<compile_context>
chip_gen: v5e
topology: v5e:2x2
jax: 0.10.0
libtpu: 0.0.40
codegen_flags: <defaults>
</compile_context>

<pallas_src>
import jax
import jax.numpy as jnp
from jax.experimental import pallas as pl
from jax.experimental.pallas import tpu as pltpu


def nnue_kernel(wf_ref, bf_ref, w1_ref, b1_ref, w2w_ref, w2b_ref, b2_ref,
                w3_ref, b3_ref, w4_ref, b4_ref, out_ref, wacc_ref, bacc_ref):
    # NOTE: the reduction (feature) axis MUST be the innermost grid axis
    # (axis 1 here) for the init/accumulate/finalize pattern below to be valid.
    k = pl.program_id(1)

    @pl.when(k == 0)
    def _():
        wacc_ref[...] = jnp.zeros_like(wacc_ref)
        bacc_ref[...] = jnp.zeros_like(bacc_ref)

    # Two accumulating bf16 MXU dots (white + black perspective) sharing the
    # same streamed w1 tile; f32 accumulation.  The kernel is HBM-bound, so the
    # extra MXU push is free compared to one stacked dot, and it avoids a
    # host-side concat of the entire feature stream.
    w1 = w1_ref[...]
    wacc_ref[...] += jnp.dot(wf_ref[...], w1, preferred_element_type=jnp.float32)
    bacc_ref[...] += jnp.dot(bf_ref[...], w1, preferred_element_type=jnp.float32)

    @pl.when(k == pl.num_programs(1) - 1)
    def _():
        b1 = b1_ref[...]
        # input_layer bias + ReLU per perspective.
        wh = jnp.maximum(wacc_ref[...] + b1, 0.0)
        bh = jnp.maximum(bacc_ref[...] + b1, 0.0)
        # hidden1 (== concat([wh, bh]) @ w2) without materializing the concat:
        # split-weight dots summed.
        x = jnp.maximum(
            jnp.dot(wh, w2w_ref[...], preferred_element_type=jnp.float32)
            + jnp.dot(bh, w2b_ref[...], preferred_element_type=jnp.float32)
            + b2_ref[...], 0.0)
        # hidden2 -> ReLU
        x = jnp.maximum(
            jnp.dot(x, w3_ref[...], preferred_element_type=jnp.float32)
            + b3_ref[...], 0.0)
        # output (no activation)
        out_ref[...] = (jnp.dot(x, w4_ref[...],
                                preferred_element_type=jnp.float32)
                        + b4_ref[...])


def _choose_tiling(feature_size,
                   tk_candidates=(2048, 1536, 1024, 512, 256, 128),
                   max_pad_frac=0.02):
    """Pick the largest reduction tile tk whose zero-pad waste is <= 2%."""
    best = None
    for tk in tk_candidates:
        f_pad = ((feature_size + tk - 1) // tk) * tk
        if (f_pad - feature_size) / feature_size <= max_pad_frac:
            return tk, f_pad
        if best is None or f_pad < best[1]:
            best = (tk, f_pad)
    return best


def prepare_params(params):
    """One-time weight preparation (hoisted out of the per-call path).

    Casts w1 to bf16, zero-pads its feature axis to the chosen tile multiple,
    and splits hidden1's weight into white/black halves.
    """
    F, H = params["w1"].shape
    tk, f_pad = _choose_tiling(F)
    w1 = params["w1"].astype(jnp.bfloat16)
    if f_pad != F:
        w1 = jnp.pad(w1, ((0, f_pad - F), (0, 0)))
    return dict(
        w1=w1,                         # (f_pad, H) bf16
        b1=params["b1"],               # (1, H) f32
        w2w=params["w2"][:H],          # (H, 32) f32  (white half)
        w2b=params["w2"][H:],          # (H, 32) f32  (black half)
        b2=params["b2"], w3=params["w3"], b3=params["b3"],
        w4=params["w4"], b4=params["b4"],
        feature_size=F, f_pad=f_pad, tk=tk, hidden_size=H,
    )


def nnue_forward(white_features, black_features, prep, *, num_batch_blocks=1):
    """NNUE forward pass as one pallas_call.

    white_features / black_features: (B, F) float32 (0/1 HalfKP activations).
    prep: output of prepare_params (call once, reuse across forwards).
    num_batch_blocks: leave at 1 on single-TensorCore chips (v5e/v6e); >1 only
      to feed a second core (v7x), since w1 is re-streamed once per block.
    """
    B, F = white_features.shape
    assert F == prep["feature_size"]
    f_pad, tk, H = prep["f_pad"], prep["tk"], prep["hidden_size"]

    assert B % 8 == 0, "batch must be a multiple of 8 (sublane alignment)"
    assert B % num_batch_blocks == 0
    bb = B // num_batch_blocks
    assert bb % 8 == 0

    # Only the feature cast (and optional zero-pad) remains per-call.
    wf = white_features.astype(jnp.bfloat16)
    bf = black_features.astype(jnp.bfloat16)
    if f_pad != F:
        pad = f_pad - F
        wf = jnp.pad(wf, ((0, 0), (0, pad)))
        bf = jnp.pad(bf, ((0, 0), (0, pad)))

    grid = (num_batch_blocks, f_pad // tk)   # reduction axis LAST (innermost)

    in_specs = [
        pl.BlockSpec((bb, tk), lambda i, k: (i, k)),   # white features (bf16)
        pl.BlockSpec((bb, tk), lambda i, k: (i, k)),   # black features (bf16)
        pl.BlockSpec((tk, H), lambda i, k: (k, 0)),    # w1 tile (bf16)
        pl.BlockSpec((1, H), lambda i, k: (0, 0)),     # b1
        pl.BlockSpec((H, 32), lambda i, k: (0, 0)),    # w2 (white half)
        pl.BlockSpec((H, 32), lambda i, k: (0, 0)),    # w2 (black half)
        pl.BlockSpec((1, 32), lambda i, k: (0, 0)),    # b2
        pl.BlockSpec((32, 32), lambda i, k: (0, 0)),   # w3
        pl.BlockSpec((1, 32), lambda i, k: (0, 0)),    # b3
        pl.BlockSpec((32, 1), lambda i, k: (0, 0)),    # w4
        pl.BlockSpec((1, 1), lambda i, k: (0, 0)),     # b4
    ]
    out_spec = pl.BlockSpec((bb, 1), lambda i, k: (i, 0))

    return pl.pallas_call(
        nnue_kernel,
        out_shape=jax.ShapeDtypeStruct((B, 1), jnp.float32),
        grid_spec=pltpu.PrefetchScalarGridSpec(
            num_scalar_prefetch=0,
            grid=grid,
            in_specs=in_specs,
            out_specs=out_spec,
            scratch_shapes=[
                pltpu.VMEM((bb, H), jnp.float32),   # white accumulator
                pltpu.VMEM((bb, H), jnp.float32),   # black accumulator
            ],
        ),
        compiler_params=pltpu.CompilerParams(
            dimension_semantics=("parallel", "arbitrary"),
            # ~5 MiB actual footprint; 32 MiB cap is within every generation's
            # default scoped VMEM (incl. v7x) and leaves ample headroom.
            vmem_limit_bytes=32 * 1024 * 1024),
    )(wf, bf, prep["w1"], prep["b1"], prep["w2w"], prep["w2b"], prep["b2"],
      prep["w3"], prep["b3"], prep["w4"], prep["b4"])


def init_params(key, feature_size, hidden_size):
    """Deterministic synthetic init (PyTorch Linear-style uniform).

    Weights stored pre-transposed as (in_features, out_features), f32.
    """
    def linear(k, fan_in, fan_out):
        kw, kb = jax.random.split(k)
        bound = 1.0 / jnp.sqrt(fan_in)
        w = jax.random.uniform(kw, (fan_in, fan_out), jnp.float32, -bound, bound)
        b = jax.random.uniform(kb, (1, fan_out), jnp.float32, -bound, bound)
        return w, b

    k1, k2, k3, k4 = jax.random.split(key, 4)
    w1, b1 = linear(k1, feature_size, hidden_size)       # input_layer
    w2, b2 = linear(k2, hidden_size * 2, 32)              # hidden1
    w3, b3 = linear(k3, 32, 32)                           # hidden2
    w4, b4 = linear(k4, 32, 1)                            # output
    return dict(w1=w1, b1=b1, w2=w2, b2=b2, w3=w3, b3=b3, w4=w4, b4=b4)


def nnue_reference(white, black, p, *, bf16_w1=False):
    """Pure-JAX reference mirroring the PyTorch forward."""
    w1 = p["w1"]
    if bf16_w1:  # mirror the kernel's bf16 storage of the input weights
        w1 = w1.astype(jnp.bfloat16).astype(jnp.float32)
    wh = jax.nn.relu(white @ w1 + p["b1"])
    bh = jax.nn.relu(black @ w1 + p["b1"])
    x = jnp.concatenate([wh, bh], axis=-1)
    x = jax.nn.relu(x @ p["w2"] + p["b2"])
    x = jax.nn.relu(x @ p["w3"] + p["b3"])
    return x @ p["w4"] + p["b4"]


if __name__ == "__main__":
    # Small shapes consistent with the module (feature_size scaled down from 41024).
    BATCH = 128          # multiple of 8; amortizes the streamed w1
    FEATURE_SIZE = 2048  # stands in for 41024 HalfKP features
    HIDDEN_SIZE = 256

    key = jax.random.PRNGKey(0)
    kp, kw, kb = jax.random.split(key, 3)

    params = init_params(kp, FEATURE_SIZE, HIDDEN_SIZE)
    prep = prepare_params(params)   # one-time: bf16 cast, pad, w2 split

    # Sparse binary feature vectors, like HalfKP one-hot activations (~2% dense).
    white_features = (jax.random.uniform(kw, (BATCH, FEATURE_SIZE)) < 0.02
                      ).astype(jnp.float32)
    black_features = (jax.random.uniform(kb, (BATCH, FEATURE_SIZE)) < 0.02
                      ).astype(jnp.float32)

    out = nnue_forward(white_features, black_features, prep)
    out = jax.block_until_ready(out)

    ref_bf16 = nnue_reference(white_features, black_features, params, bf16_w1=True)
    ref_f32 = nnue_reference(white_features, black_features, params, bf16_w1=False)

    assert out.shape == (BATCH, 1)
    assert jnp.allclose(out, ref_bf16, atol=1e-2, rtol=1e-2), \
        "mismatch vs bf16-consistent reference"
    assert jnp.allclose(out, ref_f32, atol=5e-2, rtol=5e-2), \
        "drift vs full-f32 reference too large"

    print("KERNEL_OK")
</pallas_src>

<mosaic_0001>
module attributes {stable_mosaic.version = 11 : i64} {
  func.func @nnue_kernel(%arg0: i32, %arg1: i32, %arg2: memref<128x2048xbf16, #tpu.memory_space<vmem>>, %arg3: memref<128x2048xbf16, #tpu.memory_space<vmem>>, %arg4: memref<2048x256xbf16, #tpu.memory_space<vmem>>, %arg5: memref<1x256xf32, #tpu.memory_space<vmem>>, %arg6: memref<256x32xf32, #tpu.memory_space<vmem>>, %arg7: memref<256x32xf32, #tpu.memory_space<vmem>>, %arg8: memref<1x32xf32, #tpu.memory_space<vmem>>, %arg9: memref<32x32xf32, #tpu.memory_space<vmem>>, %arg10: memref<1x32xf32, #tpu.memory_space<vmem>>, %arg11: memref<32x1xf32, #tpu.memory_space<vmem>>, %arg12: memref<1x1xf32, #tpu.memory_space<vmem>>, %arg13: memref<128x1xf32, #tpu.memory_space<vmem>>, %arg14: memref<128x256xf32, #tpu.memory_space<vmem>>, %arg15: memref<128x256xf32, #tpu.memory_space<vmem>>) attributes {dimension_semantics = [#tpu.dimension_semantics<parallel>, #tpu.dimension_semantics<arbitrary>], iteration_bounds = array<i64: 1, 1>, scalar_prefetch = 0 : i64, scratch_operands = 2 : i64, tpu.core_type = #tpu.core_type<tc>, window_params = [{transform_indices = @transform_0, window_bounds = array<i64: 128, 2048>}, {transform_indices = @transform_1, window_bounds = array<i64: 128, 2048>}, {transform_indices = @transform_2, window_bounds = array<i64: 2048, 256>}, {pipeline_mode = #tpu.pipeline_mode<synchronous>, transform_indices = @transform_3, window_bounds = array<i64: 1, 256>}, {pipeline_mode = #tpu.pipeline_mode<synchronous>, transform_indices = @transform_4, window_bounds = array<i64: 256, 32>}, {pipeline_mode = #tpu.pipeline_mode<synchronous>, transform_indices = @transform_5, window_bounds = array<i64: 256, 32>}, {pipeline_mode = #tpu.pipeline_mode<synchronous>, transform_indices = @transform_6, window_bounds = array<i64: 1, 32>}, {pipeline_mode = #tpu.pipeline_mode<synchronous>, transform_indices = @transform_7, window_bounds = array<i64: 32, 32>}, {pipeline_mode = #tpu.pipeline_mode<synchronous>, transform_indices = @transform_8, window_bounds = array<i64: 1, 32>}, {pipeline_mode = #tpu.pipeline_mode<synchronous>, transform_indices = @transform_9, window_bounds = array<i64: 32, 1>}, {pipeline_mode = #tpu.pipeline_mode<synchronous>, transform_indices = @transform_10, window_bounds = array<i64: 1, 1>}, {transform_indices = @transform_11, window_bounds = array<i64: 128, 1>}]} {
    %c0_i32 = arith.constant 0 : i32
    %0 = arith.cmpi eq, %arg1, %c0_i32 : i32
    %1 = arith.extui %0 : i1 to i32
    %c0_i32_0 = arith.constant 0 : i32
    %2 = arith.cmpi ne, %1, %c0_i32_0 : i32
    scf.if %2 {
      %cst_17 = arith.constant 0.000000e+00 : f32
      %17 = vector.broadcast %cst_17 : f32 to vector<128x256xf32>
      %c0_18 = arith.constant 0 : index
      %c0_19 = arith.constant 0 : index
      %18 = vector.load %arg14[%c0_18, %c0_19] : memref<128x256xf32, #tpu.memory_space<vmem>>, vector<128x256xf32>
      tpu.vector_store %arg14[%c0_18, %c0_19], %17 {strides = array<i32>} : memref<128x256xf32, #tpu.memory_space<vmem>>, vector<128x256xf32>,
      %cst_20 = arith.constant 0.000000e+00 : f32
      %19 = vector.broadcast %cst_20 : f32 to vector<128x256xf32>
      %c0_21 = arith.constant 0 : index
      %c0_22 = arith.constant 0 : index
      %20 = vector.load %arg15[%c0_21, %c0_22] : memref<128x256xf32, #tpu.memory_space<vmem>>, vector<128x256xf32>
      tpu.vector_store %arg15[%c0_21, %c0_22], %19 {strides = array<i32>} : memref<128x256xf32, #tpu.memory_space<vmem>>, vector<128x256xf32>,
    } else {
    }
    %c0 = arith.constant 0 : index
    %c0_1 = arith.constant 0 : index
    %3 = vector.load %arg4[%c0, %c0_1] : memref<2048x256xbf16, #tpu.memory_space<vmem>>, vector<2048x256xbf16>
    %c0_2 = arith.constant 0 : index
    %c0_3 = arith.constant 0 : index
    %4 = vector.load %arg14[%c0_2, %c0_3] : memref<128x256xf32, #tpu.memory_space<vmem>>, vector<128x256xf32>
    %c0_4 = arith.constant 0 : index
    %c0_5 = arith.constant 0 : index
    %5 = vector.load %arg2[%c0_4, %c0_5] : memref<128x2048xbf16, #tpu.memory_space<vmem>>, vector<128x2048xbf16>
    %cst = arith.constant dense<0.000000e+00> : vector<128x256xf32>
    %6 = tpu.matmul %5, %3, %cst {dimension_numbers = #tpu.dot_dimension_numbers<[1], [0], [0], [1], [0, 0, 1, 1], [], []>} : vector<128x2048xbf16>, vector<2048x256xbf16>, vector<128x256xf32> -> vector<128x256xf32>
    %7 = arith.addf %4, %6 : vector<128x256xf32>
    %c0_6 = arith.constant 0 : index
    %c0_7 = arith.constant 0 : index
    %8 = vector.load %arg14[%c0_6, %c0_7] : memref<128x256xf32, #tpu.memory_space<vmem>>, vector<128x256xf32>
    tpu.vector_store %arg14[%c0_6, %c0_7], %7 {strides = array<i32>} : memref<128x256xf32, #tpu.memory_space<vmem>>, vector<128x256xf32>,
    %c0_8 = arith.constant 0 : index
    %c0_9 = arith.constant 0 : index
    %9 = vector.load %arg15[%c0_8, %c0_9] : memref<128x256xf32, #tpu.memory_space<vmem>>, vector<128x256xf32>
    %c0_10 = arith.constant 0 : index
    %c0_11 = arith.constant 0 : index
    %10 = vector.load %arg3[%c0_10, %c0_11] : memref<128x2048xbf16, #tpu.memory_space<vmem>>, vector<128x2048xbf16>
    %cst_12 = arith.constant dense<0.000000e+00> : vector<128x256xf32>
    %11 = tpu.matmul %10, %3, %cst_12 {dimension_numbers = #tpu.dot_dimension_numbers<[1], [0], [0], [1], [0, 0, 1, 1], [], []>} : vector<128x2048xbf16>, vector<2048x256xbf16>, vector<128x256xf32> -> vector<128x256xf32>
    %12 = arith.addf %9, %11 : vector<128x256xf32>
    %c0_13 = arith.constant 0 : index
    %c0_14 = arith.constant 0 : index
    %13 = vector.load %arg15[%c0_13, %c0_14] : memref<128x256xf32, #tpu.memory_space<vmem>>, vector<128x256xf32>
    tpu.vector_store %arg15[%c0_13, %c0_14], %12 {strides = array<i32>} : memref<128x256xf32, #tpu.memory_space<vmem>>, vector<128x256xf32>,
    %c0_i32_15 = arith.constant 0 : i32
    %14 = arith.cmpi eq, %arg1, %c0_i32_15 : i32
    %15 = arith.extui %14 : i1 to i32
    %c0_i32_16 = arith.constant 0 : i32
    %16 = arith.cmpi ne, %15, %c0_i32_16 : i32
    scf.if %16 {
      %c0_17 = arith.constant 0 : index
      %c0_18 = arith.constant 0 : index
      %17 = vector.load %arg5[%c0_17, %c0_18] : memref<1x256xf32, #tpu.memory_space<vmem>>, vector<1x256xf32>
      %c0_19 = arith.constant 0 : index
      %c0_20 = arith.constant 0 : index
      %18 = vector.load %arg14[%c0_19, %c0_20] : memref<128x256xf32, #tpu.memory_space<vmem>>, vector<128x256xf32>
      %19 = vector.broadcast %17 : vector<1x256xf32> to vector<128x256xf32>
      %20 = arith.addf %18, %19 : vector<128x256xf32>
      %cst_21 = arith.constant 0.000000e+00 : f32
      %21 = vector.broadcast %cst_21 : f32 to vector<128x256xf32>
      %22 = arith.maximumf %20, %21 : vector<128x256xf32>
      %c0_22 = arith.constant 0 : index
      %c0_23 = arith.constant 0 : index
      %23 = vector.load %arg15[%c0_22, %c0_23] : memref<128x256xf32, #tpu.memory_space<vmem>>, vector<128x256xf32>
      %24 = vector.broadcast %17 : vector<1x256xf32> to vector<128x256xf32>
      %25 = arith.addf %23, %24 : vector<128x256xf32>
      %cst_24 = arith.constant 0.000000e+00 : f32
      %26 = vector.broadcast %cst_24 : f32 to vector<128x256xf32>
      %27 = arith.maximumf %25, %26 : vector<128x256xf32>
      %c0_25 = arith.constant 0 : index
      %c0_26 = arith.constant 0 : index
      %28 = vector.load %arg6[%c0_25, %c0_26] : memref<256x32xf32, #tpu.memory_space<vmem>>, vector<256x32xf32>
      %cst_27 = arith.constant dense<0.000000e+00> : vector<128x32xf32>
      %29 = tpu.matmul %22, %28, %cst_27 {dimension_numbers = #tpu.dot_dimension_numbers<[1], [0], [0], [1], [0, 0, 1, 1], [], []>} : vector<128x256xf32>, vector<256x32xf32>, vector<128x32xf32> -> vector<128x32xf32>
      %c0_28 = arith.constant 0 : index
      %c0_29 = arith.constant 0 : index
      %30 = vector.load %arg7[%c0_28, %c0_29] : memref<256x32xf32, #tpu.memory_space<vmem>>, vector<256x32xf32>
      %cst_30 = arith.constant dense<0.000000e+00> : vector<128x32xf32>
      %31 = tpu.matmul %27, %30, %cst_30 {dimension_numbers = #tpu.dot_dimension_numbers<[1], [0], [0], [1], [0, 0, 1, 1], [], []>} : vector<128x256xf32>, vector<256x32xf32>, vector<128x32xf32> -> vector<128x32xf32>
      %32 = arith.addf %29, %31 : vector<128x32xf32>
      %c0_31 = arith.constant 0 : index
      %c0_32 = arith.constant 0 : index
      %33 = vector.load %arg8[%c0_31, %c0_32] : memref<1x32xf32, #tpu.memory_space<vmem>>, vector<1x32xf32>
      %34 = vector.broadcast %33 : vector<1x32xf32> to vector<128x32xf32>
      %35 = arith.addf %32, %34 : vector<128x32xf32>
      %cst_33 = arith.constant 0.000000e+00 : f32
      %36 = vector.broadcast %cst_33 : f32 to vector<128x32xf32>
      %37 = arith.maximumf %35, %36 : vector<128x32xf32>
      %c0_34 = arith.constant 0 : index
      %c0_35 = arith.constant 0 : index
      %38 = vector.load %arg9[%c0_34, %c0_35] : memref<32x32xf32, #tpu.memory_space<vmem>>, vector<32x32xf32>
      %cst_36 = arith.constant dense<0.000000e+00> : vector<128x32xf32>
      %39 = tpu.matmul %37, %38, %cst_36 {dimension_numbers = #tpu.dot_dimension_numbers<[1], [0], [0], [1], [0, 0, 1, 1], [], []>} : vector<128x32xf32>, vector<32x32xf32>, vector<128x32xf32> -> vector<128x32xf32>
      %c0_37 = arith.constant 0 : index
      %c0_38 = arith.constant 0 : index
      %40 = vector.load %arg10[%c0_37, %c0_38] : memref<1x32xf32, #tpu.memory_space<vmem>>, vector<1x32xf32>
      %41 = vector.broadcast %40 : vector<1x32xf32> to vector<128x32xf32>
      %42 = arith.addf %39, %41 : vector<128x32xf32>
      %cst_39 = arith.constant 0.000000e+00 : f32
      %43 = vector.broadcast %cst_39 : f32 to vector<128x32xf32>
      %44 = arith.maximumf %42, %43 : vector<128x32xf32>
      %c0_40 = arith.constant 0 : index
      %c0_41 = arith.constant 0 : index
      %45 = vector.load %arg11[%c0_40, %c0_41] : memref<32x1xf32, #tpu.memory_space<vmem>>, vector<32x1xf32>
      %cst_42 = arith.constant dense<0.000000e+00> : vector<128x1xf32>
      %46 = tpu.matmul %44, %45, %cst_42 {dimension_numbers = #tpu.dot_dimension_numbers<[1], [0], [0], [1], [0, 0, 1, 1], [], []>} : vector<128x32xf32>, vector<32x1xf32>, vector<128x1xf32> -> vector<128x1xf32>
      %c0_43 = arith.constant 0 : index
      %c0_44 = arith.constant 0 : index
      %47 = vector.load %arg12[%c0_43, %c0_44] : memref<1x1xf32, #tpu.memory_space<vmem>>, vector<1x1xf32>
      %48 = vector.broadcast %47 : vector<1x1xf32> to vector<128x1xf32>
      %49 = arith.addf %46, %48 : vector<128x1xf32>
      %c0_45 = arith.constant 0 : index
      %c0_46 = arith.constant 0 : index
      %50 = vector.load %arg13[%c0_45, %c0_46] : memref<128x1xf32, #tpu.memory_space<vmem>>, vector<128x1xf32>
      tpu.vector_store %arg13[%c0_45, %c0_46], %49 {strides = array<i32>} : memref<128x1xf32, #tpu.memory_space<vmem>>, vector<128x1xf32>,
    } else {
    }
    return
  }
  func.func @transform_0(%arg0: i32, %arg1: i32) -> (i32, i32) {
    %c0_i32 = arith.constant 0 : i32
    return %arg0, %arg1 : i32, i32
  }
  func.func @transform_1(%arg0: i32, %arg1: i32) -> (i32, i32) {
    %c0_i32 = arith.constant 0 : i32
    return %arg0, %arg1 : i32, i32
  }
  func.func @transform_2(%arg0: i32, %arg1: i32) -> (i32, i32) {
    %c0_i32 = arith.constant 0 : i32
    %c0_i32_0 = arith.constant 0 : i32
    return %arg1, %c0_i32 : i32, i32
  }
  func.func @transform_3(%arg0: i32, %arg1: i32) -> (i32, i32) {
    %c0_i32 = arith.constant 0 : i32
    %c0_i32_0 = arith.constant 0 : i32
    %c0_i32_1 = arith.constant 0 : i32
    return %c0_i32, %c0_i32_0 : i32, i32
  }
  func.func @transform_4(%arg0: i32, %arg1: i32) -> (i32, i32) {
    %c0_i32 = arith.constant 0 : i32
    %c0_i32_0 = arith.constant 0 : i32
    %c0_i32_1 = arith.constant 0 : i32
    return %c0_i32, %c0_i32_0 : i32, i32
  }
  func.func @transform_5(%arg0: i32, %arg1: i32) -> (i32, i32) {
    %c0_i32 = arith.constant 0 : i32
    %c0_i32_0 = arith.constant 0 : i32
    %c0_i32_1 = arith.constant 0 : i32
    return %c0_i32, %c0_i32_0 : i32, i32
  }
  func.func @transform_6(%arg0: i32, %arg1: i32) -> (i32, i32) {
    %c0_i32 = arith.constant 0 : i32
    %c0_i32_0 = arith.constant 0 : i32
    %c0_i32_1 = arith.constant 0 : i32
    return %c0_i32, %c0_i32_0 : i32, i32
  }
  func.func @transform_7(%arg0: i32, %arg1: i32) -> (i32, i32) {
    %c0_i32 = arith.constant 0 : i32
    %c0_i32_0 = arith.constant 0 : i32
    %c0_i32_1 = arith.constant 0 : i32
    return %c0_i32, %c0_i32_0 : i32, i32
  }
  func.func @transform_8(%arg0: i32, %arg1: i32) -> (i32, i32) {
    %c0_i32 = arith.constant 0 : i32
    %c0_i32_0 = arith.constant 0 : i32
    %c0_i32_1 = arith.constant 0 : i32
    return %c0_i32, %c0_i32_0 : i32, i32
  }
  func.func @transform_9(%arg0: i32, %arg1: i32) -> (i32, i32) {
    %c0_i32 = arith.constant 0 : i32
    %c0_i32_0 = arith.constant 0 : i32
    %c0_i32_1 = arith.constant 0 : i32
    return %c0_i32, %c0_i32_0 : i32, i32
  }
  func.func @transform_10(%arg0: i32, %arg1: i32) -> (i32, i32) {
    %c0_i32 = arith.constant 0 : i32
    %c0_i32_0 = arith.constant 0 : i32
    %c0_i32_1 = arith.constant 0 : i32
    return %c0_i32, %c0_i32_0 : i32, i32
  }
  func.func @transform_11(%arg0: i32, %arg1: i32) -> (i32, i32) {
    %c0_i32 = arith.constant 0 : i32
    %c0_i32_0 = arith.constant 0 : i32
    return %arg0, %c0_i32 : i32, i32
  }
}

</mosaic_0001>

<bundles_post_ra>
// kernel: tpu_custom_call.1
= control target key start
LH: loop header
LB: loop body
LE: loop exit
PB: predicated region body
PF: predicated region fallthrough
CT: control target
= control target key end

     0   :  { %s13612_s0 = inlined_call_operand.hbm [shape: bf16[128,2048], index: 0, kind: input, shape index: {}]   ;;  %s13613_s1 = inlined_call_operand.hbm [shape: bf16[128,2048], index: 1, kind: input, shape index: {}]   ;;  %s13614_s2 = inlined_call_operand.hbm [shape: bf16[2048,256], index: 2, kind: input, shape index: {}]   ;;  %s13615_s3 = inlined_call_operand.vmem [shape: f32[1,256], index: 3, kind: input, shape index: {}]   ;;  %s13616_s4 = inlined_call_operand.vmem [shape: f32[256,32], index: 4, kind: input, shape index: {}]   ;;  %s13617_s5 = inlined_call_operand.vmem [shape: f32[256,32], index: 5, kind: input, shape index: {}]   ;;  %s13618_s6 = inlined_call_operand.vmem [shape: f32[1,32], index: 6, kind: input, shape index: {}]   ;;  %s13619_s7 = inlined_call_operand.vmem [shape: f32[32,32], index: 7, kind: input, shape index: {}]   ;;  %s13620_s8 = inlined_call_operand.vmem [shape: f32[1,32], index: 8, kind: input, shape index: {}]   ;;  %s13621_s9 = inlined_call_operand.vmem [shape: f32[32,1], index: 9, kind: input, shape index: {}]   ;;  %s13622_s10 = inlined_call_operand.<no memory space> [shape: f32[1,1], index: 10, kind: input, shape index: {}]   ;;  %s13623_s11 = inlined_call_operand.vmem [shape: f32[128,1], index: 11, kind: output, shape index: {}]  }
   0x1   :  { %v16_v0 = vstv %s13622_s10 }
   0x2   :  { %17 = vst [vmem:[#allocation4] sm:$0x1] %v16_v0 }
   0x3   :  { %18 = vsyncpa [#allocation6], 0 }
   0x4   :  { %19 = vsyncpa [#allocation8], 0  ;;  %s37_s21 = sshll.u32 %s13613_s1, 4  ;;  %s10092_s22 = smov [#allocation7]   ;;  %s38_s21 = int_to_ptr.hbm [resolvable:$true] %s37_s21 }
   0x5   :  { %s39_s23 = sshll.u32 %s10092_s22, 4  ;;  %s24_s26 = sshll.u32 %s13612_s0, 4  ;;  %s40_s23 = int_to_ptr.vmem [resolvable:$true] %s39_s23  ;;  %s25_s26 = int_to_ptr.hbm [resolvable:$true] %s24_s26 }
   0x6   :  { %s10093_s27 = smov 1024   ;;  %s10094_s28 = smov 64  }
   0x7   :  { %45 = dma.hbm_to_vmem [thread:$0]  %s38_s21, 16384, %s40_s23, [#allocation8], %s10093_s27, %s10093_s27, %s10094_s28  }
   0x8   :  { %s10095_s10 = smov [#allocation5]   ;;  %s50_s13 = sshll.u32 %s13614_s2, 4  ;;  %s51_s13 = int_to_ptr.hbm [resolvable:$true] %s50_s13 }
   0x9   :  { %s26_s29 = sshll.u32 %s10095_s10, 4  ;;  %s10096_s1 = smov [#allocation9]   ;;  %s27_s29 = int_to_ptr.vmem [resolvable:$true] %s26_s29 }
   0xa   :  { %32 = dma.hbm_to_vmem [thread:$0]  %s25_s26, 16384, %s27_s29, [#allocation6], %s10093_s27, %s10093_s27, %s10094_s28  }
   0xb   :  { %s52_s14 = sshll.u32 %s10096_s1, 4  ;;  %s10097_s15 = smov 128   ;;  %s53_s14 = int_to_ptr.vmem [resolvable:$true] %s52_s14 }
   0xc   :  { %s10098_s16 = smov 8  }
   0xd   :  { %58 = dma.hbm_to_vmem [thread:$0]  %s51_s13, 32768, %s53_s14, [#allocation8], %s10097_s15, %s10097_s15, %s10098_s16  }
   0xe   :  { %10088 = dma.done.wait [#allocation6], 16384  }
   0xf   :  { %10089 = vsyncadd [#allocation6], 4294950912 }
  0x10   :  { %10090 = dma.done.wait [#allocation8], 49152  }
  0x11   :  { %10091 = vsyncadd [#allocation8], 4294918144  ;;  %v7968_v1 = vld [vmem:[#allocation9 + $0x70] sm:$0xf]  ;;  %v9493_v2 = vld [vmem:[#allocation9 + $0x74] sm:$0xf0] }
  0x12   :  { %v8032_v3 = vld [vmem:[#allocation9 + $0xf0] sm:$0xf]  ;;  %v10171_v4 = vor.u32 %v9493_v2, %v7968_v1  ;;  %v9509_v5 = vld [vmem:[#allocation9 + $0xf4] sm:$0xf0]  ;;  %v7960_v6 = vld [vmem:[#allocation9 + $0x60] sm:$0xf] }
  0x13   :  { %v9491_v7 = vld [vmem:[#allocation9 + $0x64] sm:$0xf0]  ;;  %v10173_v8 = vor.u32 %v9509_v5, %v8032_v3  ;;  %v8024_v9 = vld [vmem:[#allocation9 + $0xe0] sm:$0xf]  ;;  %v7952_v13 = vld [vmem:[#allocation9 + $0x50] sm:$0xf] }
  0x14   :  { %14052 = vst [vmem:[#allocation12_spill] sm:$0xff] %v10171_v4  ;;  %v9507_v10 = vld [vmem:[#allocation9 + $0xe4] sm:$0xf0]  ;;  %2491 = vmatpush.bf16.msra.mxu0 %v10171_v4  ;;  %9990 = vmatpush.bf16.msra.mxu2 %v10171_v4  ;;  %v10177_v11 = vor.u32 %v9491_v7, %v7960_v6  ;;  %v9489_v14 = vld [vmem:[#allocation9 + $0x54] sm:$0xf0]  ;;  %vm7124_vm0 = vcmask 261120  }
  0x15   :  { %14053 = vst [vmem:[#allocation13_spill] sm:$0xff] %v10173_v8  ;;  %9998 = vmatpush.bf16.msra.mxu3 %v10173_v8  ;;  %v10180_v12 = vor.u32 %v9507_v10, %v8024_v9  ;;  %2540 = vmatpush.bf16.msra.mxu1 %v10173_v8  ;;  %v8016_v15 = vld [vmem:[#allocation9 + $0xd0] sm:$0xf]  ;;  %v9505_v16 = vld [vmem:[#allocation9 + $0xd4] sm:$0xf0]  ;;  %v10185_v17 = vor.u32 %v9489_v14, %v7952_v13  ;;  %vm7375_vm1 = vcmask 7168  }
  0x16   :  { %14054 = vst [vmem:[#allocation14_spill] sm:$0xff] %v10177_v11  ;;  %v10188_v18 = vor.u32 %v9505_v16, %v8016_v15  ;;  %v7944_v19 = vld [vmem:[#allocation9 + $0x40] sm:$0xf]  ;;  %v9487_v20 = vld [vmem:[#allocation9 + $0x44] sm:$0xf0] }
  0x17   :  { %14055 = vst [vmem:[#allocation15_spill] sm:$0xff] %v10180_v12  ;;  %v8008_v21 = vld [vmem:[#allocation9 + $0xc0] sm:$0xf]  ;;  %v9503_v22 = vld [vmem:[#allocation9 + $0xc4] sm:$0xf0]  ;;  %v10193_v23 = vor.u32 %v9487_v20, %v7944_v19 }
  0x18   :  { %2492 = vmatpush.bf16.msra.mxu0 %v10177_v11  ;;  %9991 = vmatpush.bf16.msra.mxu2 %v10177_v11  ;;  %14056 = vst [vmem:[#allocation16_spill] sm:$0xff] %v10185_v17  ;;  %v10196_v24 = vor.u32 %v9503_v22, %v8008_v21  ;;  %v7936_v25 = vld [vmem:[#allocation9 + $0x30] sm:$0xf]  ;;  %v9485_v26 = vld [vmem:[#allocation9 + $0x34] sm:$0xf0] }
  0x19   :  { %9999 = vmatpush.bf16.msra.mxu3 %v10180_v12  ;;  %14057 = vst [vmem:[#allocation17_spill] sm:$0xff] %v10188_v18  ;;  %2541 = vmatpush.bf16.msra.mxu1 %v10180_v12  ;;  %v8000_v27 = vld [vmem:[#allocation9 + $0xb0] sm:$0xf]  ;;  %v9501_v28 = vld [vmem:[#allocation9 + $0xb4] sm:$0xf0]  ;;  %v10201_v29 = vor.u32 %v9485_v26, %v7936_v25 }
  0x1a   :  { %14058 = vst [vmem:[#allocation18_spill] sm:$0xff] %v10193_v23  ;;  %v10204_v30 = vor.u32 %v9501_v28, %v8000_v27  ;;  %v7928_v31 = vld [vmem:[#allocation9 + $0x20] sm:$0xf]  ;;  %v9483_v32 = vld [vmem:[#allocation9 + $0x24] sm:$0xf0] }
  0x1b   :  { %14059 = vst [vmem:[#allocation19_spill] sm:$0xff] %v10196_v24  ;;  %v7992_v33 = vld [vmem:[#allocation9 + $0xa0] sm:$0xf]  ;;  %v9499_v34 = vld [vmem:[#allocation9 + $0xa4] sm:$0xf0]  ;;  %v10209_v35 = vor.u32 %v9483_v32, %v7928_v31 }
  0x1c   :  { %2493 = vmatpush.bf16.msra.mxu0 %v10185_v17  ;;  %9992 = vmatpush.bf16.msra.mxu2 %v10185_v17  ;;  %14060 = vst [vmem:[#allocation20_spill] sm:$0xff] %v10201_v29  ;;  %v10212_v36 = vor.u32 %v9499_v34, %v7992_v33  ;;  %v7920_v37 = vld [vmem:[#allocation9 + $0x10] sm:$0xf]  ;;  %v9481_v38 = vld [vmem:[#allocation9 + $0x14] sm:$0xf0] }
  0x1d   :  { %10000 = vmatpush.bf16.msra.mxu3 %v10188_v18  ;;  %2542 = vmatpush.bf16.msra.mxu1 %v10188_v18  ;;  %14061 = vst [vmem:[#allocation21_spill] sm:$0xff] %v10204_v30  ;;  %v7984_v39 = vld [vmem:[#allocation9 + $0x90] sm:$0xf]  ;;  %v9497_v40 = vld [vmem:[#allocation9 + $0x94] sm:$0xf0]  ;;  %v10217_v41 = vor.u32 %v9481_v38, %v7920_v37 }
  0x1e   :  { %14062 = vst [vmem:[#allocation22_spill] sm:$0xff] %v10209_v35  ;;  %v10220_v42 = vor.u32 %v9497_v40, %v7984_v39  ;;  %v7912_v43 = vld [vmem:[#allocation9] sm:$0xf]  ;;  %v9479_v44 = vld [vmem:[#allocation9 + $0x4] sm:$0xf0] }
  0x1f   :  { %14063 = vst [vmem:[#allocation23_spill] sm:$0xff] %v10212_v36  ;;  %v7976_v45 = vld [vmem:[#allocation9 + $0x80] sm:$0xf]  ;;  %v9495_v46 = vld [vmem:[#allocation9 + $0x84] sm:$0xf0]  ;;  %v10225_v52 = vor.u32 %v9479_v44, %v7912_v43 }
  0x20   :  { %2494 = vmatpush.bf16.msra.mxu0 %v10193_v23  ;;  %9993 = vmatpush.bf16.msra.mxu2 %v10193_v23  ;;  %14064 = vst [vmem:[#allocation24_spill] sm:$0xff] %v10217_v41  ;;  %v8096_v47 = vld [vmem:[#allocation9 + $0x170] sm:$0xf]  ;;  %v9525_v48 = vld [vmem:[#allocation9 + $0x174] sm:$0xf0]  ;;  %v10228_v56 = vor.u32 %v9495_v46, %v7976_v45 }
  0x21   :  { %10001 = vmatpush.bf16.msra.mxu3 %v10196_v24  ;;  %2543 = vmatpush.bf16.msra.mxu1 %v10196_v24  ;;  %14065 = vst [vmem:[#allocation25_spill] sm:$0xff] %v10220_v42  ;;  %v7400_v49 = vld [vmem:[#allocation5] sm:$0xf]  ;;  %v8160_v50 = vld [vmem:[#allocation9 + $0x1f0] sm:$0xf]  ;;  %v10230_v59 = vor.u32 %v9525_v48, %v8096_v47 }
  0x22   :  { %v9541_v51 = vld [vmem:[#allocation9 + $0x1f4] sm:$0xf0]  ;;  %14066 = vst [vmem:[#allocation26_spill] sm:$0xff] %v10225_v52  ;;  %v9742_v53 = vld [vmem:[#allocation5 + $0x3c] sm:$0xf0] }
  0x23   :  { %v7656_v54 = vld [vmem:[#allocation5 + $0x200] sm:$0xf]  ;;  %14067 = vst [vmem:[#allocation27_spill] sm:$0xff] %v10228_v56  ;;  %v9798_v57 = vld [vmem:[#allocation5 + $0x204] sm:$0xf]  ;;  %v10233_v61 = vor.u32 %v9541_v51, %v8160_v50  ;;  %v10235_v1 = vor.u32 %v9742_v53, %v7400_v49 }
  0x24   :  { %2495 = vmatpush.bf16.msra.mxu0 %v10201_v29  ;;  %9994 = vmatpush.bf16.msra.mxu2 %v10201_v29  ;;  %v9806_v55 = vld [vmem:[#allocation5 + $0x23c] sm:$0xf0]  ;;  %v7658_v58 = vld [vmem:[#allocation5 + $0x240] sm:$0xf0]  ;;  %14068 = vst [vmem:[#allocation28_spill] sm:$0xff] %v10230_v59 }
  0x25   :  { %10002 = vmatpush.bf16.msra.mxu3 %v10204_v30  ;;  %2544 = vmatpush.bf16.msra.mxu1 %v10204_v30  ;;  %v8088_v60 = vld [vmem:[#allocation9 + $0x160] sm:$0xf]  ;;  %14069 = vst [vmem:[#allocation29_spill] sm:$0xff] %v10233_v61  ;;  %v9523_v62 = vld [vmem:[#allocation9 + $0x164] sm:$0xf0]  ;;  %v10237_v2 = vor.u32 %v9806_v55, %v7656_v54  ;;  %v10241_v6 = vor.u32 %v9798_v57, %v7658_v58 }
  0x26   :  { %v9734_v63 = vld [vmem:[#allocation5 + $0x4] sm:$0xf]  ;;  %v8152_v3 = vld [vmem:[#allocation9 + $0x1e0] sm:$0xf]  ;;  %v9539_v5 = vld [vmem:[#allocation9 + $0x1e4] sm:$0xf0]  ;;  %v10245_v7 = vor.u32 %v9523_v62, %v8088_v60 }
  0x27   :  { %v7402_v0 = vld [vmem:[#allocation5 + $0x40] sm:$0xf0]  ;;  %v8080_v10 = vld [vmem:[#allocation9 + $0x150] sm:$0xf]  ;;  %v10251_v13 = vor.u32 %v9539_v5, %v8152_v3  ;;  %v9521_v14 = vld [vmem:[#allocation9 + $0x154] sm:$0xf0] }
  0x28   :  { %2496 = vmatpush.bf16.msra.mxu0 %v10209_v35  ;;  %9995 = vmatpush.bf16.msra.mxu2 %v10209_v35  ;;  %14070 = vst [vmem:[#allocation30_spill] sm:$0xff] %v10245_v7  ;;  %v10247_v9 = vor.u32 %v9734_v63, %v7402_v0  ;;  %v8224_v15 = vld [vmem:[#allocation9 + $0x270] sm:$0xf]  ;;  %v9557_v16 = vld [vmem:[#allocation9 + $0x274] sm:$0xf0]  ;;  %v10260_v22 = vor.u32 %v9521_v14, %v8080_v10 }
  0x29   :  { %10003 = vmatpush.bf16.msra.mxu3 %v10212_v36  ;;  %2545 = vmatpush.bf16.msra.mxu1 %v10212_v36  ;;  %14071 = vst [vmem:[#allocation31_spill] sm:$0xff] %v10251_v13  ;;  %v8144_v19 = vld [vmem:[#allocation9 + $0x1d0] sm:$0xf]  ;;  %v9537_v20 = vld [vmem:[#allocation9 + $0x1d4] sm:$0xf0]  ;;  %v10255_v21 = vor.u32 %v9557_v16, %v8224_v15 }
  0x2a   :  { %14073 = vst [vmem:[#allocation33_spill] sm:$0xff] %v10260_v22  ;;  %v8216_v25 = vld [vmem:[#allocation9 + $0x260] sm:$0xf]  ;;  %v9555_v26 = vld [vmem:[#allocation9 + $0x264] sm:$0xf0]  ;;  %v10263_v27 = vor.u32 %v9537_v20, %v8144_v19 }
  0x2b   :  { %14072 = vst [vmem:[#allocation32_spill] sm:$0xff] %v10255_v21  ;;  %v8072_v28 = vld [vmem:[#allocation9 + $0x140] sm:$0xf]  ;;  %v9519_v31 = vld [vmem:[#allocation9 + $0x144] sm:$0xf0]  ;;  %v10266_v33 = vor.u32 %v9555_v26, %v8216_v25 }
  0x2c   :  { %2497 = vmatpush.bf16.msra.mxu0 %v10217_v41  ;;  %9996 = vmatpush.bf16.msra.mxu2 %v10217_v41  ;;  %14074 = vst [vmem:[#allocation34_spill] sm:$0xff] %v10263_v27  ;;  %v8136_v32 = vld [vmem:[#allocation9 + $0x1c0] sm:$0xf]  ;;  %v9535_v34 = vld [vmem:[#allocation9 + $0x1c4] sm:$0xf0]  ;;  %v10269_v39 = vor.u32 %v9519_v31, %v8072_v28 }
  0x2d   :  { %10004 = vmatpush.bf16.msra.mxu3 %v10220_v42  ;;  %2546 = vmatpush.bf16.msra.mxu1 %v10220_v42  ;;  %14075 = vst [vmem:[#allocation35_spill] sm:$0xff] %v10266_v33  ;;  %v8208_v37 = vld [vmem:[#allocation9 + $0x250] sm:$0xf]  ;;  %v9553_v38 = vld [vmem:[#allocation9 + $0x254] sm:$0xf0]  ;;  %v10272_v45 = vor.u32 %v9535_v34, %v8136_v32 }
  0x2e   :  { %14076 = vst [vmem:[#allocation36_spill] sm:$0xff] %v10269_v39  ;;  %v8288_v40 = vld [vmem:[#allocation9 + $0x2f0] sm:$0xf]  ;;  %v9573_v43 = vld [vmem:[#allocation9 + $0x2f4] sm:$0xf0]  ;;  %v10275_v49 = vor.u32 %v9553_v38, %v8208_v37 }
  0x2f   :  { %v7464_v44 = vld [vmem:[#allocation5 + $0x80] sm:$0xf]  ;;  %14077 = vst [vmem:[#allocation37_spill] sm:$0xff] %v10272_v45  ;;  %v8064_v46 = vld [vmem:[#allocation9 + $0x130] sm:$0xf]  ;;  %v10277_v50 = vor.u32 %v9573_v43, %v8288_v40 }
  0x30   :  { %2498 = vmatpush.bf16.msra.mxu0 %v10225_v52  ;;  %9997 = vmatpush.bf16.msra.mxu2 %v10225_v52  ;;  %v9517_v47 = vld [vmem:[#allocation9 + $0x134] sm:$0xf0]  ;;  %v8128_v48 = vld [vmem:[#allocation9 + $0x1b0] sm:$0xf]  ;;  %14078 = vst [vmem:[#allocation38_spill] sm:$0xff] %v10275_v49 }
  0x31   :  { %10005 = vmatpush.bf16.msra.mxu3 %v10228_v56  ;;  %2547 = vmatpush.bf16.msra.mxu1 %v10228_v56  ;;  %14079 = vst [vmem:[#allocation39_spill] sm:$0xff] %v10277_v50  ;;  %v9533_v51 = vld [vmem:[#allocation9 + $0x1b4] sm:$0xf0]  ;;  %v8200_v53 = vld [vmem:[#allocation9 + $0x240] sm:$0xf]  ;;  %v10281_v0 = vor.u32 %v9517_v47, %v8064_v46 }
  0x32   :  { %v9551_v54 = vld [vmem:[#allocation9 + $0x244] sm:$0xf0]  ;;  %v9758_v55 = vld [vmem:[#allocation5 + $0xbc] sm:$0xf0]  ;;  %v9814_v60 = vld [vmem:[#allocation5 + $0x284] sm:$0xf]  ;;  %v10284_v5 = vor.u32 %v9533_v51, %v8128_v48 }
  0x33   :  { %2499 = vmatmul.bf16.vlgmr.msra.gmra.mxu0 %v10235_v1  ;;  %2519 = vmatmul.bf16.vlgmr.msra.gmra.mxu2 %v10237_v2  ;;  %v7720_v57 = vld [vmem:[#allocation5 + $0x280] sm:$0xf]  ;;  %v7722_v62 = vld [vmem:[#allocation5 + $0x2c0] sm:$0xf0]  ;;  %14080 = vst [vmem:[#allocation40_spill] sm:$0xff] %v10281_v0  ;;  %v10287_v15 = vor.u32 %v9551_v54, %v8200_v53  ;;  %v10289_v16 = vor.u32 %v9758_v55, %v7464_v44 }
  0x34   :  { %2589 = vmatpush.bf16.msrb.mxu2 %v10230_v59  ;;  %2568 = vmatmul.bf16.vlgmr.msra.gmra.mxu3 %v10241_v6  ;;  %v9822_v58 = vld [vmem:[#allocation5 + $0x2bc] sm:$0xf0]  ;;  %v9750_v63 = vld [vmem:[#allocation5 + $0x84] sm:$0xf]  ;;  %14081 = vst [vmem:[#allocation41_spill] sm:$0xff] %v10284_v5  ;;  %v10293_v26 = vor.u32 %v9814_v60, %v7722_v62 }
  0x35   :  { %2638 = vmatpush.bf16.msrb.mxu3 %v10233_v61  ;;  %2548 = vmatmul.bf16.vlgmr.msra.gmra.mxu1 %v10247_v9  ;;  %v7466_v3 = vld [vmem:[#allocation5 + $0xc0] sm:$0xf0]  ;;  %v8056_v10 = vld [vmem:[#allocation9 + $0x120] sm:$0xf]  ;;  %v9515_v14 = vld [vmem:[#allocation9 + $0x124] sm:$0xf0]  ;;  %v10291_v19 = vor.u32 %v9822_v58, %v7720_v57 }
  0x36   :  { %2687 = vmatpush.bf16.msrb.mxu0 %v10255_v21  ;;  %2736 = vmatpush.bf16.msrb.mxu1 %v10277_v50  ;;  %14082 = vst [vmem:[#allocation42_spill] sm:$0xff] %v10287_v15  ;;  %v8120_v20 = vld [vmem:[#allocation9 + $0x1a0] sm:$0xf]  ;;  %v9531_v25 = vld [vmem:[#allocation9 + $0x1a4] sm:$0xf0]  ;;  %v10295_v28 = vor.u32 %v9750_v63, %v7466_v3  ;;  %v10298_v31 = vor.u32 %v9515_v14, %v8056_v10 }
  0x37   :  { %v10301_v32 = vor.u32 %v9531_v25, %v8120_v20  ;;  %v8192_v34 = vld [vmem:[#allocation9 + $0x230] sm:$0xf]  ;;  %v9549_v37 = vld [vmem:[#allocation9 + $0x234] sm:$0xf0]  ;;  %v8280_v40 = vld [vmem:[#allocation9 + $0x2e0] sm:$0xf] }
  0x38   :  { %2590 = vmatpush.bf16.msrb.mxu2 %v10245_v7  ;;  %14083 = vst [vmem:[#allocation43_spill] sm:$0xff] %v10298_v31  ;;  %v10306_v38 = vor.u32 %v9549_v37, %v8192_v34  ;;  %v9571_v43 = vld [vmem:[#allocation9 + $0x2e4] sm:$0xf0]  ;;  %v8048_v44 = vld [vmem:[#allocation9 + $0x110] sm:$0xf] }
  0x39   :  { %2639 = vmatpush.bf16.msrb.mxu3 %v10251_v13  ;;  %14084 = vst [vmem:[#allocation44_spill] sm:$0xff] %v10301_v32  ;;  %v9513_v46 = vld [vmem:[#allocation9 + $0x114] sm:$0xf0]  ;;  %v10309_v47 = vor.u32 %v9571_v43, %v8280_v40  ;;  %v8112_v48 = vld [vmem:[#allocation9 + $0x190] sm:$0xf] }
  0x3a   :  { %2688 = vmatpush.bf16.msrb.mxu0 %v10266_v33  ;;  %14085 = vst [vmem:[#allocation45_spill] sm:$0xff] %v10306_v38  ;;  %v10313_v51 = vor.u32 %v9513_v46, %v8048_v44  ;;  %v9529_v53 = vld [vmem:[#allocation9 + $0x194] sm:$0xf0]  ;;  %v8184_v54 = vld [vmem:[#allocation9 + $0x220] sm:$0xf] }
  0x3b   :  { %14086 = vst [vmem:[#allocation46_spill] sm:$0xff] %v10309_v47  ;;  %v9547_v55 = vld [vmem:[#allocation9 + $0x224] sm:$0xf0]  ;;  %v10317_v57 = vor.u32 %v9529_v53, %v8112_v48  ;;  %v8272_v60 = vld [vmem:[#allocation9 + $0x2d0] sm:$0xf]  ;;  %2737 = vmatpush.bf16.msrb.mxu1 %v10309_v47 }
  0x3c   :  { %2591 = vmatpush.bf16.msrb.mxu2 %v10260_v22  ;;  %14087 = vst [vmem:[#allocation47_spill] sm:$0xff] %v10313_v51  ;;  %v10319_v58 = vor.u32 %v9547_v55, %v8184_v54  ;;  %v9569_v62 = vld [vmem:[#allocation9 + $0x2d4] sm:$0xf0]  ;;  %v8040_v63 = vld [vmem:[#allocation9 + $0x100] sm:$0xf] }
  0x3d   :  { %2640 = vmatpush.bf16.msrb.mxu3 %v10263_v27  ;;  %14088 = vst [vmem:[#allocation48_spill] sm:$0xff] %v10317_v57  ;;  %v10322_v3 = vor.u32 %v9569_v62, %v8272_v60  ;;  %v9511_v10 = vld [vmem:[#allocation9 + $0x104] sm:$0xf0]  ;;  %v8176_v14 = vld [vmem:[#allocation9 + $0x210] sm:$0xf] }
  0x3e   :  { %2689 = vmatpush.bf16.msrb.mxu0 %v10275_v49  ;;  %14089 = vst [vmem:[#allocation49_spill] sm:$0xff] %v10319_v58  ;;  %v9545_v20 = vld [vmem:[#allocation9 + $0x214] sm:$0xf0]  ;;  %v8264_v25 = vld [vmem:[#allocation9 + $0x2c0] sm:$0xf]  ;;  %v10325_v40 = vor.u32 %v9511_v10, %v8040_v63 }
  0x3f   :  { %14090 = vst [vmem:[#allocation50_spill] sm:$0xff] %v10322_v3  ;;  %v9567_v34 = vld [vmem:[#allocation9 + $0x2c4] sm:$0xf0]  ;;  %v8104_v37 = vld [vmem:[#allocation9 + $0x180] sm:$0xf]  ;;  %v10329_v46 = vor.u32 %v9545_v20, %v8176_v14  ;;  %2738 = vmatpush.bf16.msrb.mxu1 %v10322_v3 }
  0x40   :  { %2592 = vmatpush.bf16.msrb.mxu2 %v10269_v39  ;;  %14091 = vst [vmem:[#allocation51_spill] sm:$0xff] %v10325_v40  ;;  %v9527_v43 = vld [vmem:[#allocation9 + $0x184] sm:$0xf0]  ;;  %v7528_v44 = vld [vmem:[#allocation5 + $0x100] sm:$0xf]  ;;  %v10334_v54 = vor.u32 %v9567_v34, %v8264_v25 }
  0x41   :  { %2641 = vmatpush.bf16.msrb.mxu3 %v10272_v45  ;;  %14092 = vst [vmem:[#allocation52_spill] sm:$0xff] %v10329_v46  ;;  %v10331_v48 = vor.u32 %v9527_v43, %v8104_v37  ;;  %v9774_v53 = vld [vmem:[#allocation5 + $0x13c] sm:$0xf0]  ;;  %v9543_v60 = vld [vmem:[#allocation9 + $0x204] sm:$0xf0] }
  0x42   :  { %2690 = vmatpush.bf16.msrb.mxu0 %v10287_v15  ;;  %14094 = vst [vmem:[#allocation54_spill] sm:$0xff] %v10334_v54  ;;  %v8168_v55 = vld [vmem:[#allocation9 + $0x200] sm:$0xf]  ;;  %v9830_v10 = vld [vmem:[#allocation5 + $0x304] sm:$0xf]  ;;  %v10341_v25 = vor.u32 %v9774_v53, %v7528_v44 }
  0x43   :  { %2504 = vmatmul.bf16.gmra.mxu0 %v10289_v16  ;;  %2524 = vmatmul.bf16.gmra.mxu2 %v10291_v19  ;;  %14093 = vst [vmem:[#allocation53_spill] sm:$0xff] %v10331_v48  ;;  %v7784_v62 = vld [vmem:[#allocation5 + $0x300] sm:$0xf]  ;;  %v7530_v14 = vld [vmem:[#allocation5 + $0x140] sm:$0xf0]  ;;  %v10339_v20 = vor.u32 %v9543_v60, %v8168_v55 }
  0x44   :  { %2593 = vmatpush.bf16.msrb.mxu2 %v10281_v0  ;;  %2573 = vmatmul.bf16.gmra.mxu3 %v10293_v26  ;;  %v9838_v63 = vld [vmem:[#allocation5 + $0x33c] sm:$0xf0]  ;;  %v9563_v0 = vld [vmem:[#allocation9 + $0x2a4] sm:$0xf0]  ;;  %v8352_v44 = vld [vmem:[#allocation9 + $0x370] sm:$0xf] }
  0x45   :  { %2642 = vmatpush.bf16.msrb.mxu3 %v10284_v5  ;;  %2553 = vmatmul.bf16.gmra.mxu1 %v10295_v28  ;;  %14095 = vst [vmem:[#allocation55_spill] sm:$0xff] %v10339_v20  ;;  %v10343_v34 = vor.u32 %v9838_v63, %v7784_v62  ;;  %v8248_v5 = vld [vmem:[#allocation9 + $0x2a0] sm:$0xf]  ;;  %v9589_v53 = vld [vmem:[#allocation9 + $0x374] sm:$0xf0] }
  0x46   :  { %2691 = vmatpush.bf16.msrb.mxu0 %v10306_v38  ;;  %2739 = vmatpush.bf16.msrb.mxu1 %v10334_v54  ;;  %v8240_v55 = vld [vmem:[#allocation9 + $0x290] sm:$0xf]  ;;  %v9561_v60 = vld [vmem:[#allocation9 + $0x294] sm:$0xf0]  ;;  %v9782_v45 = vld [vmem:[#allocation5 + $0x184] sm:$0xf] }
  0x47   :  { %v10367_v63 = vor.u32 %v9561_v60, %v8240_v55  ;;  %v7410_v22 = vld [vmem:[#allocation5 + $0x48] sm:$0xf0]  ;;  %v9736_v13 = vld [vmem:[#allocation5 + $0x14] sm:$0xf]  ;;  %v9823_v30 = vld [vmem:[#allocation5 + $0x2c4] sm:$0xf0] }
  0x48   :  { %2594 = vmatpush.bf16.msrb.mxu2 %v10298_v31  ;;  %v9766_v31 = vld [vmem:[#allocation5 + $0x104] sm:$0xf]  ;;  %v7418_v7 = vld [vmem:[#allocation5 + $0x50] sm:$0xf0]  ;;  %v9815_v24 = vld [vmem:[#allocation5 + $0x28c] sm:$0xf] }
  0x49   :  { %2643 = vmatpush.bf16.msrb.mxu3 %v10301_v32  ;;  %v9565_v32 = vld [vmem:[#allocation9 + $0x2b4] sm:$0xf0]  ;;  %14100 = vst [vmem:[#allocation60_spill] sm:$0xff] %v10367_v63  ;;  %v9784_v3 = vld [vmem:[#allocation5 + $0x194] sm:$0xf] }
  0x4a   :  { %2692 = vmatpush.bf16.msrb.mxu0 %v10319_v58  ;;  %v7610_v38 = vld [vmem:[#allocation5 + $0x1d0] sm:$0xf0]  ;;  %v8456_v41 = vld [vmem:[#allocation9 + $0x440] sm:$0xf]  ;;  %v9615_v18 = vld [vmem:[#allocation9 + $0x444] sm:$0xf0] }
  0x4b   :  { %v9800_v50 = vld [vmem:[#allocation5 + $0x214] sm:$0xf]  ;;  %v8544_v35 = vld [vmem:[#allocation9 + $0x4f0] sm:$0xf]  ;;  %v10500_v12 = vor.u32 %v9615_v18, %v8456_v41 }
  0x4c   :  { %2595 = vmatpush.bf16.msrb.mxu2 %v10313_v51  ;;  %v7786_v51 = vld [vmem:[#allocation5 + $0x340] sm:$0xf0]  ;;  %v7674_v49 = vld [vmem:[#allocation5 + $0x250] sm:$0xf0] }
  0x4d   :  { %2644 = vmatpush.bf16.msrb.mxu3 %v10317_v57  ;;  %v8256_v57 = vld [vmem:[#allocation9 + $0x2b0] sm:$0xf]  ;;  %v10346_v37 = vor.u32 %v9830_v10, %v7786_v51  ;;  %v10357_v51 = vor.u32 %v9563_v0, %v8248_v5  ;;  %v8232_v0 = vld [vmem:[#allocation9 + $0x280] sm:$0xf]  ;;  %v9559_v5 = vld [vmem:[#allocation9 + $0x284] sm:$0xf0] }
  0x4e   :  { %2693 = vmatpush.bf16.msrb.mxu0 %v10329_v46  ;;  %v10348_v43 = vor.u32 %v9565_v32, %v8256_v57  ;;  %v8416_v32 = vld [vmem:[#allocation9 + $0x3f0] sm:$0xf]  ;;  %v9605_v57 = vld [vmem:[#allocation9 + $0x3f4] sm:$0xf0]  ;;  %v7592_v10 = vld [vmem:[#allocation5 + $0x180] sm:$0xf] }
  0x4f   :  { %14097 = vst [vmem:[#allocation57_spill] sm:$0xff] %v10357_v51  ;;  %v10362_v62 = vor.u32 %v9605_v57, %v8416_v32  ;;  %v9846_v32 = vld [vmem:[#allocation5 + $0x384] sm:$0xf]  ;;  %v7546_v46 = vld [vmem:[#allocation5 + $0x150] sm:$0xf0] }
  0x50   :  { %2596 = vmatpush.bf16.msrb.mxu2 %v10325_v40  ;;  %14096 = vst [vmem:[#allocation56_spill] sm:$0xff] %v10348_v43  ;;  %v10350_v40 = vor.u32 %v9766_v31, %v7530_v14  ;;  %2740 = vmatpush.bf16.msrb.mxu1 %v10348_v43  ;;  %v10360_v31 = vor.u32 %v9589_v53, %v8352_v44  ;;  %v9790_v14 = vld [vmem:[#allocation5 + $0x1bc] sm:$0xf0]  ;;  %v7850_v57 = vld [vmem:[#allocation5 + $0x3c0] sm:$0xf0] }
  0x51   :  { %2645 = vmatpush.bf16.msrb.mxu3 %v10331_v48  ;;  %14099 = vst [vmem:[#allocation59_spill] sm:$0xff] %v10362_v62  ;;  %v7848_v48 = vld [vmem:[#allocation5 + $0x380] sm:$0xf]  ;;  %v10370_v53 = vor.u32 %v9559_v5, %v8232_v0  ;;  %v10372_v39 = vor.u32 %v9790_v14, %v7592_v10  ;;  %v10376_v55 = vor.u32 %v9846_v32, %v7850_v57  ;;  %v9587_v5 = vld [vmem:[#allocation9 + $0x364] sm:$0xf0] }
  0x52   :  { %2694 = vmatpush.bf16.msrb.mxu0 %v10339_v20  ;;  %14098 = vst [vmem:[#allocation58_spill] sm:$0xff] %v10360_v31  ;;  %v9854_v44 = vld [vmem:[#allocation5 + $0x3bc] sm:$0xf0]  ;;  %v9744_v32 = vld [vmem:[#allocation5 + $0x4c] sm:$0xf0] }
  0x53   :  { %2509 = vmatmul.bf16.gmra.mxu0 %v10341_v25  ;;  %2529 = vmatmul.bf16.gmra.mxu2 %v10343_v34  ;;  %14101 = vst [vmem:[#allocation61_spill] sm:$0xff] %v10370_v53  ;;  %v10374_v27 = vor.u32 %v9854_v44, %v7848_v48  ;;  %v8344_v0 = vld [vmem:[#allocation9 + $0x360] sm:$0xf]  ;;  %v9603_v48 = vld [vmem:[#allocation9 + $0x3e4] sm:$0xf0] }
  0x54   :  { %2578 = vmatmul.bf16.gmra.mxu3 %v10346_v37  ;;  %2785 = vmatpush.bf16.msra.mxu2 %v10360_v31  ;;  %v7594_v31 = vld [vmem:[#allocation5 + $0x1c0] sm:$0xf0]  ;;  %v10385_v10 = vor.u32 %v9587_v5, %v8344_v0  ;;  %v7416_v44 = vld [vmem:[#allocation5 + $0x10] sm:$0xf]  ;;  %v9735_v57 = vld [vmem:[#allocation5 + $0xc] sm:$0xf] }
  0x55   :  { %2558 = vmatmul.bf16.gmra.mxu1 %v10350_v40  ;;  %2834 = vmatpush.bf16.msra.mxu3 %v10362_v62  ;;  %v10379_v60 = vor.u32 %v9782_v45, %v7594_v31  ;;  %v8408_v62 = vld [vmem:[#allocation9 + $0x3e0] sm:$0xf]  ;;  %v7408_v45 = vld [vmem:[#allocation5 + $0x8] sm:$0xf]  ;;  %v10393_v59 = vor.u32 %v9744_v32, %v7416_v44  ;;  %v10395_v0 = vor.u32 %v9735_v57, %v7410_v22  ;;  %v8336_v5 = vld [vmem:[#allocation9 + $0x350] sm:$0xf] }
  0x56   :  { %2741 = vmatpush.bf16.msrb.mxu1 %v10357_v51  ;;  %14102 = vst [vmem:[#allocation62_spill] sm:$0xff] %v10385_v10  ;;  %v10387_v14 = vor.u32 %v9603_v48, %v8408_v62  ;;  %v9743_v31 = vld [vmem:[#allocation5 + $0x44] sm:$0xf0]  ;;  %v10397_v62 = vor.u32 %v9736_v13, %v7418_v7  ;;  %v9585_v48 = vld [vmem:[#allocation9 + $0x354] sm:$0xf0] }
  0x57   :  { %v10391_v61 = vor.u32 %v9743_v31, %v7408_v45  ;;  %v9601_v45 = vld [vmem:[#allocation9 + $0x3d4] sm:$0xf0]  ;;  %v7472_v7 = vld [vmem:[#allocation5 + $0x88] sm:$0xf]  ;;  %v7480_v22 = vld [vmem:[#allocation5 + $0x90] sm:$0xf] }
  0x58   :  { %14103 = vst [vmem:[#allocation63_spill] sm:$0xff] %v10387_v14  ;;  %2786 = vmatpush.bf16.msra.mxu2 %v10385_v10  ;;  %v10403_v10 = vor.u32 %v9585_v48, %v8336_v5  ;;  %v9759_v13 = vld [vmem:[#allocation5 + $0xc4] sm:$0xf0]  ;;  %v9760_v44 = vld [vmem:[#allocation5 + $0xcc] sm:$0xf0] }
  0x59   :  { %2835 = vmatpush.bf16.msra.mxu3 %v10387_v14  ;;  %v8400_v14 = vld [vmem:[#allocation9 + $0x3d0] sm:$0xf]  ;;  %v9751_v32 = vld [vmem:[#allocation5 + $0x8c] sm:$0xf]  ;;  %v10409_v51 = vor.u32 %v9759_v13, %v7472_v7  ;;  %v10411_v20 = vor.u32 %v9760_v44, %v7480_v22  ;;  %v8328_v48 = vld [vmem:[#allocation9 + $0x340] sm:$0xf] }
  0x5a   :  { %2742 = vmatpush.bf16.msrb.mxu1 %v10367_v63  ;;  %14104 = vst [vmem:[#allocation64_spill] sm:$0xff] %v10403_v10  ;;  %v10405_v31 = vor.u32 %v9601_v45, %v8400_v14  ;;  %v7474_v57 = vld [vmem:[#allocation5 + $0xc8] sm:$0xf0]  ;;  %v7482_v63 = vld [vmem:[#allocation5 + $0xd0] sm:$0xf0] }
  0x5b   :  { %14106 = vst [vmem:[#allocation66_spill] sm:$0xff] %v10411_v20  ;;  %v10413_v5 = vor.u32 %v9751_v32, %v7474_v57  ;;  %v9583_v45 = vld [vmem:[#allocation9 + $0x344] sm:$0xf0]  ;;  %v7544_v22 = vld [vmem:[#allocation5 + $0x110] sm:$0xf] }
  0x5c   :  { %14105 = vst [vmem:[#allocation65_spill] sm:$0xff] %v10405_v31  ;;  %2787 = vmatpush.bf16.msra.mxu2 %v10403_v10  ;;  %v10421_v10 = vor.u32 %v9583_v45, %v8328_v48  ;;  %v9599_v7 = vld [vmem:[#allocation9 + $0x3c4] sm:$0xf0]  ;;  %v9776_v44 = vld [vmem:[#allocation5 + $0x14c] sm:$0xf0] }
  0x5d   :  { %2836 = vmatpush.bf16.msra.mxu3 %v10405_v31  ;;  %14107 = vst [vmem:[#allocation67_spill] sm:$0xff] %v10413_v5  ;;  %v8392_v31 = vld [vmem:[#allocation9 + $0x3c0] sm:$0xf]  ;;  %v9767_v32 = vld [vmem:[#allocation5 + $0x10c] sm:$0xf]  ;;  %v10429_v58 = vor.u32 %v9776_v44, %v7544_v22 }
  0x5e   :  { %2743 = vmatpush.bf16.msrb.mxu1 %v10370_v53  ;;  %v9752_v53 = vld [vmem:[#allocation5 + $0x94] sm:$0xf]  ;;  %14109 = vst [vmem:[#allocation69_spill] sm:$0xff] %v10421_v10  ;;  %v10423_v13 = vor.u32 %v9599_v7, %v8392_v31  ;;  %v7538_v57 = vld [vmem:[#allocation5 + $0x148] sm:$0xf0] }
  0x5f   :  { %v10415_v14 = vor.u32 %v9752_v53, %v7482_v63  ;;  %v7536_v63 = vld [vmem:[#allocation5 + $0x108] sm:$0xf]  ;;  %v9768_v43 = vld [vmem:[#allocation5 + $0x114] sm:$0xf]  ;;  %14112 = vst [vmem:[#allocation72_spill] sm:$0xff] %v10429_v58  ;;  %v10431_v48 = vor.u32 %v9767_v32, %v7538_v57 }
  0x60   :  { %14110 = vst [vmem:[#allocation70_spill] sm:$0xff] %v10423_v13  ;;  %2788 = vmatpush.bf16.msra.mxu2 %v10421_v10  ;;  %v9775_v53 = vld [vmem:[#allocation5 + $0x144] sm:$0xf0]  ;;  %v10433_v31 = vor.u32 %v9768_v43, %v7546_v46  ;;  %v8320_v45 = vld [vmem:[#allocation9 + $0x330] sm:$0xf] }
  0x61   :  { %14108 = vst [vmem:[#allocation68_spill] sm:$0xff] %v10415_v14  ;;  %2837 = vmatpush.bf16.msra.mxu3 %v10423_v13  ;;  %v10427_v54 = vor.u32 %v9775_v53, %v7536_v63  ;;  %v9581_v7 = vld [vmem:[#allocation9 + $0x334] sm:$0xf0]  ;;  %v8384_v13 = vld [vmem:[#allocation9 + $0x3b0] sm:$0xf] }
  0x62   :  { %14113 = vst [vmem:[#allocation73_spill] sm:$0xff] %v10431_v48  ;;  %v10439_v10 = vor.u32 %v9581_v7, %v8320_v45  ;;  %v9597_v63 = vld [vmem:[#allocation9 + $0x3b4] sm:$0xf0]  ;;  %v7600_v46 = vld [vmem:[#allocation5 + $0x188] sm:$0xf] }
  0x63   :  { %2514 = vmatmul.bf16.gmra.mxu0 %v10372_v39  ;;  %2534 = vmatmul.bf16.gmra.mxu2 %v10374_v27  ;;  %14111 = vst [vmem:[#allocation71_spill] sm:$0xff] %v10427_v54  ;;  %v10441_v53 = vor.u32 %v9597_v63, %v8384_v13  ;;  %v9791_v43 = vld [vmem:[#allocation5 + $0x1c4] sm:$0xf0]  ;;  %v7608_v22 = vld [vmem:[#allocation5 + $0x190] sm:$0xf]  ;;  %v10451_v13 = vor.u32 %v9784_v3, %v7610_v38 }
  0x64   :  { %2583 = vmatmul.bf16.gmra.mxu3 %v10376_v55  ;;  %14114 = vst [vmem:[#allocation74_spill] sm:$0xff] %v10433_v31  ;;  %2789 = vmatpush.bf16.msra.mxu2 %v10439_v10  ;;  %v9792_v44 = vld [vmem:[#allocation5 + $0x1cc] sm:$0xf0]  ;;  %v9783_v32 = vld [vmem:[#allocation5 + $0x18c] sm:$0xf]  ;;  %v10445_v47 = vor.u32 %v9791_v43, %v7600_v46 }
  0x65   :  { %2563 = vmatmul.bf16.gmra.mxu1 %v10379_v60  ;;  %14115 = vst [vmem:[#allocation75_spill] sm:$0xff] %v10439_v10  ;;  %2838 = vmatpush.bf16.msra.mxu3 %v10441_v53  ;;  %v7602_v57 = vld [vmem:[#allocation5 + $0x1c8] sm:$0xf0]  ;;  %v10447_v15 = vor.u32 %v9792_v44, %v7608_v22  ;;  %v8312_v7 = vld [vmem:[#allocation9 + $0x320] sm:$0xf] }
  0x66   :  { %14116 = vst [vmem:[#allocation76_spill] sm:$0xff] %v10441_v53  ;;  %v10449_v45 = vor.u32 %v9783_v32, %v7602_v57  ;;  %v9579_v63 = vld [vmem:[#allocation9 + $0x324] sm:$0xf0]  ;;  %v8376_v53 = vld [vmem:[#allocation9 + $0x3a0] sm:$0xf] }
  0x67   :  { %14117 = vst [vmem:[#allocation77_spill] sm:$0xff] %v10445_v47  ;;  %v10457_v10 = vor.u32 %v9579_v63, %v8312_v7  ;;  %v9595_v46 = vld [vmem:[#allocation9 + $0x3a4] sm:$0xf0]  ;;  %v7672_v22 = vld [vmem:[#allocation5 + $0x210] sm:$0xf] }
  0x68   :  { %14118 = vst [vmem:[#allocation78_spill] sm:$0xff] %v10447_v15  ;;  %v10459_v43 = vor.u32 %v9595_v46, %v8376_v53  ;;  %v7664_v38 = vld [vmem:[#allocation5 + $0x208] sm:$0xf]  ;;  %v9808_v44 = vld [vmem:[#allocation5 + $0x24c] sm:$0xf0]  ;;  %v10469_v53 = vor.u32 %v9800_v50, %v7674_v49 }
  0x69   :  { %14119 = vst [vmem:[#allocation79_spill] sm:$0xff] %v10449_v45  ;;  %2790 = vmatpush.bf16.msra.mxu2 %v10457_v10  ;;  %v9807_v3 = vld [vmem:[#allocation5 + $0x244] sm:$0xf0]  ;;  %v9799_v32 = vld [vmem:[#allocation5 + $0x20c] sm:$0xf]  ;;  %v10465_v33 = vor.u32 %v9808_v44, %v7672_v22 }
  0x6a   :  { %14120 = vst [vmem:[#allocation80_spill] sm:$0xff] %v10451_v13  ;;  %2839 = vmatpush.bf16.msra.mxu3 %v10459_v43  ;;  %v7666_v57 = vld [vmem:[#allocation5 + $0x248] sm:$0xf0]  ;;  %v10463_v56 = vor.u32 %v9807_v3, %v7664_v38  ;;  %v8304_v38 = vld [vmem:[#allocation9 + $0x310] sm:$0xf] }
  0x6b   :  { %14121 = vst [vmem:[#allocation81_spill] sm:$0xff] %v10457_v10  ;;  %v10467_v63 = vor.u32 %v9799_v32, %v7666_v57  ;;  %v8480_v10 = vld [vmem:[#allocation9 + $0x470] sm:$0xf]  ;;  %v9577_v3 = vld [vmem:[#allocation9 + $0x314] sm:$0xf0] }
  0x6c   :  { %14122 = vst [vmem:[#allocation82_spill] sm:$0xff] %v10459_v43  ;;  %v9621_v43 = vld [vmem:[#allocation9 + $0x474] sm:$0xf0]  ;;  %v8368_v22 = vld [vmem:[#allocation9 + $0x390] sm:$0xf]  ;;  %v10479_v49 = vor.u32 %v9577_v3, %v8304_v38 }
  0x6d   :  { %14123 = vst [vmem:[#allocation83_spill] sm:$0xff] %v10463_v56  ;;  %v10475_v21 = vor.u32 %v9621_v43, %v8480_v10  ;;  %v9593_v50 = vld [vmem:[#allocation9 + $0x394] sm:$0xf0]  ;;  %v8472_v57 = vld [vmem:[#allocation9 + $0x460] sm:$0xf] }
  0x6e   :  { %14124 = vst [vmem:[#allocation84_spill] sm:$0xff] %v10465_v33  ;;  %v10482_v32 = vor.u32 %v9593_v50, %v8368_v22  ;;  %2791 = vmatpush.bf16.msra.mxu2 %v10479_v49  ;;  %v8464_v38 = vld [vmem:[#allocation9 + $0x450] sm:$0xf]  ;;  %v9617_v3 = vld [vmem:[#allocation9 + $0x454] sm:$0xf0] }
  0x6f   :  { %14125 = vst [vmem:[#allocation85_spill] sm:$0xff] %v10467_v63  ;;  %2883 = vmatpush.bf16.msra.mxu0 %v10475_v21  ;;  %v7728_v50 = vld [vmem:[#allocation5 + $0x288] sm:$0xf]  ;;  %v9832_v4 = vld [vmem:[#allocation5 + $0x314] sm:$0xf] }
  0x70   :  { %14126 = vst [vmem:[#allocation86_spill] sm:$0xff] %v10469_v53  ;;  %2840 = vmatpush.bf16.msra.mxu3 %v10482_v32 }
  0x71   :  { %14127 = vst [vmem:[#allocation87_spill] sm:$0xff] %v10475_v21  ;;  %v10491_v21 = vor.u32 %v9617_v3, %v8464_v38  ;;  %v10496_v38 = vor.u32 %v9823_v30, %v7728_v50  ;;  %v8448_v30 = vld [vmem:[#allocation9 + $0x430] sm:$0xf] }
  0x72   :  { %14128 = vst [vmem:[#allocation88_spill] sm:$0xff] %v10479_v49  ;;  %v7736_v49 = vld [vmem:[#allocation5 + $0x290] sm:$0xf] }
  0x73   :  { %2597 = vmatmul.bf16.vlgmr.msrb.gmra.mxu2 %v10391_v61  ;;  %2695 = vmatmul.bf16.vlgmr.msrb.gmra.mxu0 %v10393_v59  ;;  %14129 = vst [vmem:[#allocation89_spill] sm:$0xff] %v10482_v32 }
  0x74   :  { %2646 = vmatmul.bf16.vlgmr.msrb.gmra.mxu3 %v10395_v0  ;;  %14131 = vst [vmem:[#allocation91_spill] sm:$0xff] %v10491_v21 }
  0x75   :  { %2744 = vmatmul.bf16.vlgmr.msrb.gmra.mxu1 %v10397_v62  ;;  %14132 = vst [vmem:[#allocation92_spill] sm:$0xff] %v10496_v38 }
  0x76   :  { %14134 = vst [vmem:[#allocation94_spill] sm:$0xff] %v10500_v12 }
  0x83   :  { %2602 = vmatmul.bf16.gmra.mxu2 %v10409_v51  ;;  %2700 = vmatmul.bf16.gmra.mxu0 %v10411_v20 }
  0x84   :  { %2651 = vmatmul.bf16.gmra.mxu3 %v10413_v5 }
  0x85   :  { %2749 = vmatmul.bf16.gmra.mxu1 %v10415_v14 }
  0x93   :  { %2607 = vmatmul.bf16.gmra.mxu2 %v10427_v54  ;;  %2705 = vmatmul.bf16.gmra.mxu0 %v10429_v58  ;;  %v9685_v58 = vld [vmem:[#allocation9 + $0x674] sm:$0xf0] }
  0x94   :  { %2656 = vmatmul.bf16.gmra.mxu3 %v10431_v48  ;;  %v8736_v48 = vld [vmem:[#allocation9 + $0x670] sm:$0xf] }
  0x95   :  { %2754 = vmatmul.bf16.gmra.mxu1 %v10433_v31 }
  0xa3   :  { %2612 = vmatmul.bf16.gmra.mxu2 %v10445_v47  ;;  %2710 = vmatmul.bf16.gmra.mxu0 %v10447_v15  ;;  %v9753_v15 = vld [vmem:[#allocation5 + $0x9c] sm:$0xf]  ;;  %v9754_v47 = vld [vmem:[#allocation5 + $0xa4] sm:$0xf] }
  0xa4   :  { %2661 = vmatmul.bf16.gmra.mxu3 %v10449_v45  ;;  %v9649_v45 = vld [vmem:[#allocation9 + $0x554] sm:$0xf0] }
  0xa5   :  { %2759 = vmatmul.bf16.gmra.mxu1 %v10451_v13  ;;  %v8592_v13 = vld [vmem:[#allocation9 + $0x550] sm:$0xf] }
  0xb0   :  { %v2500_v7 = vpop.f32.mrf.mxu0 }
  0xb2   :  { %v2549_v46 = vpop.f32.mrf.mxu1 }
  0xb3   :  { %2617 = vmatmul.bf16.gmra.mxu2 %v10463_v56  ;;  %2715 = vmatmul.bf16.gmra.mxu0 %v10465_v33  ;;  %v10473_v42 = vadd.f32 %v2549_v46, %v2500_v7  ;;  %v9619_v7 = vld [vmem:[#allocation9 + $0x464] sm:$0xf0] }
  0xb4   :  { %2666 = vmatmul.bf16.gmra.mxu3 %v10467_v63  ;;  %v10485_v10 = vor.u32 %v9619_v7, %v8472_v57  ;;  %v9824_v57 = vld [vmem:[#allocation5 + $0x2cc] sm:$0xf0]  ;;  %v7730_v7 = vld [vmem:[#allocation5 + $0x2c8] sm:$0xf0] }
  0xb5   :  { %2764 = vmatmul.bf16.gmra.mxu1 %v10469_v53  ;;  %v10498_v3 = vor.u32 %v9824_v57, %v7736_v49  ;;  %v10504_v8 = vor.u32 %v9815_v24, %v7730_v7  ;;  %v9613_v49 = vld [vmem:[#allocation9 + $0x434] sm:$0xf0]  ;;  %v8536_v24 = vld [vmem:[#allocation9 + $0x4e0] sm:$0xf] }
  0xb6   :  { %v2520_v44 = vpop.f32.mrf.mxu2  ;;  %14130 = vst [vmem:[#allocation90_spill] sm:$0xff] %v10485_v10  ;;  %2884 = vmatpush.bf16.msra.mxu0 %v10485_v10  ;;  %v10516_v41 = vor.u32 %v9613_v49, %v8448_v30  ;;  %v8360_v57 = vld [vmem:[#allocation9 + $0x380] sm:$0xf]  ;;  %v8528_v30 = vld [vmem:[#allocation9 + $0x4d0] sm:$0xf] }
  0xb7   :  { %v2569_v46 = vpop.f32.mrf.mxu3  ;;  %14133 = vst [vmem:[#allocation93_spill] sm:$0xff] %v10498_v3 }
  0xb8   :  { %v10487_v43 = vadd.f32 %v2569_v46, %v2520_v44  ;;  %v2502_v36 = vpop.f32.mrf.mxu0  ;;  %v9816_v44 = vld [vmem:[#allocation5 + $0x294] sm:$0xf]  ;;  %14135 = vst [vmem:[#allocation95_spill] sm:$0xff] %v10504_v8 }
  0xb9   :  { %v7738_v46 = vld [vmem:[#allocation5 + $0x2d0] sm:$0xf0]  ;;  %14138 = vst [vmem:[#allocation98_spill] sm:$0xff] %v10516_v41 }
  0xba   :  { %v2551_v22 = vpop.f32.mrf.mxu1  ;;  %2885 = vmatpush.bf16.msra.mxu0 %v10491_v21  ;;  %v10508_v21 = vor.u32 %v9816_v44, %v7738_v46  ;;  %v9591_v44 = vld [vmem:[#allocation9 + $0x384] sm:$0xf0]  ;;  %v8440_v46 = vld [vmem:[#allocation9 + $0x420] sm:$0xf] }
  0xbb   :  { %v10493_v52 = vadd.f32 %v2551_v22, %v2502_v36  ;;  %v9637_v36 = vld [vmem:[#allocation9 + $0x4f4] sm:$0xf0] }
  0xbc   :  { %v10506_v23 = vor.u32 %v9637_v36, %v8544_v35  ;;  %14137 = vst [vmem:[#allocation97_spill] sm:$0xff] %v10508_v21  ;;  %v9635_v35 = vld [vmem:[#allocation9 + $0x4e4] sm:$0xf0] }
  0xbd   :  { %v10519_v50 = vor.u32 %v9635_v35, %v8536_v24  ;;  %v9611_v36 = vld [vmem:[#allocation9 + $0x424] sm:$0xf0]  ;;  %v9633_v35 = vld [vmem:[#allocation9 + $0x4d4] sm:$0xf0] }
  0xbe   :  { %v2522_v32 = vpop.f32.mrf.mxu2  ;;  %14136 = vst [vmem:[#allocation96_spill] sm:$0xff] %v10506_v23  ;;  %2886 = vmatpush.bf16.msra.mxu0 %v10500_v12  ;;  %2932 = vmatpush.bf16.msra.mxu1 %v10506_v23  ;;  %v10529_v24 = vor.u32 %v9611_v36, %v8440_v46  ;;  %v9631_v23 = vld [vmem:[#allocation9 + $0x4c4] sm:$0xf0] }
  0xbf   :  { %v2571_v10 = vpop.f32.mrf.mxu3  ;;  %14139 = vst [vmem:[#allocation99_spill] sm:$0xff] %v10519_v50  ;;  %v9839_v36 = vld [vmem:[#allocation5 + $0x344] sm:$0xf0] }
  0xc0   :  { %v10502_v22 = vadd.f32 %v2571_v10, %v2522_v32  ;;  %v2505_v29 = vpop.f32.mrf.mxu0  ;;  %v8296_v32 = vld [vmem:[#allocation9 + $0x300] sm:$0xf]  ;;  %v9575_v10 = vld [vmem:[#allocation9 + $0x304] sm:$0xf0]  ;;  %14142 = vst [vmem:[#allocation102_spill] sm:$0xff] %v10529_v24 }
  0xc1   :  { %v10522_v7 = vor.u32 %v9575_v10, %v8296_v32  ;;  %v10534_v10 = vor.u32 %v9633_v35, %v8528_v30  ;;  %v7800_v30 = vld [vmem:[#allocation5 + $0x310] sm:$0xf] }
  0xc2   :  { %v2554_v17 = vpop.f32.mrf.mxu1  ;;  %2887 = vmatpush.bf16.msra.mxu0 %v10516_v41  ;;  %2933 = vmatpush.bf16.msra.mxu1 %v10519_v50  ;;  %v8432_v41 = vld [vmem:[#allocation9 + $0x410] sm:$0xf]  ;;  %v9609_v50 = vld [vmem:[#allocation9 + $0x414] sm:$0xf0] }
  0xc3   :  { %2622 = vmatmul.bf16.gmra.mxu2 %v10496_v38  ;;  %2720 = vmatmul.bf16.gmra.mxu0 %v10498_v3  ;;  %v10514_v18 = vadd.f32 %v2554_v17, %v2505_v29  ;;  %14140 = vst [vmem:[#allocation100_spill] sm:$0xff] %v10522_v7  ;;  %v10526_v29 = vor.u32 %v9591_v44, %v8360_v57  ;;  %v8520_v57 = vld [vmem:[#allocation9 + $0x4c0] sm:$0xf]  ;;  %v9840_v35 = vld [vmem:[#allocation5 + $0x34c] sm:$0xf0] }
  0xc4   :  { %2671 = vmatmul.bf16.gmra.mxu3 %v10504_v8  ;;  %2792 = vmatpush.bf16.msra.mxu2 %v10522_v7  ;;  %14143 = vst [vmem:[#allocation103_spill] sm:$0xff] %v10534_v10  ;;  %v10537_v44 = vor.u32 %v9609_v50, %v8432_v41  ;;  %v10540_v46 = vor.u32 %v9631_v23, %v8520_v57  ;;  %v7794_v7 = vld [vmem:[#allocation5 + $0x348] sm:$0xf0]  ;;  %v8424_v50 = vld [vmem:[#allocation9 + $0x400] sm:$0xf] }
  0xc5   :  { %2769 = vmatmul.bf16.gmra.mxu1 %v10508_v21  ;;  %14141 = vst [vmem:[#allocation101_spill] sm:$0xff] %v10526_v29  ;;  %2841 = vmatpush.bf16.msra.mxu3 %v10526_v29  ;;  %v9831_v29 = vld [vmem:[#allocation5 + $0x30c] sm:$0xf]  ;;  %v7802_v21 = vld [vmem:[#allocation5 + $0x350] sm:$0xf0]  ;;  %v10548_v8 = vor.u32 %v9840_v35, %v7800_v30 }
  0xc6   :  { %v2525_v17 = vpop.f32.mrf.mxu2  ;;  %2888 = vmatpush.bf16.msra.mxu0 %v10529_v24  ;;  %14144 = vst [vmem:[#allocation104_spill] sm:$0xff] %v10537_v44  ;;  %2934 = vmatpush.bf16.msra.mxu1 %v10534_v10  ;;  %v9607_v24 = vld [vmem:[#allocation9 + $0x404] sm:$0xf0]  ;;  %v8512_v10 = vld [vmem:[#allocation9 + $0x4b0] sm:$0xf]  ;;  %v10554_v53 = vor.u32 %v9831_v29, %v7794_v7  ;;  %v10558_v63 = vor.u32 %v9832_v4, %v7802_v21 }
  0xc7   :  { %v2574_v49 = vpop.f32.mrf.mxu3  ;;  %14145 = vst [vmem:[#allocation105_spill] sm:$0xff] %v10540_v46  ;;  %v8608_v7 = vld [vmem:[#allocation9 + $0x570] sm:$0xf]  ;;  %v9653_v4 = vld [vmem:[#allocation9 + $0x574] sm:$0xf0] }
  0xc8   :  { %v10531_v12 = vadd.f32 %v2574_v49, %v2525_v17  ;;  %v2507_v32 = vpop.f32.mrf.mxu0  ;;  %v7792_v17 = vld [vmem:[#allocation5 + $0x308] sm:$0xf]  ;;  %14147 = vst [vmem:[#allocation107_spill] sm:$0xff] %v10548_v8  ;;  %v8672_v21 = vld [vmem:[#allocation9 + $0x5f0] sm:$0xf]  ;;  %v10570_v29 = vor.u32 %v9653_v4, %v8608_v7 }
  0xc9   :  { %v10546_v57 = vor.u32 %v9839_v36, %v7792_v17  ;;  %14149 = vst [vmem:[#allocation109_spill] sm:$0xff] %v10554_v53  ;;  %v8504_v17 = vld [vmem:[#allocation9 + $0x4a0] sm:$0xf]  ;;  %v9627_v36 = vld [vmem:[#allocation9 + $0x4a4] sm:$0xf0] }
  0xca   :  { %v2556_v11 = vpop.f32.mrf.mxu1  ;;  %2889 = vmatpush.bf16.msra.mxu0 %v10537_v44  ;;  %2935 = vmatpush.bf16.msra.mxu1 %v10540_v46  ;;  %14151 = vst [vmem:[#allocation111_spill] sm:$0xff] %v10558_v63  ;;  %v10566_v30 = vor.u32 %v9627_v36, %v8504_v17  ;;  %v8488_v7 = vld [vmem:[#allocation9 + $0x480] sm:$0xf]  ;;  %v9623_v4 = vld [vmem:[#allocation9 + $0x484] sm:$0xf0] }
  0xcb   :  { %v10542_v49 = vadd.f32 %v2556_v11, %v2507_v32  ;;  %14146 = vst [vmem:[#allocation106_spill] sm:$0xff] %v10546_v57  ;;  %v10550_v11 = vor.u32 %v9607_v24, %v8424_v50  ;;  %v9629_v32 = vld [vmem:[#allocation9 + $0x4b4] sm:$0xf0]  ;;  %v8496_v50 = vld [vmem:[#allocation9 + $0x490] sm:$0xf]  ;;  %2981 = vmatpush.bf16.msrb.mxu2 %v10570_v29 }
  0xcc   :  { %v10556_v44 = vor.u32 %v9629_v32, %v8512_v10  ;;  %14152 = vst [vmem:[#allocation112_spill] sm:$0xff] %v10566_v30  ;;  %v9669_v10 = vld [vmem:[#allocation9 + $0x5f4] sm:$0xf0] }
  0xcd   :  { %14148 = vst [vmem:[#allocation108_spill] sm:$0xff] %v10550_v11 }
  0xce   :  { %v2527_v41 = vpop.f32.mrf.mxu2  ;;  %14150 = vst [vmem:[#allocation110_spill] sm:$0xff] %v10556_v44  ;;  %2890 = vmatpush.bf16.msra.mxu0 %v10550_v11  ;;  %2936 = vmatpush.bf16.msra.mxu1 %v10556_v44  ;;  %v7856_v11 = vld [vmem:[#allocation5 + $0x388] sm:$0xf]  ;;  %v7864_v44 = vld [vmem:[#allocation5 + $0x390] sm:$0xf] }
  0xcf   :  { %v2576_v23 = vpop.f32.mrf.mxu3  ;;  %14153 = vst [vmem:[#allocation113_spill] sm:$0xff] %v10570_v29  ;;  %v9856_v29 = vld [vmem:[#allocation5 + $0x3cc] sm:$0xf0] }
  0xd0   :  { %v10552_v3 = vadd.f32 %v2576_v23, %v2527_v41  ;;  %v2510_v38 = vpop.f32.mrf.mxu0  ;;  %v10573_v41 = vor.u32 %v9669_v10, %v8672_v21  ;;  %v10584_v10 = vor.u32 %v9623_v4, %v8488_v7 }
  0xd2   :  { %v2559_v46 = vpop.f32.mrf.mxu1  ;;  %2937 = vmatpush.bf16.msra.mxu1 %v10566_v30  ;;  %14154 = vst [vmem:[#allocation114_spill] sm:$0xff] %v10573_v41  ;;  %3030 = vmatpush.bf16.msrb.mxu3 %v10573_v41  ;;  %v9855_v30 = vld [vmem:[#allocation5 + $0x3c4] sm:$0xf0] }
  0xd3   :  { %2627 = vmatmul.bf16.gmra.mxu2 %v10546_v57  ;;  %2725 = vmatmul.bf16.gmra.mxu0 %v10548_v8  ;;  %v10564_v24 = vadd.f32 %v2559_v46, %v2510_v38  ;;  %v9625_v38 = vld [vmem:[#allocation9 + $0x494] sm:$0xf0]  ;;  %14156 = vst [vmem:[#allocation116_spill] sm:$0xff] %v10584_v10 }
  0xd4   :  { %2676 = vmatmul.bf16.gmra.mxu3 %v10554_v53  ;;  %v10576_v23 = vor.u32 %v9625_v38, %v8496_v50  ;;  %v9847_v50 = vld [vmem:[#allocation5 + $0x38c] sm:$0xf]  ;;  %v10587_v53 = vor.u32 %v9855_v30, %v7856_v11  ;;  %v8600_v11 = vld [vmem:[#allocation9 + $0x560] sm:$0xf]  ;;  %v9651_v30 = vld [vmem:[#allocation9 + $0x564] sm:$0xf0] }
  0xd5   :  { %2774 = vmatmul.bf16.gmra.mxu1 %v10558_v63  ;;  %v7858_v38 = vld [vmem:[#allocation5 + $0x3c8] sm:$0xf0]  ;;  %v7866_v63 = vld [vmem:[#allocation5 + $0x3d0] sm:$0xf0] }
  0xd6   :  { %v2530_v35 = vpop.f32.mrf.mxu2  ;;  %14155 = vst [vmem:[#allocation115_spill] sm:$0xff] %v10576_v23  ;;  %2938 = vmatpush.bf16.msra.mxu1 %v10576_v23  ;;  %v10589_v23 = vor.u32 %v9856_v29, %v7864_v44  ;;  %v10603_v44 = vor.u32 %v9651_v30, %v8600_v11  ;;  %v8664_v29 = vld [vmem:[#allocation9 + $0x5e0] sm:$0xf] }
  0xd7   :  { %v2579_v46 = vpop.f32.mrf.mxu3  ;;  %14157 = vst [vmem:[#allocation117_spill] sm:$0xff] %v10587_v53  ;;  %v7432_v11 = vld [vmem:[#allocation5 + $0x20] sm:$0xf] }
  0xd8   :  { %v10578_v32 = vadd.f32 %v2579_v46, %v2530_v35  ;;  %v2512_v17 = vpop.f32.mrf.mxu0  ;;  %v9848_v46 = vld [vmem:[#allocation5 + $0x394] sm:$0xf]  ;;  %14158 = vst [vmem:[#allocation118_spill] sm:$0xff] %v10589_v23  ;;  %2982 = vmatpush.bf16.msrb.mxu2 %v10603_v44  ;;  %v9746_v30 = vld [vmem:[#allocation5 + $0x5c] sm:$0xf0] }
  0xd9   :  { %v10595_v7 = vor.u32 %v9848_v46, %v7866_v63  ;;  %14161 = vst [vmem:[#allocation121_spill] sm:$0xff] %v10603_v44 }
  0xda   :  { %v2561_v36 = vpop.f32.mrf.mxu1  ;;  %2939 = vmatpush.bf16.msra.mxu1 %v10584_v10 }
  0xdb   :  { %v10582_v21 = vadd.f32 %v2561_v36, %v2512_v17  ;;  %v10593_v36 = vor.u32 %v9847_v50, %v7858_v38  ;;  %14160 = vst [vmem:[#allocation120_spill] sm:$0xff] %v10595_v7 }
  0xdd   :  { %14159 = vst [vmem:[#allocation119_spill] sm:$0xff] %v10593_v36 }
  0xde   :  { %v2532_v35 = vpop.f32.mrf.mxu2 }
  0xdf   :  { %v2581_v41 = vpop.f32.mrf.mxu3 }
  0xe0   :  { %v10591_v8 = vadd.f32 %v2581_v41, %v2532_v35  ;;  %v2515_v17 = vpop.f32.mrf.mxu0  ;;  %v9667_v41 = vld [vmem:[#allocation9 + $0x5e4] sm:$0xf0] }
  0xe1   :  { %v10605_v63 = vor.u32 %v9667_v41, %v8664_v29  ;;  %v9738_v29 = vld [vmem:[#allocation5 + $0x24] sm:$0xf] }
  0xe2   :  { %v2564_v4 = vpop.f32.mrf.mxu1  ;;  %v7434_v41 = vld [vmem:[#allocation5 + $0x60] sm:$0xf0] }
  0xe3   :  { %2632 = vmatmul.bf16.gmra.mxu2 %v10587_v53  ;;  %2730 = vmatmul.bf16.gmra.mxu0 %v10589_v23  ;;  %v10599_v57 = vadd.f32 %v2564_v4, %v2515_v17  ;;  %14162 = vst [vmem:[#allocation122_spill] sm:$0xff] %v10605_v63  ;;  %v7424_v4 = vld [vmem:[#allocation5 + $0x18] sm:$0xf]  ;;  %v7426_v23 = vld [vmem:[#allocation5 + $0x58] sm:$0xf0] }
  0xe4   :  { %2681 = vmatmul.bf16.gmra.mxu3 %v10593_v36  ;;  %v9737_v36 = vld [vmem:[#allocation5 + $0x1c] sm:$0xf] }
  0xe5   :  { %2779 = vmatmul.bf16.gmra.mxu1 %v10595_v7  ;;  %3031 = vmatpush.bf16.msrb.mxu3 %v10605_v63  ;;  %v9745_v7 = vld [vmem:[#allocation5 + $0x54] sm:$0xf0]  ;;  %v10619_v44 = vor.u32 %v9737_v36, %v7426_v23 }
  0xe6   :  { %v2535_v50 = vpop.f32.mrf.mxu2  ;;  %v10613_v56 = vor.u32 %v9745_v7, %v7424_v4  ;;  %v10627_v7 = vor.u32 %v9649_v45, %v8592_v13  ;;  %v7496_v45 = vld [vmem:[#allocation5 + $0xa0] sm:$0xf] }
  0xe7   :  { %v2584_v38 = vpop.f32.mrf.mxu3  ;;  %14165 = vst [vmem:[#allocation125_spill] sm:$0xff] %v10619_v44  ;;  %v9762_v13 = vld [vmem:[#allocation5 + $0xdc] sm:$0xf0] }
  0xe8   :  { %v10608_v35 = vadd.f32 %v2584_v38, %v2535_v50  ;;  %v2517_v46 = vpop.f32.mrf.mxu0  ;;  %14163 = vst [vmem:[#allocation123_spill] sm:$0xff] %v10613_v56  ;;  %v10615_v50 = vor.u32 %v9746_v30, %v7432_v11  ;;  %2983 = vmatpush.bf16.msrb.mxu2 %v10627_v7 }
  0xe9   :  { %14167 = vst [vmem:[#allocation127_spill] sm:$0xff] %v10627_v7 }
  0xea   :  { %v2566_v17 = vpop.f32.mrf.mxu1  ;;  %14164 = vst [vmem:[#allocation124_spill] sm:$0xff] %v10615_v50 }
  0xeb   :  { %v10611_v10 = vadd.f32 %v2566_v17, %v2517_v46  ;;  %v10621_v46 = vor.u32 %v9738_v29, %v7434_v41 }
  0xed   :  { %14166 = vst [vmem:[#allocation126_spill] sm:$0xff] %v10621_v46 }
  0xee   :  { %v2537_v53 = vpop.f32.mrf.mxu2 }
  0xef   :  { %v2586_v33 = vpop.f32.mrf.mxu3 }
  0xf0   :  { %v10617_v38 = vadd.f32 %v2586_v33, %v2537_v53  ;;  %v2696_v63 = vpop.f32.mrf.mxu0  ;;  %v8656_v33 = vld [vmem:[#allocation9 + $0x5d0] sm:$0xf]  ;;  %v9665_v53 = vld [vmem:[#allocation9 + $0x5d4] sm:$0xf0] }
  0xf1   :  { %v10629_v23 = vor.u32 %v9665_v53, %v8656_v33  ;;  %v7490_v33 = vld [vmem:[#allocation5 + $0xd8] sm:$0xf0] }
  0xf2   :  { %v2745_v17 = vpop.f32.mrf.mxu1 }
  0xf3   :  { %2793 = vmatmul.bf16.vlgmr.msra.gmra.mxu2 %v10613_v56  ;;  %2891 = vmatmul.bf16.vlgmr.msra.gmra.mxu0 %v10615_v50  ;;  %14168 = vst [vmem:[#allocation128_spill] sm:$0xff] %v10629_v23  ;;  %v7488_v50 = vld [vmem:[#allocation5 + $0x98] sm:$0xf] }
  0xf4   :  { %2842 = vmatmul.bf16.vlgmr.msra.gmra.mxu3 %v10619_v44 }
  0xf5   :  { %2940 = vmatmul.bf16.vlgmr.msra.gmra.mxu1 %v10621_v46  ;;  %3032 = vmatpush.bf16.msrb.mxu3 %v10629_v23  ;;  %v9761_v46 = vld [vmem:[#allocation5 + $0xd4] sm:$0xf0]  ;;  %v10639_v23 = vor.u32 %v9762_v13, %v7496_v45 }
  0xf6   :  { %v2598_v4 = vpop.f32.mrf.mxu2  ;;  %v10637_v31 = vor.u32 %v9761_v46, %v7488_v50 }
  0xf7   :  { %v2599_v36 = vadd.f32 %v2598_v4, %v10473_v42  ;;  %v2647_v11 = vpop.f32.mrf.mxu3  ;;  %v7498_v42 = vld [vmem:[#allocation5 + $0xe0] sm:$0xf0]  ;;  %14170 = vst [vmem:[#allocation130_spill] sm:$0xff] %v10639_v23 }
  0xf8   :  { %v2698_v30 = vpop.f32.mrf.mxu0  ;;  %14169 = vst [vmem:[#allocation129_spill] sm:$0xff] %v10637_v31 }
  0xf9   :  { %v2648_v29 = vadd.f32 %v2647_v11, %v2599_v36 }
  0xfa   :  { %v2747_v41 = vpop.f32.mrf.mxu1 }
  0xfb   :  { %v2697_v44 = vadd.f32 %v2696_v63, %v2648_v29  ;;  %v10641_v63 = vor.u32 %v9753_v15, %v7490_v33  ;;  %v10643_v29 = vor.u32 %v9754_v47, %v7498_v42  ;;  %v8648_v15 = vld [vmem:[#allocation9 + $0x5c0] sm:$0xf] }
  0xfd   :  { %v10634_v56 = vadd.f32 %v2745_v17, %v2697_v44  ;;  %14171 = vst [vmem:[#allocation131_spill] sm:$0xff] %v10641_v63 }
  0xfe   :  { %v2600_v53 = vpop.f32.mrf.mxu2  ;;  %14172 = vst [vmem:[#allocation132_spill] sm:$0xff] %v10643_v29 }
  0xff   :  { %v2601_v4 = vadd.f32 %v2600_v53, %v10493_v52  ;;  %v2649_v7 = vpop.f32.mrf.mxu3  ;;  %v8584_v52 = vld [vmem:[#allocation9 + $0x540] sm:$0xf]  ;;  %v9647_v53 = vld [vmem:[#allocation9 + $0x544] sm:$0xf0] }
 0x100   :  { %v2701_v36 = vpop.f32.mrf.mxu0  ;;  %v10651_v46 = vor.u32 %v9647_v53, %v8584_v52  ;;  %v7560_v52 = vld [vmem:[#allocation5 + $0x120] sm:$0xf] }
 0x101   :  { %v2650_v11 = vadd.f32 %v2649_v7, %v2601_v4  ;;  %v9663_v7 = vld [vmem:[#allocation9 + $0x5c4] sm:$0xf0]  ;;  %v9778_v53 = vld [vmem:[#allocation5 + $0x15c] sm:$0xf0] }
 0x102   :  { %v2750_v44 = vpop.f32.mrf.mxu1  ;;  %14173 = vst [vmem:[#allocation133_spill] sm:$0xff] %v10651_v46  ;;  %v10653_v45 = vor.u32 %v9663_v7, %v8648_v15  ;;  %2984 = vmatpush.bf16.msrb.mxu2 %v10651_v46  ;;  %v7554_v15 = vld [vmem:[#allocation5 + $0x158] sm:$0xf0] }
 0x103   :  { %2798 = vmatmul.bf16.gmra.mxu2 %v10637_v31  ;;  %2896 = vmatmul.bf16.gmra.mxu0 %v10639_v23  ;;  %v2699_v17 = vadd.f32 %v2698_v30, %v2650_v11  ;;  %v7552_v11 = vld [vmem:[#allocation5 + $0x118] sm:$0xf]  ;;  %v9770_v23 = vld [vmem:[#allocation5 + $0x124] sm:$0xf] }
 0x104   :  { %2847 = vmatmul.bf16.gmra.mxu3 %v10641_v63  ;;  %14174 = vst [vmem:[#allocation134_spill] sm:$0xff] %v10653_v45  ;;  %v9769_v63 = vld [vmem:[#allocation5 + $0x11c] sm:$0xf] }
 0x105   :  { %v10648_v50 = vadd.f32 %v2747_v41, %v2699_v17  ;;  %2945 = vmatmul.bf16.gmra.mxu1 %v10643_v29  ;;  %3033 = vmatpush.bf16.msrb.mxu3 %v10653_v45  ;;  %v9777_v17 = vld [vmem:[#allocation5 + $0x154] sm:$0xf0]  ;;  %v10663_v45 = vor.u32 %v9778_v53, %v7560_v52 }
 0x106   :  { %v2603_v47 = vpop.f32.mrf.mxu2  ;;  %v10661_v31 = vor.u32 %v9777_v17, %v7552_v11 }
 0x107   :  { %v2604_v13 = vadd.f32 %v2603_v47, %v10514_v18  ;;  %v2652_v33 = vpop.f32.mrf.mxu3  ;;  %v7562_v18 = vld [vmem:[#allocation5 + $0x160] sm:$0xf0]  ;;  %14176 = vst [vmem:[#allocation136_spill] sm:$0xff] %v10663_v45 }
 0x108   :  { %v2703_v30 = vpop.f32.mrf.mxu0  ;;  %14175 = vst [vmem:[#allocation135_spill] sm:$0xff] %v10661_v31 }
 0x109   :  { %v2653_v42 = vadd.f32 %v2652_v33, %v2604_v13 }
 0x10a   :  { %v2752_v41 = vpop.f32.mrf.mxu1 }
 0x10b   :  { %v2702_v4 = vadd.f32 %v2701_v36, %v2653_v42  ;;  %v10665_v36 = vor.u32 %v9769_v63, %v7554_v15  ;;  %v10667_v42 = vor.u32 %v9770_v23, %v7562_v18  ;;  %v8640_v63 = vld [vmem:[#allocation9 + $0x5b0] sm:$0xf] }
 0x10d   :  { %v10658_v29 = vadd.f32 %v2750_v44, %v2702_v4  ;;  %14177 = vst [vmem:[#allocation137_spill] sm:$0xff] %v10665_v36 }
 0x10e   :  { %v2605_v7 = vpop.f32.mrf.mxu2  ;;  %14178 = vst [vmem:[#allocation138_spill] sm:$0xff] %v10667_v42 }
 0x10f   :  { %v2606_v47 = vadd.f32 %v2605_v7, %v10542_v49  ;;  %v2654_v46 = vpop.f32.mrf.mxu3  ;;  %v8576_v49 = vld [vmem:[#allocation9 + $0x530] sm:$0xf]  ;;  %v9645_v7 = vld [vmem:[#allocation9 + $0x534] sm:$0xf0] }
 0x110   :  { %v2706_v13 = vpop.f32.mrf.mxu0  ;;  %v10675_v17 = vor.u32 %v9645_v7, %v8576_v49  ;;  %v7624_v49 = vld [vmem:[#allocation5 + $0x1a0] sm:$0xf] }
 0x111   :  { %v2655_v33 = vadd.f32 %v2654_v46, %v2606_v47  ;;  %v9661_v46 = vld [vmem:[#allocation9 + $0x5b4] sm:$0xf0]  ;;  %v9794_v7 = vld [vmem:[#allocation5 + $0x1dc] sm:$0xf0] }
 0x112   :  { %v2755_v44 = vpop.f32.mrf.mxu1  ;;  %14179 = vst [vmem:[#allocation139_spill] sm:$0xff] %v10675_v17  ;;  %v10677_v52 = vor.u32 %v9661_v46, %v8640_v63  ;;  %2985 = vmatpush.bf16.msrb.mxu2 %v10675_v17  ;;  %v7618_v63 = vld [vmem:[#allocation5 + $0x1d8] sm:$0xf0] }
 0x113   :  { %2803 = vmatmul.bf16.gmra.mxu2 %v10661_v31  ;;  %2901 = vmatmul.bf16.gmra.mxu0 %v10663_v45  ;;  %v2704_v4 = vadd.f32 %v2703_v30, %v2655_v33  ;;  %v7616_v33 = vld [vmem:[#allocation5 + $0x198] sm:$0xf]  ;;  %v9786_v45 = vld [vmem:[#allocation5 + $0x1a4] sm:$0xf] }
 0x114   :  { %2852 = vmatmul.bf16.gmra.mxu3 %v10665_v36  ;;  %14180 = vst [vmem:[#allocation140_spill] sm:$0xff] %v10677_v52  ;;  %v9785_v36 = vld [vmem:[#allocation5 + $0x19c] sm:$0xf] }
 0x115   :  { %v10672_v11 = vadd.f32 %v2752_v41, %v2704_v4  ;;  %2950 = vmatmul.bf16.gmra.mxu1 %v10667_v42  ;;  %3034 = vmatpush.bf16.msrb.mxu3 %v10677_v52  ;;  %v9793_v4 = vld [vmem:[#allocation5 + $0x1d4] sm:$0xf0]  ;;  %v10687_v52 = vor.u32 %v9794_v7, %v7624_v49 }
 0x116   :  { %v2608_v23 = vpop.f32.mrf.mxu2  ;;  %v10685_v31 = vor.u32 %v9793_v4, %v7616_v33 }
 0x117   :  { %v2609_v53 = vadd.f32 %v2608_v23, %v10564_v24  ;;  %v2657_v15 = vpop.f32.mrf.mxu3  ;;  %v7626_v24 = vld [vmem:[#allocation5 + $0x1e0] sm:$0xf0]  ;;  %14182 = vst [vmem:[#allocation142_spill] sm:$0xff] %v10687_v52 }
 0x118   :  { %v2708_v30 = vpop.f32.mrf.mxu0  ;;  %14181 = vst [vmem:[#allocation141_spill] sm:$0xff] %v10685_v31 }
 0x119   :  { %v2658_v18 = vadd.f32 %v2657_v15, %v2609_v53 }
 0x11a   :  { %v2757_v41 = vpop.f32.mrf.mxu1 }
 0x11b   :  { %v2707_v47 = vadd.f32 %v2706_v13, %v2658_v18  ;;  %v10689_v13 = vor.u32 %v9785_v36, %v7618_v63  ;;  %v10691_v18 = vor.u32 %v9786_v45, %v7626_v24  ;;  %v8632_v36 = vld [vmem:[#allocation9 + $0x5a0] sm:$0xf] }
 0x11d   :  { %v10682_v42 = vadd.f32 %v2755_v44, %v2707_v47  ;;  %14183 = vst [vmem:[#allocation143_spill] sm:$0xff] %v10689_v13 }
 0x11e   :  { %v2610_v46 = vpop.f32.mrf.mxu2  ;;  %14184 = vst [vmem:[#allocation144_spill] sm:$0xff] %v10691_v18 }
 0x11f   :  { %v2611_v23 = vadd.f32 %v2610_v46, %v10582_v21  ;;  %v2659_v17 = vpop.f32.mrf.mxu3  ;;  %v8568_v21 = vld [vmem:[#allocation9 + $0x520] sm:$0xf]  ;;  %v9643_v46 = vld [vmem:[#allocation9 + $0x524] sm:$0xf0] }
 0x120   :  { %v2711_v53 = vpop.f32.mrf.mxu0  ;;  %v10699_v4 = vor.u32 %v9643_v46, %v8568_v21  ;;  %v7688_v21 = vld [vmem:[#allocation5 + $0x220] sm:$0xf] }
 0x121   :  { %v2660_v15 = vadd.f32 %v2659_v17, %v2611_v23  ;;  %v9659_v17 = vld [vmem:[#allocation9 + $0x5a4] sm:$0xf0]  ;;  %v9810_v46 = vld [vmem:[#allocation5 + $0x25c] sm:$0xf0] }
 0x122   :  { %v2760_v44 = vpop.f32.mrf.mxu1  ;;  %14185 = vst [vmem:[#allocation145_spill] sm:$0xff] %v10699_v4  ;;  %v10701_v49 = vor.u32 %v9659_v17, %v8632_v36  ;;  %2986 = vmatpush.bf16.msrb.mxu2 %v10699_v4  ;;  %v7682_v36 = vld [vmem:[#allocation5 + $0x258] sm:$0xf0] }
 0x123   :  { %2808 = vmatmul.bf16.gmra.mxu2 %v10685_v31  ;;  %2906 = vmatmul.bf16.gmra.mxu0 %v10687_v52  ;;  %v2709_v47 = vadd.f32 %v2708_v30, %v2660_v15  ;;  %v7680_v15 = vld [vmem:[#allocation5 + $0x218] sm:$0xf]  ;;  %v9802_v52 = vld [vmem:[#allocation5 + $0x224] sm:$0xf] }
 0x124   :  { %2857 = vmatmul.bf16.gmra.mxu3 %v10689_v13  ;;  %14186 = vst [vmem:[#allocation146_spill] sm:$0xff] %v10701_v49  ;;  %v9801_v13 = vld [vmem:[#allocation5 + $0x21c] sm:$0xf] }
 0x125   :  { %v10696_v33 = vadd.f32 %v2757_v41, %v2709_v47  ;;  %2955 = vmatmul.bf16.gmra.mxu1 %v10691_v18  ;;  %3035 = vmatpush.bf16.msrb.mxu3 %v10701_v49  ;;  %v9809_v47 = vld [vmem:[#allocation5 + $0x254] sm:$0xf0]  ;;  %v10711_v49 = vor.u32 %v9810_v46, %v7688_v21 }
 0x126   :  { %v2613_v45 = vpop.f32.mrf.mxu2  ;;  %v10709_v31 = vor.u32 %v9809_v47, %v7680_v15  ;;  %v9641_v15 = vld [vmem:[#allocation9 + $0x514] sm:$0xf0]  ;;  %v10720_v47 = vor.u32 %v9685_v58, %v8736_v48 }
 0x127   :  { %v2614_v7 = vadd.f32 %v2613_v45, %v10599_v57  ;;  %v2662_v63 = vpop.f32.mrf.mxu3  ;;  %v7690_v57 = vld [vmem:[#allocation5 + $0x260] sm:$0xf0]  ;;  %14188 = vst [vmem:[#allocation148_spill] sm:$0xff] %v10711_v49 }
 0x128   :  { %v2713_v30 = vpop.f32.mrf.mxu0  ;;  %14187 = vst [vmem:[#allocation147_spill] sm:$0xff] %v10709_v31  ;;  %3079 = vmatpush.bf16.msrb.mxu0 %v10720_v47 }
 0x129   :  { %v2663_v24 = vadd.f32 %v2662_v63, %v2614_v7  ;;  %14191 = vst [vmem:[#allocation151_spill] sm:$0xff] %v10720_v47 }
 0x12a   :  { %v2762_v41 = vpop.f32.mrf.mxu1 }
 0x12b   :  { %v2712_v23 = vadd.f32 %v2711_v53, %v2663_v24  ;;  %v10713_v53 = vor.u32 %v9801_v13, %v7682_v36  ;;  %v10715_v24 = vor.u32 %v9802_v52, %v7690_v57  ;;  %v8624_v13 = vld [vmem:[#allocation9 + $0x590] sm:$0xf]  ;;  %v8728_v36 = vld [vmem:[#allocation9 + $0x660] sm:$0xf] }
 0x12d   :  { %v10706_v18 = vadd.f32 %v2760_v44, %v2712_v23  ;;  %14189 = vst [vmem:[#allocation149_spill] sm:$0xff] %v10713_v53 }
 0x12e   :  { %v2615_v17 = vpop.f32.mrf.mxu2  ;;  %14190 = vst [vmem:[#allocation150_spill] sm:$0xff] %v10715_v24 }
 0x12f   :  { %v2616_v45 = vadd.f32 %v2615_v17, %v10611_v10  ;;  %v2664_v4 = vpop.f32.mrf.mxu3  ;;  %v8560_v10 = vld [vmem:[#allocation9 + $0x510] sm:$0xf]  ;;  %v9683_v17 = vld [vmem:[#allocation9 + $0x664] sm:$0xf0] }
 0x130   :  { %v2716_v7 = vpop.f32.mrf.mxu0  ;;  %v10725_v52 = vor.u32 %v9641_v15, %v8560_v10  ;;  %v10732_v58 = vor.u32 %v9683_v17, %v8728_v36  ;;  %v9681_v10 = vld [vmem:[#allocation9 + $0x654] sm:$0xf0]  ;;  %v7746_v36 = vld [vmem:[#allocation5 + $0x2d8] sm:$0xf0]  ;;  %v9818_v17 = vld [vmem:[#allocation5 + $0x2a4] sm:$0xf] }
 0x131   :  { %v2665_v63 = vadd.f32 %v2664_v4, %v2616_v45  ;;  %v9657_v4 = vld [vmem:[#allocation9 + $0x594] sm:$0xf0] }
 0x132   :  { %v2765_v44 = vpop.f32.mrf.mxu1  ;;  %14192 = vst [vmem:[#allocation152_spill] sm:$0xff] %v10725_v52  ;;  %2987 = vmatpush.bf16.msrb.mxu2 %v10725_v52  ;;  %3080 = vmatpush.bf16.msrb.mxu0 %v10732_v58 }
 0x133   :  { %2813 = vmatmul.bf16.gmra.mxu2 %v10709_v31  ;;  %2911 = vmatmul.bf16.gmra.mxu0 %v10711_v49  ;;  %v2714_v23 = vadd.f32 %v2713_v30, %v2665_v63  ;;  %v10728_v30 = vor.u32 %v9657_v4, %v8624_v13  ;;  %14194 = vst [vmem:[#allocation154_spill] sm:$0xff] %v10732_v58  ;;  %v7744_v13 = vld [vmem:[#allocation5 + $0x298] sm:$0xf]  ;;  %v8800_v58 = vld [vmem:[#allocation9 + $0x6f0] sm:$0xf] }
 0x134   :  { %2862 = vmatmul.bf16.gmra.mxu3 %v10713_v53  ;;  %v9825_v4 = vld [vmem:[#allocation5 + $0x2d4] sm:$0xf0]  ;;  %v7754_v53 = vld [vmem:[#allocation5 + $0x2e0] sm:$0xf0] }
 0x135   :  { %v10722_v21 = vadd.f32 %v2762_v41, %v2714_v23  ;;  %2960 = vmatmul.bf16.gmra.mxu1 %v10715_v24  ;;  %14193 = vst [vmem:[#allocation153_spill] sm:$0xff] %v10728_v30  ;;  %3036 = vmatpush.bf16.msrb.mxu3 %v10728_v30  ;;  %v8720_v23 = vld [vmem:[#allocation9 + $0x650] sm:$0xf]  ;;  %v9826_v24 = vld [vmem:[#allocation5 + $0x2dc] sm:$0xf0]  ;;  %v10742_v49 = vor.u32 %v9825_v4, %v7744_v13 }
 0x136   :  { %v2618_v46 = vpop.f32.mrf.mxu2  ;;  %v10736_v47 = vor.u32 %v9681_v10, %v8720_v23  ;;  %v8792_v13 = vld [vmem:[#allocation9 + $0x6e0] sm:$0xf]  ;;  %v9639_v4 = vld [vmem:[#allocation9 + $0x504] sm:$0xf0] }
 0x137   :  { %v2619_v57 = vadd.f32 %v2618_v46, %v10487_v43  ;;  %v2667_v45 = vpop.f32.mrf.mxu3  ;;  %v9817_v43 = vld [vmem:[#allocation5 + $0x29c] sm:$0xf]  ;;  %v7752_v46 = vld [vmem:[#allocation5 + $0x2a0] sm:$0xf]  ;;  %14196 = vst [vmem:[#allocation156_spill] sm:$0xff] %v10742_v49 }
 0x138   :  { %v2718_v48 = vpop.f32.mrf.mxu0  ;;  %14195 = vst [vmem:[#allocation155_spill] sm:$0xff] %v10736_v47  ;;  %3081 = vmatpush.bf16.msrb.mxu0 %v10736_v47  ;;  %v10744_v23 = vor.u32 %v9826_v24, %v7752_v46  ;;  %v10748_v31 = vor.u32 %v9817_v43, %v7746_v36  ;;  %v10752_v47 = vor.u32 %v9818_v17, %v7754_v53  ;;  %v8704_v24 = vld [vmem:[#allocation9 + $0x630] sm:$0xf]  ;;  %v9699_v53 = vld [vmem:[#allocation9 + $0x6e4] sm:$0xf0] }
 0x139   :  { %v2668_v41 = vadd.f32 %v2667_v45, %v2619_v57  ;;  %v8712_v57 = vld [vmem:[#allocation9 + $0x640] sm:$0xf]  ;;  %v9679_v45 = vld [vmem:[#allocation9 + $0x644] sm:$0xf0]  ;;  %v10766_v17 = vor.u32 %v9699_v53, %v8792_v13 }
 0x13a   :  { %v2767_v63 = vpop.f32.mrf.mxu1  ;;  %14197 = vst [vmem:[#allocation157_spill] sm:$0xff] %v10744_v23  ;;  %v10746_v10 = vor.u32 %v9679_v45, %v8712_v57  ;;  %v8616_v57 = vld [vmem:[#allocation9 + $0x580] sm:$0xf] }
 0x13b   :  { %v2717_v15 = vadd.f32 %v2716_v7, %v2668_v41  ;;  %14199 = vst [vmem:[#allocation159_spill] sm:$0xff] %v10748_v31 }
 0x13c   :  { %14198 = vst [vmem:[#allocation158_spill] sm:$0xff] %v10746_v10  ;;  %3082 = vmatpush.bf16.msrb.mxu0 %v10746_v10  ;;  %v9833_v10 = vld [vmem:[#allocation5 + $0x31c] sm:$0xf] }
 0x13d   :  { %v10738_v52 = vadd.f32 %v2765_v44, %v2717_v15  ;;  %v9701_v44 = vld [vmem:[#allocation9 + $0x6f4] sm:$0xf0]  ;;  %14201 = vst [vmem:[#allocation161_spill] sm:$0xff] %v10752_v47 }
 0x13e   :  { %v2620_v30 = vpop.f32.mrf.mxu2  ;;  %v10750_v54 = vor.u32 %v9701_v44, %v8800_v58  ;;  %v8552_v58 = vld [vmem:[#allocation9 + $0x500] sm:$0xf]  ;;  %14204 = vst [vmem:[#allocation164_spill] sm:$0xff] %v10766_v17  ;;  %v8784_v44 = vld [vmem:[#allocation9 + $0x6d0] sm:$0xf] }
 0x13f   :  { %v2621_v7 = vadd.f32 %v2620_v30, %v10502_v22  ;;  %v2669_v41 = vpop.f32.mrf.mxu3  ;;  %v9677_v30 = vld [vmem:[#allocation9 + $0x634] sm:$0xf0]  ;;  %v10764_v36 = vor.u32 %v9639_v4, %v8552_v58 }
 0x140   :  { %v2721_v15 = vpop.f32.mrf.mxu0  ;;  %14200 = vst [vmem:[#allocation160_spill] sm:$0xff] %v10750_v54  ;;  %3128 = vmatpush.bf16.msrb.mxu1 %v10750_v54  ;;  %v10759_v43 = vor.u32 %v9677_v30, %v8704_v24  ;;  %v9697_v30 = vld [vmem:[#allocation9 + $0x6d4] sm:$0xf0] }
 0x141   :  { %v2670_v14 = vadd.f32 %v2669_v41, %v2621_v7  ;;  %14203 = vst [vmem:[#allocation163_spill] sm:$0xff] %v10764_v36  ;;  %v8696_v7 = vld [vmem:[#allocation9 + $0x620] sm:$0xf]  ;;  %v9675_v41 = vld [vmem:[#allocation9 + $0x624] sm:$0xf0]  ;;  %2988 = vmatpush.bf16.msrb.mxu2 %v10764_v36  ;;  %v10777_v58 = vor.u32 %v9697_v30, %v8784_v44 }
 0x142   :  { %v2770_v5 = vpop.f32.mrf.mxu1  ;;  %14202 = vst [vmem:[#allocation162_spill] sm:$0xff] %v10759_v43  ;;  %3083 = vmatpush.bf16.msrb.mxu0 %v10759_v43  ;;  %v7808_v43 = vld [vmem:[#allocation5 + $0x318] sm:$0xf]  ;;  %v9834_v30 = vld [vmem:[#allocation5 + $0x324] sm:$0xf] }
 0x143   :  { %2818 = vmatmul.bf16.gmra.mxu2 %v10742_v49  ;;  %2916 = vmatmul.bf16.gmra.mxu0 %v10744_v23  ;;  %v2719_v22 = vadd.f32 %v2718_v48, %v2670_v14  ;;  %v9655_v14 = vld [vmem:[#allocation9 + $0x584] sm:$0xf0]  ;;  %14207 = vst [vmem:[#allocation167_spill] sm:$0xff] %v10777_v58  ;;  %v9841_v36 = vld [vmem:[#allocation5 + $0x354] sm:$0xf0] }
 0x144   :  { %2867 = vmatmul.bf16.gmra.mxu3 %v10748_v31  ;;  %v10769_v45 = vor.u32 %v9655_v14, %v8616_v57  ;;  %3129 = vmatpush.bf16.msrb.mxu1 %v10766_v17  ;;  %v8688_v57 = vld [vmem:[#allocation9 + $0x610] sm:$0xf]  ;;  %v9673_v14 = vld [vmem:[#allocation9 + $0x614] sm:$0xf0]  ;;  %v7816_v17 = vld [vmem:[#allocation5 + $0x320] sm:$0xf] }
 0x145   :  { %v10761_v46 = vadd.f32 %v2767_v63, %v2719_v22  ;;  %2965 = vmatmul.bf16.gmra.mxu1 %v10752_v47  ;;  %v10774_v22 = vor.u32 %v9675_v41, %v8696_v7  ;;  %v10781_v7 = vor.u32 %v9673_v14, %v8688_v57  ;;  %v9695_v41 = vld [vmem:[#allocation9 + $0x6c4] sm:$0xf0]  ;;  %v8768_v47 = vld [vmem:[#allocation9 + $0x6b0] sm:$0xf] }
 0x146   :  { %v2623_v48 = vpop.f32.mrf.mxu2  ;;  %14205 = vst [vmem:[#allocation165_spill] sm:$0xff] %v10769_v45  ;;  %3037 = vmatpush.bf16.msrb.mxu3 %v10769_v45  ;;  %v9842_v45 = vld [vmem:[#allocation5 + $0x35c] sm:$0xf0] }
 0x147   :  { %v2624_v24 = vadd.f32 %v2623_v48, %v10531_v12  ;;  %v2672_v63 = vpop.f32.mrf.mxu3  ;;  %14206 = vst [vmem:[#allocation166_spill] sm:$0xff] %v10774_v22  ;;  %3084 = vmatpush.bf16.msrb.mxu0 %v10774_v22  ;;  %v8776_v12 = vld [vmem:[#allocation9 + $0x6c0] sm:$0xf]  ;;  %v7818_v22 = vld [vmem:[#allocation5 + $0x360] sm:$0xf0]  ;;  %v10791_v31 = vor.u32 %v9842_v45, %v7816_v17 }
 0x148   :  { %v2723_v13 = vpop.f32.mrf.mxu0  ;;  %3130 = vmatpush.bf16.msrb.mxu1 %v10777_v58  ;;  %14208 = vst [vmem:[#allocation168_spill] sm:$0xff] %v10781_v7  ;;  %v10783_v44 = vor.u32 %v9695_v41, %v8776_v12  ;;  %v10789_v58 = vor.u32 %v9841_v36, %v7808_v43  ;;  %v9693_v12 = vld [vmem:[#allocation9 + $0x6b4] sm:$0xf0]  ;;  %v10800_v49 = vor.u32 %v9834_v30, %v7818_v22  ;;  %v9691_v43 = vld [vmem:[#allocation9 + $0x6a4] sm:$0xf0] }
 0x149   :  { %v2673_v4 = vadd.f32 %v2672_v63, %v2624_v24  ;;  %v7810_v63 = vld [vmem:[#allocation5 + $0x358] sm:$0xf0]  ;;  %14211 = vst [vmem:[#allocation171_spill] sm:$0xff] %v10791_v31  ;;  %v10798_v23 = vor.u32 %v9693_v12, %v8768_v47  ;;  %v9717_v47 = vld [vmem:[#allocation9 + $0x774] sm:$0xf0] }
 0x14a   :  { %v2772_v53 = vpop.f32.mrf.mxu1  ;;  %14209 = vst [vmem:[#allocation169_spill] sm:$0xff] %v10783_v44  ;;  %v10796_v41 = vor.u32 %v9833_v10, %v7810_v63  ;;  %v8864_v10 = vld [vmem:[#allocation9 + $0x770] sm:$0xf]  ;;  %v9733_v63 = vld [vmem:[#allocation9 + $0x7f4] sm:$0xf0] }
 0x14b   :  { %v2722_v48 = vadd.f32 %v2721_v15, %v2673_v4  ;;  %3085 = vmatpush.bf16.msrb.mxu0 %v10781_v7  ;;  %v8680_v15 = vld [vmem:[#allocation9 + $0x600] sm:$0xf]  ;;  %v9671_v4 = vld [vmem:[#allocation9 + $0x604] sm:$0xf0]  ;;  %14210 = vst [vmem:[#allocation170_spill] sm:$0xff] %v10789_v58  ;;  %v10812_v45 = vor.u32 %v9717_v47, %v8864_v10 }
 0x14c   :  { %3131 = vmatpush.bf16.msrb.mxu1 %v10783_v44  ;;  %14213 = vst [vmem:[#allocation173_spill] sm:$0xff] %v10796_v41  ;;  %v8928_v22 = vld [vmem:[#allocation9 + $0x7f0] sm:$0xf]  ;;  %v7872_v47 = vld [vmem:[#allocation5 + $0x398] sm:$0xf] }
 0x14d   :  { %v10785_v24 = vadd.f32 %v2770_v5, %v2722_v48  ;;  %v10794_v5 = vor.u32 %v9671_v4, %v8680_v15  ;;  %14214 = vst [vmem:[#allocation174_spill] sm:$0xff] %v10798_v23  ;;  %v9689_v15 = vld [vmem:[#allocation9 + $0x694] sm:$0xf0]  ;;  %3177 = vmatpush.bf16.msra.mxu2 %v10812_v45 }
 0x14e   :  { %v2625_v54 = vpop.f32.mrf.mxu2  ;;  %14215 = vst [vmem:[#allocation175_spill] sm:$0xff] %v10800_v49 }
 0x14f   :  { %v2626_v57 = vadd.f32 %v2625_v54, %v10552_v3  ;;  %v2674_v14 = vpop.f32.mrf.mxu3  ;;  %14212 = vst [vmem:[#allocation172_spill] sm:$0xff] %v10794_v5  ;;  %3086 = vmatpush.bf16.msrb.mxu0 %v10794_v5  ;;  %v8760_v3 = vld [vmem:[#allocation9 + $0x6a0] sm:$0xf] }
 0x150   :  { %v2726_v48 = vpop.f32.mrf.mxu0  ;;  %3132 = vmatpush.bf16.msrb.mxu1 %v10798_v23  ;;  %v10807_v36 = vor.u32 %v9691_v43, %v8760_v3  ;;  %14217 = vst [vmem:[#allocation177_spill] sm:$0xff] %v10812_v45  ;;  %v8744_v3 = vld [vmem:[#allocation9 + $0x680] sm:$0xf]  ;;  %v9687_v43 = vld [vmem:[#allocation9 + $0x684] sm:$0xf0] }
 0x151   :  { %v2675_v7 = vadd.f32 %v2674_v14, %v2626_v57  ;;  %v9858_v5 = vld [vmem:[#allocation5 + $0x3dc] sm:$0xf0]  ;;  %v9849_v45 = vld [vmem:[#allocation5 + $0x39c] sm:$0xf] }
 0x152   :  { %v2775_v20 = vpop.f32.mrf.mxu1  ;;  %14216 = vst [vmem:[#allocation176_spill] sm:$0xff] %v10807_v36 }
 0x153   :  { %2823 = vmatmul.bf16.gmra.mxu2 %v10789_v58  ;;  %2921 = vmatmul.bf16.gmra.mxu0 %v10791_v31  ;;  %v2724_v54 = vadd.f32 %v2723_v13, %v2675_v7  ;;  %v10814_v13 = vor.u32 %v9733_v63, %v8928_v22  ;;  %v8752_v7 = vld [vmem:[#allocation9 + $0x690] sm:$0xf]  ;;  %v9857_v22 = vld [vmem:[#allocation5 + $0x3d4] sm:$0xf0]  ;;  %v7880_v63 = vld [vmem:[#allocation5 + $0x3a0] sm:$0xf] }
 0x154   :  { %2872 = vmatmul.bf16.gmra.mxu3 %v10796_v41  ;;  %3133 = vmatpush.bf16.msrb.mxu1 %v10807_v36  ;;  %v7874_v36 = vld [vmem:[#allocation5 + $0x3d8] sm:$0xf0]  ;;  %v10828_v23 = vor.u32 %v9857_v22, %v7872_v47  ;;  %v9731_v47 = vld [vmem:[#allocation9 + $0x7e4] sm:$0xf0] }
 0x155   :  { %v10809_v17 = vadd.f32 %v2772_v53, %v2724_v54  ;;  %2970 = vmatmul.bf16.gmra.mxu1 %v10800_v49  ;;  %14218 = vst [vmem:[#allocation178_spill] sm:$0xff] %v10814_v13  ;;  %3226 = vmatpush.bf16.msra.mxu3 %v10814_v13  ;;  %v10820_v53 = vor.u32 %v9689_v15, %v8752_v7  ;;  %v9850_v7 = vld [vmem:[#allocation5 + $0x3a4] sm:$0xf] }
 0x156   :  { %v2628_v30 = vpop.f32.mrf.mxu2  ;;  %v7882_v15 = vld [vmem:[#allocation5 + $0x3e0] sm:$0xf0]  ;;  %14221 = vst [vmem:[#allocation181_spill] sm:$0xff] %v10828_v23  ;;  %v10832_v44 = vor.u32 %v9849_v45, %v7874_v36  ;;  %v8920_v45 = vld [vmem:[#allocation9 + $0x7e0] sm:$0xf] }
 0x157   :  { %v2629_v4 = vadd.f32 %v2628_v30, %v10578_v32  ;;  %v2677_v57 = vpop.f32.mrf.mxu3  ;;  %14219 = vst [vmem:[#allocation179_spill] sm:$0xff] %v10820_v53  ;;  %v10823_v32 = vor.u32 %v9687_v43, %v8744_v3 }
 0x158   :  { %v2728_v14 = vpop.f32.mrf.mxu0  ;;  %3134 = vmatpush.bf16.msrb.mxu1 %v10820_v53  ;;  %14223 = vst [vmem:[#allocation183_spill] sm:$0xff] %v10832_v44  ;;  %v9739_v53 = vld [vmem:[#allocation5 + $0x2c] sm:$0xf] }
 0x159   :  { %v2678_v12 = vadd.f32 %v2677_v57, %v2629_v4  ;;  %14220 = vst [vmem:[#allocation180_spill] sm:$0xff] %v10823_v32 }
 0x15a   :  { %v2777_v54 = vpop.f32.mrf.mxu1 }
 0x15b   :  { %v2727_v10 = vadd.f32 %v2726_v48, %v2678_v12  ;;  %v10830_v48 = vor.u32 %v9858_v5, %v7880_v63  ;;  %v10845_v63 = vor.u32 %v9731_v47, %v8920_v45  ;;  %v7442_v45 = vld [vmem:[#allocation5 + $0x68] sm:$0xf0] }
 0x15c   :  { %3135 = vmatpush.bf16.msrb.mxu1 %v10823_v32 }
 0x15d   :  { %v10825_v30 = vadd.f32 %v2775_v20, %v2727_v10  ;;  %14222 = vst [vmem:[#allocation182_spill] sm:$0xff] %v10830_v48  ;;  %v10835_v20 = vor.u32 %v9850_v7, %v7882_v15  ;;  %3227 = vmatpush.bf16.msra.mxu3 %v10845_v63 }
 0x15e   :  { %v2630_v13 = vpop.f32.mrf.mxu2  ;;  %14226 = vst [vmem:[#allocation186_spill] sm:$0xff] %v10845_v63 }
 0x15f   :  { %v2631_v4 = vadd.f32 %v2630_v13, %v10591_v8  ;;  %v2679_v57 = vpop.f32.mrf.mxu3  ;;  %14224 = vst [vmem:[#allocation184_spill] sm:$0xff] %v10835_v20  ;;  %v8856_v8 = vld [vmem:[#allocation9 + $0x760] sm:$0xf]  ;;  %v9715_v13 = vld [vmem:[#allocation9 + $0x764] sm:$0xf0] }
 0x160   :  { %v2731_v12 = vpop.f32.mrf.mxu0  ;;  %v10843_v36 = vor.u32 %v9715_v13, %v8856_v8  ;;  %v7448_v8 = vld [vmem:[#allocation5 + $0x30] sm:$0xf] }
 0x161   :  { %v2680_v3 = vadd.f32 %v2679_v57, %v2631_v4  ;;  %v9748_v13 = vld [vmem:[#allocation5 + $0x6c] sm:$0xf0] }
 0x162   :  { %v2780_v43 = vpop.f32.mrf.mxu1  ;;  %14225 = vst [vmem:[#allocation185_spill] sm:$0xff] %v10843_v36  ;;  %3178 = vmatpush.bf16.msra.mxu2 %v10843_v36  ;;  %v10855_v63 = vor.u32 %v9748_v13, %v7448_v8 }
 0x163   :  { %2828 = vmatmul.bf16.gmra.mxu2 %v10828_v23  ;;  %2926 = vmatmul.bf16.gmra.mxu0 %v10830_v48  ;;  %v2729_v10 = vadd.f32 %v2728_v14, %v2680_v3  ;;  %v7440_v3 = vld [vmem:[#allocation5 + $0x28] sm:$0xf]  ;;  %v9492_v48 = vld [vmem:[#allocation9 + $0x74] sm:$0xf]  ;;  %v7970_v23 = vld [vmem:[#allocation9 + $0x78] sm:$0xf0] }
 0x164   :  { %2877 = vmatmul.bf16.gmra.mxu3 %v10832_v44  ;;  %14228 = vst [vmem:[#allocation188_spill] sm:$0xff] %v10855_v63 }
 0x165   :  { %v10840_v5 = vadd.f32 %v2777_v54, %v2729_v10  ;;  %2975 = vmatmul.bf16.gmra.mxu1 %v10835_v20  ;;  %v9747_v10 = vld [vmem:[#allocation5 + $0x64] sm:$0xf0]  ;;  %v9740_v20 = vld [vmem:[#allocation5 + $0x34] sm:$0xf] }
 0x166   :  { %v2633_v22 = vpop.f32.mrf.mxu2  ;;  %v10853_v44 = vor.u32 %v9747_v10, %v7440_v3 }
 0x167   :  { %v2634_v7 = vadd.f32 %v2633_v22, %v10608_v35  ;;  %v2682_v15 = vpop.f32.mrf.mxu3  ;;  %v7450_v35 = vld [vmem:[#allocation5 + $0x70] sm:$0xf0] }
 0x168   :  { %v2733_v14 = vpop.f32.mrf.mxu0  ;;  %14227 = vst [vmem:[#allocation187_spill] sm:$0xff] %v10853_v44 }
 0x169   :  { %v2683_v4 = vadd.f32 %v2682_v15, %v2634_v7 }
 0x16a   :  { %v2782_v54 = vpop.f32.mrf.mxu1 }
 0x16b   :  { %v2732_v57 = vadd.f32 %v2731_v12, %v2683_v4  ;;  %v10857_v12 = vor.u32 %v9739_v53, %v7442_v45  ;;  %v10859_v4 = vor.u32 %v9740_v20, %v7450_v35  ;;  %v8912_v53 = vld [vmem:[#allocation9 + $0x7d0] sm:$0xf] }
 0x16d   :  { %v10850_v32 = vadd.f32 %v2780_v43, %v2732_v57  ;;  %14229 = vst [vmem:[#allocation189_spill] sm:$0xff] %v10857_v12 }
 0x16e   :  { %v2635_v47 = vpop.f32.mrf.mxu2  ;;  %14230 = vst [vmem:[#allocation190_spill] sm:$0xff] %v10859_v4 }
 0x16f   :  { %v2636_v22 = vadd.f32 %v2635_v47, %v10617_v38  ;;  %v2684_v36 = vpop.f32.mrf.mxu3  ;;  %v8848_v38 = vld [vmem:[#allocation9 + $0x750] sm:$0xf]  ;;  %v9713_v47 = vld [vmem:[#allocation9 + $0x754] sm:$0xf0] }
 0x170   :  { %v2892_v7 = vpop.f32.mrf.mxu0  ;;  %v10867_v10 = vor.u32 %v9713_v47, %v8848_v38  ;;  %v7512_v38 = vld [vmem:[#allocation5 + $0xb0] sm:$0xf] }
 0x171   :  { %v2685_v15 = vadd.f32 %v2684_v36, %v2636_v22  ;;  %v9729_v36 = vld [vmem:[#allocation9 + $0x7d4] sm:$0xf0]  ;;  %v9764_v47 = vld [vmem:[#allocation5 + $0xec] sm:$0xf0] }
 0x172   :  { %v2941_v43 = vpop.f32.mrf.mxu1  ;;  %14231 = vst [vmem:[#allocation191_spill] sm:$0xff] %v10867_v10  ;;  %v10869_v8 = vor.u32 %v9729_v36, %v8912_v53  ;;  %3179 = vmatpush.bf16.msra.mxu2 %v10867_v10  ;;  %v7506_v53 = vld [vmem:[#allocation5 + $0xe8] sm:$0xf0] }
 0x173   :  { %2989 = vmatmul.bf16.vlgmr.msrb.gmra.mxu2 %v10853_v44  ;;  %3087 = vmatmul.bf16.vlgmr.msrb.gmra.mxu0 %v10855_v63  ;;  %v2734_v57 = vadd.f32 %v2733_v14, %v2685_v15  ;;  %v7504_v15 = vld [vmem:[#allocation5 + $0xa8] sm:$0xf]  ;;  %v9756_v63 = vld [vmem:[#allocation5 + $0xb4] sm:$0xf] }
 0x174   :  { %3038 = vmatmul.bf16.vlgmr.msrb.gmra.mxu3 %v10857_v12  ;;  %14232 = vst [vmem:[#allocation192_spill] sm:$0xff] %v10869_v8  ;;  %v9755_v12 = vld [vmem:[#allocation5 + $0xac] sm:$0xf] }
 0x175   :  { %v10864_v3 = vadd.f32 %v2782_v54, %v2734_v57  ;;  %3136 = vmatmul.bf16.vlgmr.msrb.gmra.mxu1 %v10859_v4  ;;  %3228 = vmatpush.bf16.msra.mxu3 %v10869_v8  ;;  %v9763_v57 = vld [vmem:[#allocation5 + $0xe4] sm:$0xf0]  ;;  %v10879_v8 = vor.u32 %v9764_v47, %v7512_v38 }
 0x176   :  { %v2794_v20 = vpop.f32.mrf.mxu2  ;;  %v10877_v44 = vor.u32 %v9763_v57, %v7504_v15 }
 0x177   :  { %v2795_v13 = vadd.f32 %v2794_v20, %v10634_v56  ;;  %v2843_v45 = vpop.f32.mrf.mxu3  ;;  %v7514_v56 = vld [vmem:[#allocation5 + $0xf0] sm:$0xf0]  ;;  %14234 = vst [vmem:[#allocation194_spill] sm:$0xff] %v10879_v8 }
 0x178   :  { %v2894_v14 = vpop.f32.mrf.mxu0  ;;  %14233 = vst [vmem:[#allocation193_spill] sm:$0xff] %v10877_v44 }
 0x179   :  { %v2844_v35 = vadd.f32 %v2843_v45, %v2795_v13 }
 0x17a   :  { %v2943_v54 = vpop.f32.mrf.mxu1 }
 0x17b   :  { %v2893_v22 = vadd.f32 %v2892_v7, %v2844_v35  ;;  %v10881_v7 = vor.u32 %v9755_v12, %v7506_v53  ;;  %v10883_v35 = vor.u32 %v9756_v63, %v7514_v56  ;;  %v8904_v12 = vld [vmem:[#allocation9 + $0x7c0] sm:$0xf] }
 0x17d   :  { %v10874_v4 = vadd.f32 %v2941_v43, %v2893_v22  ;;  %14235 = vst [vmem:[#allocation195_spill] sm:$0xff] %v10881_v7 }
 0x17e   :  { %v2796_v36 = vpop.f32.mrf.mxu2  ;;  %14236 = vst [vmem:[#allocation196_spill] sm:$0xff] %v10883_v35 }
 0x17f   :  { %v2797_v20 = vadd.f32 %v2796_v36, %v10648_v50  ;;  %v2845_v10 = vpop.f32.mrf.mxu3  ;;  %v8840_v50 = vld [vmem:[#allocation9 + $0x740] sm:$0xf]  ;;  %v9711_v36 = vld [vmem:[#allocation9 + $0x744] sm:$0xf0] }
 0x180   :  { %v2897_v13 = vpop.f32.mrf.mxu0  ;;  %v10891_v57 = vor.u32 %v9711_v36, %v8840_v50  ;;  %v7576_v50 = vld [vmem:[#allocation5 + $0x130] sm:$0xf] }
 0x181   :  { %v2846_v45 = vadd.f32 %v2845_v10, %v2797_v20  ;;  %v9727_v10 = vld [vmem:[#allocation9 + $0x7c4] sm:$0xf0]  ;;  %v9780_v36 = vld [vmem:[#allocation5 + $0x16c] sm:$0xf0] }
 0x182   :  { %v2946_v43 = vpop.f32.mrf.mxu1  ;;  %14237 = vst [vmem:[#allocation197_spill] sm:$0xff] %v10891_v57  ;;  %v10893_v38 = vor.u32 %v9727_v10, %v8904_v12  ;;  %3180 = vmatpush.bf16.msra.mxu2 %v10891_v57  ;;  %v7570_v12 = vld [vmem:[#allocation5 + $0x168] sm:$0xf0] }
 0x183   :  { %2994 = vmatmul.bf16.gmra.mxu2 %v10877_v44  ;;  %3092 = vmatmul.bf16.gmra.mxu0 %v10879_v8  ;;  %v2895_v22 = vadd.f32 %v2894_v14, %v2846_v45  ;;  %v7568_v45 = vld [vmem:[#allocation5 + $0x128] sm:$0xf]  ;;  %v9772_v8 = vld [vmem:[#allocation5 + $0x134] sm:$0xf] }
 0x184   :  { %3043 = vmatmul.bf16.gmra.mxu3 %v10881_v7  ;;  %14238 = vst [vmem:[#allocation198_spill] sm:$0xff] %v10893_v38  ;;  %v9771_v7 = vld [vmem:[#allocation5 + $0x12c] sm:$0xf] }
 0x185   :  { %v10888_v15 = vadd.f32 %v2943_v54, %v2895_v22  ;;  %3141 = vmatmul.bf16.gmra.mxu1 %v10883_v35  ;;  %3229 = vmatpush.bf16.msra.mxu3 %v10893_v38  ;;  %v9779_v22 = vld [vmem:[#allocation5 + $0x164] sm:$0xf0]  ;;  %v10903_v38 = vor.u32 %v9780_v36, %v7576_v50 }
 0x186   :  { %v2799_v63 = vpop.f32.mrf.mxu2  ;;  %v10901_v44 = vor.u32 %v9779_v22, %v7568_v45 }
 0x187   :  { %v2800_v47 = vadd.f32 %v2799_v63, %v10658_v29  ;;  %v2848_v53 = vpop.f32.mrf.mxu3  ;;  %v7578_v29 = vld [vmem:[#allocation5 + $0x170] sm:$0xf0]  ;;  %14240 = vst [vmem:[#allocation200_spill] sm:$0xff] %v10903_v38 }
 0x188   :  { %v2899_v14 = vpop.f32.mrf.mxu0  ;;  %14239 = vst [vmem:[#allocation199_spill] sm:$0xff] %v10901_v44 }
 0x189   :  { %v2849_v56 = vadd.f32 %v2848_v53, %v2800_v47 }
 0x18a   :  { %v2948_v54 = vpop.f32.mrf.mxu1 }
 0x18b   :  { %v2898_v20 = vadd.f32 %v2897_v13, %v2849_v56  ;;  %v10905_v13 = vor.u32 %v9771_v7, %v7570_v12  ;;  %v10907_v56 = vor.u32 %v9772_v8, %v7578_v29  ;;  %v8896_v7 = vld [vmem:[#allocation9 + $0x7b0] sm:$0xf] }
 0x18d   :  { %v10898_v35 = vadd.f32 %v2946_v43, %v2898_v20  ;;  %14241 = vst [vmem:[#allocation201_spill] sm:$0xff] %v10905_v13 }
 0x18e   :  { %v2801_v10 = vpop.f32.mrf.mxu2  ;;  %14242 = vst [vmem:[#allocation202_spill] sm:$0xff] %v10907_v56 }
 0x18f   :  { %v2802_v63 = vadd.f32 %v2801_v10, %v10672_v11  ;;  %v2850_v57 = vpop.f32.mrf.mxu3  ;;  %v8832_v11 = vld [vmem:[#allocation9 + $0x730] sm:$0xf]  ;;  %v9709_v10 = vld [vmem:[#allocation9 + $0x734] sm:$0xf0] }
 0x190   :  { %v2902_v47 = vpop.f32.mrf.mxu0  ;;  %v10915_v22 = vor.u32 %v9709_v10, %v8832_v11  ;;  %v7640_v11 = vld [vmem:[#allocation5 + $0x1b0] sm:$0xf] }
 0x191   :  { %v2851_v53 = vadd.f32 %v2850_v57, %v2802_v63  ;;  %v9725_v57 = vld [vmem:[#allocation9 + $0x7b4] sm:$0xf0]  ;;  %v9796_v10 = vld [vmem:[#allocation5 + $0x1ec] sm:$0xf0] }
 0x192   :  { %v2951_v43 = vpop.f32.mrf.mxu1  ;;  %14243 = vst [vmem:[#allocation203_spill] sm:$0xff] %v10915_v22  ;;  %v10917_v50 = vor.u32 %v9725_v57, %v8896_v7  ;;  %3181 = vmatpush.bf16.msra.mxu2 %v10915_v22  ;;  %v7634_v7 = vld [vmem:[#allocation5 + $0x1e8] sm:$0xf0] }
 0x193   :  { %2999 = vmatmul.bf16.gmra.mxu2 %v10901_v44  ;;  %3097 = vmatmul.bf16.gmra.mxu0 %v10903_v38  ;;  %v2900_v20 = vadd.f32 %v2899_v14, %v2851_v53  ;;  %v7632_v53 = vld [vmem:[#allocation5 + $0x1a8] sm:$0xf]  ;;  %v9788_v38 = vld [vmem:[#allocation5 + $0x1b4] sm:$0xf] }
 0x194   :  { %3048 = vmatmul.bf16.gmra.mxu3 %v10905_v13  ;;  %14244 = vst [vmem:[#allocation204_spill] sm:$0xff] %v10917_v50  ;;  %v9787_v13 = vld [vmem:[#allocation5 + $0x1ac] sm:$0xf] }
 0x195   :  { %v10912_v45 = vadd.f32 %v2948_v54, %v2900_v20  ;;  %3146 = vmatmul.bf16.gmra.mxu1 %v10907_v56  ;;  %3230 = vmatpush.bf16.msra.mxu3 %v10917_v50  ;;  %v9795_v20 = vld [vmem:[#allocation5 + $0x1e4] sm:$0xf0]  ;;  %v10927_v50 = vor.u32 %v9796_v10, %v7640_v11 }
 0x196   :  { %v2804_v8 = vpop.f32.mrf.mxu2  ;;  %v10925_v44 = vor.u32 %v9795_v20, %v7632_v53 }
 0x197   :  { %v2805_v36 = vadd.f32 %v2804_v8, %v10682_v42  ;;  %v2853_v12 = vpop.f32.mrf.mxu3  ;;  %v7642_v42 = vld [vmem:[#allocation5 + $0x1f0] sm:$0xf0]  ;;  %14246 = vst [vmem:[#allocation206_spill] sm:$0xff] %v10927_v50 }
 0x198   :  { %v2904_v14 = vpop.f32.mrf.mxu0  ;;  %14245 = vst [vmem:[#allocation205_spill] sm:$0xff] %v10925_v44 }
 0x199   :  { %v2854_v29 = vadd.f32 %v2853_v12, %v2805_v36 }
 0x19a   :  { %v2953_v54 = vpop.f32.mrf.mxu1 }
 0x19b   :  { %v2903_v63 = vadd.f32 %v2902_v47, %v2854_v29  ;;  %v10929_v47 = vor.u32 %v9787_v13, %v7634_v7  ;;  %v10931_v29 = vor.u32 %v9788_v38, %v7642_v42  ;;  %v8888_v13 = vld [vmem:[#allocation9 + $0x7a0] sm:$0xf] }
 0x19d   :  { %v10922_v56 = vadd.f32 %v2951_v43, %v2903_v63  ;;  %14247 = vst [vmem:[#allocation207_spill] sm:$0xff] %v10929_v47 }
 0x19e   :  { %v2806_v57 = vpop.f32.mrf.mxu2  ;;  %14248 = vst [vmem:[#allocation208_spill] sm:$0xff] %v10931_v29 }
 0x19f   :  { %v2807_v8 = vadd.f32 %v2806_v57, %v10696_v33  ;;  %v2855_v22 = vpop.f32.mrf.mxu3  ;;  %v8824_v33 = vld [vmem:[#allocation9 + $0x720] sm:$0xf]  ;;  %v9707_v57 = vld [vmem:[#allocation9 + $0x724] sm:$0xf0] }
 0x1a0   :  { %v2907_v36 = vpop.f32.mrf.mxu0  ;;  %v10939_v20 = vor.u32 %v9707_v57, %v8824_v33  ;;  %v7704_v33 = vld [vmem:[#allocation5 + $0x230] sm:$0xf] }
 0x1a1   :  { %v2856_v12 = vadd.f32 %v2855_v22, %v2807_v8  ;;  %v9723_v22 = vld [vmem:[#allocation9 + $0x7a4] sm:$0xf0]  ;;  %v9812_v57 = vld [vmem:[#allocation5 + $0x26c] sm:$0xf0] }
 0x1a2   :  { %v2956_v43 = vpop.f32.mrf.mxu1  ;;  %14249 = vst [vmem:[#allocation209_spill] sm:$0xff] %v10939_v20  ;;  %v10941_v11 = vor.u32 %v9723_v22, %v8888_v13  ;;  %3182 = vmatpush.bf16.msra.mxu2 %v10939_v20  ;;  %v7698_v13 = vld [vmem:[#allocation5 + $0x268] sm:$0xf0] }
 0x1a3   :  { %3004 = vmatmul.bf16.gmra.mxu2 %v10925_v44  ;;  %3102 = vmatmul.bf16.gmra.mxu0 %v10927_v50  ;;  %v2905_v63 = vadd.f32 %v2904_v14, %v2856_v12  ;;  %v7696_v12 = vld [vmem:[#allocation5 + $0x228] sm:$0xf]  ;;  %v9804_v50 = vld [vmem:[#allocation5 + $0x234] sm:$0xf] }
 0x1a4   :  { %3053 = vmatmul.bf16.gmra.mxu3 %v10929_v47  ;;  %14250 = vst [vmem:[#allocation210_spill] sm:$0xff] %v10941_v11  ;;  %v9803_v47 = vld [vmem:[#allocation5 + $0x22c] sm:$0xf] }
 0x1a5   :  { %v10936_v53 = vadd.f32 %v2953_v54, %v2905_v63  ;;  %3151 = vmatmul.bf16.gmra.mxu1 %v10931_v29  ;;  %3231 = vmatpush.bf16.msra.mxu3 %v10941_v11  ;;  %v9811_v63 = vld [vmem:[#allocation5 + $0x264] sm:$0xf0]  ;;  %v10951_v11 = vor.u32 %v9812_v57, %v7704_v33 }
 0x1a6   :  { %v2809_v38 = vpop.f32.mrf.mxu2  ;;  %v10949_v44 = vor.u32 %v9811_v63, %v7696_v12  ;;  %v9705_v12 = vld [vmem:[#allocation9 + $0x714] sm:$0xf0]  ;;  %v10960_v63 = vor.u32 %v9492_v48, %v7970_v23 }
 0x1a7   :  { %v2810_v10 = vadd.f32 %v2809_v38, %v10706_v18  ;;  %v2858_v7 = vpop.f32.mrf.mxu3  ;;  %v7706_v18 = vld [vmem:[#allocation5 + $0x270] sm:$0xf0]  ;;  %14252 = vst [vmem:[#allocation212_spill] sm:$0xff] %v10951_v11 }
 0x1a8   :  { %v2909_v14 = vpop.f32.mrf.mxu0  ;;  %14251 = vst [vmem:[#allocation211_spill] sm:$0xff] %v10949_v44  ;;  %3275 = vmatpush.bf16.msra.mxu0 %v10960_v63 }
 0x1a9   :  { %v2859_v42 = vadd.f32 %v2858_v7, %v2810_v10  ;;  %14255 = vst [vmem:[#allocation215_spill] sm:$0xff] %v10960_v63 }
 0x1aa   :  { %v2958_v54 = vpop.f32.mrf.mxu1 }
 0x1ab   :  { %v2908_v8 = vadd.f32 %v2907_v36, %v2859_v42  ;;  %v10953_v36 = vor.u32 %v9803_v47, %v7698_v13  ;;  %v10955_v42 = vor.u32 %v9804_v50, %v7706_v18  ;;  %v8880_v47 = vld [vmem:[#allocation9 + $0x790] sm:$0xf]  ;;  %v9490_v13 = vld [vmem:[#allocation9 + $0x64] sm:$0xf] }
 0x1ad   :  { %v10946_v29 = vadd.f32 %v2956_v43, %v2908_v8  ;;  %14253 = vst [vmem:[#allocation213_spill] sm:$0xff] %v10953_v36 }
 0x1ae   :  { %v2811_v22 = vpop.f32.mrf.mxu2  ;;  %14254 = vst [vmem:[#allocation214_spill] sm:$0xff] %v10955_v42 }
 0x1af   :  { %v2812_v38 = vadd.f32 %v2811_v22, %v10722_v21  ;;  %v2860_v20 = vpop.f32.mrf.mxu3  ;;  %v8816_v21 = vld [vmem:[#allocation9 + $0x710] sm:$0xf]  ;;  %v7962_v22 = vld [vmem:[#allocation9 + $0x68] sm:$0xf0] }
 0x1b0   :  { %v2912_v10 = vpop.f32.mrf.mxu0  ;;  %v10965_v50 = vor.u32 %v9705_v12, %v8816_v21  ;;  %v10972_v23 = vor.u32 %v9490_v13, %v7962_v22  ;;  %v7954_v21 = vld [vmem:[#allocation9 + $0x58] sm:$0xf0]  ;;  %v7762_v13 = vld [vmem:[#allocation5 + $0x2e8] sm:$0xf0]  ;;  %v9820_v22 = vld [vmem:[#allocation5 + $0x2b4] sm:$0xf] }
 0x1b1   :  { %v2861_v7 = vadd.f32 %v2860_v20, %v2812_v38  ;;  %v9721_v20 = vld [vmem:[#allocation9 + $0x794] sm:$0xf0] }
 0x1b2   :  { %v2961_v43 = vpop.f32.mrf.mxu1  ;;  %14256 = vst [vmem:[#allocation216_spill] sm:$0xff] %v10965_v50  ;;  %3183 = vmatpush.bf16.msra.mxu2 %v10965_v50  ;;  %3276 = vmatpush.bf16.msra.mxu0 %v10972_v23 }
 0x1b3   :  { %3009 = vmatmul.bf16.gmra.mxu2 %v10949_v44  ;;  %3107 = vmatmul.bf16.gmra.mxu0 %v10951_v11  ;;  %v2910_v8 = vadd.f32 %v2909_v14, %v2861_v7  ;;  %v10968_v14 = vor.u32 %v9721_v20, %v8880_v47  ;;  %14258 = vst [vmem:[#allocation218_spill] sm:$0xff] %v10972_v23  ;;  %v7760_v47 = vld [vmem:[#allocation5 + $0x2a8] sm:$0xf]  ;;  %v9508_v23 = vld [vmem:[#allocation9 + $0xf4] sm:$0xf] }
 0x1b4   :  { %3058 = vmatmul.bf16.gmra.mxu3 %v10953_v36  ;;  %v9827_v20 = vld [vmem:[#allocation5 + $0x2e4] sm:$0xf0]  ;;  %v7770_v36 = vld [vmem:[#allocation5 + $0x2f0] sm:$0xf0] }
 0x1b5   :  { %v10962_v33 = vadd.f32 %v2958_v54, %v2910_v8  ;;  %3156 = vmatmul.bf16.gmra.mxu1 %v10955_v42  ;;  %14257 = vst [vmem:[#allocation217_spill] sm:$0xff] %v10968_v14  ;;  %3232 = vmatpush.bf16.msra.mxu3 %v10968_v14  ;;  %v9488_v8 = vld [vmem:[#allocation9 + $0x54] sm:$0xf]  ;;  %v9828_v42 = vld [vmem:[#allocation5 + $0x2ec] sm:$0xf0]  ;;  %v10982_v11 = vor.u32 %v9827_v20, %v7760_v47 }
 0x1b6   :  { %v2814_v57 = vpop.f32.mrf.mxu2  ;;  %v10976_v63 = vor.u32 %v9488_v8, %v7954_v21  ;;  %v9506_v47 = vld [vmem:[#allocation9 + $0xe4] sm:$0xf]  ;;  %v9703_v20 = vld [vmem:[#allocation9 + $0x704] sm:$0xf0] }
 0x1b7   :  { %v2815_v18 = vadd.f32 %v2814_v57, %v10738_v52  ;;  %v2863_v38 = vpop.f32.mrf.mxu3  ;;  %v9819_v52 = vld [vmem:[#allocation5 + $0x2ac] sm:$0xf]  ;;  %v7768_v57 = vld [vmem:[#allocation5 + $0x2b0] sm:$0xf]  ;;  %14260 = vst [vmem:[#allocation220_spill] sm:$0xff] %v10982_v11 }
 0x1b8   :  { %v2914_v48 = vpop.f32.mrf.mxu0  ;;  %14259 = vst [vmem:[#allocation219_spill] sm:$0xff] %v10976_v63  ;;  %3277 = vmatpush.bf16.msra.mxu0 %v10976_v63  ;;  %v10984_v8 = vor.u32 %v9828_v42, %v7768_v57  ;;  %v10988_v44 = vor.u32 %v9819_v52, %v7762_v13  ;;  %v10992_v63 = vor.u32 %v9820_v22, %v7770_v36  ;;  %v9484_v42 = vld [vmem:[#allocation9 + $0x34] sm:$0xf]  ;;  %v8026_v36 = vld [vmem:[#allocation9 + $0xe8] sm:$0xf0] }
 0x1b9   :  { %v2864_v54 = vadd.f32 %v2863_v38, %v2815_v18  ;;  %v9486_v18 = vld [vmem:[#allocation9 + $0x44] sm:$0xf]  ;;  %v7946_v38 = vld [vmem:[#allocation9 + $0x48] sm:$0xf0]  ;;  %v11006_v22 = vor.u32 %v9506_v47, %v8026_v36 }
 0x1ba   :  { %v2963_v7 = vpop.f32.mrf.mxu1  ;;  %14261 = vst [vmem:[#allocation221_spill] sm:$0xff] %v10984_v8  ;;  %v10986_v21 = vor.u32 %v9486_v18, %v7946_v38  ;;  %v8872_v18 = vld [vmem:[#allocation9 + $0x780] sm:$0xf] }
 0x1bb   :  { %v2913_v12 = vadd.f32 %v2912_v10, %v2864_v54  ;;  %14263 = vst [vmem:[#allocation223_spill] sm:$0xff] %v10988_v44 }
 0x1bc   :  { %14262 = vst [vmem:[#allocation222_spill] sm:$0xff] %v10986_v21  ;;  %3278 = vmatpush.bf16.msra.mxu0 %v10986_v21  ;;  %v9835_v21 = vld [vmem:[#allocation5 + $0x32c] sm:$0xf] }
 0x1bd   :  { %v10978_v50 = vadd.f32 %v2961_v43, %v2913_v12  ;;  %v8034_v43 = vld [vmem:[#allocation9 + $0xf8] sm:$0xf0]  ;;  %14265 = vst [vmem:[#allocation225_spill] sm:$0xff] %v10992_v63 }
 0x1be   :  { %v2816_v14 = vpop.f32.mrf.mxu2  ;;  %v10990_v49 = vor.u32 %v9508_v23, %v8034_v43  ;;  %v8808_v23 = vld [vmem:[#allocation9 + $0x700] sm:$0xf]  ;;  %14268 = vst [vmem:[#allocation228_spill] sm:$0xff] %v11006_v22  ;;  %v9504_v43 = vld [vmem:[#allocation9 + $0xd4] sm:$0xf] }
 0x1bf   :  { %v2817_v10 = vadd.f32 %v2816_v14, %v10761_v46  ;;  %v2865_v54 = vpop.f32.mrf.mxu3  ;;  %v7938_v14 = vld [vmem:[#allocation9 + $0x38] sm:$0xf0]  ;;  %v11004_v13 = vor.u32 %v9703_v20, %v8808_v23 }
 0x1c0   :  { %v2917_v12 = vpop.f32.mrf.mxu0  ;;  %14264 = vst [vmem:[#allocation224_spill] sm:$0xff] %v10990_v49  ;;  %3324 = vmatpush.bf16.msra.mxu1 %v10990_v49  ;;  %v10999_v52 = vor.u32 %v9484_v42, %v7938_v14  ;;  %v8018_v14 = vld [vmem:[#allocation9 + $0xd8] sm:$0xf0] }
 0x1c1   :  { %v2866_v41 = vadd.f32 %v2865_v54, %v2817_v10  ;;  %14267 = vst [vmem:[#allocation227_spill] sm:$0xff] %v11004_v13  ;;  %v9482_v10 = vld [vmem:[#allocation9 + $0x24] sm:$0xf]  ;;  %v7930_v54 = vld [vmem:[#allocation9 + $0x28] sm:$0xf0]  ;;  %3184 = vmatpush.bf16.msra.mxu2 %v11004_v13  ;;  %v11017_v23 = vor.u32 %v9504_v43, %v8018_v14 }
 0x1c2   :  { %v2966_v31 = vpop.f32.mrf.mxu1  ;;  %14266 = vst [vmem:[#allocation226_spill] sm:$0xff] %v10999_v52  ;;  %3279 = vmatpush.bf16.msra.mxu0 %v10999_v52  ;;  %v7824_v52 = vld [vmem:[#allocation5 + $0x328] sm:$0xf]  ;;  %v9836_v14 = vld [vmem:[#allocation5 + $0x334] sm:$0xf] }
 0x1c3   :  { %3014 = vmatmul.bf16.gmra.mxu2 %v10982_v11  ;;  %3112 = vmatmul.bf16.gmra.mxu0 %v10984_v8  ;;  %v2915_v46 = vadd.f32 %v2914_v48, %v2866_v41  ;;  %v9719_v41 = vld [vmem:[#allocation9 + $0x784] sm:$0xf0]  ;;  %14271 = vst [vmem:[#allocation231_spill] sm:$0xff] %v11017_v23 }
 0x1c4   :  { %3063 = vmatmul.bf16.gmra.mxu3 %v10988_v44  ;;  %v11009_v38 = vor.u32 %v9719_v41, %v8872_v18  ;;  %3325 = vmatpush.bf16.msra.mxu1 %v11006_v22  ;;  %v9480_v18 = vld [vmem:[#allocation9 + $0x14] sm:$0xf]  ;;  %v7922_v41 = vld [vmem:[#allocation9 + $0x18] sm:$0xf0]  ;;  %v9843_v13 = vld [vmem:[#allocation5 + $0x364] sm:$0xf0] }
 0x1c5   :  { %v11001_v57 = vadd.f32 %v2963_v7, %v2915_v46  ;;  %3161 = vmatmul.bf16.gmra.mxu1 %v10992_v63  ;;  %v11014_v46 = vor.u32 %v9482_v10, %v7930_v54  ;;  %v11021_v10 = vor.u32 %v9480_v18, %v7922_v41  ;;  %v8010_v54 = vld [vmem:[#allocation9 + $0xc8] sm:$0xf0]  ;;  %v7832_v22 = vld [vmem:[#allocation5 + $0x330] sm:$0xf]  ;;  %v9500_v63 = vld [vmem:[#allocation9 + $0xb4] sm:$0xf] }
 0x1c6   :  { %v2819_v48 = vpop.f32.mrf.mxu2  ;;  %14269 = vst [vmem:[#allocation229_spill] sm:$0xff] %v11009_v38  ;;  %3233 = vmatpush.bf16.msra.mxu3 %v11009_v38  ;;  %v9844_v38 = vld [vmem:[#allocation5 + $0x36c] sm:$0xf0] }
 0x1c7   :  { %v2820_v42 = vadd.f32 %v2819_v48, %v10785_v24  ;;  %v2868_v7 = vpop.f32.mrf.mxu3  ;;  %14270 = vst [vmem:[#allocation230_spill] sm:$0xff] %v11014_v46  ;;  %3280 = vmatpush.bf16.msra.mxu0 %v11014_v46  ;;  %v9502_v24 = vld [vmem:[#allocation9 + $0xc4] sm:$0xf]  ;;  %v7834_v46 = vld [vmem:[#allocation5 + $0x370] sm:$0xf0]  ;;  %v11031_v44 = vor.u32 %v9844_v38, %v7832_v22 }
 0x1c8   :  { %v2919_v47 = vpop.f32.mrf.mxu0  ;;  %3326 = vmatpush.bf16.msra.mxu1 %v11017_v23  ;;  %14272 = vst [vmem:[#allocation232_spill] sm:$0xff] %v11021_v10  ;;  %v11023_v43 = vor.u32 %v9502_v24, %v8010_v54  ;;  %v11029_v23 = vor.u32 %v9843_v13, %v7824_v52  ;;  %v8002_v24 = vld [vmem:[#allocation9 + $0xb8] sm:$0xf0]  ;;  %v11040_v11 = vor.u32 %v9836_v14, %v7834_v46  ;;  %v9540_v46 = vld [vmem:[#allocation9 + $0x1f4] sm:$0xf] }
 0x1c9   :  { %v2869_v20 = vadd.f32 %v2868_v7, %v2820_v42  ;;  %v7826_v7 = vld [vmem:[#allocation5 + $0x368] sm:$0xf0]  ;;  %v11038_v8 = vor.u32 %v9500_v63, %v8002_v24  ;;  %v8098_v63 = vld [vmem:[#allocation9 + $0x178] sm:$0xf0] }
 0x1ca   :  { %v2968_v36 = vpop.f32.mrf.mxu1  ;;  %14273 = vst [vmem:[#allocation233_spill] sm:$0xff] %v11023_v43  ;;  %v11036_v54 = vor.u32 %v9835_v21, %v7826_v7  ;;  %v9524_v21 = vld [vmem:[#allocation9 + $0x174] sm:$0xf]  ;;  %v8162_v7 = vld [vmem:[#allocation9 + $0x1f8] sm:$0xf0] }
 0x1cb   :  { %v2918_v48 = vadd.f32 %v2917_v12, %v2869_v20  ;;  %3281 = vmatpush.bf16.msra.mxu0 %v11021_v10  ;;  %v9478_v12 = vld [vmem:[#allocation9 + $0x4] sm:$0xf]  ;;  %v7914_v20 = vld [vmem:[#allocation9 + $0x8] sm:$0xf0]  ;;  %14275 = vst [vmem:[#allocation235_spill] sm:$0xff] %v11038_v8  ;;  %v11052_v38 = vor.u32 %v9524_v21, %v8098_v63 }
 0x1cc   :  { %3327 = vmatpush.bf16.msra.mxu1 %v11023_v43  ;;  %v7888_v63 = vld [vmem:[#allocation5 + $0x3a8] sm:$0xf] }
 0x1cd   :  { %v11025_v42 = vadd.f32 %v2966_v31, %v2918_v48  ;;  %v11034_v31 = vor.u32 %v9478_v12, %v7914_v20  ;;  %14277 = vst [vmem:[#allocation237_spill] sm:$0xff] %v11052_v38  ;;  %v11054_v12 = vor.u32 %v9540_v46, %v8162_v7  ;;  %3373 = vmatpush.bf16.msrb.mxu2 %v11052_v38  ;;  %v9859_v46 = vld [vmem:[#allocation5 + $0x3e4] sm:$0xf0]  ;;  %v7896_v7 = vld [vmem:[#allocation5 + $0x3b0] sm:$0xf] }
 0x1ce   :  { %v2821_v49 = vpop.f32.mrf.mxu2  ;;  %v9851_v38 = vld [vmem:[#allocation5 + $0x3ac] sm:$0xf] }
 0x1cf   :  { %v2822_v18 = vadd.f32 %v2821_v49, %v10809_v17  ;;  %v2870_v41 = vpop.f32.mrf.mxu3  ;;  %14274 = vst [vmem:[#allocation234_spill] sm:$0xff] %v11034_v31  ;;  %3282 = vmatpush.bf16.msra.mxu0 %v11034_v31  ;;  %v9498_v49 = vld [vmem:[#allocation9 + $0xa4] sm:$0xf]  ;;  %v7994_v17 = vld [vmem:[#allocation9 + $0xa8] sm:$0xf0]  ;;  %3422 = vmatpush.bf16.msrb.mxu3 %v11054_v12 }
 0x1d0   :  { %v2922_v48 = vpop.f32.mrf.mxu0  ;;  %3328 = vmatpush.bf16.msra.mxu1 %v11038_v8  ;;  %v11047_v13 = vor.u32 %v9498_v49, %v7994_v17  ;;  %14278 = vst [vmem:[#allocation238_spill] sm:$0xff] %v11054_v12  ;;  %v9494_v17 = vld [vmem:[#allocation9 + $0x84] sm:$0xf]  ;;  %v9860_v31 = vld [vmem:[#allocation5 + $0x3ec] sm:$0xf0]  ;;  %v11068_v8 = vor.u32 %v9859_v46, %v7888_v63 }
 0x1d1   :  { %v2871_v10 = vadd.f32 %v2870_v41, %v2822_v18  ;;  %v8154_v63 = vld [vmem:[#allocation9 + $0x1e8] sm:$0xf0] }
 0x1d2   :  { %v2971_v58 = vpop.f32.mrf.mxu1  ;;  %14276 = vst [vmem:[#allocation236_spill] sm:$0xff] %v11047_v13 }
 0x1d3   :  { %3019 = vmatmul.bf16.gmra.mxu2 %v11029_v23  ;;  %3117 = vmatmul.bf16.gmra.mxu0 %v11031_v44  ;;  %v2920_v52 = vadd.f32 %v2919_v47, %v2871_v10  ;;  %v9496_v47 = vld [vmem:[#allocation9 + $0x94] sm:$0xf]  ;;  %v7986_v10 = vld [vmem:[#allocation9 + $0x98] sm:$0xf0] }
 0x1d4   :  { %3068 = vmatmul.bf16.gmra.mxu3 %v11036_v54  ;;  %3329 = vmatpush.bf16.msra.mxu1 %v11047_v13  ;;  %v7890_v13 = vld [vmem:[#allocation5 + $0x3e8] sm:$0xf0] }
 0x1d5   :  { %v11049_v22 = vadd.f32 %v2968_v36, %v2920_v52  ;;  %3166 = vmatmul.bf16.gmra.mxu1 %v11040_v11  ;;  %v11060_v36 = vor.u32 %v9496_v47, %v7986_v10  ;;  %v7978_v52 = vld [vmem:[#allocation9 + $0x88] sm:$0xf0]  ;;  %v9852_v47 = vld [vmem:[#allocation5 + $0x3b4] sm:$0xf]  ;;  %v11072_v43 = vor.u32 %v9851_v38, %v7890_v13  ;;  %v9538_v38 = vld [vmem:[#allocation9 + $0x1e4] sm:$0xf] }
 0x1d6   :  { %v2824_v14 = vpop.f32.mrf.mxu2  ;;  %v7898_v10 = vld [vmem:[#allocation5 + $0x3f0] sm:$0xf0] }
 0x1d7   :  { %v2825_v20 = vadd.f32 %v2824_v14, %v10825_v30  ;;  %v2873_v18 = vpop.f32.mrf.mxu3  ;;  %14279 = vst [vmem:[#allocation239_spill] sm:$0xff] %v11060_v36  ;;  %v11063_v30 = vor.u32 %v9494_v17, %v7978_v52 }
 0x1d8   :  { %v2924_v41 = vpop.f32.mrf.mxu0  ;;  %3330 = vmatpush.bf16.msra.mxu1 %v11060_v36 }
 0x1d9   :  { %v2874_v24 = vadd.f32 %v2873_v18, %v2825_v20  ;;  %14280 = vst [vmem:[#allocation240_spill] sm:$0xff] %v11063_v30 }
 0x1da   :  { %v2973_v49 = vpop.f32.mrf.mxu1 }
 0x1db   :  { %v2923_v21 = vadd.f32 %v2922_v48, %v2874_v24  ;;  %v11070_v48 = vor.u32 %v9860_v31, %v7896_v7  ;;  %v11085_v7 = vor.u32 %v9538_v38, %v8154_v63 }
 0x1dc   :  { %3331 = vmatpush.bf16.msra.mxu1 %v11063_v30  ;;  %v7458_v30 = vld [vmem:[#allocation5 + $0x78] sm:$0xf0] }
 0x1dd   :  { %v11065_v14 = vadd.f32 %v2971_v58, %v2923_v21  ;;  %v11075_v58 = vor.u32 %v9852_v47, %v7898_v10  ;;  %14283 = vst [vmem:[#allocation243_spill] sm:$0xff] %v11085_v7  ;;  %3423 = vmatpush.bf16.msrb.mxu3 %v11085_v7 }
 0x1de   :  { %v2826_v12 = vpop.f32.mrf.mxu2 }
 0x1df   :  { %v2827_v20 = vadd.f32 %v2826_v12, %v10840_v5  ;;  %v2875_v18 = vpop.f32.mrf.mxu3  ;;  %14281 = vst [vmem:[#allocation241_spill] sm:$0xff] %v11075_v58  ;;  %v9522_v5 = vld [vmem:[#allocation9 + $0x164] sm:$0xf]  ;;  %v8090_v12 = vld [vmem:[#allocation9 + $0x168] sm:$0xf0] }
 0x1e0   :  { %v2927_v24 = vpop.f32.mrf.mxu0  ;;  %v11083_v13 = vor.u32 %v9522_v5, %v8090_v12  ;;  %v9741_v12 = vld [vmem:[#allocation5 + $0x3c] sm:$0xf] }
 0x1e1   :  { %v2876_v17 = vadd.f32 %v2875_v18, %v2827_v20 }
 0x1e2   :  { %v2976_v52 = vpop.f32.mrf.mxu1  ;;  %14282 = vst [vmem:[#allocation242_spill] sm:$0xff] %v11083_v13  ;;  %3374 = vmatpush.bf16.msrb.mxu2 %v11083_v13  ;;  %v11095_v13 = vor.u32 %v9741_v12, %v7458_v30  ;;  %v8146_v30 = vld [vmem:[#allocation9 + $0x1d8] sm:$0xf0]  ;;  %v7520_v12 = vld [vmem:[#allocation5 + $0xb8] sm:$0xf] }
 0x1e3   :  { %3024 = vmatmul.bf16.gmra.mxu2 %v11068_v8  ;;  %3122 = vmatmul.bf16.gmra.mxu0 %v11070_v48  ;;  %v2925_v21 = vadd.f32 %v2924_v41, %v2876_v17  ;;  %v7456_v17 = vld [vmem:[#allocation5 + $0x38] sm:$0xf] }
 0x1e4   :  { %3073 = vmatmul.bf16.gmra.mxu3 %v11072_v43 }
 0x1e5   :  { %v11080_v31 = vadd.f32 %v2973_v49, %v2925_v21  ;;  %3171 = vmatmul.bf16.gmra.mxu1 %v11075_v58  ;;  %v9749_v21 = vld [vmem:[#allocation5 + $0x74] sm:$0xf0] }
 0x1e6   :  { %v2829_v46 = vpop.f32.mrf.mxu2 }
 0x1e7   :  { %v2830_v47 = vadd.f32 %v2829_v46, %v10850_v32  ;;  %v2878_v10 = vpop.f32.mrf.mxu3  ;;  %v11093_v32 = vor.u32 %v9749_v21, %v7456_v17 }
 0x1e8   :  { %v2929_v41 = vpop.f32.mrf.mxu0 }
 0x1e9   :  { %v2879_v20 = vadd.f32 %v2878_v10, %v2830_v47  ;;  %v8082_v47 = vld [vmem:[#allocation9 + $0x158] sm:$0xf0] }
 0x1ea   :  { %v2978_v49 = vpop.f32.mrf.mxu1 }
 0x1eb   :  { %v2928_v18 = vadd.f32 %v2927_v24, %v2879_v20 }
 0x1ed   :  { %v11090_v5 = vadd.f32 %v2976_v52, %v2928_v18  ;;  %v9520_v52 = vld [vmem:[#allocation9 + $0x154] sm:$0xf] }
 0x1ee   :  { %v2831_v36 = vpop.f32.mrf.mxu2 }
 0x1ef   :  { %v2832_v38 = vadd.f32 %v2831_v36, %v10864_v3  ;;  %v2880_v63 = vpop.f32.mrf.mxu3  ;;  %v11103_v3 = vor.u32 %v9520_v52, %v8082_v47  ;;  %v9536_v36 = vld [vmem:[#allocation9 + $0x1d4] sm:$0xf] }
 0x1f0   :  { %v3088_v46 = vpop.f32.mrf.mxu0  ;;  %v11105_v18 = vor.u32 %v9536_v36, %v8146_v30 }
 0x1f1   :  { %v2881_v58 = vadd.f32 %v2880_v63, %v2832_v38  ;;  %14284 = vst [vmem:[#allocation244_spill] sm:$0xff] %v11103_v3  ;;  %3375 = vmatpush.bf16.msrb.mxu2 %v11103_v3  ;;  %v9757_v63 = vld [vmem:[#allocation5 + $0xbc] sm:$0xf] }
 0x1f2   :  { %v3137_v7 = vpop.f32.mrf.mxu1  ;;  %14285 = vst [vmem:[#allocation245_spill] sm:$0xff] %v11105_v18  ;;  %3424 = vmatpush.bf16.msrb.mxu3 %v11105_v18 }
 0x1f3   :  { %3185 = vmatmul.bf16.vlgmr.msra.gmra.mxu2 %v11093_v32  ;;  %3283 = vmatmul.bf16.vlgmr.msra.gmra.mxu0 %v10235_v1  ;;  %v2930_v24 = vadd.f32 %v2929_v41, %v2881_v58 }
 0x1f4   :  { %3234 = vmatmul.bf16.vlgmr.msra.gmra.mxu3 %v11095_v13 }
 0x1f5   :  { %v11100_v10 = vadd.f32 %v2978_v49, %v2930_v24  ;;  %3332 = vmatmul.bf16.vlgmr.msra.gmra.mxu1 %v10247_v9  ;;  %v9765_v9 = vld [vmem:[#allocation5 + $0xf4] sm:$0xf0]  ;;  %v7522_v24 = vld [vmem:[#allocation5 + $0xf8] sm:$0xf0] }
 0x1f6   :  { %v2990_v20 = vpop.f32.mrf.mxu2 }
 0x1f7   :  { %v2991_v17 = vadd.f32 %v2990_v20, %v10874_v4  ;;  %v3039_v21 = vpop.f32.mrf.mxu3  ;;  %v11113_v4 = vor.u32 %v9765_v9, %v7520_v12  ;;  %v11115_v20 = vor.u32 %v9757_v63, %v7522_v24 }
 0x1f8   :  { %v3090_v1 = vpop.f32.mrf.mxu0 }
 0x1f9   :  { %v3040_v58 = vadd.f32 %v3039_v21, %v2991_v17  ;;  %v8074_v17 = vld [vmem:[#allocation9 + $0x148] sm:$0xf0] }
 0x1fa   :  { %v3139_v41 = vpop.f32.mrf.mxu1 }
 0x1fb   :  { %v3089_v49 = vadd.f32 %v3088_v46, %v3040_v58  ;;  %v9534_v58 = vld [vmem:[#allocation9 + $0x1c4] sm:$0xf] }
 0x1fd   :  { %v11110_v38 = vadd.f32 %v3137_v7, %v3089_v49  ;;  %v9518_v7 = vld [vmem:[#allocation9 + $0x144] sm:$0xf]  ;;  %v8138_v49 = vld [vmem:[#allocation9 + $0x1c8] sm:$0xf0] }
 0x1fe   :  { %v2992_v52 = vpop.f32.mrf.mxu2  ;;  %v11125_v9 = vor.u32 %v9534_v58, %v8138_v49 }
 0x1ff   :  { %v2993_v47 = vadd.f32 %v2992_v52, %v10888_v15  ;;  %v3041_v36 = vpop.f32.mrf.mxu3  ;;  %v11123_v15 = vor.u32 %v9518_v7, %v8074_v17  ;;  %v7584_v52 = vld [vmem:[#allocation5 + $0x138] sm:$0xf] }
 0x200   :  { %v3093_v30 = vpop.f32.mrf.mxu0  ;;  %14287 = vst [vmem:[#allocation247_spill] sm:$0xff] %v11125_v9  ;;  %3425 = vmatpush.bf16.msrb.mxu3 %v11125_v9 }
 0x201   :  { %v3042_v3 = vadd.f32 %v3041_v36, %v2993_v47  ;;  %14286 = vst [vmem:[#allocation246_spill] sm:$0xff] %v11123_v15  ;;  %3376 = vmatpush.bf16.msrb.mxu2 %v11123_v15  ;;  %v9773_v36 = vld [vmem:[#allocation5 + $0x13c] sm:$0xf] }
 0x202   :  { %v3142_v18 = vpop.f32.mrf.mxu1 }
 0x203   :  { %3190 = vmatmul.bf16.gmra.mxu2 %v11113_v4  ;;  %3288 = vmatmul.bf16.gmra.mxu0 %v10289_v16  ;;  %v3091_v46 = vadd.f32 %v3090_v1, %v3042_v3 }
 0x204   :  { %3239 = vmatmul.bf16.gmra.mxu3 %v11115_v20 }
 0x205   :  { %v11120_v21 = vadd.f32 %v3139_v41, %v3091_v46  ;;  %3337 = vmatmul.bf16.gmra.mxu1 %v10295_v28  ;;  %v9781_v28 = vld [vmem:[#allocation5 + $0x174] sm:$0xf0]  ;;  %v7586_v46 = vld [vmem:[#allocation5 + $0x178] sm:$0xf0] }
 0x206   :  { %v2995_v12 = vpop.f32.mrf.mxu2 }
 0x207   :  { %v2996_v63 = vadd.f32 %v2995_v12, %v10898_v35  ;;  %v3044_v24 = vpop.f32.mrf.mxu3  ;;  %v11133_v35 = vor.u32 %v9781_v28, %v7584_v52  ;;  %v11135_v12 = vor.u32 %v9773_v36, %v7586_v46 }
 0x208   :  { %v3095_v16 = vpop.f32.mrf.mxu0 }
 0x209   :  { %v3045_v3 = vadd.f32 %v3044_v24, %v2996_v63  ;;  %v8066_v63 = vld [vmem:[#allocation9 + $0x138] sm:$0xf0] }
 0x20a   :  { %v3144_v1 = vpop.f32.mrf.mxu1 }
 0x20b   :  { %v3094_v41 = vadd.f32 %v3093_v30, %v3045_v3  ;;  %v9532_v3 = vld [vmem:[#allocation9 + $0x1b4] sm:$0xf] }
 0x20d   :  { %v11130_v47 = vadd.f32 %v3142_v18, %v3094_v41  ;;  %v9516_v18 = vld [vmem:[#allocation9 + $0x134] sm:$0xf]  ;;  %v8130_v41 = vld [vmem:[#allocation9 + $0x1b8] sm:$0xf0] }
 0x20e   :  { %v2997_v7 = vpop.f32.mrf.mxu2  ;;  %v11145_v28 = vor.u32 %v9532_v3, %v8130_v41 }
 0x20f   :  { %v2998_v17 = vadd.f32 %v2997_v7, %v10912_v45  ;;  %v3046_v58 = vpop.f32.mrf.mxu3  ;;  %v11143_v45 = vor.u32 %v9516_v18, %v8066_v63  ;;  %v7648_v7 = vld [vmem:[#allocation5 + $0x1b8] sm:$0xf] }
 0x210   :  { %v3098_v49 = vpop.f32.mrf.mxu0  ;;  %14289 = vst [vmem:[#allocation249_spill] sm:$0xff] %v11145_v28  ;;  %3426 = vmatpush.bf16.msrb.mxu3 %v11145_v28 }
 0x211   :  { %v3047_v15 = vadd.f32 %v3046_v58, %v2998_v17  ;;  %14288 = vst [vmem:[#allocation248_spill] sm:$0xff] %v11143_v45  ;;  %3377 = vmatpush.bf16.msrb.mxu2 %v11143_v45  ;;  %v9789_v58 = vld [vmem:[#allocation5 + $0x1bc] sm:$0xf] }
 0x212   :  { %v3147_v9 = vpop.f32.mrf.mxu1 }
 0x213   :  { %3195 = vmatmul.bf16.gmra.mxu2 %v11133_v35  ;;  %3293 = vmatmul.bf16.gmra.mxu0 %v10341_v25  ;;  %v3096_v30 = vadd.f32 %v3095_v16, %v3047_v15 }
 0x214   :  { %3244 = vmatmul.bf16.gmra.mxu3 %v11135_v12 }
 0x215   :  { %v11140_v24 = vadd.f32 %v3144_v1, %v3096_v30  ;;  %3342 = vmatmul.bf16.gmra.mxu1 %v10350_v40  ;;  %v9797_v40 = vld [vmem:[#allocation5 + $0x1f4] sm:$0xf0]  ;;  %v7650_v30 = vld [vmem:[#allocation5 + $0x1f8] sm:$0xf0] }
 0x216   :  { %v3000_v52 = vpop.f32.mrf.mxu2 }
 0x217   :  { %v3001_v36 = vadd.f32 %v3000_v52, %v10922_v56  ;;  %v3049_v46 = vpop.f32.mrf.mxu3  ;;  %v11153_v56 = vor.u32 %v9797_v40, %v7648_v7  ;;  %v11155_v52 = vor.u32 %v9789_v58, %v7650_v30 }
 0x218   :  { %v3100_v25 = vpop.f32.mrf.mxu0 }
 0x219   :  { %v3050_v15 = vadd.f32 %v3049_v46, %v3001_v36  ;;  %v8058_v36 = vld [vmem:[#allocation9 + $0x128] sm:$0xf0] }
 0x21a   :  { %v3149_v16 = vpop.f32.mrf.mxu1 }
 0x21b   :  { %v3099_v1 = vadd.f32 %v3098_v49, %v3050_v15  ;;  %v9530_v15 = vld [vmem:[#allocation9 + $0x1a4] sm:$0xf] }
 0x21d   :  { %v11150_v17 = vadd.f32 %v3147_v9, %v3099_v1  ;;  %v9514_v9 = vld [vmem:[#allocation9 + $0x124] sm:$0xf]  ;;  %v8122_v1 = vld [vmem:[#allocation9 + $0x1a8] sm:$0xf0] }
 0x21e   :  { %v3002_v18 = vpop.f32.mrf.mxu2  ;;  %v11165_v40 = vor.u32 %v9530_v15, %v8122_v1 }
 0x21f   :  { %v3003_v63 = vadd.f32 %v3002_v18, %v10936_v53  ;;  %v3051_v3 = vpop.f32.mrf.mxu3  ;;  %v11163_v53 = vor.u32 %v9514_v9, %v8058_v36  ;;  %v7712_v18 = vld [vmem:[#allocation5 + $0x238] sm:$0xf] }
 0x220   :  { %v3103_v41 = vpop.f32.mrf.mxu0  ;;  %14291 = vst [vmem:[#allocation251_spill] sm:$0xff] %v11165_v40  ;;  %3427 = vmatpush.bf16.msrb.mxu3 %v11165_v40 }
 0x221   :  { %v3052_v45 = vadd.f32 %v3051_v3, %v3003_v63  ;;  %14290 = vst [vmem:[#allocation250_spill] sm:$0xff] %v11163_v53  ;;  %3378 = vmatpush.bf16.msrb.mxu2 %v11163_v53  ;;  %v9805_v3 = vld [vmem:[#allocation5 + $0x23c] sm:$0xf] }
 0x222   :  { %v3152_v28 = vpop.f32.mrf.mxu1 }
 0x223   :  { %3200 = vmatmul.bf16.gmra.mxu2 %v11153_v56  ;;  %3298 = vmatmul.bf16.gmra.mxu0 %v10372_v39  ;;  %v3101_v49 = vadd.f32 %v3100_v25, %v3052_v45 }
 0x224   :  { %3249 = vmatmul.bf16.gmra.mxu3 %v11155_v52 }
 0x225   :  { %v11160_v46 = vadd.f32 %v3149_v16, %v3101_v49  ;;  %3347 = vmatmul.bf16.gmra.mxu1 %v10379_v60  ;;  %v9813_v60 = vld [vmem:[#allocation5 + $0x274] sm:$0xf0]  ;;  %v7714_v49 = vld [vmem:[#allocation5 + $0x278] sm:$0xf0] }
 0x226   :  { %v3005_v7 = vpop.f32.mrf.mxu2 }
 0x227   :  { %v3006_v58 = vadd.f32 %v3005_v7, %v10946_v29  ;;  %v3054_v30 = vpop.f32.mrf.mxu3  ;;  %v11173_v29 = vor.u32 %v9813_v60, %v7712_v18  ;;  %v11175_v7 = vor.u32 %v9805_v3, %v7714_v49  ;;  %v9528_v60 = vld [vmem:[#allocation9 + $0x194] sm:$0xf]  ;;  %v8114_v3 = vld [vmem:[#allocation9 + $0x198] sm:$0xf0] }
 0x228   :  { %v3105_v39 = vpop.f32.mrf.mxu0 }
 0x229   :  { %v3055_v45 = vadd.f32 %v3054_v30, %v3006_v58  ;;  %14292 = vst [vmem:[#allocation252_spill] sm:$0xff] %v11173_v29  ;;  %v9556_v58 = vld [vmem:[#allocation9 + $0x274] sm:$0xf]  ;;  %v8226_v30 = vld [vmem:[#allocation9 + $0x278] sm:$0xf0] }
 0x22a   :  { %v3154_v25 = vpop.f32.mrf.mxu1  ;;  %14293 = vst [vmem:[#allocation253_spill] sm:$0xff] %v11175_v7 }
 0x22b   :  { %v3104_v16 = vadd.f32 %v3103_v41, %v3055_v45  ;;  %v11179_v41 = vor.u32 %v9556_v58, %v8226_v30  ;;  %v8050_v45 = vld [vmem:[#allocation9 + $0x118] sm:$0xf0]  ;;  %v9552_v30 = vld [vmem:[#allocation9 + $0x254] sm:$0xf] }
 0x22d   :  { %v11170_v63 = vadd.f32 %v3152_v28, %v3104_v16  ;;  %14294 = vst [vmem:[#allocation254_spill] sm:$0xff] %v11179_v41  ;;  %3471 = vmatpush.bf16.msrb.mxu0 %v11179_v41 }
 0x22e   :  { %v3007_v9 = vpop.f32.mrf.mxu2 }
 0x22f   :  { %v3008_v36 = vadd.f32 %v3007_v9, %v10962_v33  ;;  %v3056_v15 = vpop.f32.mrf.mxu3  ;;  %v9512_v33 = vld [vmem:[#allocation9 + $0x114] sm:$0xf]  ;;  %v11188_v9 = vor.u32 %v9528_v60, %v8114_v3  ;;  %v7776_v60 = vld [vmem:[#allocation5 + $0x2b8] sm:$0xf] }
 0x230   :  { %v3108_v1 = vpop.f32.mrf.mxu0  ;;  %v11185_v18 = vor.u32 %v9512_v33, %v8050_v45  ;;  %v9829_v3 = vld [vmem:[#allocation5 + $0x2f4] sm:$0xf0] }
 0x231   :  { %v3057_v53 = vadd.f32 %v3056_v15, %v3008_v36  ;;  %14296 = vst [vmem:[#allocation256_spill] sm:$0xff] %v11188_v9  ;;  %3428 = vmatpush.bf16.msrb.mxu3 %v11188_v9  ;;  %v8202_v9 = vld [vmem:[#allocation9 + $0x248] sm:$0xf0]  ;;  %v11202_v41 = vor.u32 %v9829_v3, %v7776_v60  ;;  %v9570_v60 = vld [vmem:[#allocation9 + $0x2e4] sm:$0xf] }
 0x232   :  { %v3157_v40 = vpop.f32.mrf.mxu1  ;;  %14295 = vst [vmem:[#allocation255_spill] sm:$0xff] %v11185_v18  ;;  %3379 = vmatpush.bf16.msrb.mxu2 %v11185_v18  ;;  %v7778_v18 = vld [vmem:[#allocation5 + $0x2f8] sm:$0xf0]  ;;  %v9510_v3 = vld [vmem:[#allocation9 + $0x104] sm:$0xf] }
 0x233   :  { %3205 = vmatmul.bf16.gmra.mxu2 %v11173_v29  ;;  %3303 = vmatmul.bf16.gmra.mxu0 %v10237_v2  ;;  %v3106_v28 = vadd.f32 %v3105_v39, %v3057_v53  ;;  %v9554_v2 = vld [vmem:[#allocation9 + $0x264] sm:$0xf]  ;;  %v8218_v53 = vld [vmem:[#allocation9 + $0x268] sm:$0xf0]  ;;  %v8194_v29 = vld [vmem:[#allocation9 + $0x238] sm:$0xf0] }
 0x234   :  { %3254 = vmatmul.bf16.gmra.mxu3 %v11175_v7  ;;  %v9548_v7 = vld [vmem:[#allocation9 + $0x234] sm:$0xf] }
 0x235   :  { %v11182_v16 = vadd.f32 %v3154_v25, %v3106_v28  ;;  %3352 = vmatmul.bf16.gmra.mxu1 %v10241_v6  ;;  %v11192_v25 = vor.u32 %v9554_v2, %v8218_v53  ;;  %v8210_v28 = vld [vmem:[#allocation9 + $0x258] sm:$0xf0]  ;;  %v9550_v53 = vld [vmem:[#allocation9 + $0x244] sm:$0xf] }
 0x236   :  { %v3010_v49 = vpop.f32.mrf.mxu2  ;;  %v11196_v45 = vor.u32 %v9552_v30, %v8210_v28 }
 0x237   :  { %v3011_v39 = vadd.f32 %v3010_v49, %v10978_v50  ;;  %v3059_v36 = vpop.f32.mrf.mxu3  ;;  %14297 = vst [vmem:[#allocation257_spill] sm:$0xff] %v11192_v25  ;;  %3472 = vmatpush.bf16.msrb.mxu0 %v11192_v25  ;;  %v9821_v49 = vld [vmem:[#allocation5 + $0x2bc] sm:$0xf] }
 0x238   :  { %v3110_v15 = vpop.f32.mrf.mxu0  ;;  %14298 = vst [vmem:[#allocation258_spill] sm:$0xff] %v11196_v45  ;;  %v11206_v28 = vor.u32 %v9821_v49, %v7778_v18  ;;  %v8282_v18 = vld [vmem:[#allocation9 + $0x2e8] sm:$0xf0] }
 0x239   :  { %v3060_v6 = vadd.f32 %v3059_v36, %v3011_v39  ;;  %v9572_v39 = vld [vmem:[#allocation9 + $0x2f4] sm:$0xf]  ;;  %v11217_v49 = vor.u32 %v9570_v60, %v8282_v18 }
 0x23a   :  { %v3159_v58 = vpop.f32.mrf.mxu1 }
 0x23b   :  { %v3109_v33 = vadd.f32 %v3108_v1, %v3060_v6  ;;  %3473 = vmatpush.bf16.msrb.mxu0 %v11196_v45  ;;  %v11204_v1 = vor.u32 %v9550_v53, %v8202_v9  ;;  %v8290_v6 = vld [vmem:[#allocation9 + $0x2f8] sm:$0xf0]  ;;  %v11214_v9 = vor.u32 %v9548_v7, %v8194_v29  ;;  %14302 = vst [vmem:[#allocation262_spill] sm:$0xff] %v11217_v49 }
 0x23d   :  { %v11198_v50 = vadd.f32 %v3157_v40, %v3109_v33  ;;  %14299 = vst [vmem:[#allocation259_spill] sm:$0xff] %v11204_v1  ;;  %v11208_v40 = vor.u32 %v9572_v39, %v8290_v6  ;;  %v9546_v39 = vld [vmem:[#allocation9 + $0x224] sm:$0xf]  ;;  %v9568_v6 = vld [vmem:[#allocation9 + $0x2d4] sm:$0xf] }
 0x23e   :  { %v3012_v2 = vpop.f32.mrf.mxu2  ;;  %14301 = vst [vmem:[#allocation261_spill] sm:$0xff] %v11214_v9 }
 0x23f   :  { %v3013_v36 = vadd.f32 %v3012_v2, %v11001_v57  ;;  %v3061_v25 = vpop.f32.mrf.mxu3  ;;  %14300 = vst [vmem:[#allocation260_spill] sm:$0xff] %v11208_v40  ;;  %3474 = vmatpush.bf16.msrb.mxu0 %v11204_v1  ;;  %3520 = vmatpush.bf16.msrb.mxu1 %v11208_v40  ;;  %v8250_v40 = vld [vmem:[#allocation9 + $0x2a8] sm:$0xf0] }
 0x240   :  { %v3113_v30 = vpop.f32.mrf.mxu0 }
 0x241   :  { %v3062_v33 = vadd.f32 %v3061_v25, %v3013_v36  ;;  %v8042_v25 = vld [vmem:[#allocation9 + $0x108] sm:$0xf0] }
 0x242   :  { %v3162_v45 = vpop.f32.mrf.mxu1  ;;  %v11222_v53 = vor.u32 %v9510_v3, %v8042_v25  ;;  %v8186_v36 = vld [vmem:[#allocation9 + $0x228] sm:$0xf0] }
 0x243   :  { %3210 = vmatmul.bf16.gmra.mxu2 %v11202_v41  ;;  %3308 = vmatmul.bf16.gmra.mxu0 %v10291_v19  ;;  %v3111_v57 = vadd.f32 %v3110_v15, %v3062_v33  ;;  %v9526_v19 = vld [vmem:[#allocation9 + $0x184] sm:$0xf]  ;;  %v8106_v15 = vld [vmem:[#allocation9 + $0x188] sm:$0xf0] }
 0x244   :  { %3259 = vmatmul.bf16.gmra.mxu3 %v11206_v28  ;;  %14303 = vst [vmem:[#allocation263_spill] sm:$0xff] %v11222_v53  ;;  %3475 = vmatpush.bf16.msrb.mxu0 %v11214_v9  ;;  %v11226_v7 = vor.u32 %v9526_v19, %v8106_v15  ;;  %v9544_v19 = vld [vmem:[#allocation9 + $0x214] sm:$0xf]  ;;  %v8178_v15 = vld [vmem:[#allocation9 + $0x218] sm:$0xf0] }
 0x245   :  { %v11219_v2 = vadd.f32 %v3159_v58, %v3111_v57  ;;  %3357 = vmatmul.bf16.gmra.mxu1 %v10293_v26  ;;  %3380 = vmatpush.bf16.msrb.mxu2 %v11222_v53  ;;  %v11230_v26 = vor.u32 %v9546_v39, %v8186_v36  ;;  %v8274_v57 = vld [vmem:[#allocation9 + $0x2d8] sm:$0xf0]  ;;  %v11237_v9 = vor.u32 %v9544_v19, %v8178_v15  ;;  %v8266_v39 = vld [vmem:[#allocation9 + $0x2c8] sm:$0xf0]  ;;  %v7840_v36 = vld [vmem:[#allocation5 + $0x338] sm:$0xf] }
 0x246   :  { %v3015_v29 = vpop.f32.mrf.mxu2  ;;  %3521 = vmatpush.bf16.msrb.mxu1 %v11217_v49  ;;  %14304 = vst [vmem:[#allocation264_spill] sm:$0xff] %v11226_v7  ;;  %3429 = vmatpush.bf16.msrb.mxu3 %v11226_v7  ;;  %v11233_v18 = vor.u32 %v9568_v6, %v8274_v57  ;;  %v9845_v53 = vld [vmem:[#allocation5 + $0x374] sm:$0xf0]  ;;  %v9837_v6 = vld [vmem:[#allocation5 + $0x33c] sm:$0xf] }
 0x247   :  { %v3016_v33 = vadd.f32 %v3015_v29, %v11025_v42  ;;  %v3064_v58 = vpop.f32.mrf.mxu3  ;;  %14305 = vst [vmem:[#allocation265_spill] sm:$0xff] %v11230_v26  ;;  %v9566_v42 = vld [vmem:[#allocation9 + $0x2c4] sm:$0xf]  ;;  %v11246_v19 = vor.u32 %v9845_v53, %v7840_v36 }
 0x248   :  { %v3115_v60 = vpop.f32.mrf.mxu0  ;;  %14306 = vst [vmem:[#allocation266_spill] sm:$0xff] %v11233_v18  ;;  %3476 = vmatpush.bf16.msrb.mxu0 %v11230_v26  ;;  %v11239_v1 = vor.u32 %v9566_v42, %v8266_v39  ;;  %v9542_v57 = vld [vmem:[#allocation9 + $0x204] sm:$0xf]  ;;  %v8170_v26 = vld [vmem:[#allocation9 + $0x208] sm:$0xf0] }
 0x249   :  { %v3065_v3 = vadd.f32 %v3064_v58, %v3016_v33  ;;  %14307 = vst [vmem:[#allocation267_spill] sm:$0xff] %v11237_v9  ;;  %v7842_v33 = vld [vmem:[#allocation5 + $0x378] sm:$0xf0]  ;;  %v11248_v15 = vor.u32 %v9542_v57, %v8170_v26  ;;  %v9562_v49 = vld [vmem:[#allocation9 + $0x2a4] sm:$0xf] }
 0x24a   :  { %v3164_v25 = vpop.f32.mrf.mxu1  ;;  %3522 = vmatpush.bf16.msrb.mxu1 %v11233_v18  ;;  %14308 = vst [vmem:[#allocation268_spill] sm:$0xff] %v11239_v1  ;;  %v9564_v18 = vld [vmem:[#allocation9 + $0x2b4] sm:$0xf]  ;;  %v8258_v42 = vld [vmem:[#allocation9 + $0x2b8] sm:$0xf0]  ;;  %v11258_v53 = vor.u32 %v9562_v49, %v8250_v40 }
 0x24b   :  { %v3114_v29 = vadd.f32 %v3113_v30, %v3065_v3  ;;  %14309 = vst [vmem:[#allocation269_spill] sm:$0xff] %v11248_v15  ;;  %v11252_v39 = vor.u32 %v9564_v18, %v8258_v42  ;;  %v9588_v26 = vld [vmem:[#allocation9 + $0x374] sm:$0xf]  ;;  %v8354_v18 = vld [vmem:[#allocation9 + $0x378] sm:$0xf0] }
 0x24c   :  { %3477 = vmatpush.bf16.msrb.mxu0 %v11237_v9  ;;  %v8242_v40 = vld [vmem:[#allocation9 + $0x298] sm:$0xf0]  ;;  %v9558_v42 = vld [vmem:[#allocation9 + $0x284] sm:$0xf] }
 0x24d   :  { %v11241_v7 = vadd.f32 %v3162_v45, %v3114_v29  ;;  %v11250_v29 = vor.u32 %v9837_v6, %v7842_v33  ;;  %v11264_v6 = vor.u32 %v9588_v26, %v8354_v18  ;;  %v9604_v33 = vld [vmem:[#allocation9 + $0x3f4] sm:$0xf] }
 0x24e   :  { %v3017_v58 = vpop.f32.mrf.mxu2  ;;  %3523 = vmatpush.bf16.msrb.mxu1 %v11239_v1 }
 0x24f   :  { %v3018_v30 = vadd.f32 %v3017_v58, %v11049_v22  ;;  %v3066_v3 = vpop.f32.mrf.mxu3  ;;  %14310 = vst [vmem:[#allocation270_spill] sm:$0xff] %v11264_v6  ;;  %v8418_v58 = vld [vmem:[#allocation9 + $0x3f8] sm:$0xf0]  ;;  %3569 = vmatpush.bf16.msra.mxu2 %v11264_v6 }
 0x250   :  { %v3118_v45 = vpop.f32.mrf.mxu0  ;;  %3478 = vmatpush.bf16.msrb.mxu0 %v11248_v15  ;;  %v7906_v6 = vld [vmem:[#allocation5 + $0x3f8] sm:$0xf0] }
 0x251   :  { %v3067_v9 = vadd.f32 %v3066_v3, %v3018_v30  ;;  %v11267_v30 = vor.u32 %v9604_v33, %v8418_v58  ;;  %v7904_v33 = vld [vmem:[#allocation5 + $0x3b8] sm:$0xf] }
 0x252   :  { %v3167_v1 = vpop.f32.mrf.mxu1  ;;  %3524 = vmatpush.bf16.msrb.mxu1 %v11252_v39  ;;  %v9861_v58 = vld [vmem:[#allocation5 + $0x3f4] sm:$0xf0] }
 0x253   :  { %3215 = vmatmul.bf16.gmra.mxu2 %v11246_v19  ;;  %3313 = vmatmul.bf16.gmra.mxu0 %v10343_v34  ;;  %v3116_v22 = vadd.f32 %v3115_v60, %v3067_v9  ;;  %14311 = vst [vmem:[#allocation271_spill] sm:$0xff] %v11267_v30  ;;  %v9560_v34 = vld [vmem:[#allocation9 + $0x294] sm:$0xf] }
 0x254   :  { %3264 = vmatmul.bf16.gmra.mxu3 %v11250_v29  ;;  %v11271_v60 = vor.u32 %v9560_v34, %v8242_v40 }
 0x255   :  { %v11261_v36 = vadd.f32 %v3164_v25, %v3116_v22  ;;  %3362 = vmatmul.bf16.gmra.mxu1 %v10346_v37  ;;  %3618 = vmatpush.bf16.msra.mxu3 %v11267_v30  ;;  %v8234_v22 = vld [vmem:[#allocation9 + $0x288] sm:$0xf0] }
 0x256   :  { %v3020_v57 = vpop.f32.mrf.mxu2  ;;  %3525 = vmatpush.bf16.msrb.mxu1 %v11258_v53  ;;  %v11275_v18 = vor.u32 %v9558_v42, %v8234_v22  ;;  %v9586_v42 = vld [vmem:[#allocation9 + $0x364] sm:$0xf]  ;;  %v8346_v22 = vld [vmem:[#allocation9 + $0x368] sm:$0xf0] }
 0x257   :  { %v3021_v9 = vadd.f32 %v3020_v57, %v11065_v14  ;;  %v3069_v49 = vpop.f32.mrf.mxu3  ;;  %v9853_v57 = vld [vmem:[#allocation5 + $0x3bc] sm:$0xf] }
 0x258   :  { %v3120_v25 = vpop.f32.mrf.mxu0  ;;  %14312 = vst [vmem:[#allocation272_spill] sm:$0xff] %v11275_v18  ;;  %v11283_v15 = vor.u32 %v9853_v57, %v7906_v6  ;;  %v8410_v6 = vld [vmem:[#allocation9 + $0x3e8] sm:$0xf0] }
 0x259   :  { %v3070_v37 = vadd.f32 %v3069_v49, %v3021_v9  ;;  %v11281_v49 = vor.u32 %v9861_v58, %v7904_v33 }
 0x25a   :  { %v3169_v3 = vpop.f32.mrf.mxu1  ;;  %3526 = vmatpush.bf16.msrb.mxu1 %v11271_v60 }
 0x25b   :  { %v3119_v26 = vadd.f32 %v3118_v45, %v3070_v37 }
 0x25d   :  { %v11277_v14 = vadd.f32 %v3167_v1, %v3119_v26  ;;  %v9602_v26 = vld [vmem:[#allocation9 + $0x3e4] sm:$0xf] }
 0x25e   :  { %v3022_v34 = vpop.f32.mrf.mxu2  ;;  %3527 = vmatpush.bf16.msrb.mxu1 %v11275_v18  ;;  %v11293_v58 = vor.u32 %v9602_v26, %v8410_v6 }
 0x25f   :  { %v3023_v40 = vadd.f32 %v3022_v34, %v11080_v31  ;;  %v3071_v9 = vpop.f32.mrf.mxu3  ;;  %v11291_v31 = vor.u32 %v9586_v42, %v8346_v22 }
 0x260   :  { %v3123_v30 = vpop.f32.mrf.mxu0  ;;  %3619 = vmatpush.bf16.msra.mxu3 %v11293_v58 }
 0x261   :  { %v3072_v45 = vadd.f32 %v3071_v9, %v3023_v40  ;;  %3570 = vmatpush.bf16.msra.mxu2 %v11291_v31 }
 0x262   :  { %v3172_v37 = vpop.f32.mrf.mxu1 }
 0x263   :  { %3220 = vmatmul.bf16.gmra.mxu2 %v11281_v49  ;;  %3318 = vmatmul.bf16.gmra.mxu0 %v10374_v27  ;;  %v3121_v1 = vadd.f32 %v3120_v25, %v3072_v45 }
 0x264   :  { %3269 = vmatmul.bf16.gmra.mxu3 %v11283_v15 }
 0x265   :  { %v11288_v18 = vadd.f32 %v3169_v3, %v3121_v1  ;;  %3367 = vmatmul.bf16.gmra.mxu1 %v10376_v55 }
 0x266   :  { %v3025_v33 = vpop.f32.mrf.mxu2 }
 0x267   :  { %v3026_v57 = vadd.f32 %v3025_v33, %v11090_v5  ;;  %v3074_v34 = vpop.f32.mrf.mxu3  ;;  %v9584_v33 = vld [vmem:[#allocation9 + $0x354] sm:$0xf] }
 0x268   :  { %v3125_v27 = vpop.f32.mrf.mxu0 }
 0x269   :  { %v3075_v25 = vadd.f32 %v3074_v34, %v3026_v57  ;;  %v8402_v34 = vld [vmem:[#allocation9 + $0x3d8] sm:$0xf0] }
 0x26a   :  { %v3174_v40 = vpop.f32.mrf.mxu1 }
 0x26b   :  { %v3124_v3 = vadd.f32 %v3123_v30, %v3075_v25  ;;  %v8338_v30 = vld [vmem:[#allocation9 + $0x358] sm:$0xf0] }
 0x26d   :  { %v11298_v9 = vadd.f32 %v3172_v37, %v3124_v3  ;;  %v9600_v37 = vld [vmem:[#allocation9 + $0x3d4] sm:$0xf] }
 0x26e   :  { %v3027_v55 = vpop.f32.mrf.mxu2  ;;  %v11311_v3 = vor.u32 %v9600_v37, %v8402_v34  ;;  %v8330_v37 = vld [vmem:[#allocation9 + $0x348] sm:$0xf0]  ;;  %v9598_v34 = vld [vmem:[#allocation9 + $0x3c4] sm:$0xf] }
 0x26f   :  { %v3028_v45 = vadd.f32 %v3027_v55, %v11100_v10  ;;  %v3076_v1 = vpop.f32.mrf.mxu3  ;;  %v11309_v10 = vor.u32 %v9584_v33, %v8338_v30  ;;  %v14318_v33 = vld [vmem:[#allocation67_spill] sm:$0xff]  ;;  %v9582_v30 = vld [vmem:[#allocation9 + $0x344] sm:$0xf] }
 0x270   :  { %v3284_v42 = vpop.f32.mrf.mxu0  ;;  %14314 = vst [vmem:[#allocation274_spill] sm:$0xff] %v11311_v3  ;;  %3620 = vmatpush.bf16.msra.mxu3 %v11311_v3 }
 0x271   :  { %v3077_v22 = vadd.f32 %v3076_v1, %v3028_v45  ;;  %14313 = vst [vmem:[#allocation273_spill] sm:$0xff] %v11309_v10  ;;  %3571 = vmatpush.bf16.msra.mxu2 %v11309_v10 }
 0x272   :  { %v3333_v26 = vpop.f32.mrf.mxu1 }
 0x273   :  { %3381 = vmatmul.bf16.vlgmr.msrb.gmra.mxu2 %v10391_v61  ;;  %3479 = vmatmul.bf16.vlgmr.msrb.gmra.mxu0 %v10393_v59  ;;  %v3126_v5 = vadd.f32 %v3125_v27, %v3077_v22  ;;  %v11303_v6 = vadd.f32 %v3333_v26, %v3284_v42 }
 0x274   :  { %3430 = vmatmul.bf16.vlgmr.msrb.gmra.mxu3 %v10395_v0 }
 0x275   :  { %v11306_v57 = vadd.f32 %v3174_v40, %v3126_v5  ;;  %3528 = vmatmul.bf16.vlgmr.msrb.gmra.mxu1 %v10397_v62 }
 0x276   :  { %v3186_v25 = vpop.f32.mrf.mxu2 }
 0x277   :  { %v3187_v59 = vadd.f32 %v3186_v25, %v11110_v38  ;;  %v3235_v61 = vpop.f32.mrf.mxu3  ;;  %v14317_v38 = vld [vmem:[#allocation66_spill] sm:$0xff]  ;;  %v14319_v25 = vld [vmem:[#allocation68_spill] sm:$0xff] }
 0x278   :  { %v3286_v27 = vpop.f32.mrf.mxu0 }
 0x279   :  { %v11316_v0 = vadd.f32 %v3235_v61, %v3187_v59  ;;  %v11329_v59 = vor.u32 %v9582_v30, %v8330_v37 }
 0x27a   :  { %v3335_v40 = vpop.f32.mrf.mxu1 }
 0x27b   :  { %14315 = vst [vmem:[#allocation275_spill] sm:$0xff] %v11316_v0  ;;  %v11318_v55 = vadd.f32 %v3335_v40, %v3286_v27  ;;  %3572 = vmatpush.bf16.msra.mxu2 %v11329_v59  ;;  %v14334_v0 = vld [vmem:[#allocation79_spill] sm:$0xff] }
 0x27c   :  { %14320 = vst [vmem:[#allocation66_spill] sm:$0xff] %v11329_v59  ;;  %v14351_v59 = vld [vmem:[#allocation92_spill] sm:$0xff] }
 0x27e   :  { %v3188_v62 = vpop.f32.mrf.mxu2 }
 0x27f   :  { %v3189_v45 = vadd.f32 %v3188_v62, %v11120_v21  ;;  %v3237_v1 = vpop.f32.mrf.mxu3  ;;  %v8394_v21 = vld [vmem:[#allocation9 + $0x3c8] sm:$0xf0] }
 0x280   :  { %v3289_v42 = vpop.f32.mrf.mxu0  ;;  %v11331_v27 = vor.u32 %v9598_v34, %v8394_v21 }
 0x281   :  { %v11321_v22 = vadd.f32 %v3237_v1, %v3189_v45 }
 0x282   :  { %v3338_v26 = vpop.f32.mrf.mxu1  ;;  %14321 = vst [vmem:[#allocation67_spill] sm:$0xff] %v11331_v27  ;;  %3621 = vmatpush.bf16.msra.mxu3 %v11331_v27 }
 0x283   :  { %14316 = vst [vmem:[#allocation276_spill] sm:$0xff] %v11321_v22  ;;  %3386 = vmatmul.bf16.gmra.mxu2 %v10409_v51  ;;  %3484 = vmatmul.bf16.gmra.mxu0 %v14317_v38  ;;  %v11325_v5 = vadd.f32 %v3338_v26, %v3289_v42 }
 0x284   :  { %3435 = vmatmul.bf16.gmra.mxu3 %v14318_v33 }
 0x285   :  { %3533 = vmatmul.bf16.gmra.mxu1 %v14319_v25  ;;  %v14325_v25 = vld [vmem:[#allocation72_spill] sm:$0xff] }
 0x286   :  { %v3191_v61 = vpop.f32.mrf.mxu2 }
 0x287   :  { %v3192_v40 = vadd.f32 %v3191_v61, %v11130_v47  ;;  %v3240_v51 = vpop.f32.mrf.mxu3  ;;  %v14324_v47 = vld [vmem:[#allocation71_spill] sm:$0xff]  ;;  %v14326_v61 = vld [vmem:[#allocation73_spill] sm:$0xff] }
 0x288   :  { %v3291_v62 = vpop.f32.mrf.mxu0 }
 0x289   :  { %v11336_v45 = vadd.f32 %v3240_v51, %v3192_v40  ;;  %v9580_v40 = vld [vmem:[#allocation9 + $0x334] sm:$0xf]  ;;  %v8322_v51 = vld [vmem:[#allocation9 + $0x338] sm:$0xf0] }
 0x28a   :  { %v3340_v1 = vpop.f32.mrf.mxu1 }
 0x28b   :  { %14322 = vst [vmem:[#allocation68_spill] sm:$0xff] %v11336_v45  ;;  %v11338_v42 = vadd.f32 %v3340_v1, %v3291_v62  ;;  %v9596_v62 = vld [vmem:[#allocation9 + $0x3b4] sm:$0xf]  ;;  %v11349_v45 = vor.u32 %v9580_v40, %v8322_v51 }
 0x28c   :  { %v14327_v1 = vld [vmem:[#allocation74_spill] sm:$0xff] }
 0x28d   :  { %14328 = vst [vmem:[#allocation71_spill] sm:$0xff] %v11349_v45  ;;  %3573 = vmatpush.bf16.msra.mxu2 %v11349_v45 }
 0x28e   :  { %v3193_v26 = vpop.f32.mrf.mxu2 }
 0x28f   :  { %v3194_v38 = vadd.f32 %v3193_v26, %v11140_v24  ;;  %v3242_v33 = vpop.f32.mrf.mxu3  ;;  %v8386_v24 = vld [vmem:[#allocation9 + $0x3b8] sm:$0xf0] }
 0x290   :  { %v3294_v30 = vpop.f32.mrf.mxu0 }
 0x291   :  { %v11341_v37 = vadd.f32 %v3242_v33, %v3194_v38  ;;  %v11351_v38 = vor.u32 %v9596_v62, %v8386_v24 }
 0x292   :  { %v3343_v34 = vpop.f32.mrf.mxu1 }
 0x293   :  { %14323 = vst [vmem:[#allocation277_spill] sm:$0xff] %v11341_v37  ;;  %3391 = vmatmul.bf16.gmra.mxu2 %v14324_v47  ;;  %3489 = vmatmul.bf16.gmra.mxu0 %v14325_v25  ;;  %v11345_v21 = vadd.f32 %v3343_v34, %v3294_v30 }
 0x294   :  { %3440 = vmatmul.bf16.gmra.mxu3 %v14326_v61  ;;  %14329 = vst [vmem:[#allocation72_spill] sm:$0xff] %v11351_v38 }
 0x295   :  { %3538 = vmatmul.bf16.gmra.mxu1 %v14327_v1  ;;  %3622 = vmatpush.bf16.msra.mxu3 %v11351_v38  ;;  %v14340_v38 = vld [vmem:[#allocation83_spill] sm:$0xff] }
 0x296   :  { %v3196_v26 = vpop.f32.mrf.mxu2 }
 0x297   :  { %v3197_v33 = vadd.f32 %v3196_v26, %v11150_v17  ;;  %v3245_v47 = vpop.f32.mrf.mxu3  ;;  %v14332_v17 = vld [vmem:[#allocation77_spill] sm:$0xff]  ;;  %v14333_v26 = vld [vmem:[#allocation78_spill] sm:$0xff] }
 0x298   :  { %v3296_v30 = vpop.f32.mrf.mxu0 }
 0x299   :  { %v11356_v34 = vadd.f32 %v3245_v47, %v3197_v33  ;;  %v9578_v33 = vld [vmem:[#allocation9 + $0x324] sm:$0xf]  ;;  %v8314_v47 = vld [vmem:[#allocation9 + $0x328] sm:$0xf0] }
 0x29a   :  { %v3345_v25 = vpop.f32.mrf.mxu1 }
 0x29b   :  { %14330 = vst [vmem:[#allocation73_spill] sm:$0xff] %v11356_v34  ;;  %v11358_v61 = vadd.f32 %v3345_v25, %v3296_v30  ;;  %v9594_v30 = vld [vmem:[#allocation9 + $0x3a4] sm:$0xf]  ;;  %v11369_v34 = vor.u32 %v9578_v33, %v8314_v47 }
 0x29c   :  { %v14335_v25 = vld [vmem:[#allocation80_spill] sm:$0xff] }
 0x29d   :  { %14336 = vst [vmem:[#allocation77_spill] sm:$0xff] %v11369_v34  ;;  %3574 = vmatpush.bf16.msra.mxu2 %v11369_v34  ;;  %v14341_v34 = vld [vmem:[#allocation84_spill] sm:$0xff] }
 0x29e   :  { %v3198_v1 = vpop.f32.mrf.mxu2 }
 0x29f   :  { %v3199_v40 = vadd.f32 %v3198_v1, %v11160_v46  ;;  %v3247_v51 = vpop.f32.mrf.mxu3  ;;  %v8378_v46 = vld [vmem:[#allocation9 + $0x3a8] sm:$0xf0] }
 0x2a0   :  { %v3299_v37 = vpop.f32.mrf.mxu0 }
 0x2a1   :  { %v11361_v62 = vadd.f32 %v3247_v51, %v3199_v40  ;;  %v11371_v40 = vor.u32 %v9594_v30, %v8378_v46 }
 0x2a2   :  { %v3348_v24 = vpop.f32.mrf.mxu1 }
 0x2a3   :  { %14331 = vst [vmem:[#allocation74_spill] sm:$0xff] %v11361_v62  ;;  %3396 = vmatmul.bf16.gmra.mxu2 %v14332_v17  ;;  %3494 = vmatmul.bf16.gmra.mxu0 %v14333_v26  ;;  %v11365_v22 = vadd.f32 %v3348_v24, %v3299_v37 }
 0x2a4   :  { %3445 = vmatmul.bf16.gmra.mxu3 %v14334_v0  ;;  %14337 = vst [vmem:[#allocation78_spill] sm:$0xff] %v11371_v40 }
 0x2a5   :  { %3543 = vmatmul.bf16.gmra.mxu1 %v14335_v25  ;;  %3623 = vmatpush.bf16.msra.mxu3 %v11371_v40 }
 0x2a6   :  { %v3201_v1 = vpop.f32.mrf.mxu2 }
 0x2a7   :  { %v3202_v51 = vadd.f32 %v3201_v1, %v11170_v63  ;;  %v3250_v17 = vpop.f32.mrf.mxu3  ;;  %v9620_v63 = vld [vmem:[#allocation9 + $0x474] sm:$0xf]  ;;  %v8482_v1 = vld [vmem:[#allocation9 + $0x478] sm:$0xf0] }
 0x2a8   :  { %v3301_v37 = vpop.f32.mrf.mxu0 }
 0x2a9   :  { %v11376_v0 = vadd.f32 %v3250_v17, %v3202_v51  ;;  %v11387_v51 = vor.u32 %v9620_v63, %v8482_v1  ;;  %v14342_v17 = vld [vmem:[#allocation85_spill] sm:$0xff] }
 0x2aa   :  { %v3350_v24 = vpop.f32.mrf.mxu1 }
 0x2ab   :  { %14338 = vst [vmem:[#allocation79_spill] sm:$0xff] %v11376_v0  ;;  %v11378_v26 = vadd.f32 %v3350_v24, %v3301_v37  ;;  %v9576_v37 = vld [vmem:[#allocation9 + $0x314] sm:$0xf]  ;;  %v8306_v24 = vld [vmem:[#allocation9 + $0x318] sm:$0xf0]  ;;  %3667 = vmatpush.bf16.msra.mxu0 %v11387_v51 }
 0x2ae   :  { %v3203_v25 = vpop.f32.mrf.mxu2 }
 0x2af   :  { %v3204_v33 = vadd.f32 %v3203_v25, %v11182_v16  ;;  %v3252_v47 = vpop.f32.mrf.mxu3  ;;  %v9592_v16 = vld [vmem:[#allocation9 + $0x394] sm:$0xf] }
 0x2b0   :  { %v3304_v62 = vpop.f32.mrf.mxu0  ;;  %v14343_v25 = vld [vmem:[#allocation86_spill] sm:$0xff] }
 0x2b1   :  { %v11381_v30 = vadd.f32 %v3252_v47, %v3204_v33  ;;  %v11391_v33 = vor.u32 %v9576_v37, %v8306_v24  ;;  %v8370_v47 = vld [vmem:[#allocation9 + $0x398] sm:$0xf0] }
 0x2b2   :  { %v3353_v46 = vpop.f32.mrf.mxu1 }
 0x2b3   :  { %14339 = vst [vmem:[#allocation80_spill] sm:$0xff] %v11381_v30  ;;  %3401 = vmatmul.bf16.gmra.mxu2 %v14340_v38  ;;  %3499 = vmatmul.bf16.gmra.mxu0 %v14341_v34  ;;  %v11385_v40 = vadd.f32 %v3353_v46, %v3304_v62  ;;  %v11394_v38 = vor.u32 %v9592_v16, %v8370_v47  ;;  %v9618_v34 = vld [vmem:[#allocation9 + $0x464] sm:$0xf]  ;;  %v8474_v62 = vld [vmem:[#allocation9 + $0x468] sm:$0xf0] }
 0x2b4   :  { %3450 = vmatmul.bf16.gmra.mxu3 %v14342_v17  ;;  %14344 = vst [vmem:[#allocation83_spill] sm:$0xff] %v11391_v33  ;;  %3575 = vmatpush.bf16.msra.mxu2 %v11391_v33  ;;  %v11398_v1 = vor.u32 %v9618_v34, %v8474_v62  ;;  %v8466_v16 = vld [vmem:[#allocation9 + $0x458] sm:$0xf0]  ;;  %v8458_v34 = vld [vmem:[#allocation9 + $0x448] sm:$0xf0] }
 0x2b5   :  { %3548 = vmatmul.bf16.gmra.mxu1 %v14343_v25  ;;  %14345 = vst [vmem:[#allocation84_spill] sm:$0xff] %v11394_v38  ;;  %3624 = vmatpush.bf16.msra.mxu3 %v11394_v38  ;;  %v9616_v25 = vld [vmem:[#allocation9 + $0x454] sm:$0xf] }
 0x2b6   :  { %v3206_v30 = vpop.f32.mrf.mxu2  ;;  %14346 = vst [vmem:[#allocation85_spill] sm:$0xff] %v11398_v1  ;;  %3668 = vmatpush.bf16.msra.mxu0 %v11398_v1  ;;  %v11406_v0 = vor.u32 %v9616_v25, %v8466_v16  ;;  %v9636_v62 = vld [vmem:[#allocation9 + $0x4f4] sm:$0xf]  ;;  %v8450_v25 = vld [vmem:[#allocation9 + $0x438] sm:$0xf0] }
 0x2b7   :  { %v3207_v46 = vadd.f32 %v3206_v30, %v11198_v50  ;;  %v3255_v63 = vpop.f32.mrf.mxu3  ;;  %v9614_v30 = vld [vmem:[#allocation9 + $0x444] sm:$0xf] }
 0x2b8   :  { %v3306_v17 = vpop.f32.mrf.mxu0  ;;  %14348 = vst [vmem:[#allocation278_spill] sm:$0xff] %v11406_v0  ;;  %v9634_v16 = vld [vmem:[#allocation9 + $0x4e4] sm:$0xf] }
 0x2b9   :  { %v11401_v37 = vadd.f32 %v3255_v63, %v3207_v46  ;;  %v11410_v46 = vor.u32 %v9614_v30, %v8458_v34  ;;  %v8546_v63 = vld [vmem:[#allocation9 + $0x4f8] sm:$0xf0]  ;;  %v8538_v34 = vld [vmem:[#allocation9 + $0x4e8] sm:$0xf0] }
 0x2ba   :  { %v3355_v24 = vpop.f32.mrf.mxu1  ;;  %3669 = vmatpush.bf16.msra.mxu0 %v11406_v0  ;;  %v11412_v45 = vor.u32 %v9636_v62, %v8546_v63  ;;  %v14354_v62 = vld [vmem:[#allocation95_spill] sm:$0xff]  ;;  %v11425_v63 = vor.u32 %v9634_v16, %v8538_v34 }
 0x2bb   :  { %14347 = vst [vmem:[#allocation86_spill] sm:$0xff] %v11401_v37  ;;  %v11404_v47 = vadd.f32 %v3355_v24, %v3306_v17  ;;  %v9612_v24 = vld [vmem:[#allocation9 + $0x434] sm:$0xf] }
 0x2bc   :  { %14349 = vst [vmem:[#allocation279_spill] sm:$0xff] %v11410_v46  ;;  %3716 = vmatpush.bf16.msra.mxu1 %v11412_v45  ;;  %v11422_v30 = vor.u32 %v9612_v24, %v8450_v25  ;;  %v8442_v24 = vld [vmem:[#allocation9 + $0x428] sm:$0xf0]  ;;  %v9632_v25 = vld [vmem:[#allocation9 + $0x4d4] sm:$0xf] }
 0x2be   :  { %v3208_v50 = vpop.f32.mrf.mxu2  ;;  %3670 = vmatpush.bf16.msra.mxu0 %v11410_v46  ;;  %14353 = vst [vmem:[#allocation92_spill] sm:$0xff] %v11422_v30  ;;  %v14356_v46 = vld [vmem:[#allocation97_spill] sm:$0xff] }
 0x2bf   :  { %v3209_v33 = vadd.f32 %v3208_v50, %v11219_v2  ;;  %v3257_v38 = vpop.f32.mrf.mxu3  ;;  %v14352_v2 = vld [vmem:[#allocation93_spill] sm:$0xff] }
 0x2c0   :  { %v3309_v37 = vpop.f32.mrf.mxu0  ;;  %14355 = vst [vmem:[#allocation93_spill] sm:$0xff] %v11425_v63  ;;  %3717 = vmatpush.bf16.msra.mxu1 %v11425_v63  ;;  %v14392_v63 = vld [vmem:[#allocation129_spill] sm:$0xff] }
 0x2c1   :  { %v11414_v27 = vadd.f32 %v3257_v38, %v3209_v33  ;;  %v9574_v33 = vld [vmem:[#allocation9 + $0x304] sm:$0xf]  ;;  %v8298_v38 = vld [vmem:[#allocation9 + $0x308] sm:$0xf0] }
 0x2c2   :  { %v3358_v17 = vpop.f32.mrf.mxu1  ;;  %v11428_v0 = vor.u32 %v9574_v33, %v8298_v38  ;;  %3671 = vmatpush.bf16.msra.mxu0 %v11422_v30 }
 0x2c3   :  { %14350 = vst [vmem:[#allocation280_spill] sm:$0xff] %v11414_v27  ;;  %3406 = vmatmul.bf16.gmra.mxu2 %v14351_v59  ;;  %3504 = vmatmul.bf16.gmra.mxu0 %v14352_v2  ;;  %v11420_v50 = vadd.f32 %v3358_v17, %v3309_v37  ;;  %v9590_v27 = vld [vmem:[#allocation9 + $0x384] sm:$0xf]  ;;  %v8362_v59 = vld [vmem:[#allocation9 + $0x388] sm:$0xf0] }
 0x2c4   :  { %3455 = vmatmul.bf16.gmra.mxu3 %v14354_v62  ;;  %14357 = vst [vmem:[#allocation95_spill] sm:$0xff] %v11428_v0  ;;  %v11432_v37 = vor.u32 %v9590_v27, %v8362_v59  ;;  %v9610_v17 = vld [vmem:[#allocation9 + $0x424] sm:$0xf]  ;;  %3576 = vmatpush.bf16.msra.mxu2 %v11428_v0  ;;  %v9608_v59 = vld [vmem:[#allocation9 + $0x414] sm:$0xf] }
 0x2c5   :  { %3553 = vmatmul.bf16.gmra.mxu1 %v14356_v46  ;;  %v11436_v34 = vor.u32 %v9610_v17, %v8442_v24  ;;  %v8530_v46 = vld [vmem:[#allocation9 + $0x4d8] sm:$0xf0]  ;;  %v8522_v24 = vld [vmem:[#allocation9 + $0x4c8] sm:$0xf0] }
 0x2c6   :  { %v3211_v2 = vpop.f32.mrf.mxu2  ;;  %14358 = vst [vmem:[#allocation97_spill] sm:$0xff] %v11432_v37  ;;  %3625 = vmatpush.bf16.msra.mxu3 %v11432_v37  ;;  %v11439_v38 = vor.u32 %v9632_v25, %v8530_v46  ;;  %v9628_v46 = vld [vmem:[#allocation9 + $0x4b4] sm:$0xf] }
 0x2c7   :  { %v3212_v62 = vadd.f32 %v3211_v2, %v11241_v7  ;;  %v3260_v16 = vpop.f32.mrf.mxu3  ;;  %14359 = vst [vmem:[#allocation281_spill] sm:$0xff] %v11436_v34  ;;  %3672 = vmatpush.bf16.msra.mxu0 %v11436_v34  ;;  %v8434_v7 = vld [vmem:[#allocation9 + $0x418] sm:$0xf0]  ;;  %v9630_v2 = vld [vmem:[#allocation9 + $0x4c4] sm:$0xf] }
 0x2c8   :  { %v3311_v33 = vpop.f32.mrf.mxu0  ;;  %14360 = vst [vmem:[#allocation282_spill] sm:$0xff] %v11439_v38  ;;  %3718 = vmatpush.bf16.msra.mxu1 %v11439_v38  ;;  %v11447_v17 = vor.u32 %v9608_v59, %v8434_v7  ;;  %v11449_v0 = vor.u32 %v9630_v2, %v8522_v24  ;;  %v9626_v24 = vld [vmem:[#allocation9 + $0x4a4] sm:$0xf]  ;;  %v14368_v38 = vld [vmem:[#allocation107_spill] sm:$0xff] }
 0x2c9   :  { %v11441_v30 = vadd.f32 %v3260_v16, %v3212_v62  ;;  %v9606_v62 = vld [vmem:[#allocation9 + $0x404] sm:$0xf]  ;;  %v8426_v16 = vld [vmem:[#allocation9 + $0x408] sm:$0xf0] }
 0x2ca   :  { %v3360_v27 = vpop.f32.mrf.mxu1  ;;  %14362 = vst [vmem:[#allocation284_spill] sm:$0xff] %v11447_v17  ;;  %v11454_v34 = vor.u32 %v9606_v62, %v8426_v16  ;;  %v14370_v62 = vld [vmem:[#allocation109_spill] sm:$0xff]  ;;  %v9652_v16 = vld [vmem:[#allocation9 + $0x574] sm:$0xf] }
 0x2cb   :  { %14361 = vst [vmem:[#allocation283_spill] sm:$0xff] %v11441_v30  ;;  %v11445_v3 = vadd.f32 %v3360_v27, %v3311_v33  ;;  %3673 = vmatpush.bf16.msra.mxu0 %v11447_v17  ;;  %v8514_v33 = vld [vmem:[#allocation9 + $0x4b8] sm:$0xf0]  ;;  %v8506_v17 = vld [vmem:[#allocation9 + $0x4a8] sm:$0xf0] }
 0x2cc   :  { %14363 = vst [vmem:[#allocation285_spill] sm:$0xff] %v11449_v0  ;;  %3719 = vmatpush.bf16.msra.mxu1 %v11449_v0  ;;  %v11456_v59 = vor.u32 %v9628_v46, %v8514_v33  ;;  %v14367_v0 = vld [vmem:[#allocation106_spill] sm:$0xff]  ;;  %v14371_v46 = vld [vmem:[#allocation111_spill] sm:$0xff] }
 0x2cd   :  { %14364 = vst [vmem:[#allocation286_spill] sm:$0xff] %v11454_v34 }
 0x2ce   :  { %v3213_v25 = vpop.f32.mrf.mxu2  ;;  %14365 = vst [vmem:[#allocation287_spill] sm:$0xff] %v11456_v59 }
 0x2cf   :  { %v3214_v30 = vadd.f32 %v3213_v25, %v11261_v36  ;;  %v3262_v37 = vpop.f32.mrf.mxu3  ;;  %3674 = vmatpush.bf16.msra.mxu0 %v11454_v34  ;;  %v11466_v25 = vor.u32 %v9626_v24, %v8506_v17 }
 0x2d0   :  { %v3314_v27 = vpop.f32.mrf.mxu0  ;;  %3720 = vmatpush.bf16.msra.mxu1 %v11456_v59 }
 0x2d1   :  { %v11458_v7 = vadd.f32 %v3262_v37, %v3214_v30  ;;  %14369 = vst [vmem:[#allocation106_spill] sm:$0xff] %v11466_v25  ;;  %v8610_v30 = vld [vmem:[#allocation9 + $0x578] sm:$0xf0]  ;;  %v9668_v37 = vld [vmem:[#allocation9 + $0x5f4] sm:$0xf] }
 0x2d2   :  { %v3363_v2 = vpop.f32.mrf.mxu1  ;;  %v11470_v33 = vor.u32 %v9652_v16, %v8610_v30 }
 0x2d3   :  { %14366 = vst [vmem:[#allocation288_spill] sm:$0xff] %v11458_v7  ;;  %3411 = vmatmul.bf16.gmra.mxu2 %v14367_v0  ;;  %3509 = vmatmul.bf16.gmra.mxu0 %v14368_v38  ;;  %v11464_v36 = vadd.f32 %v3363_v2, %v3314_v27  ;;  %v8674_v7 = vld [vmem:[#allocation9 + $0x5f8] sm:$0xf0]  ;;  %v9624_v38 = vld [vmem:[#allocation9 + $0x494] sm:$0xf] }
 0x2d4   :  { %3460 = vmatmul.bf16.gmra.mxu3 %v14370_v62  ;;  %14372 = vst [vmem:[#allocation107_spill] sm:$0xff] %v11470_v33  ;;  %3721 = vmatpush.bf16.msra.mxu1 %v11466_v25  ;;  %v11473_v0 = vor.u32 %v9668_v37, %v8674_v7  ;;  %v8498_v27 = vld [vmem:[#allocation9 + $0x498] sm:$0xf0]  ;;  %v8490_v7 = vld [vmem:[#allocation9 + $0x488] sm:$0xf0] }
 0x2d5   :  { %3558 = vmatmul.bf16.gmra.mxu1 %v14371_v46  ;;  %3765 = vmatpush.bf16.msrb.mxu2 %v11470_v33  ;;  %v11477_v24 = vor.u32 %v9624_v38, %v8498_v27  ;;  %v9622_v46 = vld [vmem:[#allocation9 + $0x484] sm:$0xf] }
 0x2d6   :  { %v3216_v34 = vpop.f32.mrf.mxu2  ;;  %14373 = vst [vmem:[#allocation109_spill] sm:$0xff] %v11473_v0  ;;  %3814 = vmatpush.bf16.msrb.mxu3 %v11473_v0  ;;  %v11485_v25 = vor.u32 %v9622_v46, %v8490_v7  ;;  %v8602_v46 = vld [vmem:[#allocation9 + $0x568] sm:$0xf0]  ;;  %v14381_v7 = vld [vmem:[#allocation120_spill] sm:$0xff] }
 0x2d7   :  { %v3217_v17 = vadd.f32 %v3216_v34, %v11277_v14  ;;  %v3265_v2 = vpop.f32.mrf.mxu3  ;;  %14374 = vst [vmem:[#allocation111_spill] sm:$0xff] %v11477_v24 }
 0x2d8   :  { %v3316_v62 = vpop.f32.mrf.mxu0  ;;  %3722 = vmatpush.bf16.msra.mxu1 %v11477_v24  ;;  %14376 = vst [vmem:[#allocation290_spill] sm:$0xff] %v11485_v25 }
 0x2d9   :  { %v11480_v16 = vadd.f32 %v3265_v2, %v3217_v17  ;;  %v14378_v2 = vld [vmem:[#allocation117_spill] sm:$0xff] }
 0x2da   :  { %v3365_v30 = vpop.f32.mrf.mxu1 }
 0x2db   :  { %14375 = vst [vmem:[#allocation289_spill] sm:$0xff] %v11480_v16  ;;  %v11483_v37 = vadd.f32 %v3365_v30, %v3316_v62  ;;  %v14379_v16 = vld [vmem:[#allocation118_spill] sm:$0xff]  ;;  %v14380_v62 = vld [vmem:[#allocation119_spill] sm:$0xff]  ;;  %v9650_v30 = vld [vmem:[#allocation9 + $0x564] sm:$0xf] }
 0x2dc   :  { %3723 = vmatpush.bf16.msra.mxu1 %v11485_v25  ;;  %v11497_v25 = vor.u32 %v9650_v30, %v8602_v46 }
 0x2de   :  { %v3218_v14 = vpop.f32.mrf.mxu2  ;;  %14382 = vst [vmem:[#allocation117_spill] sm:$0xff] %v11497_v25  ;;  %3766 = vmatpush.bf16.msrb.mxu2 %v11497_v25  ;;  %v14388_v25 = vld [vmem:[#allocation125_spill] sm:$0xff] }
 0x2df   :  { %v3219_v34 = vadd.f32 %v3218_v14, %v11288_v18  ;;  %v3267_v38 = vpop.f32.mrf.mxu3  ;;  %v9666_v18 = vld [vmem:[#allocation9 + $0x5e4] sm:$0xf]  ;;  %v8666_v14 = vld [vmem:[#allocation9 + $0x5e8] sm:$0xf0] }
 0x2e0   :  { %v3319_v27 = vpop.f32.mrf.mxu0 }
 0x2e1   :  { %v11489_v33 = vadd.f32 %v3267_v38, %v3219_v34  ;;  %v11499_v34 = vor.u32 %v9666_v18, %v8666_v14 }
 0x2e2   :  { %v3368_v17 = vpop.f32.mrf.mxu1 }
 0x2e3   :  { %14377 = vst [vmem:[#allocation291_spill] sm:$0xff] %v11489_v33  ;;  %3416 = vmatmul.bf16.gmra.mxu2 %v14378_v2  ;;  %3514 = vmatmul.bf16.gmra.mxu0 %v14379_v16  ;;  %v11493_v0 = vadd.f32 %v3368_v17, %v3319_v27 }
 0x2e4   :  { %3465 = vmatmul.bf16.gmra.mxu3 %v14380_v62  ;;  %14383 = vst [vmem:[#allocation118_spill] sm:$0xff] %v11499_v34 }
 0x2e5   :  { %3563 = vmatmul.bf16.gmra.mxu1 %v14381_v7  ;;  %3815 = vmatpush.bf16.msrb.mxu3 %v11499_v34  ;;  %v9648_v34 = vld [vmem:[#allocation9 + $0x554] sm:$0xf] }
 0x2e6   :  { %v3221_v24 = vpop.f32.mrf.mxu2 }
 0x2e7   :  { %v3222_v38 = vadd.f32 %v3221_v24, %v11298_v9  ;;  %v3270_v2 = vpop.f32.mrf.mxu3  ;;  %v14386_v9 = vld [vmem:[#allocation123_spill] sm:$0xff]  ;;  %v14387_v24 = vld [vmem:[#allocation124_spill] sm:$0xff] }
 0x2e8   :  { %v3321_v16 = vpop.f32.mrf.mxu0 }
 0x2e9   :  { %v11504_v27 = vadd.f32 %v3270_v2, %v3222_v38  ;;  %v8594_v38 = vld [vmem:[#allocation9 + $0x558] sm:$0xf0]  ;;  %v14389_v2 = vld [vmem:[#allocation126_spill] sm:$0xff] }
 0x2ea   :  { %v3370_v17 = vpop.f32.mrf.mxu1 }
 0x2eb   :  { %14384 = vst [vmem:[#allocation119_spill] sm:$0xff] %v11504_v27  ;;  %v11506_v62 = vadd.f32 %v3370_v17, %v3321_v16  ;;  %v11515_v16 = vor.u32 %v9648_v34, %v8594_v38  ;;  %v9664_v17 = vld [vmem:[#allocation9 + $0x5d4] sm:$0xf]  ;;  %v8658_v27 = vld [vmem:[#allocation9 + $0x5d8] sm:$0xf0] }
 0x2ed   :  { %14390 = vst [vmem:[#allocation123_spill] sm:$0xff] %v11515_v16  ;;  %3767 = vmatpush.bf16.msrb.mxu2 %v11515_v16  ;;  %v14394_v16 = vld [vmem:[#allocation131_spill] sm:$0xff] }
 0x2ee   :  { %v3223_v30 = vpop.f32.mrf.mxu2 }
 0x2ef   :  { %v3224_v46 = vadd.f32 %v3223_v30, %v11306_v57  ;;  %v3272_v7 = vpop.f32.mrf.mxu3  ;;  %v11517_v30 = vor.u32 %v9664_v17, %v8658_v27 }
 0x2f0   :  { %v3480_v33 = vpop.f32.mrf.mxu0 }
 0x2f1   :  { %v11509_v18 = vadd.f32 %v3272_v7, %v3224_v46  ;;  %14391 = vst [vmem:[#allocation124_spill] sm:$0xff] %v11517_v30  ;;  %3816 = vmatpush.bf16.msrb.mxu3 %v11517_v30  ;;  %v9646_v30 = vld [vmem:[#allocation9 + $0x544] sm:$0xf] }
 0x2f2   :  { %v3529_v14 = vpop.f32.mrf.mxu1 }
 0x2f3   :  { %14385 = vst [vmem:[#allocation120_spill] sm:$0xff] %v11509_v18  ;;  %3577 = vmatmul.bf16.vlgmr.msra.gmra.mxu2 %v14386_v9  ;;  %3675 = vmatmul.bf16.vlgmr.msra.gmra.mxu0 %v14387_v24 }
 0x2f4   :  { %3626 = vmatmul.bf16.vlgmr.msra.gmra.mxu3 %v14388_v25 }
 0x2f5   :  { %3724 = vmatmul.bf16.vlgmr.msra.gmra.mxu1 %v14389_v2 }
 0x2f6   :  { %v3382_v57 = vpop.f32.mrf.mxu2 }
 0x2f7   :  { %v3383_v46 = vadd.f32 %v3382_v57, %v11303_v6  ;;  %v3431_v7 = vpop.f32.mrf.mxu3  ;;  %v14393_v6 = vld [vmem:[#allocation130_spill] sm:$0xff] }
 0x2f8   :  { %v3482_v9 = vpop.f32.mrf.mxu0 }
 0x2f9   :  { %v3432_v25 = vadd.f32 %v3431_v7, %v3383_v46  ;;  %v8586_v46 = vld [vmem:[#allocation9 + $0x548] sm:$0xf0] }
 0x2fa   :  { %v3531_v24 = vpop.f32.mrf.mxu1 }
 0x2fb   :  { %v3481_v18 = vadd.f32 %v3480_v33, %v3432_v25  ;;  %v14395_v33 = vld [vmem:[#allocation132_spill] sm:$0xff] }
 0x2fd   :  { %v11522_v59 = vadd.f32 %v3529_v14, %v3481_v18  ;;  %v11531_v18 = vor.u32 %v9646_v30, %v8586_v46  ;;  %v8650_v14 = vld [vmem:[#allocation9 + $0x5c8] sm:$0xf0] }
 0x2fe   :  { %v3384_v34 = vpop.f32.mrf.mxu2 }
 0x2ff   :  { %v3385_v38 = vadd.f32 %v3384_v34, %v11318_v55  ;;  %v3433_v2 = vpop.f32.mrf.mxu3  ;;  %14396 = vst [vmem:[#allocation125_spill] sm:$0xff] %v11531_v18  ;;  %v9662_v55 = vld [vmem:[#allocation9 + $0x5c4] sm:$0xf]  ;;  %3768 = vmatpush.bf16.msrb.mxu2 %v11531_v18  ;;  %v14400_v18 = vld [vmem:[#allocation137_spill] sm:$0xff] }
 0x300   :  { %v3485_v10 = vpop.f32.mrf.mxu0  ;;  %v11533_v34 = vor.u32 %v9662_v55, %v8650_v14  ;;  %v14398_v14 = vld [vmem:[#allocation135_spill] sm:$0xff] }
 0x301   :  { %v3434_v27 = vadd.f32 %v3433_v2, %v3385_v38 }
 0x302   :  { %v3534_v17 = vpop.f32.mrf.mxu1  ;;  %14397 = vst [vmem:[#allocation126_spill] sm:$0xff] %v11533_v34  ;;  %3817 = vmatpush.bf16.msrb.mxu3 %v11533_v34  ;;  %v9644_v34 = vld [vmem:[#allocation9 + $0x534] sm:$0xf] }
 0x303   :  { %3582 = vmatmul.bf16.gmra.mxu2 %v14392_v63  ;;  %3680 = vmatmul.bf16.gmra.mxu0 %v14393_v6  ;;  %v3483_v57 = vadd.f32 %v3482_v9, %v3434_v27 }
 0x304   :  { %3631 = vmatmul.bf16.gmra.mxu3 %v14394_v16 }
 0x305   :  { %v11528_v7 = vadd.f32 %v3531_v24, %v3483_v57  ;;  %3729 = vmatmul.bf16.gmra.mxu1 %v14395_v33 }
 0x306   :  { %v3387_v25 = vpop.f32.mrf.mxu2 }
 0x307   :  { %v3388_v63 = vadd.f32 %v3387_v25, %v11325_v5  ;;  %v3436_v38 = vpop.f32.mrf.mxu3  ;;  %v14399_v5 = vld [vmem:[#allocation136_spill] sm:$0xff] }
 0x308   :  { %v3487_v9 = vpop.f32.mrf.mxu0 }
 0x309   :  { %v3437_v16 = vadd.f32 %v3436_v38, %v3388_v63  ;;  %v8578_v63 = vld [vmem:[#allocation9 + $0x538] sm:$0xf0] }
 0x30a   :  { %v3536_v24 = vpop.f32.mrf.mxu1 }
 0x30b   :  { %v3486_v2 = vadd.f32 %v3485_v10, %v3437_v16  ;;  %v14401_v10 = vld [vmem:[#allocation138_spill] sm:$0xff]  ;;  %v8642_v16 = vld [vmem:[#allocation9 + $0x5b8] sm:$0xf0] }
 0x30d   :  { %v11538_v27 = vadd.f32 %v3534_v17, %v3486_v2  ;;  %v11547_v17 = vor.u32 %v9644_v34, %v8578_v63 }
 0x30e   :  { %v3389_v30 = vpop.f32.mrf.mxu2 }
 0x30f   :  { %v3390_v6 = vadd.f32 %v3389_v30, %v11338_v42  ;;  %v3438_v57 = vpop.f32.mrf.mxu3  ;;  %14402 = vst [vmem:[#allocation129_spill] sm:$0xff] %v11547_v17  ;;  %v9660_v42 = vld [vmem:[#allocation9 + $0x5b4] sm:$0xf]  ;;  %3769 = vmatpush.bf16.msrb.mxu2 %v11547_v17  ;;  %v14406_v17 = vld [vmem:[#allocation143_spill] sm:$0xff] }
 0x310   :  { %v3490_v46 = vpop.f32.mrf.mxu0  ;;  %v11549_v30 = vor.u32 %v9660_v42, %v8642_v16  ;;  %v14404_v16 = vld [vmem:[#allocation141_spill] sm:$0xff] }
 0x311   :  { %v3439_v33 = vadd.f32 %v3438_v57, %v3390_v6 }
 0x312   :  { %v3539_v55 = vpop.f32.mrf.mxu1  ;;  %14403 = vst [vmem:[#allocation130_spill] sm:$0xff] %v11549_v30  ;;  %3818 = vmatpush.bf16.msrb.mxu3 %v11549_v30  ;;  %v9642_v30 = vld [vmem:[#allocation9 + $0x524] sm:$0xf] }
 0x313   :  { %3587 = vmatmul.bf16.gmra.mxu2 %v14398_v14  ;;  %3685 = vmatmul.bf16.gmra.mxu0 %v14399_v5  ;;  %v3488_v25 = vadd.f32 %v3487_v9, %v3439_v33 }
 0x314   :  { %3636 = vmatmul.bf16.gmra.mxu3 %v14400_v18 }
 0x315   :  { %v11544_v38 = vadd.f32 %v3536_v24, %v3488_v25  ;;  %3734 = vmatmul.bf16.gmra.mxu1 %v14401_v10 }
 0x316   :  { %v3392_v2 = vpop.f32.mrf.mxu2 }
 0x317   :  { %v3393_v6 = vadd.f32 %v3392_v2, %v11345_v21  ;;  %v3441_v57 = vpop.f32.mrf.mxu3  ;;  %v14405_v21 = vld [vmem:[#allocation142_spill] sm:$0xff] }
 0x318   :  { %v3492_v9 = vpop.f32.mrf.mxu0 }
 0x319   :  { %v3442_v18 = vadd.f32 %v3441_v57, %v3393_v6  ;;  %v8570_v6 = vld [vmem:[#allocation9 + $0x528] sm:$0xf0] }
 0x31a   :  { %v3541_v24 = vpop.f32.mrf.mxu1 }
 0x31b   :  { %v3491_v33 = vadd.f32 %v3490_v46, %v3442_v18  ;;  %v14407_v46 = vld [vmem:[#allocation144_spill] sm:$0xff]  ;;  %v8634_v18 = vld [vmem:[#allocation9 + $0x5a8] sm:$0xf0] }
 0x31d   :  { %v11554_v14 = vadd.f32 %v3539_v55, %v3491_v33  ;;  %v11563_v55 = vor.u32 %v9642_v30, %v8570_v6 }
 0x31e   :  { %v3394_v34 = vpop.f32.mrf.mxu2 }
 0x31f   :  { %v3395_v5 = vadd.f32 %v3394_v34, %v11358_v61  ;;  %v3443_v25 = vpop.f32.mrf.mxu3  ;;  %14408 = vst [vmem:[#allocation131_spill] sm:$0xff] %v11563_v55  ;;  %v9658_v61 = vld [vmem:[#allocation9 + $0x5a4] sm:$0xf]  ;;  %3770 = vmatpush.bf16.msrb.mxu2 %v11563_v55 }
 0x320   :  { %v3495_v63 = vpop.f32.mrf.mxu0  ;;  %v11565_v34 = vor.u32 %v9658_v61, %v8634_v18  ;;  %v9684_v18 = vld [vmem:[#allocation9 + $0x674] sm:$0xf]  ;;  %v14411_v55 = vld [vmem:[#allocation148_spill] sm:$0xff] }
 0x321   :  { %v3444_v10 = vadd.f32 %v3443_v25, %v3395_v5 }
 0x322   :  { %v3544_v42 = vpop.f32.mrf.mxu1  ;;  %14409 = vst [vmem:[#allocation132_spill] sm:$0xff] %v11565_v34  ;;  %3819 = vmatpush.bf16.msrb.mxu3 %v11565_v34 }
 0x323   :  { %3592 = vmatmul.bf16.gmra.mxu2 %v14404_v16  ;;  %3690 = vmatmul.bf16.gmra.mxu0 %v14405_v21  ;;  %v3493_v2 = vadd.f32 %v3492_v9, %v3444_v10 }
 0x324   :  { %3641 = vmatmul.bf16.gmra.mxu3 %v14406_v17 }
 0x325   :  { %v11560_v57 = vadd.f32 %v3541_v24, %v3493_v2  ;;  %3739 = vmatmul.bf16.gmra.mxu1 %v14407_v46 }
 0x326   :  { %v3397_v33 = vpop.f32.mrf.mxu2 }
 0x327   :  { %v3398_v5 = vadd.f32 %v3397_v33, %v11365_v22  ;;  %v3446_v25 = vpop.f32.mrf.mxu3  ;;  %v8738_v22 = vld [vmem:[#allocation9 + $0x678] sm:$0xf0] }
 0x328   :  { %v3497_v9 = vpop.f32.mrf.mxu0  ;;  %v14410_v33 = vld [vmem:[#allocation147_spill] sm:$0xff]  ;;  %v11575_v34 = vor.u32 %v9684_v18, %v8738_v22 }
 0x329   :  { %v3447_v17 = vadd.f32 %v3446_v25, %v3398_v5  ;;  %v14413_v5 = vld [vmem:[#allocation149_spill] sm:$0xff] }
 0x32a   :  { %v3546_v24 = vpop.f32.mrf.mxu1  ;;  %14412 = vst [vmem:[#allocation135_spill] sm:$0xff] %v11575_v34  ;;  %3863 = vmatpush.bf16.msrb.mxu0 %v11575_v34 }
 0x32b   :  { %v3496_v10 = vadd.f32 %v3495_v63, %v3447_v17  ;;  %v9640_v63 = vld [vmem:[#allocation9 + $0x514] sm:$0xf] }
 0x32d   :  { %v11570_v16 = vadd.f32 %v3544_v42, %v3496_v10  ;;  %v8562_v42 = vld [vmem:[#allocation9 + $0x518] sm:$0xf0]  ;;  %v9656_v10 = vld [vmem:[#allocation9 + $0x594] sm:$0xf] }
 0x32e   :  { %v3399_v30 = vpop.f32.mrf.mxu2  ;;  %v11581_v17 = vor.u32 %v9640_v63, %v8562_v42  ;;  %v8722_v63 = vld [vmem:[#allocation9 + $0x658] sm:$0xf0] }
 0x32f   :  { %v3400_v21 = vadd.f32 %v3399_v30, %v11378_v26  ;;  %v3448_v2 = vpop.f32.mrf.mxu3  ;;  %v14414_v26 = vld [vmem:[#allocation150_spill] sm:$0xff]  ;;  %v8626_v30 = vld [vmem:[#allocation9 + $0x598] sm:$0xf0] }
 0x330   :  { %v3500_v6 = vpop.f32.mrf.mxu0  ;;  %14415 = vst [vmem:[#allocation136_spill] sm:$0xff] %v11581_v17  ;;  %3771 = vmatpush.bf16.msrb.mxu2 %v11581_v17 }
 0x331   :  { %v3449_v46 = vadd.f32 %v3448_v2, %v3400_v21  ;;  %v11584_v2 = vor.u32 %v9656_v10, %v8626_v30  ;;  %v9678_v30 = vld [vmem:[#allocation9 + $0x644] sm:$0xf] }
 0x332   :  { %v3549_v61 = vpop.f32.mrf.mxu1 }
 0x333   :  { %3597 = vmatmul.bf16.gmra.mxu2 %v14410_v33  ;;  %3695 = vmatmul.bf16.gmra.mxu0 %v14411_v55  ;;  %v3498_v1 = vadd.f32 %v3497_v9, %v3449_v46  ;;  %14416 = vst [vmem:[#allocation137_spill] sm:$0xff] %v11584_v2  ;;  %v9682_v55 = vld [vmem:[#allocation9 + $0x664] sm:$0xf]  ;;  %v8730_v9 = vld [vmem:[#allocation9 + $0x668] sm:$0xf0] }
 0x334   :  { %3646 = vmatmul.bf16.gmra.mxu3 %v14413_v5  ;;  %v9680_v5 = vld [vmem:[#allocation9 + $0x654] sm:$0xf] }
 0x335   :  { %v11578_v25 = vadd.f32 %v3546_v24, %v3498_v1  ;;  %3744 = vmatmul.bf16.gmra.mxu1 %v14414_v26  ;;  %v11588_v1 = vor.u32 %v9682_v55, %v8730_v9  ;;  %3820 = vmatpush.bf16.msrb.mxu3 %v11584_v2  ;;  %v11592_v26 = vor.u32 %v9680_v5, %v8722_v63  ;;  %v9700_v55 = vld [vmem:[#allocation9 + $0x6f4] sm:$0xf]  ;;  %v8706_v5 = vld [vmem:[#allocation9 + $0x638] sm:$0xf0]  ;;  %v9698_v63 = vld [vmem:[#allocation9 + $0x6e4] sm:$0xf] }
 0x336   :  { %v3402_v21 = vpop.f32.mrf.mxu2 }
 0x337   :  { %v3403_v46 = vadd.f32 %v3402_v21, %v11385_v40  ;;  %v3451_v18 = vpop.f32.mrf.mxu3  ;;  %14417 = vst [vmem:[#allocation138_spill] sm:$0xff] %v11588_v1  ;;  %3864 = vmatpush.bf16.msrb.mxu0 %v11588_v1  ;;  %v8714_v21 = vld [vmem:[#allocation9 + $0x648] sm:$0xf0] }
 0x338   :  { %v3502_v24 = vpop.f32.mrf.mxu0  ;;  %14418 = vst [vmem:[#allocation141_spill] sm:$0xff] %v11592_v26 }
 0x339   :  { %v3452_v22 = vadd.f32 %v3451_v18, %v3403_v46  ;;  %v11598_v46 = vor.u32 %v9678_v30, %v8714_v21  ;;  %v8802_v18 = vld [vmem:[#allocation9 + $0x6f8] sm:$0xf0]  ;;  %v8794_v30 = vld [vmem:[#allocation9 + $0x6e8] sm:$0xf0] }
 0x33a   :  { %v3551_v33 = vpop.f32.mrf.mxu1  ;;  %v11600_v1 = vor.u32 %v9700_v55, %v8802_v18  ;;  %v14424_v21 = vld [vmem:[#allocation159_spill] sm:$0xff]  ;;  %v9638_v55 = vld [vmem:[#allocation9 + $0x504] sm:$0xf] }
 0x33b   :  { %v3501_v42 = vadd.f32 %v3500_v6, %v3452_v22  ;;  %3865 = vmatpush.bf16.msrb.mxu0 %v11592_v26  ;;  %14419 = vst [vmem:[#allocation142_spill] sm:$0xff] %v11598_v46  ;;  %v9676_v22 = vld [vmem:[#allocation9 + $0x634] sm:$0xf]  ;;  %v14422_v26 = vld [vmem:[#allocation157_spill] sm:$0xff] }
 0x33c   :  { %14420 = vst [vmem:[#allocation143_spill] sm:$0xff] %v11600_v1  ;;  %3912 = vmatpush.bf16.msrb.mxu1 %v11600_v1 }
 0x33d   :  { %v11594_v10 = vadd.f32 %v3549_v61, %v3501_v42  ;;  %v14421_v42 = vld [vmem:[#allocation156_spill] sm:$0xff] }
 0x33e   :  { %v3404_v40 = vpop.f32.mrf.mxu2 }
 0x33f   :  { %v3405_v9 = vadd.f32 %v3404_v40, %v11404_v47  ;;  %v3453_v2 = vpop.f32.mrf.mxu3  ;;  %3866 = vmatpush.bf16.msrb.mxu0 %v11598_v46  ;;  %v11606_v40 = vor.u32 %v9676_v22, %v8706_v5  ;;  %v14426_v46 = vld [vmem:[#allocation161_spill] sm:$0xff]  ;;  %v9674_v22 = vld [vmem:[#allocation9 + $0x624] sm:$0xf] }
 0x340   :  { %v3505_v17 = vpop.f32.mrf.mxu0  ;;  %v8698_v5 = vld [vmem:[#allocation9 + $0x628] sm:$0xf0] }
 0x341   :  { %v3454_v6 = vadd.f32 %v3453_v2, %v3405_v9  ;;  %14423 = vst [vmem:[#allocation144_spill] sm:$0xff] %v11606_v40  ;;  %v8554_v2 = vld [vmem:[#allocation9 + $0x508] sm:$0xf0]  ;;  %v11609_v9 = vor.u32 %v9698_v63, %v8794_v30 }
 0x342   :  { %v3554_v61 = vpop.f32.mrf.mxu1  ;;  %v11614_v1 = vor.u32 %v9638_v55, %v8554_v2 }
 0x343   :  { %3602 = vmatmul.bf16.gmra.mxu2 %v14421_v42  ;;  %3700 = vmatmul.bf16.gmra.mxu0 %v14422_v26  ;;  %v3503_v47 = vadd.f32 %v3502_v24, %v3454_v6  ;;  %14425 = vst [vmem:[#allocation147_spill] sm:$0xff] %v11609_v9  ;;  %v9654_v42 = vld [vmem:[#allocation9 + $0x584] sm:$0xf]  ;;  %v8618_v26 = vld [vmem:[#allocation9 + $0x588] sm:$0xf0] }
 0x344   :  { %3651 = vmatmul.bf16.gmra.mxu3 %v14424_v21  ;;  %14427 = vst [vmem:[#allocation148_spill] sm:$0xff] %v11614_v1  ;;  %3867 = vmatpush.bf16.msrb.mxu0 %v11606_v40  ;;  %v11618_v6 = vor.u32 %v9654_v42, %v8618_v26  ;;  %v9696_v21 = vld [vmem:[#allocation9 + $0x6d4] sm:$0xf]  ;;  %v8690_v40 = vld [vmem:[#allocation9 + $0x618] sm:$0xf0] }
 0x345   :  { %v11611_v18 = vadd.f32 %v3551_v33, %v3503_v47  ;;  %3749 = vmatmul.bf16.gmra.mxu1 %v14426_v46  ;;  %3772 = vmatpush.bf16.msrb.mxu2 %v11614_v1  ;;  %v11622_v46 = vor.u32 %v9674_v22, %v8698_v5  ;;  %v8786_v47 = vld [vmem:[#allocation9 + $0x6d8] sm:$0xf0]  ;;  %v9672_v26 = vld [vmem:[#allocation9 + $0x614] sm:$0xf]  ;;  %v8778_v22 = vld [vmem:[#allocation9 + $0x6c8] sm:$0xf0] }
 0x346   :  { %v3407_v24 = vpop.f32.mrf.mxu2  ;;  %3913 = vmatpush.bf16.msrb.mxu1 %v11609_v9  ;;  %14428 = vst [vmem:[#allocation149_spill] sm:$0xff] %v11618_v6  ;;  %3821 = vmatpush.bf16.msrb.mxu3 %v11618_v6  ;;  %v11625_v55 = vor.u32 %v9696_v21, %v8786_v47  ;;  %v11629_v9 = vor.u32 %v9672_v26, %v8690_v40  ;;  %v9692_v47 = vld [vmem:[#allocation9 + $0x6b4] sm:$0xf] }
 0x347   :  { %v3408_v63 = vadd.f32 %v3407_v24, %v11420_v50  ;;  %v3456_v33 = vpop.f32.mrf.mxu3  ;;  %14429 = vst [vmem:[#allocation150_spill] sm:$0xff] %v11622_v46  ;;  %v9694_v50 = vld [vmem:[#allocation9 + $0x6c4] sm:$0xf] }
 0x348   :  { %v3507_v30 = vpop.f32.mrf.mxu0  ;;  %14430 = vst [vmem:[#allocation156_spill] sm:$0xff] %v11625_v55  ;;  %3868 = vmatpush.bf16.msrb.mxu0 %v11622_v46  ;;  %v11631_v5 = vor.u32 %v9694_v50, %v8778_v22  ;;  %v9690_v50 = vld [vmem:[#allocation9 + $0x6a4] sm:$0xf] }
 0x349   :  { %v3457_v2 = vadd.f32 %v3456_v33, %v3408_v63  ;;  %14431 = vst [vmem:[#allocation157_spill] sm:$0xff] %v11629_v9  ;;  %v9670_v63 = vld [vmem:[#allocation9 + $0x604] sm:$0xf]  ;;  %v8682_v33 = vld [vmem:[#allocation9 + $0x608] sm:$0xf0] }
 0x34a   :  { %v3556_v42 = vpop.f32.mrf.mxu1  ;;  %3914 = vmatpush.bf16.msrb.mxu1 %v11625_v55  ;;  %14432 = vst [vmem:[#allocation159_spill] sm:$0xff] %v11631_v5  ;;  %v11638_v55 = vor.u32 %v9670_v63, %v8682_v33  ;;  %v14435_v22 = vld [vmem:[#allocation12_spill] sm:$0xff]  ;;  %v14439_v33 = vld [vmem:[#allocation173_spill] sm:$0xff] }
 0x34b   :  { %v3506_v24 = vadd.f32 %v3505_v17, %v3457_v2  ;;  %v8770_v17 = vld [vmem:[#allocation9 + $0x6b8] sm:$0xf0] }
 0x34c   :  { %3869 = vmatpush.bf16.msrb.mxu0 %v11629_v9  ;;  %14433 = vst [vmem:[#allocation161_spill] sm:$0xff] %v11638_v55  ;;  %v11640_v2 = vor.u32 %v9692_v47, %v8770_v17  ;;  %v14436_v9 = vld [vmem:[#allocation170_spill] sm:$0xff]  ;;  %v14440_v17 = vld [vmem:[#allocation175_spill] sm:$0xff] }
 0x34d   :  { %v11633_v1 = vadd.f32 %v3554_v61, %v3506_v24  ;;  %v8762_v24 = vld [vmem:[#allocation9 + $0x6a8] sm:$0xf0]  ;;  %v9716_v47 = vld [vmem:[#allocation9 + $0x774] sm:$0xf] }
 0x34e   :  { %v3409_v21 = vpop.f32.mrf.mxu2  ;;  %3915 = vmatpush.bf16.msrb.mxu1 %v11631_v5  ;;  %14434 = vst [vmem:[#allocation292_spill] sm:$0xff] %v11640_v2  ;;  %v11647_v63 = vor.u32 %v9690_v50, %v8762_v24  ;;  %v8930_v5 = vld [vmem:[#allocation9 + $0x7f8] sm:$0xf0]  ;;  %v14443_v50 = vld [vmem:[#allocation14_spill] sm:$0xff] }
 0x34f   :  { %v3410_v6 = vadd.f32 %v3409_v21, %v11445_v3  ;;  %v3458_v46 = vpop.f32.mrf.mxu3  ;;  %v14437_v3 = vld [vmem:[#allocation171_spill] sm:$0xff] }
 0x350   :  { %v3510_v40 = vpop.f32.mrf.mxu0  ;;  %3870 = vmatpush.bf16.msrb.mxu0 %v11638_v55  ;;  %14438 = vst [vmem:[#allocation12_spill] sm:$0xff] %v11647_v63 }
 0x351   :  { %v3459_v26 = vadd.f32 %v3458_v46, %v3410_v6  ;;  %v8866_v6 = vld [vmem:[#allocation9 + $0x778] sm:$0xf0] }
 0x352   :  { %v3559_v61 = vpop.f32.mrf.mxu1  ;;  %3916 = vmatpush.bf16.msrb.mxu1 %v11640_v2  ;;  %v11653_v55 = vor.u32 %v9716_v47, %v8866_v6  ;;  %v9732_v2 = vld [vmem:[#allocation9 + $0x7f4] sm:$0xf]  ;;  %v14445_v6 = vld [vmem:[#allocation16_spill] sm:$0xff] }
 0x353   :  { %3607 = vmatmul.bf16.gmra.mxu2 %v14436_v9  ;;  %3705 = vmatmul.bf16.gmra.mxu0 %v14437_v3  ;;  %v3508_v21 = vadd.f32 %v3507_v30, %v3459_v26  ;;  %v11656_v9 = vor.u32 %v9732_v2, %v8930_v5  ;;  %v9688_v30 = vld [vmem:[#allocation9 + $0x694] sm:$0xf]  ;;  %v8754_v26 = vld [vmem:[#allocation9 + $0x698] sm:$0xf0]  ;;  %v9686_v5 = vld [vmem:[#allocation9 + $0x684] sm:$0xf] }
 0x354   :  { %4923 = vmatpush.bf16.msra.mxu0 %v14435_v22  ;;  %3656 = vmatmul.bf16.gmra.mxu3 %v14439_v33  ;;  %14441 = vst [vmem:[#allocation170_spill] sm:$0xff] %v11653_v55  ;;  %v8746_v2 = vld [vmem:[#allocation9 + $0x688] sm:$0xf0] }
 0x355   :  { %v11650_v46 = vadd.f32 %v3556_v42, %v3508_v21  ;;  %3754 = vmatmul.bf16.gmra.mxu1 %v14440_v17  ;;  %14442 = vst [vmem:[#allocation171_spill] sm:$0xff] %v11656_v9  ;;  %3961 = vmatpush.bf16.msra.mxu2 %v11653_v55  ;;  %v11661_v42 = vor.u32 %v9688_v30, %v8754_v26  ;;  %v14447_v30 = vld [vmem:[#allocation18_spill] sm:$0xff] }
 0x356   :  { %v3412_v22 = vpop.f32.mrf.mxu2  ;;  %3917 = vmatpush.bf16.msrb.mxu1 %v11647_v63  ;;  %4010 = vmatpush.bf16.msra.mxu3 %v11656_v9  ;;  %v14449_v63 = vld [vmem:[#allocation20_spill] sm:$0xff] }
 0x357   :  { %v3413_v24 = vadd.f32 %v3412_v22, %v11464_v36  ;;  %v3461_v3 = vpop.f32.mrf.mxu3  ;;  %14444 = vst [vmem:[#allocation173_spill] sm:$0xff] %v11661_v42 }
 0x358   :  { %4924 = vmatpush.bf16.msra.mxu0 %v14443_v50  ;;  %v3512_v21 = vpop.f32.mrf.mxu0  ;;  %v11666_v50 = vor.u32 %v9686_v5, %v8746_v2  ;;  %v14452_v5 = vld [vmem:[#allocation183_spill] sm:$0xff]  ;;  %v9714_v2 = vld [vmem:[#allocation9 + $0x764] sm:$0xf] }
 0x359   :  { %v3462_v33 = vadd.f32 %v3461_v3, %v3413_v24  ;;  %v14448_v3 = vld [vmem:[#allocation13_spill] sm:$0xff] }
 0x35a   :  { %v3561_v47 = vpop.f32.mrf.mxu1  ;;  %3918 = vmatpush.bf16.msrb.mxu1 %v11661_v42  ;;  %14446 = vst [vmem:[#allocation175_spill] sm:$0xff] %v11666_v50 }
 0x35b   :  { %v3511_v17 = vadd.f32 %v3510_v40, %v3462_v33  ;;  %v14450_v40 = vld [vmem:[#allocation181_spill] sm:$0xff]  ;;  %v14451_v33 = vld [vmem:[#allocation182_spill] sm:$0xff] }
 0x35c   :  { %4925 = vmatpush.bf16.msra.mxu0 %v14445_v6  ;;  %v8858_v6 = vld [vmem:[#allocation9 + $0x768] sm:$0xf0] }
 0x35d   :  { %v11668_v36 = vadd.f32 %v3559_v61, %v3511_v17  ;;  %v14453_v17 = vld [vmem:[#allocation15_spill] sm:$0xff] }
 0x35e   :  { %v3414_v22 = vpop.f32.mrf.mxu2  ;;  %3919 = vmatpush.bf16.msrb.mxu1 %v11666_v50 }
 0x35f   :  { %v3415_v26 = vadd.f32 %v3414_v22, %v11483_v37  ;;  %v3463_v24 = vpop.f32.mrf.mxu3  ;;  %v14454_v22 = vld [vmem:[#allocation184_spill] sm:$0xff] }
 0x360   :  { %4926 = vmatpush.bf16.msra.mxu0 %v14447_v30  ;;  %v3515_v9 = vpop.f32.mrf.mxu0  ;;  %v11682_v30 = vor.u32 %v9714_v2, %v8858_v6  ;;  %v14459_v2 = vld [vmem:[#allocation24_spill] sm:$0xff] }
 0x361   :  { %v3464_v55 = vadd.f32 %v3463_v24, %v3415_v26  ;;  %v9730_v26 = vld [vmem:[#allocation9 + $0x7e4] sm:$0xf]  ;;  %v8922_v24 = vld [vmem:[#allocation9 + $0x7e8] sm:$0xf0] }
 0x362   :  { %4972 = vmatpush.bf16.msra.mxu1 %v14448_v3  ;;  %v3564_v42 = vpop.f32.mrf.mxu1  ;;  %14455 = vst [vmem:[#allocation14_spill] sm:$0xff] %v11682_v30  ;;  %v11684_v3 = vor.u32 %v9730_v26, %v8922_v24  ;;  %3962 = vmatpush.bf16.msra.mxu2 %v11682_v30  ;;  %v14461_v24 = vld [vmem:[#allocation26_spill] sm:$0xff]  ;;  %v14462_v30 = vld [vmem:[#allocation21_spill] sm:$0xff] }
 0x363   :  { %3612 = vmatmul.bf16.gmra.mxu2 %v14450_v40  ;;  %3710 = vmatmul.bf16.gmra.mxu0 %v14451_v33  ;;  %v3513_v61 = vadd.f32 %v3512_v21, %v3464_v55  ;;  %v14457_v40 = vld [vmem:[#allocation22_spill] sm:$0xff] }
 0x364   :  { %4927 = vmatpush.bf16.msra.mxu0 %v14449_v63  ;;  %3661 = vmatmul.bf16.gmra.mxu3 %v14452_v5  ;;  %14456 = vst [vmem:[#allocation16_spill] sm:$0xff] %v11684_v3 }
 0x365   :  { %v11679_v37 = vadd.f32 %v3561_v47, %v3513_v61  ;;  %3759 = vmatmul.bf16.gmra.mxu1 %v14454_v22  ;;  %4011 = vmatpush.bf16.msra.mxu3 %v11684_v3  ;;  %v14458_v47 = vld [vmem:[#allocation17_spill] sm:$0xff] }
 0x366   :  { %4973 = vmatpush.bf16.msra.mxu1 %v14453_v17  ;;  %v3417_v63 = vpop.f32.mrf.mxu2  ;;  %v14460_v17 = vld [vmem:[#allocation19_spill] sm:$0xff] }
 0x367   :  { %v3418_v55 = vadd.f32 %v3417_v63, %v11493_v0  ;;  %v3466_v21 = vpop.f32.mrf.mxu3 }
 0x368   :  { %4928 = vmatpush.bf16.msra.mxu0 %v14457_v40  ;;  %v3517_v33 = vpop.f32.mrf.mxu0 }
 0x369   :  { %v3467_v61 = vadd.f32 %v3466_v21, %v3418_v55  ;;  %v14463_v55 = vld [vmem:[#allocation187_spill] sm:$0xff]  ;;  %v14464_v21 = vld [vmem:[#allocation188_spill] sm:$0xff] }
 0x36a   :  { %4974 = vmatpush.bf16.msra.mxu1 %v14458_v47  ;;  %v3566_v5 = vpop.f32.mrf.mxu1 }
 0x36b   :  { %v3516_v6 = vadd.f32 %v3515_v9, %v3467_v61  ;;  %v14465_v61 = vld [vmem:[#allocation189_spill] sm:$0xff] }
 0x36c   :  { %4929 = vmatpush.bf16.msra.mxu0 %v14459_v2  ;;  %v8850_v2 = vld [vmem:[#allocation9 + $0x758] sm:$0xf0] }
 0x36d   :  { %v11693_v22 = vadd.f32 %v3564_v42, %v3516_v6  ;;  %v9712_v42 = vld [vmem:[#allocation9 + $0x754] sm:$0xf]  ;;  %v14466_v6 = vld [vmem:[#allocation23_spill] sm:$0xff] }
 0x36e   :  { %4975 = vmatpush.bf16.msra.mxu1 %v14460_v17  ;;  %v3419_v26 = vpop.f32.mrf.mxu2 }
 0x36f   :  { %v3420_v0 = vadd.f32 %v3419_v26, %v11506_v62  ;;  %v3468_v63 = vpop.f32.mrf.mxu3  ;;  %v14467_v62 = vld [vmem:[#allocation190_spill] sm:$0xff]  ;;  %v11705_v26 = vor.u32 %v9712_v42, %v8850_v2 }
 0x370   :  { %4930 = vmatpush.bf16.msra.mxu0 %v14461_v24  ;;  %v3676_v40 = vpop.f32.mrf.mxu0  ;;  %v8914_v24 = vld [vmem:[#allocation9 + $0x7d8] sm:$0xf0] }
 0x371   :  { %v3469_v3 = vadd.f32 %v3468_v63, %v3420_v0  ;;  %14468 = vst [vmem:[#allocation18_spill] sm:$0xff] %v11705_v26  ;;  %v14469_v0 = vld [vmem:[#allocation32_spill] sm:$0xff]  ;;  %3963 = vmatpush.bf16.msra.mxu2 %v11705_v26 }
 0x372   :  { %4976 = vmatpush.bf16.msra.mxu1 %v14462_v30  ;;  %v3725_v47 = vpop.f32.mrf.mxu1  ;;  %v9728_v30 = vld [vmem:[#allocation9 + $0x7d4] sm:$0xf] }
 0x373   :  { %3773 = vmatmul.bf16.vlgmr.msrb.gmra.mxu2 %v14463_v55  ;;  %3871 = vmatmul.bf16.vlgmr.msrb.gmra.mxu0 %v14464_v21  ;;  %v3518_v9 = vadd.f32 %v3517_v33, %v3469_v3  ;;  %v11708_v55 = vor.u32 %v9728_v30, %v8914_v24  ;;  %v14474_v30 = vld [vmem:[#allocation38_spill] sm:$0xff] }
 0x374   :  { %3822 = vmatmul.bf16.vlgmr.msrb.gmra.mxu3 %v14465_v61  ;;  %5119 = vmatpush.bf16.msrb.mxu0 %v14469_v0  ;;  %v14472_v61 = vld [vmem:[#allocation35_spill] sm:$0xff] }
 0x375   :  { %v11702_v17 = vadd.f32 %v3566_v5, %v3518_v9  ;;  %3920 = vmatmul.bf16.vlgmr.msrb.gmra.mxu1 %v14467_v62  ;;  %14470 = vst [vmem:[#allocation13_spill] sm:$0xff] %v11708_v55  ;;  %4012 = vmatpush.bf16.msra.mxu3 %v11708_v55  ;;  %v14471_v5 = vld [vmem:[#allocation25_spill] sm:$0xff] }
 0x376   :  { %4977 = vmatpush.bf16.msra.mxu1 %v14466_v6  ;;  %v3578_v63 = vpop.f32.mrf.mxu2  ;;  %v14473_v6 = vld [vmem:[#allocation27_spill] sm:$0xff] }
 0x377   :  { %v3579_v3 = vadd.f32 %v3578_v63, %v11522_v59  ;;  %v3627_v33 = vpop.f32.mrf.mxu3  ;;  %v14475_v59 = vld [vmem:[#allocation39_spill] sm:$0xff] }
 0x378   :  { %v3678_v21 = vpop.f32.mrf.mxu0  ;;  %5120 = vmatpush.bf16.msrb.mxu0 %v14472_v61  ;;  %v14480_v61 = vld [vmem:[#allocation195_spill] sm:$0xff] }
 0x379   :  { %v3628_v9 = vadd.f32 %v3627_v33, %v3579_v3  ;;  %v14477_v3 = vld [vmem:[#allocation46_spill] sm:$0xff] }
 0x37a   :  { %4978 = vmatpush.bf16.msra.mxu1 %v14471_v5  ;;  %v3727_v42 = vpop.f32.mrf.mxu1  ;;  %v14476_v5 = vld [vmem:[#allocation42_spill] sm:$0xff] }
 0x37b   :  { %v3677_v2 = vadd.f32 %v3676_v40, %v3628_v9  ;;  %v14478_v40 = vld [vmem:[#allocation193_spill] sm:$0xff]  ;;  %v14479_v9 = vld [vmem:[#allocation194_spill] sm:$0xff] }
 0x37c   :  { %5121 = vmatpush.bf16.msrb.mxu0 %v14474_v30 }
 0x37d   :  { %v11716_v62 = vadd.f32 %v3725_v47, %v3677_v2  ;;  %v9710_v2 = vld [vmem:[#allocation9 + $0x744] sm:$0xf] }
 0x37e   :  { %4979 = vmatpush.bf16.msra.mxu1 %v14473_v6  ;;  %v3580_v24 = vpop.f32.mrf.mxu2  ;;  %v8842_v6 = vld [vmem:[#allocation9 + $0x748] sm:$0xf0] }
 0x37f   :  { %v3581_v0 = vadd.f32 %v3580_v24, %v11528_v7  ;;  %v3629_v63 = vpop.f32.mrf.mxu3  ;;  %v14481_v7 = vld [vmem:[#allocation196_spill] sm:$0xff] }
 0x380   :  { %v3681_v55 = vpop.f32.mrf.mxu0  ;;  %5122 = vmatpush.bf16.msrb.mxu0 %v14476_v5  ;;  %v9726_v24 = vld [vmem:[#allocation9 + $0x7c4] sm:$0xf] }
 0x381   :  { %v3630_v26 = vadd.f32 %v3629_v63, %v3581_v0  ;;  %v8906_v0 = vld [vmem:[#allocation9 + $0x7c8] sm:$0xf0] }
 0x382   :  { %5168 = vmatpush.bf16.msrb.mxu1 %v14475_v59  ;;  %v3730_v33 = vpop.f32.mrf.mxu1  ;;  %v11729_v59 = vor.u32 %v9710_v2, %v8842_v6  ;;  %v14483_v63 = vld [vmem:[#allocation45_spill] sm:$0xff]  ;;  %v14487_v2 = vld [vmem:[#allocation54_spill] sm:$0xff] }
 0x383   :  { %3778 = vmatmul.bf16.gmra.mxu2 %v14478_v40  ;;  %3876 = vmatmul.bf16.gmra.mxu0 %v14479_v9  ;;  %v3679_v47 = vadd.f32 %v3678_v21, %v3630_v26  ;;  %v14485_v40 = vld [vmem:[#allocation50_spill] sm:$0xff] }
 0x384   :  { %3827 = vmatmul.bf16.gmra.mxu3 %v14480_v61  ;;  %14482 = vst [vmem:[#allocation20_spill] sm:$0xff] %v11729_v59  ;;  %5123 = vmatpush.bf16.msrb.mxu0 %v14483_v63  ;;  %v14489_v63 = vld [vmem:[#allocation56_spill] sm:$0xff] }
 0x385   :  { %v11726_v30 = vadd.f32 %v3727_v42, %v3679_v47  ;;  %3925 = vmatmul.bf16.gmra.mxu1 %v14481_v7  ;;  %3964 = vmatpush.bf16.msra.mxu2 %v11729_v59  ;;  %v14486_v47 = vld [vmem:[#allocation49_spill] sm:$0xff] }
 0x386   :  { %5169 = vmatpush.bf16.msrb.mxu1 %v14477_v3  ;;  %v3583_v5 = vpop.f32.mrf.mxu2  ;;  %v11732_v3 = vor.u32 %v9726_v24, %v8906_v0  ;;  %v14488_v24 = vld [vmem:[#allocation52_spill] sm:$0xff] }
 0x387   :  { %v3584_v26 = vadd.f32 %v3583_v5, %v11538_v27  ;;  %v3632_v21 = vpop.f32.mrf.mxu3 }
 0x388   :  { %14484 = vst [vmem:[#allocation181_spill] sm:$0xff] %v11732_v3  ;;  %v3683_v42 = vpop.f32.mrf.mxu0  ;;  %4013 = vmatpush.bf16.msra.mxu3 %v11732_v3  ;;  %5124 = vmatpush.bf16.msrb.mxu0 %v14486_v47  ;;  %v14490_v3 = vld [vmem:[#allocation55_spill] sm:$0xff] }
 0x389   :  { %v3633_v9 = vadd.f32 %v3632_v21, %v3584_v26  ;;  %v14491_v21 = vld [vmem:[#allocation57_spill] sm:$0xff]  ;;  %v14492_v47 = vld [vmem:[#allocation199_spill] sm:$0xff] }
 0x38a   :  { %5170 = vmatpush.bf16.msrb.mxu1 %v14485_v40  ;;  %v3732_v61 = vpop.f32.mrf.mxu1 }
 0x38b   :  { %v3682_v6 = vadd.f32 %v3681_v55, %v3633_v9  ;;  %v14493_v55 = vld [vmem:[#allocation200_spill] sm:$0xff]  ;;  %v14494_v9 = vld [vmem:[#allocation201_spill] sm:$0xff] }
 0x38c   :  { %5125 = vmatpush.bf16.msrb.mxu0 %v14488_v24 }
 0x38d   :  { %v11740_v7 = vadd.f32 %v3730_v33, %v3682_v6  ;;  %v8834_v6 = vld [vmem:[#allocation9 + $0x738] sm:$0xf0] }
 0x38e   :  { %5171 = vmatpush.bf16.msrb.mxu1 %v14487_v2  ;;  %v3585_v0 = vpop.f32.mrf.mxu2  ;;  %v9708_v2 = vld [vmem:[#allocation9 + $0x734] sm:$0xf] }
 0x38f   :  { %v3586_v27 = vadd.f32 %v3585_v0, %v11544_v38  ;;  %v3634_v5 = vpop.f32.mrf.mxu3  ;;  %v14495_v38 = vld [vmem:[#allocation202_spill] sm:$0xff]  ;;  %v11753_v0 = vor.u32 %v9708_v2, %v8834_v6 }
 0x390   :  { %v3686_v40 = vpop.f32.mrf.mxu0  ;;  %5126 = vmatpush.bf16.msrb.mxu0 %v14490_v3  ;;  %v8898_v3 = vld [vmem:[#allocation9 + $0x7b8] sm:$0xf0] }
 0x391   :  { %v3635_v59 = vadd.f32 %v3634_v5, %v3586_v27  ;;  %14496 = vst [vmem:[#allocation182_spill] sm:$0xff] %v11753_v0  ;;  %3965 = vmatpush.bf16.msra.mxu2 %v11753_v0  ;;  %v14501_v0 = vld [vmem:[#allocation206_spill] sm:$0xff] }
 0x392   :  { %5172 = vmatpush.bf16.msrb.mxu1 %v14489_v63  ;;  %v3735_v26 = vpop.f32.mrf.mxu1  ;;  %v9724_v63 = vld [vmem:[#allocation9 + $0x7b4] sm:$0xf] }
 0x393   :  { %3783 = vmatmul.bf16.gmra.mxu2 %v14492_v47  ;;  %3881 = vmatmul.bf16.gmra.mxu0 %v14493_v55  ;;  %v3684_v33 = vadd.f32 %v3683_v42, %v3635_v59  ;;  %v11755_v5 = vor.u32 %v9724_v63, %v8898_v3 }
 0x394   :  { %3832 = vmatmul.bf16.gmra.mxu3 %v14494_v9 }
 0x395   :  { %v11750_v24 = vadd.f32 %v3732_v61, %v3684_v33  ;;  %3930 = vmatmul.bf16.gmra.mxu1 %v14495_v38  ;;  %14497 = vst [vmem:[#allocation183_spill] sm:$0xff] %v11755_v5  ;;  %4014 = vmatpush.bf16.msra.mxu3 %v11755_v5  ;;  %v14499_v33 = vld [vmem:[#allocation61_spill] sm:$0xff]  ;;  %v14502_v5 = vld [vmem:[#allocation207_spill] sm:$0xff] }
 0x396   :  { %5173 = vmatpush.bf16.msrb.mxu1 %v14491_v21  ;;  %v3588_v27 = vpop.f32.mrf.mxu2  ;;  %v14498_v21 = vld [vmem:[#allocation60_spill] sm:$0xff] }
 0x397   :  { %v3589_v47 = vadd.f32 %v3588_v27, %v11554_v14  ;;  %v3637_v59 = vpop.f32.mrf.mxu3  ;;  %v14500_v27 = vld [vmem:[#allocation205_spill] sm:$0xff] }
 0x398   :  { %v3688_v42 = vpop.f32.mrf.mxu0 }
 0x399   :  { %v3638_v61 = vadd.f32 %v3637_v59, %v3589_v47  ;;  %v9706_v47 = vld [vmem:[#allocation9 + $0x724] sm:$0xf]  ;;  %v8826_v59 = vld [vmem:[#allocation9 + $0x728] sm:$0xf0] }
 0x39a   :  { %5174 = vmatpush.bf16.msrb.mxu1 %v14498_v21  ;;  %v3737_v55 = vpop.f32.mrf.mxu1 }
 0x39b   :  { %v3687_v9 = vadd.f32 %v3686_v40, %v3638_v61  ;;  %v14503_v40 = vld [vmem:[#allocation208_spill] sm:$0xff]  ;;  %v8890_v61 = vld [vmem:[#allocation9 + $0x7a8] sm:$0xf0] }
 0x39d   :  { %v11762_v2 = vadd.f32 %v3735_v26, %v3687_v9  ;;  %v11771_v26 = vor.u32 %v9706_v47, %v8826_v59 }
 0x39e   :  { %5175 = vmatpush.bf16.msrb.mxu1 %v14499_v33  ;;  %v3590_v6 = vpop.f32.mrf.mxu2 }
 0x39f   :  { %v3591_v38 = vadd.f32 %v3590_v6, %v11560_v57  ;;  %v3639_v63 = vpop.f32.mrf.mxu3  ;;  %14504 = vst [vmem:[#allocation15_spill] sm:$0xff] %v11771_v26  ;;  %v9722_v57 = vld [vmem:[#allocation9 + $0x7a4] sm:$0xf]  ;;  %3966 = vmatpush.bf16.msra.mxu2 %v11771_v26  ;;  %v14508_v26 = vld [vmem:[#allocation213_spill] sm:$0xff] }
 0x3a0   :  { %v3691_v3 = vpop.f32.mrf.mxu0  ;;  %v11773_v6 = vor.u32 %v9722_v57, %v8890_v61  ;;  %v14506_v61 = vld [vmem:[#allocation211_spill] sm:$0xff] }
 0x3a1   :  { %v3640_v21 = vadd.f32 %v3639_v63, %v3591_v38 }
 0x3a2   :  { %v3740_v14 = vpop.f32.mrf.mxu1  ;;  %14505 = vst [vmem:[#allocation184_spill] sm:$0xff] %v11773_v6  ;;  %4015 = vmatpush.bf16.msra.mxu3 %v11773_v6  ;;  %v9704_v6 = vld [vmem:[#allocation9 + $0x714] sm:$0xf] }
 0x3a3   :  { %3788 = vmatmul.bf16.gmra.mxu2 %v14500_v27  ;;  %3886 = vmatmul.bf16.gmra.mxu0 %v14501_v0  ;;  %v3689_v50 = vadd.f32 %v3688_v42, %v3640_v21 }
 0x3a4   :  { %3837 = vmatmul.bf16.gmra.mxu3 %v14502_v5 }
 0x3a5   :  { %v11768_v33 = vadd.f32 %v3737_v55, %v3689_v50  ;;  %3935 = vmatmul.bf16.gmra.mxu1 %v14503_v40 }
 0x3a6   :  { %v3593_v9 = vpop.f32.mrf.mxu2 }
 0x3a7   :  { %v3594_v38 = vadd.f32 %v3593_v9, %v11570_v16  ;;  %v3642_v63 = vpop.f32.mrf.mxu3  ;;  %v14507_v16 = vld [vmem:[#allocation212_spill] sm:$0xff] }
 0x3a8   :  { %v3693_v0 = vpop.f32.mrf.mxu0 }
 0x3a9   :  { %v3643_v5 = vadd.f32 %v3642_v63, %v3594_v38  ;;  %v8818_v38 = vld [vmem:[#allocation9 + $0x718] sm:$0xf0] }
 0x3aa   :  { %v3742_v50 = vpop.f32.mrf.mxu1 }
 0x3ab   :  { %v3692_v42 = vadd.f32 %v3691_v3, %v3643_v5  ;;  %v14509_v3 = vld [vmem:[#allocation214_spill] sm:$0xff]  ;;  %v8882_v5 = vld [vmem:[#allocation9 + $0x798] sm:$0xf0] }
 0x3ad   :  { %v11778_v55 = vadd.f32 %v3740_v14, %v3692_v42  ;;  %v11787_v14 = vor.u32 %v9704_v6, %v8818_v38 }
 0x3ae   :  { %v3595_v21 = vpop.f32.mrf.mxu2 }
 0x3af   :  { %v3596_v27 = vadd.f32 %v3595_v21, %v11578_v25  ;;  %v3644_v47 = vpop.f32.mrf.mxu3  ;;  %14510 = vst [vmem:[#allocation22_spill] sm:$0xff] %v11787_v14  ;;  %v9720_v25 = vld [vmem:[#allocation9 + $0x794] sm:$0xf]  ;;  %3967 = vmatpush.bf16.msra.mxu2 %v11787_v14  ;;  %v14514_v14 = vld [vmem:[#allocation223_spill] sm:$0xff] }
 0x3b0   :  { %v3696_v59 = vpop.f32.mrf.mxu0  ;;  %v11789_v21 = vor.u32 %v9720_v25, %v8882_v5  ;;  %v14512_v5 = vld [vmem:[#allocation220_spill] sm:$0xff] }
 0x3b1   :  { %v3645_v40 = vadd.f32 %v3644_v47, %v3596_v27 }
 0x3b2   :  { %v3745_v57 = vpop.f32.mrf.mxu1  ;;  %14511 = vst [vmem:[#allocation17_spill] sm:$0xff] %v11789_v21  ;;  %4016 = vmatpush.bf16.msra.mxu3 %v11789_v21  ;;  %v9702_v21 = vld [vmem:[#allocation9 + $0x704] sm:$0xf] }
 0x3b3   :  { %3793 = vmatmul.bf16.gmra.mxu2 %v14506_v61  ;;  %3891 = vmatmul.bf16.gmra.mxu0 %v14507_v16  ;;  %v3694_v9 = vadd.f32 %v3693_v0, %v3645_v40 }
 0x3b4   :  { %3842 = vmatmul.bf16.gmra.mxu3 %v14508_v26 }
 0x3b5   :  { %v11784_v63 = vadd.f32 %v3742_v50, %v3694_v9  ;;  %3940 = vmatmul.bf16.gmra.mxu1 %v14509_v3 }
 0x3b6   :  { %v3598_v42 = vpop.f32.mrf.mxu2 }
 0x3b7   :  { %v3599_v27 = vadd.f32 %v3598_v42, %v11594_v10  ;;  %v3647_v47 = vpop.f32.mrf.mxu3  ;;  %v14513_v10 = vld [vmem:[#allocation221_spill] sm:$0xff] }
 0x3b8   :  { %v3698_v0 = vpop.f32.mrf.mxu0 }
 0x3b9   :  { %v3648_v26 = vadd.f32 %v3647_v47, %v3599_v27  ;;  %v8810_v27 = vld [vmem:[#allocation9 + $0x708] sm:$0xf0] }
 0x3ba   :  { %v3747_v50 = vpop.f32.mrf.mxu1 }
 0x3bb   :  { %v3697_v40 = vadd.f32 %v3696_v59, %v3648_v26  ;;  %v14515_v59 = vld [vmem:[#allocation225_spill] sm:$0xff] }
 0x3bc   :  { %v8874_v26 = vld [vmem:[#allocation9 + $0x788] sm:$0xf0] }
 0x3bd   :  { %v11794_v61 = vadd.f32 %v3745_v57, %v3697_v40  ;;  %v11803_v57 = vor.u32 %v9702_v21, %v8810_v27  ;;  %v14521_v27 = vld [vmem:[#allocation31_spill] sm:$0xff] }
 0x3be   :  { %v3600_v6 = vpop.f32.mrf.mxu2 }
 0x3bf   :  { %v3601_v16 = vadd.f32 %v3600_v6, %v11611_v18  ;;  %v3649_v9 = vpop.f32.mrf.mxu3  ;;  %14516 = vst [vmem:[#allocation24_spill] sm:$0xff] %v11803_v57  ;;  %v9718_v18 = vld [vmem:[#allocation9 + $0x784] sm:$0xf]  ;;  %3968 = vmatpush.bf16.msra.mxu2 %v11803_v57  ;;  %v14588_v57 = vld [vmem:[#allocation133_spill] sm:$0xff] }
 0x3c0   :  { %v3701_v38 = vpop.f32.mrf.mxu0  ;;  %v11805_v6 = vor.u32 %v9718_v18, %v8874_v26 }
 0x3c1   :  { %v3650_v3 = vadd.f32 %v3649_v9, %v3601_v16 }
 0x3c2   :  { %v3750_v25 = vpop.f32.mrf.mxu1  ;;  %14517 = vst [vmem:[#allocation19_spill] sm:$0xff] %v11805_v6  ;;  %4017 = vmatpush.bf16.msra.mxu3 %v11805_v6 }
 0x3c3   :  { %3798 = vmatmul.bf16.gmra.mxu2 %v14512_v5  ;;  %3896 = vmatmul.bf16.gmra.mxu0 %v14513_v10  ;;  %v3699_v42 = vadd.f32 %v3698_v0, %v3650_v3  ;;  %v14519_v3 = vld [vmem:[#allocation29_spill] sm:$0xff]  ;;  %v14520_v10 = vld [vmem:[#allocation30_spill] sm:$0xff] }
 0x3c4   :  { %3847 = vmatmul.bf16.gmra.mxu3 %v14514_v14  ;;  %v14518_v14 = vld [vmem:[#allocation28_spill] sm:$0xff] }
 0x3c5   :  { %v11800_v47 = vadd.f32 %v3747_v50, %v3699_v42  ;;  %3945 = vmatmul.bf16.gmra.mxu1 %v14515_v59  ;;  %5021 = vmatpush.bf16.msrb.mxu2 %v14518_v14  ;;  %v14523_v14 = vld [vmem:[#allocation34_spill] sm:$0xff] }
 0x3c6   :  { %v3603_v40 = vpop.f32.mrf.mxu2  ;;  %5070 = vmatpush.bf16.msrb.mxu3 %v14519_v3 }
 0x3c7   :  { %v3604_v16 = vadd.f32 %v3603_v40, %v11633_v1  ;;  %v3652_v9 = vpop.f32.mrf.mxu3  ;;  %v14522_v40 = vld [vmem:[#allocation33_spill] sm:$0xff] }
 0x3c8   :  { %v3703_v0 = vpop.f32.mrf.mxu0 }
 0x3c9   :  { %v3653_v50 = vadd.f32 %v3652_v9, %v3604_v16  ;;  %5022 = vmatpush.bf16.msrb.mxu2 %v14520_v10 }
 0x3ca   :  { %v3752_v21 = vpop.f32.mrf.mxu1  ;;  %5071 = vmatpush.bf16.msrb.mxu3 %v14521_v27  ;;  %v14526_v27 = vld [vmem:[#allocation40_spill] sm:$0xff] }
 0x3cb   :  { %v3702_v5 = vadd.f32 %v3701_v38, %v3653_v50 }
 0x3cd   :  { %v11813_v42 = vadd.f32 %v3750_v25, %v3702_v5  ;;  %5023 = vmatpush.bf16.msrb.mxu2 %v14522_v40  ;;  %v14524_v25 = vld [vmem:[#allocation36_spill] sm:$0xff]  ;;  %v14530_v40 = vld [vmem:[#allocation47_spill] sm:$0xff] }
 0x3ce   :  { %v3605_v1 = vpop.f32.mrf.mxu2  ;;  %5072 = vmatpush.bf16.msrb.mxu3 %v14523_v14 }
 0x3cf   :  { %v3606_v59 = vadd.f32 %v3605_v1, %v11650_v46  ;;  %v3654_v18 = vpop.f32.mrf.mxu3  ;;  %v14525_v46 = vld [vmem:[#allocation37_spill] sm:$0xff]  ;;  %v14529_v1 = vld [vmem:[#allocation44_spill] sm:$0xff] }
 0x3d0   :  { %v3706_v26 = vpop.f32.mrf.mxu0 }
 0x3d1   :  { %v3655_v6 = vadd.f32 %v3654_v18, %v3606_v59  ;;  %5024 = vmatpush.bf16.msrb.mxu2 %v14524_v25 }
 0x3d2   :  { %v3755_v16 = vpop.f32.mrf.mxu1  ;;  %5073 = vmatpush.bf16.msrb.mxu3 %v14525_v46 }
 0x3d3   :  { %3803 = vmatmul.bf16.gmra.mxu2 %v11029_v23  ;;  %3901 = vmatmul.bf16.gmra.mxu0 %v11031_v44  ;;  %v3704_v38 = vadd.f32 %v3703_v0, %v3655_v6  ;;  %v14527_v44 = vld [vmem:[#allocation41_spill] sm:$0xff]  ;;  %v14528_v0 = vld [vmem:[#allocation43_spill] sm:$0xff] }
 0x3d4   :  { %3852 = vmatmul.bf16.gmra.mxu3 %v11036_v54 }
 0x3d5   :  { %v11823_v9 = vadd.f32 %v3752_v21, %v3704_v38  ;;  %3950 = vmatmul.bf16.gmra.mxu1 %v11040_v11  ;;  %5025 = vmatpush.bf16.msrb.mxu2 %v14526_v27  ;;  %v14531_v38 = vld [vmem:[#allocation48_spill] sm:$0xff] }
 0x3d6   :  { %v3608_v50 = vpop.f32.mrf.mxu2  ;;  %5074 = vmatpush.bf16.msrb.mxu3 %v14527_v44 }
 0x3d7   :  { %v3609_v3 = vadd.f32 %v3608_v50, %v11668_v36  ;;  %v3657_v5 = vpop.f32.mrf.mxu3  ;;  %v14534_v50 = vld [vmem:[#allocation53_spill] sm:$0xff] }
 0x3d8   :  { %v3708_v10 = vpop.f32.mrf.mxu0 }
 0x3d9   :  { %v3658_v23 = vadd.f32 %v3657_v5, %v3609_v3  ;;  %5026 = vmatpush.bf16.msrb.mxu2 %v14528_v0 }
 0x3da   :  { %v3757_v6 = vpop.f32.mrf.mxu1  ;;  %5075 = vmatpush.bf16.msrb.mxu3 %v14529_v1  ;;  %v9862_v1 = vld [vmem:[#allocation7 + $0x4] sm:$0xf] }
 0x3db   :  { %v3707_v54 = vadd.f32 %v3706_v26, %v3658_v23 }
 0x3dd   :  { %v11831_v21 = vadd.f32 %v3755_v16, %v3707_v54  ;;  %5027 = vmatpush.bf16.msrb.mxu2 %v14530_v40  ;;  %v14532_v16 = vld [vmem:[#allocation51_spill] sm:$0xff] }
 0x3de   :  { %v3610_v11 = vpop.f32.mrf.mxu2  ;;  %5076 = vmatpush.bf16.msrb.mxu3 %v14531_v38 }
 0x3df   :  { %v3611_v59 = vadd.f32 %v3610_v11, %v11679_v37  ;;  %v3659_v18 = vpop.f32.mrf.mxu3  ;;  %v14533_v37 = vld [vmem:[#allocation241_spill] sm:$0xff] }
 0x3e0   :  { %v3711_v36 = vpop.f32.mrf.mxu0 }
 0x3e1   :  { %v3660_v14 = vadd.f32 %v3659_v18, %v3611_v59  ;;  %5028 = vmatpush.bf16.msrb.mxu2 %v14532_v16 }
 0x3e2   :  { %v3760_v25 = vpop.f32.mrf.mxu1  ;;  %5077 = vmatpush.bf16.msrb.mxu3 %v14534_v50  ;;  %v14538_v50 = vld [vmem:[#allocation96_spill] sm:$0xff] }
 0x3e3   :  { %3808 = vmatmul.bf16.gmra.mxu2 %v11068_v8  ;;  %3906 = vmatmul.bf16.gmra.mxu0 %v11070_v48  ;;  %v3709_v26 = vadd.f32 %v3708_v10, %v3660_v14  ;;  %v8936_v48 = vld [vmem:[#allocation7] sm:$0xf] }
 0x3e4   :  { %3857 = vmatmul.bf16.gmra.mxu3 %v11072_v43  ;;  %v9870_v10 = vld [vmem:[#allocation7 + $0x3c] sm:$0xf0] }
 0x3e5   :  { %v11841_v46 = vadd.f32 %v3757_v6, %v3709_v26  ;;  %3955 = vmatmul.bf16.gmra.mxu1 %v14533_v37  ;;  %v8938_v6 = vld [vmem:[#allocation7 + $0x40] sm:$0xf0]  ;;  %v11849_v18 = vor.u32 %v9870_v10, %v8936_v48  ;;  %v14537_v37 = vld [vmem:[#allocation87_spill] sm:$0xff]  ;;  %v9000_v10 = vld [vmem:[#allocation7 + $0x80] sm:$0xf] }
 0x3e6   :  { %v3613_v3 = vpop.f32.mrf.mxu2 }
 0x3e7   :  { %v3614_v5 = vadd.f32 %v3613_v3, %v11693_v22  ;;  %v3662_v27 = vpop.f32.mrf.mxu3  ;;  %v11851_v22 = vor.u32 %v9862_v1, %v8938_v6  ;;  %v14543_v1 = vld [vmem:[#allocation64_spill] sm:$0xff] }
 0x3e8   :  { %v3713_v23 = vpop.f32.mrf.mxu0 }
 0x3e9   :  { %v3663_v44 = vadd.f32 %v3662_v27, %v3614_v5  ;;  %v14539_v27 = vld [vmem:[#allocation62_spill] sm:$0xff] }
 0x3ea   :  { %v3762_v8 = vpop.f32.mrf.mxu1 }
 0x3eb   :  { %v3712_v54 = vadd.f32 %v3711_v36, %v3663_v44 }
 0x3ed   :  { %v11846_v0 = vadd.f32 %v3760_v25, %v3712_v54  ;;  %v14535_v25 = vld [vmem:[#allocation58_spill] sm:$0xff]  ;;  %v14542_v54 = vld [vmem:[#allocation99_spill] sm:$0xff] }
 0x3ee   :  { %v3615_v43 = vpop.f32.mrf.mxu2 }
 0x3ef   :  { %v3616_v11 = vadd.f32 %v3615_v43, %v11702_v17  ;;  %v3664_v59 = vpop.f32.mrf.mxu3  ;;  %v14536_v17 = vld [vmem:[#allocation59_spill] sm:$0xff]  ;;  %v9886_v43 = vld [vmem:[#allocation7 + $0xbc] sm:$0xf0] }
 0x3f0   :  { %v3872_v40 = vpop.f32.mrf.mxu0 }
 0x3f1   :  { %v3665_v14 = vadd.f32 %v3664_v59, %v3616_v11  ;;  %v9878_v59 = vld [vmem:[#allocation7 + $0x84] sm:$0xf] }
 0x3f2   :  { %v3921_v38 = vpop.f32.mrf.mxu1 }
 0x3f3   :  { %3969 = vmatmul.bf16.vlgmr.msra.gmra.mxu2 %v11093_v32  ;;  %4931 = vmatmul.bf16.vlgmr.msra.gmra.mxu0 %v11849_v18  ;;  %v3714_v36 = vadd.f32 %v3713_v23, %v3665_v14  ;;  %v14540_v23 = vld [vmem:[#allocation63_spill] sm:$0xff]  ;;  %v9002_v14 = vld [vmem:[#allocation7 + $0xc0] sm:$0xf0] }
 0x3f4   :  { %4018 = vmatmul.bf16.vlgmr.msra.gmra.mxu3 %v11095_v13  ;;  %5217 = vmatpush.bf16.msra.mxu2 %v14535_v25  ;;  %v14546_v25 = vld [vmem:[#allocation103_spill] sm:$0xff] }
 0x3f5   :  { %v11857_v26 = vadd.f32 %v3762_v8, %v3714_v36  ;;  %4980 = vmatmul.bf16.vlgmr.msra.gmra.mxu1 %v11851_v22  ;;  %5266 = vmatpush.bf16.msra.mxu3 %v14536_v17  ;;  %v14541_v8 = vld [vmem:[#allocation90_spill] sm:$0xff]  ;;  %v14545_v36 = vld [vmem:[#allocation91_spill] sm:$0xff] }
 0x3f6   :  { %v3774_v16 = vpop.f32.mrf.mxu2  ;;  %5315 = vmatpush.bf16.msra.mxu0 %v14537_v37  ;;  %5364 = vmatpush.bf16.msra.mxu1 %v14538_v50  ;;  %v11875_v37 = vor.u32 %v9886_v43, %v9000_v10  ;;  %v14547_v50 = vld [vmem:[#allocation69_spill] sm:$0xff]  ;;  %v14553_v43 = vld [vmem:[#allocation98_spill] sm:$0xff] }
 0x3f7   :  { %v3775_v32 = vadd.f32 %v3774_v16, %v11716_v62  ;;  %v3823_v3 = vpop.f32.mrf.mxu3  ;;  %v14544_v62 = vld [vmem:[#allocation65_spill] sm:$0xff] }
 0x3f8   :  { %v3874_v5 = vpop.f32.mrf.mxu0  ;;  %5218 = vmatpush.bf16.msra.mxu2 %v14539_v27 }
 0x3f9   :  { %v3824_v13 = vadd.f32 %v3823_v3, %v3775_v32  ;;  %5267 = vmatpush.bf16.msra.mxu3 %v14540_v23  ;;  %v14548_v3 = vld [vmem:[#allocation70_spill] sm:$0xff]  ;;  %v14550_v23 = vld [vmem:[#allocation105_spill] sm:$0xff] }
 0x3fa   :  { %v3923_v44 = vpop.f32.mrf.mxu1  ;;  %5316 = vmatpush.bf16.msra.mxu0 %v14541_v8  ;;  %5365 = vmatpush.bf16.msra.mxu1 %v14542_v54  ;;  %v14551_v8 = vld [vmem:[#allocation75_spill] sm:$0xff] }
 0x3fb   :  { %v3873_v48 = vadd.f32 %v3872_v40, %v3824_v13  ;;  %v14549_v13 = vld [vmem:[#allocation94_spill] sm:$0xff] }
 0x3fc   :  { %5219 = vmatpush.bf16.msra.mxu2 %v14543_v1  ;;  %v14554_v1 = vld [vmem:[#allocation110_spill] sm:$0xff] }
 0x3fd   :  { %v11869_v6 = vadd.f32 %v3921_v38, %v3873_v48  ;;  %5268 = vmatpush.bf16.msra.mxu3 %v14544_v62  ;;  %v11878_v38 = vor.u32 %v9878_v59, %v9002_v14  ;;  %v14552_v48 = vld [vmem:[#allocation76_spill] sm:$0xff]  ;;  %v14556_v59 = vld [vmem:[#allocation82_spill] sm:$0xff] }
 0x3fe   :  { %v3776_v11 = vpop.f32.mrf.mxu2  ;;  %5317 = vmatpush.bf16.msra.mxu0 %v14545_v36  ;;  %5366 = vmatpush.bf16.msra.mxu1 %v14546_v25  ;;  %v14557_v14 = vld [vmem:[#allocation102_spill] sm:$0xff]  ;;  %v14558_v36 = vld [vmem:[#allocation112_spill] sm:$0xff] }
 0x3ff   :  { %v3777_v17 = vadd.f32 %v3776_v11, %v11726_v30  ;;  %v3825_v16 = vpop.f32.mrf.mxu3 }
 0x400   :  { %v3877_v40 = vpop.f32.mrf.mxu0  ;;  %5220 = vmatpush.bf16.msra.mxu2 %v14547_v50  ;;  %v14559_v50 = vld [vmem:[#allocation88_spill] sm:$0xff] }
 0x401   :  { %v3826_v32 = vadd.f32 %v3825_v16, %v3777_v17  ;;  %5269 = vmatpush.bf16.msra.mxu3 %v14548_v3  ;;  %v9064_v17 = vld [vmem:[#allocation7 + $0x100] sm:$0xf] }
 0x402   :  { %v3926_v27 = vpop.f32.mrf.mxu1  ;;  %5318 = vmatpush.bf16.msra.mxu0 %v14549_v13  ;;  %5367 = vmatpush.bf16.msra.mxu1 %v14550_v23  ;;  %v9902_v16 = vld [vmem:[#allocation7 + $0x13c] sm:$0xf0]  ;;  %v9894_v13 = vld [vmem:[#allocation7 + $0x104] sm:$0xf] }
 0x403   :  { %3974 = vmatmul.bf16.gmra.mxu2 %v11113_v4  ;;  %4936 = vmatmul.bf16.gmra.mxu0 %v11875_v37  ;;  %v3875_v30 = vadd.f32 %v3874_v5, %v3826_v32  ;;  %v14555_v5 = vld [vmem:[#allocation81_spill] sm:$0xff]  ;;  %v9066_v23 = vld [vmem:[#allocation7 + $0x140] sm:$0xf0] }
 0x404   :  { %4023 = vmatmul.bf16.gmra.mxu3 %v11115_v20  ;;  %5221 = vmatpush.bf16.msra.mxu2 %v14551_v8  ;;  %v14562_v8 = vld [vmem:[#allocation115_spill] sm:$0xff] }
 0x405   :  { %v11887_v54 = vadd.f32 %v3923_v44, %v3875_v30  ;;  %4985 = vmatmul.bf16.gmra.mxu1 %v11878_v38  ;;  %5270 = vmatpush.bf16.msra.mxu3 %v14552_v48  ;;  %v14561_v30 = vld [vmem:[#allocation104_spill] sm:$0xff] }
 0x406   :  { %v3779_v10 = vpop.f32.mrf.mxu2  ;;  %5319 = vmatpush.bf16.msra.mxu0 %v14553_v43  ;;  %5368 = vmatpush.bf16.msra.mxu1 %v14554_v1  ;;  %v11905_v43 = vor.u32 %v9902_v16, %v9064_v17  ;;  %v14563_v1 = vld [vmem:[#allocation100_spill] sm:$0xff] }
 0x407   :  { %v3780_v4 = vadd.f32 %v3779_v10, %v11740_v7  ;;  %v3828_v62 = vpop.f32.mrf.mxu3  ;;  %v14560_v7 = vld [vmem:[#allocation89_spill] sm:$0xff] }
 0x408   :  { %v3879_v11 = vpop.f32.mrf.mxu0  ;;  %5222 = vmatpush.bf16.msra.mxu2 %v14555_v5 }
 0x409   :  { %v3829_v20 = vadd.f32 %v3828_v62, %v3780_v4  ;;  %5271 = vmatpush.bf16.msra.mxu3 %v14556_v59  ;;  %v14564_v62 = vld [vmem:[#allocation101_spill] sm:$0xff]  ;;  %v14566_v59 = vld [vmem:[#allocation116_spill] sm:$0xff] }
 0x40a   :  { %v3928_v44 = vpop.f32.mrf.mxu1  ;;  %5320 = vmatpush.bf16.msra.mxu0 %v14557_v14  ;;  %5369 = vmatpush.bf16.msra.mxu1 %v14558_v36 }
 0x40b   :  { %v3878_v25 = vadd.f32 %v3877_v40, %v3829_v20  ;;  %v14565_v20 = vld [vmem:[#allocation108_spill] sm:$0xff] }
 0x40c   :  { %5223 = vmatpush.bf16.msra.mxu2 %v14559_v50 }
 0x40d   :  { %v11899_v32 = vadd.f32 %v3926_v27, %v3878_v25  ;;  %5272 = vmatpush.bf16.msra.mxu3 %v14560_v7  ;;  %v11908_v27 = vor.u32 %v9894_v13, %v9066_v23  ;;  %v9128_v13 = vld [vmem:[#allocation7 + $0x180] sm:$0xf] }
 0x40e   :  { %v3781_v3 = vpop.f32.mrf.mxu2  ;;  %5321 = vmatpush.bf16.msra.mxu0 %v14561_v30  ;;  %5370 = vmatpush.bf16.msra.mxu1 %v14562_v8  ;;  %v9918_v23 = vld [vmem:[#allocation7 + $0x1bc] sm:$0xf0]  ;;  %v9130_v8 = vld [vmem:[#allocation7 + $0x1c0] sm:$0xf0] }
 0x40f   :  { %v3782_v48 = vadd.f32 %v3781_v3, %v11750_v24  ;;  %v3830_v10 = vpop.f32.mrf.mxu3 }
 0x410   :  { %v3882_v40 = vpop.f32.mrf.mxu0  ;;  %5224 = vmatpush.bf16.msra.mxu2 %v14563_v1 }
 0x411   :  { %v3831_v4 = vadd.f32 %v3830_v10, %v3782_v48  ;;  %5273 = vmatpush.bf16.msra.mxu3 %v14564_v62  ;;  %v11923_v48 = vor.u32 %v9918_v23, %v9128_v13  ;;  %v9194_v13 = vld [vmem:[#allocation7 + $0x240] sm:$0xf0] }
 0x412   :  { %v3931_v5 = vpop.f32.mrf.mxu1  ;;  %5322 = vmatpush.bf16.msra.mxu0 %v14565_v20  ;;  %5371 = vmatpush.bf16.msra.mxu1 %v14566_v59 }
 0x413   :  { %3979 = vmatmul.bf16.gmra.mxu2 %v11133_v35  ;;  %4941 = vmatmul.bf16.gmra.mxu0 %v11905_v43  ;;  %v3880_v24 = vadd.f32 %v3879_v11, %v3831_v4  ;;  %v9910_v11 = vld [vmem:[#allocation7 + $0x184] sm:$0xf] }
 0x414   :  { %4028 = vmatmul.bf16.gmra.mxu3 %v11135_v12 }
 0x415   :  { %v11916_v14 = vadd.f32 %v3928_v44, %v3880_v24  ;;  %4990 = vmatmul.bf16.gmra.mxu1 %v11908_v27 }
 0x416   :  { %v3784_v36 = vpop.f32.mrf.mxu2 }
 0x417   :  { %v3785_v25 = vadd.f32 %v3784_v36, %v11762_v2  ;;  %v3833_v17 = vpop.f32.mrf.mxu3  ;;  %v11925_v2 = vor.u32 %v9910_v11, %v9130_v8 }
 0x418   :  { %v3884_v16 = vpop.f32.mrf.mxu0 }
 0x419   :  { %v3834_v50 = vadd.f32 %v3833_v17, %v3785_v25  ;;  %v9192_v17 = vld [vmem:[#allocation7 + $0x200] sm:$0xf] }
 0x41a   :  { %v3933_v7 = vpop.f32.mrf.mxu1 }
 0x41b   :  { %v3883_v3 = vadd.f32 %v3882_v40, %v3834_v50  ;;  %v9934_v50 = vld [vmem:[#allocation7 + $0x23c] sm:$0xf0] }
 0x41c   :  { %v11937_v23 = vor.u32 %v9934_v50, %v9192_v17  ;;  %v9950_v17 = vld [vmem:[#allocation7 + $0x2bc] sm:$0xf0] }
 0x41d   :  { %v11920_v35 = vadd.f32 %v3931_v5, %v3883_v3 }
 0x41e   :  { %v3786_v30 = vpop.f32.mrf.mxu2 }
 0x41f   :  { %v3787_v12 = vadd.f32 %v3786_v30, %v11768_v33  ;;  %v3835_v44 = vpop.f32.mrf.mxu3 }
 0x420   :  { %v3887_v10 = vpop.f32.mrf.mxu0 }
 0x421   :  { %v3836_v1 = vadd.f32 %v3835_v44, %v3787_v12  ;;  %v14567_v12 = vld [vmem:[#allocation252_spill] sm:$0xff] }
 0x422   :  { %v3936_v4 = vpop.f32.mrf.mxu1 }
 0x423   :  { %3984 = vmatmul.bf16.gmra.mxu2 %v11153_v56  ;;  %4946 = vmatmul.bf16.gmra.mxu0 %v11923_v48  ;;  %v3885_v40 = vadd.f32 %v3884_v16, %v3836_v1  ;;  %v9926_v16 = vld [vmem:[#allocation7 + $0x204] sm:$0xf] }
 0x424   :  { %4033 = vmatmul.bf16.gmra.mxu3 %v11155_v52 }
 0x425   :  { %v11930_v62 = vadd.f32 %v3933_v7, %v3885_v40  ;;  %4995 = vmatmul.bf16.gmra.mxu1 %v11925_v2 }
 0x426   :  { %v3789_v33 = vpop.f32.mrf.mxu2 }
 0x427   :  { %v3790_v5 = vadd.f32 %v3789_v33, %v11778_v55  ;;  %v3838_v20 = vpop.f32.mrf.mxu3  ;;  %v11939_v55 = vor.u32 %v9926_v16, %v9194_v13  ;;  %v9258_v16 = vld [vmem:[#allocation7 + $0x2c0] sm:$0xf0] }
 0x428   :  { %v3889_v59 = vpop.f32.mrf.mxu0 }
 0x429   :  { %v3839_v24 = vadd.f32 %v3838_v20, %v3790_v5 }
 0x42a   :  { %v3938_v36 = vpop.f32.mrf.mxu1 }
 0x42b   :  { %v3888_v25 = vadd.f32 %v3887_v10, %v3839_v24  ;;  %v14568_v10 = vld [vmem:[#allocation253_spill] sm:$0xff] }
 0x42d   :  { %v11934_v56 = vadd.f32 %v3936_v4, %v3888_v25  ;;  %v9256_v25 = vld [vmem:[#allocation7 + $0x280] sm:$0xf] }
 0x42e   :  { %v3791_v3 = vpop.f32.mrf.mxu2 }
 0x42f   :  { %v3792_v52 = vadd.f32 %v3791_v3, %v11784_v63  ;;  %v3840_v7 = vpop.f32.mrf.mxu3 }
 0x430   :  { %v3892_v30 = vpop.f32.mrf.mxu0 }
 0x431   :  { %v3841_v11 = vadd.f32 %v3840_v7, %v3792_v52  ;;  %v11951_v52 = vor.u32 %v9950_v17, %v9256_v25  ;;  %v9966_v25 = vld [vmem:[#allocation7 + $0x33c] sm:$0xf0] }
 0x432   :  { %v3941_v8 = vpop.f32.mrf.mxu1 }
 0x433   :  { %3989 = vmatmul.bf16.gmra.mxu2 %v14567_v12  ;;  %4951 = vmatmul.bf16.gmra.mxu0 %v11937_v23  ;;  %v3890_v44 = vadd.f32 %v3889_v59, %v3841_v11  ;;  %v9942_v59 = vld [vmem:[#allocation7 + $0x284] sm:$0xf] }
 0x434   :  { %4038 = vmatmul.bf16.gmra.mxu3 %v14568_v10 }
 0x435   :  { %v11944_v1 = vadd.f32 %v3938_v36, %v3890_v44  ;;  %5000 = vmatmul.bf16.gmra.mxu1 %v11939_v55 }
 0x436   :  { %v3794_v63 = vpop.f32.mrf.mxu2 }
 0x437   :  { %v3795_v4 = vadd.f32 %v3794_v63, %v11794_v61  ;;  %v3843_v40 = vpop.f32.mrf.mxu3  ;;  %v11953_v61 = vor.u32 %v9942_v59, %v9258_v16 }
 0x438   :  { %v3894_v33 = vpop.f32.mrf.mxu0 }
 0x439   :  { %v3844_v5 = vadd.f32 %v3843_v40, %v3795_v4 }
 0x43a   :  { %v3943_v20 = vpop.f32.mrf.mxu1 }
 0x43b   :  { %v3893_v24 = vadd.f32 %v3892_v30, %v3844_v5 }
 0x43d   :  { %v11948_v50 = vadd.f32 %v3941_v8, %v3893_v24  ;;  %v9320_v24 = vld [vmem:[#allocation7 + $0x300] sm:$0xf] }
 0x43e   :  { %v3796_v3 = vpop.f32.mrf.mxu2  ;;  %v11965_v59 = vor.u32 %v9966_v25, %v9320_v24  ;;  %v9982_v24 = vld [vmem:[#allocation7 + $0x3bc] sm:$0xf0] }
 0x43f   :  { %v3797_v36 = vadd.f32 %v3796_v3, %v11800_v47  ;;  %v3845_v13 = vpop.f32.mrf.mxu3  ;;  %v9322_v3 = vld [vmem:[#allocation7 + $0x340] sm:$0xf0] }
 0x440   :  { %v3897_v7 = vpop.f32.mrf.mxu0 }
 0x441   :  { %v3846_v11 = vadd.f32 %v3845_v13, %v3797_v36 }
 0x442   :  { %v3946_v12 = vpop.f32.mrf.mxu1 }
 0x443   :  { %3994 = vmatmul.bf16.gmra.mxu2 %v11202_v41  ;;  %4956 = vmatmul.bf16.gmra.mxu0 %v11951_v52  ;;  %v3895_v30 = vadd.f32 %v3894_v33, %v3846_v11  ;;  %v9958_v33 = vld [vmem:[#allocation7 + $0x304] sm:$0xf] }
 0x444   :  { %4043 = vmatmul.bf16.gmra.mxu3 %v11206_v28 }
 0x445   :  { %v11958_v8 = vadd.f32 %v3943_v20, %v3895_v30  ;;  %5005 = vmatmul.bf16.gmra.mxu1 %v11953_v61 }
 0x446   :  { %v3799_v47 = vpop.f32.mrf.mxu2 }
 0x447   :  { %v3800_v44 = vadd.f32 %v3799_v47, %v11813_v42  ;;  %v3848_v10 = vpop.f32.mrf.mxu3  ;;  %v11967_v42 = vor.u32 %v9958_v33, %v9322_v3 }
 0x448   :  { %v3899_v63 = vpop.f32.mrf.mxu0 }
 0x449   :  { %v3849_v4 = vadd.f32 %v3848_v10, %v3800_v44 }
 0x44a   :  { %v3948_v40 = vpop.f32.mrf.mxu1 }
 0x44b   :  { %v3898_v5 = vadd.f32 %v3897_v7, %v3849_v4 }
 0x44d   :  { %v11962_v41 = vadd.f32 %v3946_v12, %v3898_v5  ;;  %v9384_v5 = vld [vmem:[#allocation7 + $0x380] sm:$0xf] }
 0x44e   :  { %v3801_v17 = vpop.f32.mrf.mxu2  ;;  %v11979_v33 = vor.u32 %v9982_v24, %v9384_v5  ;;  %v9871_v5 = vld [vmem:[#allocation7 + $0x44] sm:$0xf0]  ;;  %v9872_v24 = vld [vmem:[#allocation7 + $0x4c] sm:$0xf0] }
 0x44f   :  { %v3802_v28 = vadd.f32 %v3801_v17, %v11823_v9  ;;  %v3850_v20 = vpop.f32.mrf.mxu3  ;;  %v9386_v17 = vld [vmem:[#allocation7 + $0x3c0] sm:$0xf0] }
 0x450   :  { %v3902_v16 = vpop.f32.mrf.mxu0 }
 0x451   :  { %v3851_v36 = vadd.f32 %v3850_v20, %v3802_v28 }
 0x452   :  { %v3951_v13 = vpop.f32.mrf.mxu1 }
 0x453   :  { %3999 = vmatmul.bf16.gmra.mxu2 %v11246_v19  ;;  %4961 = vmatmul.bf16.gmra.mxu0 %v11965_v59  ;;  %v3900_v7 = vadd.f32 %v3899_v63, %v3851_v36  ;;  %v9974_v63 = vld [vmem:[#allocation7 + $0x384] sm:$0xf] }
 0x454   :  { %4048 = vmatmul.bf16.gmra.mxu3 %v11250_v29 }
 0x455   :  { %v11972_v11 = vadd.f32 %v3948_v40, %v3900_v7  ;;  %5010 = vmatmul.bf16.gmra.mxu1 %v11967_v42 }
 0x456   :  { %v3804_v9 = vpop.f32.mrf.mxu2 }
 0x457   :  { %v3805_v12 = vadd.f32 %v3804_v9, %v11831_v21  ;;  %v3853_v30 = vpop.f32.mrf.mxu3  ;;  %v11981_v21 = vor.u32 %v9974_v63, %v9386_v17  ;;  %v9864_v63 = vld [vmem:[#allocation7 + $0x14] sm:$0xf] }
 0x458   :  { %v3904_v47 = vpop.f32.mrf.mxu0  ;;  %v8954_v17 = vld [vmem:[#allocation7 + $0x50] sm:$0xf0] }
 0x459   :  { %v3854_v44 = vadd.f32 %v3853_v30, %v3805_v12 }
 0x45a   :  { %v3953_v10 = vpop.f32.mrf.mxu1 }
 0x45b   :  { %v3903_v4 = vadd.f32 %v3902_v16, %v3854_v44 }
 0x45d   :  { %v11976_v19 = vadd.f32 %v3951_v13, %v3903_v4  ;;  %v8944_v4 = vld [vmem:[#allocation7 + $0x8] sm:$0xf] }
 0x45e   :  { %v3806_v25 = vpop.f32.mrf.mxu2 }
 0x45f   :  { %v3807_v29 = vadd.f32 %v3806_v25, %v11841_v46  ;;  %v3855_v40 = vpop.f32.mrf.mxu3 }
 0x460   :  { %v3907_v3 = vpop.f32.mrf.mxu0 }
 0x461   :  { %v3856_v28 = vadd.f32 %v3855_v40, %v3807_v29 }
 0x462   :  { %v3956_v20 = vpop.f32.mrf.mxu1 }
 0x463   :  { %4004 = vmatmul.bf16.gmra.mxu2 %v11281_v49  ;;  %4966 = vmatmul.bf16.gmra.mxu0 %v11979_v33  ;;  %v3905_v16 = vadd.f32 %v3904_v47, %v3856_v28  ;;  %v8952_v49 = vld [vmem:[#allocation7 + $0x10] sm:$0xf]  ;;  %v9863_v47 = vld [vmem:[#allocation7 + $0xc] sm:$0xf] }
 0x464   :  { %4053 = vmatmul.bf16.gmra.mxu3 %v11283_v15  ;;  %v8946_v15 = vld [vmem:[#allocation7 + $0x48] sm:$0xf0]  ;;  %v11995_v28 = vor.u32 %v9872_v24, %v8952_v49  ;;  %v14574_v49 = vld [vmem:[#allocation151_spill] sm:$0xff]  ;;  %v14575_v24 = vld [vmem:[#allocation160_spill] sm:$0xff] }
 0x465   :  { %v11986_v36 = vadd.f32 %v3953_v10, %v3905_v16  ;;  %5015 = vmatmul.bf16.gmra.mxu1 %v11981_v21 }
 0x466   :  { %v3809_v46 = vpop.f32.mrf.mxu2  ;;  %14569 = vst [vmem:[#allocation26_spill] sm:$0xff] %v11995_v28 }
 0x467   :  { %v3810_v13 = vadd.f32 %v3809_v46, %v11846_v0  ;;  %v3858_v7 = vpop.f32.mrf.mxu3  ;;  %v11993_v0 = vor.u32 %v9871_v5, %v8944_v4  ;;  %v14573_v4 = vld [vmem:[#allocation114_spill] sm:$0xff] }
 0x468   :  { %v3909_v9 = vpop.f32.mrf.mxu0 }
 0x469   :  { %v3859_v12 = vadd.f32 %v3858_v7, %v3810_v13  ;;  %v11999_v13 = vor.u32 %v9864_v63, %v8954_v17  ;;  %v14578_v17 = vld [vmem:[#allocation122_spill] sm:$0xff] }
 0x46a   :  { %v3958_v30 = vpop.f32.mrf.mxu1 }
 0x46b   :  { %v3908_v44 = vadd.f32 %v3907_v3, %v3859_v12  ;;  %v11997_v3 = vor.u32 %v9863_v47, %v8946_v15  ;;  %14571 = vst [vmem:[#allocation187_spill] sm:$0xff] %v11999_v13 }
 0x46d   :  { %v11990_v25 = vadd.f32 %v3956_v20, %v3908_v44  ;;  %14570 = vst [vmem:[#allocation21_spill] sm:$0xff] %v11997_v3 }
 0x46e   :  { %v3811_v10 = vpop.f32.mrf.mxu2 }
 0x46f   :  { %v3812_v29 = vadd.f32 %v3811_v10, %v11857_v26  ;;  %v3860_v40 = vpop.f32.mrf.mxu3  ;;  %v14572_v26 = vld [vmem:[#allocation113_spill] sm:$0xff] }
 0x470   :  { %v4932_v16 = vpop.f32.mrf.mxu0  ;;  %v14576_v10 = vld [vmem:[#allocation121_spill] sm:$0xff] }
 0x471   :  { %v3861_v46 = vadd.f32 %v3860_v40, %v3812_v29  ;;  %v14579_v29 = vld [vmem:[#allocation154_spill] sm:$0xff]  ;;  %v14580_v40 = vld [vmem:[#allocation164_spill] sm:$0xff] }
 0x472   :  { %v4981_v20 = vpop.f32.mrf.mxu1 }
 0x473   :  { %5029 = vmatmul.bf16.vlgmr.msrb.gmra.mxu2 %v11993_v0  ;;  %5127 = vmatmul.bf16.vlgmr.msrb.gmra.mxu0 %v11995_v28  ;;  %v3910_v7 = vadd.f32 %v3909_v9, %v3861_v46  ;;  %v12003_v12 = vadd.f32 %v4981_v20, %v4932_v16  ;;  %v9008_v16 = vld [vmem:[#allocation7 + $0x88] sm:$0xf]  ;;  %v14670_v28 = vld [vmem:[#allocation222_spill] sm:$0xff] }
 0x474   :  { %5078 = vmatmul.bf16.vlgmr.msrb.gmra.mxu3 %v11997_v3  ;;  %5413 = vmatpush.bf16.msrb.mxu2 %v14572_v26  ;;  %v9887_v20 = vld [vmem:[#allocation7 + $0xc4] sm:$0xf0]  ;;  %v9888_v26 = vld [vmem:[#allocation7 + $0xcc] sm:$0xf0] }
 0x475   :  { %v12007_v44 = vadd.f32 %v3958_v30, %v3910_v7  ;;  %5176 = vmatmul.bf16.vlgmr.msrb.gmra.mxu1 %v11999_v13  ;;  %5462 = vmatpush.bf16.msrb.mxu3 %v14573_v4  ;;  %v9016_v7 = vld [vmem:[#allocation7 + $0x90] sm:$0xf]  ;;  %v9879_v4 = vld [vmem:[#allocation7 + $0x8c] sm:$0xf] }
 0x476   :  { %v3970_v5 = vpop.f32.mrf.mxu2  ;;  %5511 = vmatpush.bf16.msrb.mxu0 %v14574_v49  ;;  %5560 = vmatpush.bf16.msrb.mxu1 %v14575_v24  ;;  %v14582_v49 = vld [vmem:[#allocation128_spill] sm:$0xff]  ;;  %v14591_v13 = vld [vmem:[#allocation134_spill] sm:$0xff] }
 0x477   :  { %v3971_v47 = vadd.f32 %v3970_v5, %v11869_v6  ;;  %v4019_v9 = vpop.f32.mrf.mxu3  ;;  %v14581_v6 = vld [vmem:[#allocation127_spill] sm:$0xff]  ;;  %v9010_v5 = vld [vmem:[#allocation7 + $0xc8] sm:$0xf0]  ;;  %v14669_v3 = vld [vmem:[#allocation198_spill] sm:$0xff] }
 0x478   :  { %v4934_v15 = vpop.f32.mrf.mxu0  ;;  %5414 = vmatpush.bf16.msrb.mxu2 %v14576_v10  ;;  %v14583_v10 = vld [vmem:[#allocation155_spill] sm:$0xff] }
 0x479   :  { %v12015_v63 = vadd.f32 %v4019_v9, %v3971_v47  ;;  %5463 = vmatpush.bf16.msrb.mxu3 %v14578_v17  ;;  %v9880_v47 = vld [vmem:[#allocation7 + $0x94] sm:$0xf]  ;;  %v14584_v17 = vld [vmem:[#allocation167_spill] sm:$0xff] }
 0x47a   :  { %v4983_v30 = vpop.f32.mrf.mxu1  ;;  %5512 = vmatpush.bf16.msrb.mxu0 %v14579_v29  ;;  %5561 = vmatpush.bf16.msrb.mxu1 %v14580_v40  ;;  %v9018_v9 = vld [vmem:[#allocation7 + $0xd0] sm:$0xf0]  ;;  %v12029_v40 = vor.u32 %v9888_v26, %v9016_v7 }
 0x47b   :  { %14577 = vst [vmem:[#allocation188_spill] sm:$0xff] %v12015_v63  ;;  %v12020_v46 = vadd.f32 %v4983_v30, %v4934_v15  ;;  %v12027_v30 = vor.u32 %v9887_v20, %v9008_v16  ;;  %v12036_v34 = vor.u32 %v9880_v47, %v9018_v9  ;;  %v14595_v20 = vld [vmem:[#allocation140_spill] sm:$0xff]  ;;  %v14596_v7 = vld [vmem:[#allocation162_spill] sm:$0xff]  ;;  %v14598_v47 = vld [vmem:[#allocation145_spill] sm:$0xff] }
 0x47c   :  { %5415 = vmatpush.bf16.msrb.mxu2 %v14581_v6  ;;  %14586 = vst [vmem:[#allocation23_spill] sm:$0xff] %v12029_v40  ;;  %v12031_v6 = vor.u32 %v9879_v4, %v9010_v5  ;;  %v14597_v26 = vld [vmem:[#allocation174_spill] sm:$0xff] }
 0x47d   :  { %5464 = vmatpush.bf16.msrb.mxu3 %v14582_v49  ;;  %14585 = vst [vmem:[#allocation189_spill] sm:$0xff] %v12027_v30  ;;  %v14600_v9 = vld [vmem:[#allocation146_spill] sm:$0xff] }
 0x47e   :  { %v3972_v24 = vpop.f32.mrf.mxu2  ;;  %5513 = vmatpush.bf16.msrb.mxu0 %v14583_v10  ;;  %5562 = vmatpush.bf16.msrb.mxu1 %v14584_v17  ;;  %14587 = vst [vmem:[#allocation190_spill] sm:$0xff] %v12031_v6  ;;  %v14592_v17 = vld [vmem:[#allocation158_spill] sm:$0xff] }
 0x47f   :  { %v3973_v29 = vadd.f32 %v3972_v24, %v11887_v54  ;;  %v4021_v15 = vpop.f32.mrf.mxu3  ;;  %14590 = vst [vmem:[#allocation25_spill] sm:$0xff] %v12036_v34  ;;  %v14593_v54 = vld [vmem:[#allocation169_spill] sm:$0xff] }
 0x480   :  { %v4937_v63 = vpop.f32.mrf.mxu0  ;;  %5416 = vmatpush.bf16.msrb.mxu2 %v14588_v57  ;;  %v14594_v57 = vld [vmem:[#allocation139_spill] sm:$0xff] }
 0x481   :  { %v12034_v49 = vadd.f32 %v4021_v15, %v3973_v29  ;;  %5465 = vmatpush.bf16.msrb.mxu3 %v14591_v13  ;;  %v14601_v15 = vld [vmem:[#allocation166_spill] sm:$0xff] }
 0x482   :  { %v4986_v10 = vpop.f32.mrf.mxu1  ;;  %5514 = vmatpush.bf16.msrb.mxu0 %v14592_v17  ;;  %5563 = vmatpush.bf16.msrb.mxu1 %v14593_v54  ;;  %v9072_v17 = vld [vmem:[#allocation7 + $0x108] sm:$0xf] }
 0x483   :  { %14589 = vst [vmem:[#allocation32_spill] sm:$0xff] %v12034_v49  ;;  %5034 = vmatmul.bf16.gmra.mxu2 %v12027_v30  ;;  %5132 = vmatmul.bf16.gmra.mxu0 %v12029_v40  ;;  %v12043_v16 = vadd.f32 %v4986_v10, %v4937_v63  ;;  %v14602_v10 = vld [vmem:[#allocation176_spill] sm:$0xff]  ;;  %v14613_v30 = vld [vmem:[#allocation165_spill] sm:$0xff] }
 0x484   :  { %5083 = vmatmul.bf16.gmra.mxu3 %v12031_v6  ;;  %5417 = vmatpush.bf16.msrb.mxu2 %v14594_v57  ;;  %v9903_v57 = vld [vmem:[#allocation7 + $0x144] sm:$0xf0]  ;;  %v14610_v6 = vld [vmem:[#allocation163_spill] sm:$0xff] }
 0x485   :  { %5181 = vmatmul.bf16.gmra.mxu1 %v12036_v34  ;;  %5466 = vmatpush.bf16.msrb.mxu3 %v14595_v20  ;;  %v9080_v20 = vld [vmem:[#allocation7 + $0x110] sm:$0xf] }
 0x486   :  { %v3975_v13 = vpop.f32.mrf.mxu2  ;;  %5515 = vmatpush.bf16.msrb.mxu0 %v14596_v7  ;;  %5564 = vmatpush.bf16.msrb.mxu1 %v14597_v26  ;;  %v9904_v7 = vld [vmem:[#allocation7 + $0x14c] sm:$0xf0]  ;;  %v9074_v26 = vld [vmem:[#allocation7 + $0x148] sm:$0xf0] }
 0x487   :  { %v3976_v4 = vadd.f32 %v3975_v13, %v11899_v32  ;;  %v4024_v5 = vpop.f32.mrf.mxu3  ;;  %v14603_v32 = vld [vmem:[#allocation152_spill] sm:$0xff]  ;;  %v9895_v13 = vld [vmem:[#allocation7 + $0x10c] sm:$0xf]  ;;  %v12067_v49 = vor.u32 %v9904_v7, %v9080_v20 }
 0x488   :  { %v4939_v24 = vpop.f32.mrf.mxu0  ;;  %5418 = vmatpush.bf16.msrb.mxu2 %v14598_v47  ;;  %v14604_v47 = vld [vmem:[#allocation153_spill] sm:$0xff] }
 0x489   :  { %v12053_v63 = vadd.f32 %v4024_v5, %v3976_v4  ;;  %5467 = vmatpush.bf16.msrb.mxu3 %v14600_v9  ;;  %v9896_v5 = vld [vmem:[#allocation7 + $0x114] sm:$0xf]  ;;  %14608 = vst [vmem:[#allocation38_spill] sm:$0xff] %v12067_v49 }
 0x48a   :  { %v4988_v29 = vpop.f32.mrf.mxu1  ;;  %5516 = vmatpush.bf16.msrb.mxu0 %v14601_v15  ;;  %5565 = vmatpush.bf16.msrb.mxu1 %v14602_v10  ;;  %v9082_v9 = vld [vmem:[#allocation7 + $0x150] sm:$0xf0]  ;;  %v14606_v15 = vld [vmem:[#allocation179_spill] sm:$0xff] }
 0x48b   :  { %14599 = vst [vmem:[#allocation35_spill] sm:$0xff] %v12053_v63  ;;  %v12058_v54 = vadd.f32 %v4988_v29, %v4939_v24  ;;  %v14605_v63 = vld [vmem:[#allocation168_spill] sm:$0xff]  ;;  %v12065_v29 = vor.u32 %v9903_v57, %v9072_v17  ;;  %v12074_v40 = vor.u32 %v9896_v5, %v9082_v9  ;;  %v9919_v5 = vld [vmem:[#allocation7 + $0x1c4] sm:$0xf0]  ;;  %v9144_v9 = vld [vmem:[#allocation7 + $0x190] sm:$0xf] }
 0x48c   :  { %5419 = vmatpush.bf16.msrb.mxu2 %v14603_v32  ;;  %v12069_v32 = vor.u32 %v9895_v13, %v9074_v26  ;;  %v9136_v26 = vld [vmem:[#allocation7 + $0x188] sm:$0xf] }
 0x48d   :  { %5468 = vmatpush.bf16.msrb.mxu3 %v14604_v47  ;;  %14607 = vst [vmem:[#allocation27_spill] sm:$0xff] %v12065_v29 }
 0x48e   :  { %v3977_v4 = vpop.f32.mrf.mxu2  ;;  %5517 = vmatpush.bf16.msrb.mxu0 %v14605_v63  ;;  %5566 = vmatpush.bf16.msrb.mxu1 %v14606_v15  ;;  %14609 = vst [vmem:[#allocation39_spill] sm:$0xff] %v12069_v32  ;;  %v14614_v15 = vld [vmem:[#allocation172_spill] sm:$0xff] }
 0x48f   :  { %v3978_v10 = vadd.f32 %v3977_v4, %v11916_v14  ;;  %v4026_v24 = vpop.f32.mrf.mxu3  ;;  %14612 = vst [vmem:[#allocation46_spill] sm:$0xff] %v12074_v40  ;;  %v14615_v14 = vld [vmem:[#allocation180_spill] sm:$0xff] }
 0x490   :  { %v4942_v34 = vpop.f32.mrf.mxu0  ;;  %5420 = vmatpush.bf16.msrb.mxu2 %v14610_v6 }
 0x491   :  { %v12072_v47 = vadd.f32 %v4026_v24, %v3978_v10  ;;  %5469 = vmatpush.bf16.msrb.mxu3 %v14613_v30  ;;  %v9920_v10 = vld [vmem:[#allocation7 + $0x1cc] sm:$0xf0]  ;;  %v9138_v24 = vld [vmem:[#allocation7 + $0x1c8] sm:$0xf0] }
 0x492   :  { %v4991_v63 = vpop.f32.mrf.mxu1  ;;  %5518 = vmatpush.bf16.msrb.mxu0 %v14614_v15  ;;  %5567 = vmatpush.bf16.msrb.mxu1 %v14615_v14  ;;  %v9912_v15 = vld [vmem:[#allocation7 + $0x194] sm:$0xf] }
 0x493   :  { %14611 = vst [vmem:[#allocation42_spill] sm:$0xff] %v12072_v47  ;;  %5039 = vmatmul.bf16.gmra.mxu2 %v12065_v29  ;;  %5137 = vmatmul.bf16.gmra.mxu0 %v12067_v49  ;;  %v12081_v17 = vadd.f32 %v4991_v63, %v4942_v34  ;;  %v9911_v34 = vld [vmem:[#allocation7 + $0x18c] sm:$0xf]  ;;  %v9146_v14 = vld [vmem:[#allocation7 + $0x1d0] sm:$0xf0] }
 0x494   :  { %5088 = vmatmul.bf16.gmra.mxu3 %v12069_v32 }
 0x495   :  { %5186 = vmatmul.bf16.gmra.mxu1 %v12074_v40 }
 0x496   :  { %v3980_v6 = vpop.f32.mrf.mxu2 }
 0x497   :  { %v3981_v57 = vadd.f32 %v3980_v6, %v11920_v35  ;;  %v4029_v20 = vpop.f32.mrf.mxu3  ;;  %v12091_v35 = vor.u32 %v9919_v5, %v9136_v26  ;;  %v12093_v6 = vor.u32 %v9920_v10, %v9144_v9  ;;  %v9200_v10 = vld [vmem:[#allocation7 + $0x208] sm:$0xf] }
 0x498   :  { %v4944_v30 = vpop.f32.mrf.mxu0 }
 0x499   :  { %v12086_v7 = vadd.f32 %v4029_v20, %v3981_v57  ;;  %14617 = vst [vmem:[#allocation194_spill] sm:$0xff] %v12091_v35  ;;  %v12095_v20 = vor.u32 %v9911_v34, %v9138_v24  ;;  %v9935_v24 = vld [vmem:[#allocation7 + $0x244] sm:$0xf0] }
 0x49a   :  { %v4993_v13 = vpop.f32.mrf.mxu1  ;;  %14618 = vst [vmem:[#allocation195_spill] sm:$0xff] %v12093_v6 }
 0x49b   :  { %14616 = vst [vmem:[#allocation193_spill] sm:$0xff] %v12086_v7  ;;  %v12088_v4 = vadd.f32 %v4993_v13, %v4944_v30  ;;  %v12099_v13 = vor.u32 %v9912_v15, %v9146_v14  ;;  %v9936_v15 = vld [vmem:[#allocation7 + $0x24c] sm:$0xf0]  ;;  %v9202_v14 = vld [vmem:[#allocation7 + $0x248] sm:$0xf0] }
 0x49c   :  { %14619 = vst [vmem:[#allocation196_spill] sm:$0xff] %v12095_v20 }
 0x49d   :  { %14621 = vst [vmem:[#allocation50_spill] sm:$0xff] %v12099_v13 }
 0x49e   :  { %v3982_v63 = vpop.f32.mrf.mxu2 }
 0x49f   :  { %v3983_v47 = vadd.f32 %v3982_v63, %v11930_v62  ;;  %v4031_v40 = vpop.f32.mrf.mxu3  ;;  %v9208_v63 = vld [vmem:[#allocation7 + $0x210] sm:$0xf] }
 0x4a0   :  { %v4947_v57 = vpop.f32.mrf.mxu0 }
 0x4a1   :  { %v12097_v30 = vadd.f32 %v4031_v40, %v3983_v47 }
 0x4a2   :  { %v4996_v7 = vpop.f32.mrf.mxu1 }
 0x4a3   :  { %14620 = vst [vmem:[#allocation45_spill] sm:$0xff] %v12097_v30  ;;  %5044 = vmatmul.bf16.gmra.mxu2 %v12091_v35  ;;  %5142 = vmatmul.bf16.gmra.mxu0 %v12093_v6  ;;  %v12103_v32 = vadd.f32 %v4996_v7, %v4947_v57  ;;  %v9927_v7 = vld [vmem:[#allocation7 + $0x20c] sm:$0xf]  ;;  %v9928_v30 = vld [vmem:[#allocation7 + $0x214] sm:$0xf] }
 0x4a4   :  { %5093 = vmatmul.bf16.gmra.mxu3 %v12095_v20  ;;  %v9210_v20 = vld [vmem:[#allocation7 + $0x250] sm:$0xf0] }
 0x4a5   :  { %5191 = vmatmul.bf16.gmra.mxu1 %v12099_v13 }
 0x4a6   :  { %v3985_v62 = vpop.f32.mrf.mxu2 }
 0x4a7   :  { %v3986_v26 = vadd.f32 %v3985_v62, %v11934_v56  ;;  %v4034_v5 = vpop.f32.mrf.mxu3  ;;  %v12113_v56 = vor.u32 %v9935_v24, %v9200_v10  ;;  %v12115_v62 = vor.u32 %v9936_v15, %v9208_v63  ;;  %v9951_v15 = vld [vmem:[#allocation7 + $0x2c4] sm:$0xf0] }
 0x4a8   :  { %v4949_v9 = vpop.f32.mrf.mxu0 }
 0x4a9   :  { %v12108_v40 = vadd.f32 %v4034_v5, %v3986_v26  ;;  %14623 = vst [vmem:[#allocation54_spill] sm:$0xff] %v12113_v56  ;;  %v12117_v5 = vor.u32 %v9927_v7, %v9202_v14  ;;  %v9272_v7 = vld [vmem:[#allocation7 + $0x290] sm:$0xf] }
 0x4aa   :  { %v4998_v47 = vpop.f32.mrf.mxu1  ;;  %14624 = vst [vmem:[#allocation52_spill] sm:$0xff] %v12115_v62  ;;  %v9952_v14 = vld [vmem:[#allocation7 + $0x2cc] sm:$0xf0] }
 0x4ab   :  { %14622 = vst [vmem:[#allocation49_spill] sm:$0xff] %v12108_v40  ;;  %v12110_v34 = vadd.f32 %v4998_v47, %v4949_v9  ;;  %v12121_v47 = vor.u32 %v9928_v30, %v9210_v20  ;;  %v9264_v30 = vld [vmem:[#allocation7 + $0x288] sm:$0xf] }
 0x4ac   :  { %14625 = vst [vmem:[#allocation56_spill] sm:$0xff] %v12117_v5 }
 0x4ad   :  { %14627 = vst [vmem:[#allocation57_spill] sm:$0xff] %v12121_v47 }
 0x4ae   :  { %v3987_v57 = vpop.f32.mrf.mxu2 }
 0x4af   :  { %v3988_v13 = vadd.f32 %v3987_v57, %v11944_v1  ;;  %v4036_v6 = vpop.f32.mrf.mxu3  ;;  %v9266_v57 = vld [vmem:[#allocation7 + $0x2c8] sm:$0xf0] }
 0x4b0   :  { %v4952_v26 = vpop.f32.mrf.mxu0 }
 0x4b1   :  { %v12119_v9 = vadd.f32 %v4036_v6, %v3988_v13 }
 0x4b2   :  { %v5001_v40 = vpop.f32.mrf.mxu1 }
 0x4b3   :  { %14626 = vst [vmem:[#allocation55_spill] sm:$0xff] %v12119_v9  ;;  %5049 = vmatmul.bf16.gmra.mxu2 %v12113_v56  ;;  %5147 = vmatmul.bf16.gmra.mxu0 %v12115_v62  ;;  %v12125_v35 = vadd.f32 %v5001_v40, %v4952_v26  ;;  %v9943_v40 = vld [vmem:[#allocation7 + $0x28c] sm:$0xf]  ;;  %v9944_v9 = vld [vmem:[#allocation7 + $0x294] sm:$0xf] }
 0x4b4   :  { %5098 = vmatmul.bf16.gmra.mxu3 %v12117_v5  ;;  %v9274_v5 = vld [vmem:[#allocation7 + $0x2d0] sm:$0xf0] }
 0x4b5   :  { %5196 = vmatmul.bf16.gmra.mxu1 %v12121_v47 }
 0x4b6   :  { %v3990_v1 = vpop.f32.mrf.mxu2 }
 0x4b7   :  { %v3991_v10 = vadd.f32 %v3990_v1, %v11948_v50  ;;  %v4039_v24 = vpop.f32.mrf.mxu3  ;;  %v12135_v50 = vor.u32 %v9951_v15, %v9264_v30  ;;  %v12137_v1 = vor.u32 %v9952_v14, %v9272_v7  ;;  %v9967_v14 = vld [vmem:[#allocation7 + $0x344] sm:$0xf0] }
 0x4b8   :  { %v4954_v63 = vpop.f32.mrf.mxu0 }
 0x4b9   :  { %v12130_v6 = vadd.f32 %v4039_v24, %v3991_v10  ;;  %14629 = vst [vmem:[#allocation200_spill] sm:$0xff] %v12135_v50  ;;  %v12139_v24 = vor.u32 %v9943_v40, %v9266_v57  ;;  %v9336_v40 = vld [vmem:[#allocation7 + $0x310] sm:$0xf] }
 0x4ba   :  { %v5003_v20 = vpop.f32.mrf.mxu1  ;;  %14630 = vst [vmem:[#allocation201_spill] sm:$0xff] %v12137_v1  ;;  %v9968_v57 = vld [vmem:[#allocation7 + $0x34c] sm:$0xf0] }
 0x4bb   :  { %14628 = vst [vmem:[#allocation199_spill] sm:$0xff] %v12130_v6  ;;  %v12132_v13 = vadd.f32 %v5003_v20, %v4954_v63  ;;  %v12143_v20 = vor.u32 %v9944_v9, %v9274_v5  ;;  %v9328_v9 = vld [vmem:[#allocation7 + $0x308] sm:$0xf] }
 0x4bc   :  { %14631 = vst [vmem:[#allocation202_spill] sm:$0xff] %v12139_v24 }
 0x4bd   :  { %14633 = vst [vmem:[#allocation61_spill] sm:$0xff] %v12143_v20 }
 0x4be   :  { %v3992_v26 = vpop.f32.mrf.mxu2 }
 0x4bf   :  { %v3993_v47 = vadd.f32 %v3992_v26, %v11958_v8  ;;  %v4041_v62 = vpop.f32.mrf.mxu3  ;;  %v9330_v26 = vld [vmem:[#allocation7 + $0x348] sm:$0xf0] }
 0x4c0   :  { %v4957_v10 = vpop.f32.mrf.mxu0 }
 0x4c1   :  { %v12141_v63 = vadd.f32 %v4041_v62, %v3993_v47 }
 0x4c2   :  { %v5006_v6 = vpop.f32.mrf.mxu1 }
 0x4c3   :  { %14632 = vst [vmem:[#allocation60_spill] sm:$0xff] %v12141_v63  ;;  %5054 = vmatmul.bf16.gmra.mxu2 %v12135_v50  ;;  %5152 = vmatmul.bf16.gmra.mxu0 %v12137_v1  ;;  %v12147_v56 = vadd.f32 %v5006_v6, %v4957_v10  ;;  %v9959_v6 = vld [vmem:[#allocation7 + $0x30c] sm:$0xf]  ;;  %v9960_v63 = vld [vmem:[#allocation7 + $0x314] sm:$0xf] }
 0x4c4   :  { %5103 = vmatmul.bf16.gmra.mxu3 %v12139_v24  ;;  %v9338_v24 = vld [vmem:[#allocation7 + $0x350] sm:$0xf0] }
 0x4c5   :  { %5201 = vmatmul.bf16.gmra.mxu1 %v12143_v20 }
 0x4c6   :  { %v3995_v8 = vpop.f32.mrf.mxu2 }
 0x4c7   :  { %v3996_v30 = vadd.f32 %v3995_v8, %v11962_v41  ;;  %v4044_v15 = vpop.f32.mrf.mxu3  ;;  %v12157_v41 = vor.u32 %v9967_v14, %v9328_v9  ;;  %v12159_v8 = vor.u32 %v9968_v57, %v9336_v40  ;;  %v9983_v57 = vld [vmem:[#allocation7 + $0x3c4] sm:$0xf0] }
 0x4c8   :  { %v4959_v7 = vpop.f32.mrf.mxu0 }
 0x4c9   :  { %v12152_v62 = vadd.f32 %v4044_v15, %v3996_v30  ;;  %14635 = vst [vmem:[#allocation206_spill] sm:$0xff] %v12157_v41  ;;  %v12161_v15 = vor.u32 %v9959_v6, %v9330_v26  ;;  %v9400_v6 = vld [vmem:[#allocation7 + $0x390] sm:$0xf] }
 0x4ca   :  { %v5008_v5 = vpop.f32.mrf.mxu1  ;;  %14636 = vst [vmem:[#allocation207_spill] sm:$0xff] %v12159_v8  ;;  %v9984_v26 = vld [vmem:[#allocation7 + $0x3cc] sm:$0xf0] }
 0x4cb   :  { %14634 = vst [vmem:[#allocation205_spill] sm:$0xff] %v12152_v62  ;;  %v12154_v47 = vadd.f32 %v5008_v5, %v4959_v7  ;;  %v12165_v5 = vor.u32 %v9960_v63, %v9338_v24  ;;  %v9392_v63 = vld [vmem:[#allocation7 + $0x388] sm:$0xf] }
 0x4cc   :  { %14637 = vst [vmem:[#allocation208_spill] sm:$0xff] %v12161_v15 }
 0x4cd   :  { %14639 = vst [vmem:[#allocation212_spill] sm:$0xff] %v12165_v5 }
 0x4ce   :  { %v3997_v10 = vpop.f32.mrf.mxu2 }
 0x4cf   :  { %v3998_v20 = vadd.f32 %v3997_v10, %v11972_v11  ;;  %v4046_v1 = vpop.f32.mrf.mxu3  ;;  %v9394_v10 = vld [vmem:[#allocation7 + $0x3c8] sm:$0xf0] }
 0x4d0   :  { %v4962_v30 = vpop.f32.mrf.mxu0 }
 0x4d1   :  { %v12163_v7 = vadd.f32 %v4046_v1, %v3998_v20 }
 0x4d2   :  { %v5011_v62 = vpop.f32.mrf.mxu1 }
 0x4d3   :  { %14638 = vst [vmem:[#allocation211_spill] sm:$0xff] %v12163_v7  ;;  %5059 = vmatmul.bf16.gmra.mxu2 %v12157_v41  ;;  %5157 = vmatmul.bf16.gmra.mxu0 %v12159_v8  ;;  %v12169_v50 = vadd.f32 %v5011_v62, %v4962_v30  ;;  %v9975_v62 = vld [vmem:[#allocation7 + $0x38c] sm:$0xf]  ;;  %v9976_v7 = vld [vmem:[#allocation7 + $0x394] sm:$0xf] }
 0x4d4   :  { %5108 = vmatmul.bf16.gmra.mxu3 %v12161_v15  ;;  %v9402_v15 = vld [vmem:[#allocation7 + $0x3d0] sm:$0xf0] }
 0x4d5   :  { %5206 = vmatmul.bf16.gmra.mxu1 %v12165_v5 }
 0x4d6   :  { %v4000_v11 = vpop.f32.mrf.mxu2 }
 0x4d7   :  { %v4001_v9 = vadd.f32 %v4000_v11, %v11976_v19  ;;  %v4049_v14 = vpop.f32.mrf.mxu3  ;;  %v12179_v19 = vor.u32 %v9983_v57, %v9392_v63  ;;  %v12181_v11 = vor.u32 %v9984_v26, %v9400_v6  ;;  %v9873_v26 = vld [vmem:[#allocation7 + $0x54] sm:$0xf0] }
 0x4d8   :  { %v4964_v40 = vpop.f32.mrf.mxu0 }
 0x4d9   :  { %v12174_v1 = vadd.f32 %v4049_v14, %v4001_v9  ;;  %14641 = vst [vmem:[#allocation214_spill] sm:$0xff] %v12179_v19  ;;  %v12183_v14 = vor.u32 %v9975_v62, %v9394_v10  ;;  %v8968_v62 = vld [vmem:[#allocation7 + $0x20] sm:$0xf] }
 0x4da   :  { %v5013_v24 = vpop.f32.mrf.mxu1  ;;  %14642 = vst [vmem:[#allocation220_spill] sm:$0xff] %v12181_v11  ;;  %v9874_v10 = vld [vmem:[#allocation7 + $0x5c] sm:$0xf0] }
 0x4db   :  { %14640 = vst [vmem:[#allocation213_spill] sm:$0xff] %v12174_v1  ;;  %v12176_v20 = vadd.f32 %v5013_v24, %v4964_v40  ;;  %v12187_v24 = vor.u32 %v9976_v7, %v9402_v15  ;;  %v8960_v7 = vld [vmem:[#allocation7 + $0x18] sm:$0xf] }
 0x4dc   :  { %14643 = vst [vmem:[#allocation221_spill] sm:$0xff] %v12183_v14 }
 0x4dd   :  { %14645 = vst [vmem:[#allocation225_spill] sm:$0xff] %v12187_v24 }
 0x4de   :  { %v4002_v30 = vpop.f32.mrf.mxu2 }
 0x4df   :  { %v4003_v5 = vadd.f32 %v4002_v30, %v11986_v36  ;;  %v4051_v8 = vpop.f32.mrf.mxu3  ;;  %v8962_v30 = vld [vmem:[#allocation7 + $0x58] sm:$0xf0] }
 0x4e0   :  { %v4967_v9 = vpop.f32.mrf.mxu0 }
 0x4e1   :  { %v12185_v40 = vadd.f32 %v4051_v8, %v4003_v5 }
 0x4e2   :  { %v5016_v1 = vpop.f32.mrf.mxu1 }
 0x4e3   :  { %14644 = vst [vmem:[#allocation223_spill] sm:$0xff] %v12185_v40  ;;  %5064 = vmatmul.bf16.gmra.mxu2 %v12179_v19  ;;  %5162 = vmatmul.bf16.gmra.mxu0 %v12181_v11  ;;  %v12191_v41 = vadd.f32 %v5016_v1, %v4967_v9  ;;  %v9865_v1 = vld [vmem:[#allocation7 + $0x1c] sm:$0xf]  ;;  %v9866_v40 = vld [vmem:[#allocation7 + $0x24] sm:$0xf] }
 0x4e4   :  { %5113 = vmatmul.bf16.gmra.mxu3 %v12183_v14  ;;  %v8970_v14 = vld [vmem:[#allocation7 + $0x60] sm:$0xf0]  ;;  %v14662_v19 = vld [vmem:[#allocation219_spill] sm:$0xff] }
 0x4e5   :  { %5211 = vmatmul.bf16.gmra.mxu1 %v12187_v24 }
 0x4e6   :  { %v4005_v36 = vpop.f32.mrf.mxu2 }
 0x4e7   :  { %v4006_v63 = vadd.f32 %v4005_v36, %v11990_v25  ;;  %v4054_v57 = vpop.f32.mrf.mxu3  ;;  %v12201_v25 = vor.u32 %v9873_v26, %v8960_v7  ;;  %v12203_v36 = vor.u32 %v9874_v10, %v8968_v62  ;;  %v14653_v7 = vld [vmem:[#allocation178_spill] sm:$0xff]  ;;  %v14654_v62 = vld [vmem:[#allocation215_spill] sm:$0xff]  ;;  %v14656_v10 = vld [vmem:[#allocation185_spill] sm:$0xff] }
 0x4e8   :  { %v4969_v6 = vpop.f32.mrf.mxu0 }
 0x4e9   :  { %v12196_v8 = vadd.f32 %v4054_v57, %v4006_v63  ;;  %14647 = vst [vmem:[#allocation29_spill] sm:$0xff] %v12201_v25  ;;  %v12205_v57 = vor.u32 %v9865_v1, %v8962_v30  ;;  %v14657_v30 = vld [vmem:[#allocation186_spill] sm:$0xff] }
 0x4ea   :  { %v5018_v15 = vpop.f32.mrf.mxu1  ;;  %14648 = vst [vmem:[#allocation30_spill] sm:$0xff] %v12203_v36 }
 0x4eb   :  { %14646 = vst [vmem:[#allocation28_spill] sm:$0xff] %v12196_v8  ;;  %v12198_v5 = vadd.f32 %v5018_v15, %v4969_v6  ;;  %v12209_v15 = vor.u32 %v9866_v40, %v8970_v14 }
 0x4ec   :  { %14649 = vst [vmem:[#allocation31_spill] sm:$0xff] %v12205_v57 }
 0x4ed   :  { %14651 = vst [vmem:[#allocation34_spill] sm:$0xff] %v12209_v15 }
 0x4ee   :  { %v4007_v9 = vpop.f32.mrf.mxu2 }
 0x4ef   :  { %v4008_v24 = vadd.f32 %v4007_v9, %v12007_v44  ;;  %v4056_v11 = vpop.f32.mrf.mxu3  ;;  %v14652_v44 = vld [vmem:[#allocation177_spill] sm:$0xff] }
 0x4f0   :  { %v5128_v63 = vpop.f32.mrf.mxu0 }
 0x4f1   :  { %v12207_v6 = vadd.f32 %v4056_v11, %v4008_v24  ;;  %v14655_v11 = vld [vmem:[#allocation224_spill] sm:$0xff] }
 0x4f2   :  { %v5177_v8 = vpop.f32.mrf.mxu1 }
 0x4f3   :  { %14650 = vst [vmem:[#allocation33_spill] sm:$0xff] %v12207_v6  ;;  %5225 = vmatmul.bf16.vlgmr.msra.gmra.mxu2 %v12201_v25  ;;  %5323 = vmatmul.bf16.vlgmr.msra.gmra.mxu0 %v12203_v36  ;;  %v14659_v6 = vld [vmem:[#allocation228_spill] sm:$0xff]  ;;  %v9026_v25 = vld [vmem:[#allocation7 + $0xd8] sm:$0xf0] }
 0x4f4   :  { %5274 = vmatmul.bf16.vlgmr.msra.gmra.mxu3 %v12205_v57  ;;  %5609 = vmatpush.bf16.msra.mxu2 %v14652_v44  ;;  %v14658_v44 = vld [vmem:[#allocation218_spill] sm:$0xff]  ;;  %v9889_v57 = vld [vmem:[#allocation7 + $0xd4] sm:$0xf0]  ;;  %v9890_v36 = vld [vmem:[#allocation7 + $0xdc] sm:$0xf0] }
 0x4f5   :  { %5372 = vmatmul.bf16.vlgmr.msra.gmra.mxu1 %v12209_v15  ;;  %5658 = vmatpush.bf16.msra.mxu3 %v14653_v7  ;;  %v9024_v15 = vld [vmem:[#allocation7 + $0x98] sm:$0xf] }
 0x4f6   :  { %v5030_v26 = vpop.f32.mrf.mxu2  ;;  %5707 = vmatpush.bf16.msra.mxu0 %v14654_v62  ;;  %5756 = vmatpush.bf16.msra.mxu1 %v14655_v11  ;;  %v9032_v62 = vld [vmem:[#allocation7 + $0xa0] sm:$0xf]  ;;  %v14660_v11 = vld [vmem:[#allocation191_spill] sm:$0xff] }
 0x4f7   :  { %v5031_v14 = vadd.f32 %v5030_v26, %v12003_v12  ;;  %v5079_v40 = vpop.f32.mrf.mxu3  ;;  %v9881_v26 = vld [vmem:[#allocation7 + $0x9c] sm:$0xf]  ;;  %v12233_v49 = vor.u32 %v9890_v36, %v9032_v62 }
 0x4f8   :  { %v5130_v24 = vpop.f32.mrf.mxu0  ;;  %5610 = vmatpush.bf16.msra.mxu2 %v14656_v10  ;;  %v14661_v10 = vld [vmem:[#allocation192_spill] sm:$0xff] }
 0x4f9   :  { %v5080_v1 = vadd.f32 %v5079_v40, %v5031_v14  ;;  %5659 = vmatpush.bf16.msra.mxu3 %v14657_v30  ;;  %v9882_v40 = vld [vmem:[#allocation7 + $0xa4] sm:$0xf]  ;;  %14665 = vst [vmem:[#allocation37_spill] sm:$0xff] %v12233_v49 }
 0x4fa   :  { %v5179_v9 = vpop.f32.mrf.mxu1  ;;  %5708 = vmatpush.bf16.msra.mxu0 %v14658_v44  ;;  %5757 = vmatpush.bf16.msra.mxu1 %v14659_v6  ;;  %v9034_v30 = vld [vmem:[#allocation7 + $0xe0] sm:$0xf0]  ;;  %v14663_v44 = vld [vmem:[#allocation231_spill] sm:$0xff] }
 0x4fb   :  { %v5129_v7 = vadd.f32 %v5128_v63, %v5080_v1  ;;  %v12231_v1 = vor.u32 %v9889_v57, %v9024_v15  ;;  %v12238_v29 = vor.u32 %v9882_v40, %v9034_v30  ;;  %v14673_v57 = vld [vmem:[#allocation204_spill] sm:$0xff]  ;;  %v14674_v15 = vld [vmem:[#allocation226_spill] sm:$0xff] }
 0x4fc   :  { %5611 = vmatpush.bf16.msra.mxu2 %v14660_v11  ;;  %v14667_v11 = vld [vmem:[#allocation197_spill] sm:$0xff]  ;;  %v14677_v30 = vld [vmem:[#allocation210_spill] sm:$0xff] }
 0x4fd   :  { %v12225_v12 = vadd.f32 %v5177_v8, %v5129_v7  ;;  %5660 = vmatpush.bf16.msra.mxu3 %v14661_v10  ;;  %14664 = vst [vmem:[#allocation36_spill] sm:$0xff] %v12231_v1  ;;  %v12235_v7 = vor.u32 %v9881_v26, %v9026_v25  ;;  %v14672_v25 = vld [vmem:[#allocation203_spill] sm:$0xff] }
 0x4fe   :  { %v5032_v14 = vpop.f32.mrf.mxu2  ;;  %5709 = vmatpush.bf16.msra.mxu0 %v14662_v19  ;;  %5758 = vmatpush.bf16.msra.mxu1 %v14663_v44  ;;  %14668 = vst [vmem:[#allocation41_spill] sm:$0xff] %v12238_v29  ;;  %v14671_v44 = vld [vmem:[#allocation233_spill] sm:$0xff] }
 0x4ff   :  { %v5033_v63 = vadd.f32 %v5032_v14, %v12020_v46  ;;  %v5081_v6 = vpop.f32.mrf.mxu3  ;;  %14666 = vst [vmem:[#allocation40_spill] sm:$0xff] %v12235_v7 }
 0x500   :  { %v5133_v8 = vpop.f32.mrf.mxu0  ;;  %5612 = vmatpush.bf16.msra.mxu2 %v14667_v11 }
 0x501   :  { %v5082_v10 = vadd.f32 %v5081_v6, %v5033_v63  ;;  %5661 = vmatpush.bf16.msra.mxu3 %v14669_v3  ;;  %v14678_v63 = vld [vmem:[#allocation230_spill] sm:$0xff]  ;;  %v14679_v6 = vld [vmem:[#allocation236_spill] sm:$0xff] }
 0x502   :  { %v5182_v19 = vpop.f32.mrf.mxu1  ;;  %5710 = vmatpush.bf16.msra.mxu0 %v14670_v28  ;;  %5759 = vmatpush.bf16.msra.mxu1 %v14671_v44  ;;  %v14675_v28 = vld [vmem:[#allocation235_spill] sm:$0xff] }
 0x503   :  { %5230 = vmatmul.bf16.gmra.mxu2 %v12231_v1  ;;  %5328 = vmatmul.bf16.gmra.mxu0 %v12233_v49  ;;  %v5131_v46 = vadd.f32 %v5130_v24, %v5082_v10  ;;  %v14676_v24 = vld [vmem:[#allocation209_spill] sm:$0xff]  ;;  %v9088_v10 = vld [vmem:[#allocation7 + $0x118] sm:$0xf]  ;;  %v14690_v1 = vld [vmem:[#allocation234_spill] sm:$0xff] }
 0x504   :  { %5279 = vmatmul.bf16.gmra.mxu3 %v12235_v7  ;;  %5613 = vmatpush.bf16.msra.mxu2 %v14672_v25  ;;  %v9905_v44 = vld [vmem:[#allocation7 + $0x154] sm:$0xf0]  ;;  %v9906_v25 = vld [vmem:[#allocation7 + $0x15c] sm:$0xf0]  ;;  %v14689_v49 = vld [vmem:[#allocation229_spill] sm:$0xff] }
 0x505   :  { %v12247_v36 = vadd.f32 %v5179_v9, %v5131_v46  ;;  %5377 = vmatmul.bf16.gmra.mxu1 %v12238_v29  ;;  %5662 = vmatpush.bf16.msra.mxu3 %v14673_v57  ;;  %v9096_v46 = vld [vmem:[#allocation7 + $0x120] sm:$0xf] }
 0x506   :  { %v5035_v3 = vpop.f32.mrf.mxu2  ;;  %5711 = vmatpush.bf16.msra.mxu0 %v14674_v15  ;;  %5760 = vmatpush.bf16.msra.mxu1 %v14675_v28  ;;  %v14680_v57 = vld [vmem:[#allocation216_spill] sm:$0xff]  ;;  %v9090_v15 = vld [vmem:[#allocation7 + $0x158] sm:$0xf0]  ;;  %v14681_v28 = vld [vmem:[#allocation217_spill] sm:$0xff]  ;;  %v12267_v29 = vor.u32 %v9906_v25, %v9096_v46 }
 0x507   :  { %v5036_v62 = vadd.f32 %v5035_v3, %v12043_v16  ;;  %v5084_v26 = vpop.f32.mrf.mxu3  ;;  %v9897_v3 = vld [vmem:[#allocation7 + $0x11c] sm:$0xf] }
 0x508   :  { %v5135_v14 = vpop.f32.mrf.mxu0  ;;  %5614 = vmatpush.bf16.msra.mxu2 %v14676_v24  ;;  %v9098_v24 = vld [vmem:[#allocation7 + $0x160] sm:$0xf0]  ;;  %14685 = vst [vmem:[#allocation44_spill] sm:$0xff] %v12267_v29 }
 0x509   :  { %v5085_v40 = vadd.f32 %v5084_v26, %v5036_v62  ;;  %5663 = vmatpush.bf16.msra.mxu3 %v14677_v30  ;;  %v9898_v26 = vld [vmem:[#allocation7 + $0x124] sm:$0xf] }
 0x50a   :  { %v5184_v9 = vpop.f32.mrf.mxu1  ;;  %5712 = vmatpush.bf16.msra.mxu0 %v14678_v63  ;;  %5761 = vmatpush.bf16.msra.mxu1 %v14679_v6  ;;  %v14682_v30 = vld [vmem:[#allocation232_spill] sm:$0xff]  ;;  %v14683_v63 = vld [vmem:[#allocation239_spill] sm:$0xff]  ;;  %v12265_v6 = vor.u32 %v9905_v44, %v9088_v10  ;;  %v12272_v7 = vor.u32 %v9898_v26, %v9098_v24 }
 0x50b   :  { %v5134_v11 = vadd.f32 %v5133_v8, %v5085_v40  ;;  %v9921_v26 = vld [vmem:[#allocation7 + $0x1d4] sm:$0xf0]  ;;  %v9160_v24 = vld [vmem:[#allocation7 + $0x1a0] sm:$0xf] }
 0x50c   :  { %5615 = vmatpush.bf16.msra.mxu2 %v14680_v57  ;;  %14684 = vst [vmem:[#allocation43_spill] sm:$0xff] %v12265_v6  ;;  %v14687_v57 = vld [vmem:[#allocation227_spill] sm:$0xff] }
 0x50d   :  { %v12259_v16 = vadd.f32 %v5182_v19, %v5134_v11  ;;  %5664 = vmatpush.bf16.msra.mxu3 %v14681_v28  ;;  %v12269_v11 = vor.u32 %v9897_v3, %v9090_v15  ;;  %14688 = vst [vmem:[#allocation48_spill] sm:$0xff] %v12272_v7 }
 0x50e   :  { %v5037_v62 = vpop.f32.mrf.mxu2  ;;  %5713 = vmatpush.bf16.msra.mxu0 %v14682_v30  ;;  %5762 = vmatpush.bf16.msra.mxu1 %v14683_v63  ;;  %v14691_v63 = vld [vmem:[#allocation240_spill] sm:$0xff] }
 0x50f   :  { %v5038_v8 = vadd.f32 %v5037_v62, %v12058_v54  ;;  %v5086_v40 = vpop.f32.mrf.mxu3  ;;  %14686 = vst [vmem:[#allocation47_spill] sm:$0xff] %v12269_v11  ;;  %v9152_v62 = vld [vmem:[#allocation7 + $0x198] sm:$0xf] }
 0x510   :  { %v5138_v19 = vpop.f32.mrf.mxu0  ;;  %5616 = vmatpush.bf16.msra.mxu2 %v14687_v57  ;;  %v9154_v57 = vld [vmem:[#allocation7 + $0x1d8] sm:$0xf0] }
 0x511   :  { %v5087_v28 = vadd.f32 %v5086_v40, %v5038_v8  ;;  %5665 = vmatpush.bf16.msra.mxu3 %v14689_v49  ;;  %v9922_v8 = vld [vmem:[#allocation7 + $0x1dc] sm:$0xf0] }
 0x512   :  { %v5187_v30 = vpop.f32.mrf.mxu1  ;;  %5714 = vmatpush.bf16.msra.mxu0 %v14690_v1  ;;  %5763 = vmatpush.bf16.msra.mxu1 %v14691_v63  ;;  %v9162_v63 = vld [vmem:[#allocation7 + $0x1e0] sm:$0xf0] }
 0x513   :  { %5235 = vmatmul.bf16.gmra.mxu2 %v12265_v6  ;;  %5333 = vmatmul.bf16.gmra.mxu0 %v12267_v29  ;;  %v5136_v54 = vadd.f32 %v5135_v14, %v5087_v28  ;;  %v9913_v14 = vld [vmem:[#allocation7 + $0x19c] sm:$0xf]  ;;  %v9914_v28 = vld [vmem:[#allocation7 + $0x1a4] sm:$0xf] }
 0x514   :  { %5284 = vmatmul.bf16.gmra.mxu3 %v12269_v11  ;;  %v14730_v29 = vld [vmem:[#allocation247_spill] sm:$0xff] }
 0x515   :  { %v12280_v10 = vadd.f32 %v5184_v9, %v5136_v54  ;;  %5382 = vmatmul.bf16.gmra.mxu1 %v12272_v7  ;;  %v14731_v6 = vld [vmem:[#allocation259_spill] sm:$0xff] }
 0x516   :  { %v5040_v44 = vpop.f32.mrf.mxu2 }
 0x517   :  { %v5041_v46 = vadd.f32 %v5040_v44, %v12081_v17  ;;  %v5089_v49 = vpop.f32.mrf.mxu3  ;;  %v12287_v17 = vor.u32 %v9921_v26, %v9152_v62  ;;  %v12289_v44 = vor.u32 %v9922_v8, %v9160_v24 }
 0x518   :  { %v5140_v25 = vpop.f32.mrf.mxu0 }
 0x519   :  { %v5090_v3 = vadd.f32 %v5089_v49, %v5041_v46  ;;  %14692 = vst [vmem:[#allocation51_spill] sm:$0xff] %v12287_v17 }
 0x51a   :  { %v5189_v1 = vpop.f32.mrf.mxu1  ;;  %14693 = vst [vmem:[#allocation241_spill] sm:$0xff] %v12289_v44 }
 0x51b   :  { %v5139_v15 = vadd.f32 %v5138_v19, %v5090_v3  ;;  %v12291_v19 = vor.u32 %v9913_v14, %v9154_v57  ;;  %v12293_v3 = vor.u32 %v9914_v28, %v9162_v63  ;;  %v9937_v28 = vld [vmem:[#allocation7 + $0x254] sm:$0xf0]  ;;  %v9224_v63 = vld [vmem:[#allocation7 + $0x220] sm:$0xf] }
 0x51d   :  { %v12284_v40 = vadd.f32 %v5187_v30, %v5139_v15  ;;  %14694 = vst [vmem:[#allocation53_spill] sm:$0xff] %v12291_v19 }
 0x51e   :  { %v5042_v9 = vpop.f32.mrf.mxu2  ;;  %14695 = vst [vmem:[#allocation58_spill] sm:$0xff] %v12293_v3 }
 0x51f   :  { %v5043_v54 = vadd.f32 %v5042_v9, %v12088_v4  ;;  %v5091_v7 = vpop.f32.mrf.mxu3  ;;  %v9216_v9 = vld [vmem:[#allocation7 + $0x218] sm:$0xf] }
 0x520   :  { %v5143_v46 = vpop.f32.mrf.mxu0 }
 0x521   :  { %v5092_v49 = vadd.f32 %v5091_v7, %v5043_v54  ;;  %v9938_v54 = vld [vmem:[#allocation7 + $0x25c] sm:$0xf0] }
 0x522   :  { %v5192_v30 = vpop.f32.mrf.mxu1 }
 0x523   :  { %5240 = vmatmul.bf16.gmra.mxu2 %v12287_v17  ;;  %5338 = vmatmul.bf16.gmra.mxu0 %v12289_v44  ;;  %v5141_v15 = vadd.f32 %v5140_v25, %v5092_v49  ;;  %v9929_v25 = vld [vmem:[#allocation7 + $0x21c] sm:$0xf] }
 0x524   :  { %5289 = vmatmul.bf16.gmra.mxu3 %v12291_v19  ;;  %v9218_v49 = vld [vmem:[#allocation7 + $0x258] sm:$0xf0]  ;;  %v9226_v19 = vld [vmem:[#allocation7 + $0x260] sm:$0xf0] }
 0x525   :  { %v12298_v4 = vadd.f32 %v5189_v1, %v5141_v15  ;;  %5387 = vmatmul.bf16.gmra.mxu1 %v12293_v3  ;;  %v9930_v15 = vld [vmem:[#allocation7 + $0x224] sm:$0xf] }
 0x526   :  { %v5045_v62 = vpop.f32.mrf.mxu2 }
 0x527   :  { %v5046_v26 = vadd.f32 %v5045_v62, %v12103_v32  ;;  %v5094_v24 = vpop.f32.mrf.mxu3  ;;  %v12305_v32 = vor.u32 %v9937_v28, %v9216_v9  ;;  %v12307_v62 = vor.u32 %v9938_v54, %v9224_v63 }
 0x528   :  { %v5145_v8 = vpop.f32.mrf.mxu0 }
 0x529   :  { %v5095_v7 = vadd.f32 %v5094_v24, %v5046_v26  ;;  %14696 = vst [vmem:[#allocation59_spill] sm:$0xff] %v12305_v32 }
 0x52a   :  { %v5194_v14 = vpop.f32.mrf.mxu1  ;;  %14697 = vst [vmem:[#allocation87_spill] sm:$0xff] %v12307_v62 }
 0x52b   :  { %v5144_v57 = vadd.f32 %v5143_v46, %v5095_v7  ;;  %v12309_v46 = vor.u32 %v9929_v25, %v9218_v49  ;;  %v12311_v7 = vor.u32 %v9930_v15, %v9226_v19  ;;  %v9280_v25 = vld [vmem:[#allocation7 + $0x298] sm:$0xf]  ;;  %v9954_v15 = vld [vmem:[#allocation7 + $0x2dc] sm:$0xf0] }
 0x52c   :  { %v9953_v49 = vld [vmem:[#allocation7 + $0x2d4] sm:$0xf0] }
 0x52d   :  { %v12302_v44 = vadd.f32 %v5192_v30, %v5144_v57  ;;  %14698 = vst [vmem:[#allocation96_spill] sm:$0xff] %v12309_v46 }
 0x52e   :  { %v5047_v1 = vpop.f32.mrf.mxu2  ;;  %14699 = vst [vmem:[#allocation62_spill] sm:$0xff] %v12311_v7 }
 0x52f   :  { %v5048_v3 = vadd.f32 %v5047_v1, %v12110_v34  ;;  %v5096_v17 = vpop.f32.mrf.mxu3  ;;  %v9288_v1 = vld [vmem:[#allocation7 + $0x2a0] sm:$0xf] }
 0x530   :  { %v5148_v26 = vpop.f32.mrf.mxu0 }
 0x531   :  { %v5097_v24 = vadd.f32 %v5096_v17, %v5048_v3 }
 0x532   :  { %v5197_v30 = vpop.f32.mrf.mxu1 }
 0x533   :  { %5245 = vmatmul.bf16.gmra.mxu2 %v12305_v32  ;;  %5343 = vmatmul.bf16.gmra.mxu0 %v12307_v62  ;;  %v5146_v57 = vadd.f32 %v5145_v8, %v5097_v24  ;;  %v9945_v8 = vld [vmem:[#allocation7 + $0x29c] sm:$0xf] }
 0x534   :  { %5294 = vmatmul.bf16.gmra.mxu3 %v12309_v46  ;;  %v9282_v24 = vld [vmem:[#allocation7 + $0x2d8] sm:$0xf0]  ;;  %v9290_v46 = vld [vmem:[#allocation7 + $0x2e0] sm:$0xf0] }
 0x535   :  { %v12316_v34 = vadd.f32 %v5194_v14, %v5146_v57  ;;  %5392 = vmatmul.bf16.gmra.mxu1 %v12311_v7  ;;  %v9946_v57 = vld [vmem:[#allocation7 + $0x2a4] sm:$0xf] }
 0x536   :  { %v5050_v9 = vpop.f32.mrf.mxu2 }
 0x537   :  { %v5051_v28 = vadd.f32 %v5050_v9, %v12125_v35  ;;  %v5099_v63 = vpop.f32.mrf.mxu3  ;;  %v12323_v35 = vor.u32 %v9953_v49, %v9280_v25  ;;  %v12325_v9 = vor.u32 %v9954_v15, %v9288_v1 }
 0x538   :  { %v5150_v54 = vpop.f32.mrf.mxu0 }
 0x539   :  { %v5100_v17 = vadd.f32 %v5099_v63, %v5051_v28  ;;  %14700 = vst [vmem:[#allocation63_spill] sm:$0xff] %v12323_v35 }
 0x53a   :  { %v5199_v19 = vpop.f32.mrf.mxu1  ;;  %14701 = vst [vmem:[#allocation90_spill] sm:$0xff] %v12325_v9 }
 0x53b   :  { %v5149_v3 = vadd.f32 %v5148_v26, %v5100_v17  ;;  %v12327_v26 = vor.u32 %v9945_v8, %v9282_v24  ;;  %v12329_v17 = vor.u32 %v9946_v57, %v9290_v46  ;;  %v9344_v8 = vld [vmem:[#allocation7 + $0x318] sm:$0xf]  ;;  %v9970_v57 = vld [vmem:[#allocation7 + $0x35c] sm:$0xf0] }
 0x53c   :  { %v9969_v24 = vld [vmem:[#allocation7 + $0x354] sm:$0xf0] }
 0x53d   :  { %v12320_v62 = vadd.f32 %v5197_v30, %v5149_v3  ;;  %14702 = vst [vmem:[#allocation99_spill] sm:$0xff] %v12327_v26 }
 0x53e   :  { %v5052_v14 = vpop.f32.mrf.mxu2  ;;  %14703 = vst [vmem:[#allocation64_spill] sm:$0xff] %v12329_v17 }
 0x53f   :  { %v5053_v7 = vadd.f32 %v5052_v14, %v12132_v13  ;;  %v5101_v32 = vpop.f32.mrf.mxu3  ;;  %v9352_v14 = vld [vmem:[#allocation7 + $0x320] sm:$0xf] }
 0x540   :  { %v5153_v28 = vpop.f32.mrf.mxu0 }
 0x541   :  { %v5102_v63 = vadd.f32 %v5101_v32, %v5053_v7 }
 0x542   :  { %v5202_v30 = vpop.f32.mrf.mxu1 }
 0x543   :  { %5250 = vmatmul.bf16.gmra.mxu2 %v12323_v35  ;;  %5348 = vmatmul.bf16.gmra.mxu0 %v12325_v9  ;;  %v5151_v3 = vadd.f32 %v5150_v54, %v5102_v63  ;;  %v9961_v54 = vld [vmem:[#allocation7 + $0x31c] sm:$0xf] }
 0x544   :  { %5299 = vmatmul.bf16.gmra.mxu3 %v12327_v26  ;;  %v9346_v63 = vld [vmem:[#allocation7 + $0x358] sm:$0xf0]  ;;  %v9354_v26 = vld [vmem:[#allocation7 + $0x360] sm:$0xf0] }
 0x545   :  { %v12334_v13 = vadd.f32 %v5199_v19, %v5151_v3  ;;  %5397 = vmatmul.bf16.gmra.mxu1 %v12329_v17  ;;  %v9962_v3 = vld [vmem:[#allocation7 + $0x324] sm:$0xf] }
 0x546   :  { %v5055_v25 = vpop.f32.mrf.mxu2 }
 0x547   :  { %v5056_v49 = vadd.f32 %v5055_v25, %v12147_v56  ;;  %v5104_v1 = vpop.f32.mrf.mxu3  ;;  %v12341_v56 = vor.u32 %v9969_v24, %v9344_v8  ;;  %v12343_v25 = vor.u32 %v9970_v57, %v9352_v14 }
 0x548   :  { %v5155_v15 = vpop.f32.mrf.mxu0 }
 0x549   :  { %v5105_v32 = vadd.f32 %v5104_v1, %v5056_v49  ;;  %14704 = vst [vmem:[#allocation65_spill] sm:$0xff] %v12341_v56 }
 0x54a   :  { %v5204_v46 = vpop.f32.mrf.mxu1  ;;  %14705 = vst [vmem:[#allocation91_spill] sm:$0xff] %v12343_v25 }
 0x54b   :  { %v5154_v7 = vadd.f32 %v5153_v28, %v5105_v32  ;;  %v12345_v28 = vor.u32 %v9961_v54, %v9346_v63  ;;  %v12347_v32 = vor.u32 %v9962_v3, %v9354_v26  ;;  %v9408_v54 = vld [vmem:[#allocation7 + $0x398] sm:$0xf]  ;;  %v9986_v3 = vld [vmem:[#allocation7 + $0x3dc] sm:$0xf0] }
 0x54c   :  { %v9985_v63 = vld [vmem:[#allocation7 + $0x3d4] sm:$0xf0] }
 0x54d   :  { %v12338_v9 = vadd.f32 %v5202_v30, %v5154_v7  ;;  %14706 = vst [vmem:[#allocation103_spill] sm:$0xff] %v12345_v28 }
 0x54e   :  { %v5057_v19 = vpop.f32.mrf.mxu2  ;;  %14707 = vst [vmem:[#allocation69_spill] sm:$0xff] %v12347_v32 }
 0x54f   :  { %v5058_v17 = vadd.f32 %v5057_v19, %v12154_v47  ;;  %v5106_v35 = vpop.f32.mrf.mxu3  ;;  %v9416_v19 = vld [vmem:[#allocation7 + $0x3a0] sm:$0xf] }
 0x550   :  { %v5158_v49 = vpop.f32.mrf.mxu0 }
 0x551   :  { %v5107_v1 = vadd.f32 %v5106_v35, %v5058_v17 }
 0x552   :  { %v5207_v30 = vpop.f32.mrf.mxu1 }
 0x553   :  { %5255 = vmatmul.bf16.gmra.mxu2 %v12341_v56  ;;  %5353 = vmatmul.bf16.gmra.mxu0 %v12343_v25  ;;  %v5156_v7 = vadd.f32 %v5155_v15, %v5107_v1  ;;  %v9977_v15 = vld [vmem:[#allocation7 + $0x39c] sm:$0xf] }
 0x554   :  { %5304 = vmatmul.bf16.gmra.mxu3 %v12345_v28  ;;  %v9410_v1 = vld [vmem:[#allocation7 + $0x3d8] sm:$0xf0]  ;;  %v9418_v28 = vld [vmem:[#allocation7 + $0x3e0] sm:$0xf0] }
 0x555   :  { %v12352_v47 = vadd.f32 %v5204_v46, %v5156_v7  ;;  %5402 = vmatmul.bf16.gmra.mxu1 %v12347_v32  ;;  %v9978_v7 = vld [vmem:[#allocation7 + $0x3a4] sm:$0xf] }
 0x556   :  { %v5060_v8 = vpop.f32.mrf.mxu2 }
 0x557   :  { %v5061_v24 = vadd.f32 %v5060_v8, %v12169_v50  ;;  %v5109_v14 = vpop.f32.mrf.mxu3  ;;  %v12359_v50 = vor.u32 %v9985_v63, %v9408_v54  ;;  %v12361_v8 = vor.u32 %v9986_v3, %v9416_v19 }
 0x558   :  { %v5160_v57 = vpop.f32.mrf.mxu0 }
 0x559   :  { %v5110_v35 = vadd.f32 %v5109_v14, %v5061_v24  ;;  %14708 = vst [vmem:[#allocation70_spill] sm:$0xff] %v12359_v50 }
 0x55a   :  { %v5209_v26 = vpop.f32.mrf.mxu1  ;;  %14709 = vst [vmem:[#allocation94_spill] sm:$0xff] %v12361_v8 }
 0x55b   :  { %v5159_v17 = vadd.f32 %v5158_v49, %v5110_v35  ;;  %v12363_v49 = vor.u32 %v9977_v15, %v9410_v1  ;;  %v12365_v35 = vor.u32 %v9978_v7, %v9418_v28  ;;  %v8976_v15 = vld [vmem:[#allocation7 + $0x28] sm:$0xf]  ;;  %v9876_v7 = vld [vmem:[#allocation7 + $0x6c] sm:$0xf0] }
 0x55c   :  { %v9875_v1 = vld [vmem:[#allocation7 + $0x64] sm:$0xf0] }
 0x55d   :  { %v12356_v25 = vadd.f32 %v5207_v30, %v5159_v17  ;;  %14710 = vst [vmem:[#allocation105_spill] sm:$0xff] %v12363_v49 }
 0x55e   :  { %v5062_v46 = vpop.f32.mrf.mxu2  ;;  %14711 = vst [vmem:[#allocation75_spill] sm:$0xff] %v12365_v35 }
 0x55f   :  { %v5063_v32 = vadd.f32 %v5062_v46, %v12176_v20  ;;  %v5111_v56 = vpop.f32.mrf.mxu3  ;;  %v8984_v46 = vld [vmem:[#allocation7 + $0x30] sm:$0xf] }
 0x560   :  { %v5163_v24 = vpop.f32.mrf.mxu0 }
 0x561   :  { %v5112_v14 = vadd.f32 %v5111_v56, %v5063_v32 }
 0x562   :  { %v5212_v30 = vpop.f32.mrf.mxu1 }
 0x563   :  { %5260 = vmatmul.bf16.gmra.mxu2 %v12359_v50  ;;  %5358 = vmatmul.bf16.gmra.mxu0 %v12361_v8  ;;  %v5161_v17 = vadd.f32 %v5160_v57, %v5112_v14  ;;  %v9867_v57 = vld [vmem:[#allocation7 + $0x2c] sm:$0xf] }
 0x564   :  { %5309 = vmatmul.bf16.gmra.mxu3 %v12363_v49  ;;  %v8978_v14 = vld [vmem:[#allocation7 + $0x68] sm:$0xf0]  ;;  %v8986_v49 = vld [vmem:[#allocation7 + $0x70] sm:$0xf0] }
 0x565   :  { %v12370_v20 = vadd.f32 %v5209_v26, %v5161_v17  ;;  %5407 = vmatmul.bf16.gmra.mxu1 %v12365_v35  ;;  %v9868_v17 = vld [vmem:[#allocation7 + $0x34] sm:$0xf] }
 0x566   :  { %v5065_v54 = vpop.f32.mrf.mxu2 }
 0x567   :  { %v5066_v63 = vadd.f32 %v5065_v54, %v12191_v41  ;;  %v5114_v19 = vpop.f32.mrf.mxu3  ;;  %v12377_v41 = vor.u32 %v9875_v1, %v8976_v15  ;;  %v12379_v54 = vor.u32 %v9876_v7, %v8984_v46  ;;  %v14717_v1 = vld [vmem:[#allocation238_spill] sm:$0xff] }
 0x568   :  { %v5165_v3 = vpop.f32.mrf.mxu0 }
 0x569   :  { %v5115_v56 = vadd.f32 %v5114_v19, %v5066_v63  ;;  %14712 = vst [vmem:[#allocation76_spill] sm:$0xff] %v12377_v41 }
 0x56a   :  { %v5214_v28 = vpop.f32.mrf.mxu1  ;;  %14713 = vst [vmem:[#allocation98_spill] sm:$0xff] %v12379_v54 }
 0x56b   :  { %v5164_v32 = vadd.f32 %v5163_v24, %v5115_v56  ;;  %v12381_v24 = vor.u32 %v9867_v57, %v8978_v14  ;;  %v12383_v56 = vor.u32 %v9868_v17, %v8986_v49  ;;  %v14719_v49 = vld [vmem:[#allocation260_spill] sm:$0xff]  ;;  %v14722_v17 = vld [vmem:[#allocation257_spill] sm:$0xff] }
 0x56d   :  { %v12374_v8 = vadd.f32 %v5212_v30, %v5164_v32  ;;  %14714 = vst [vmem:[#allocation110_spill] sm:$0xff] %v12381_v24 }
 0x56e   :  { %v5067_v26 = vpop.f32.mrf.mxu2  ;;  %14715 = vst [vmem:[#allocation81_spill] sm:$0xff] %v12383_v56 }
 0x56f   :  { %v5068_v35 = vadd.f32 %v5067_v26, %v12198_v5  ;;  %v5116_v50 = vpop.f32.mrf.mxu3  ;;  %v14716_v5 = vld [vmem:[#allocation237_spill] sm:$0xff]  ;;  %v14721_v26 = vld [vmem:[#allocation243_spill] sm:$0xff] }
 0x570   :  { %v5324_v63 = vpop.f32.mrf.mxu0 }
 0x571   :  { %v5117_v19 = vadd.f32 %v5116_v50, %v5068_v35  ;;  %v14718_v50 = vld [vmem:[#allocation254_spill] sm:$0xff] }
 0x572   :  { %v5373_v30 = vpop.f32.mrf.mxu1 }
 0x573   :  { %5421 = vmatmul.bf16.vlgmr.msrb.gmra.mxu2 %v12377_v41  ;;  %5519 = vmatmul.bf16.vlgmr.msrb.gmra.mxu0 %v12379_v54  ;;  %v5166_v32 = vadd.f32 %v5165_v3, %v5117_v19  ;;  %v14720_v3 = vld [vmem:[#allocation242_spill] sm:$0xff] }
 0x574   :  { %5470 = vmatmul.bf16.vlgmr.msrb.gmra.mxu3 %v12381_v24  ;;  %5805 = vmatpush.bf16.msrb.mxu2 %v14716_v5  ;;  %v14723_v19 = vld [vmem:[#allocation262_spill] sm:$0xff]  ;;  %v9040_v5 = vld [vmem:[#allocation7 + $0xa8] sm:$0xf]  ;;  %v9042_v24 = vld [vmem:[#allocation7 + $0xe8] sm:$0xf0] }
 0x575   :  { %v12389_v15 = vadd.f32 %v5214_v28, %v5166_v32  ;;  %5568 = vmatmul.bf16.vlgmr.msrb.gmra.mxu1 %v12383_v56  ;;  %5854 = vmatpush.bf16.msrb.mxu3 %v14717_v1  ;;  %v9891_v1 = vld [vmem:[#allocation7 + $0xe4] sm:$0xf0]  ;;  %v9892_v56 = vld [vmem:[#allocation7 + $0xec] sm:$0xf0] }
 0x576   :  { %v5226_v46 = vpop.f32.mrf.mxu2  ;;  %5903 = vmatpush.bf16.msrb.mxu0 %v14718_v50  ;;  %5952 = vmatpush.bf16.msrb.mxu1 %v14719_v49  ;;  %v9048_v50 = vld [vmem:[#allocation7 + $0xb0] sm:$0xf]  ;;  %v14724_v49 = vld [vmem:[#allocation244_spill] sm:$0xff] }
 0x577   :  { %v5227_v35 = vadd.f32 %v5226_v46, %v12225_v12  ;;  %v5275_v7 = vpop.f32.mrf.mxu3  ;;  %v9883_v46 = vld [vmem:[#allocation7 + $0xac] sm:$0xf]  ;;  %v14726_v54 = vld [vmem:[#allocation258_spill] sm:$0xff]  ;;  %v12409_v41 = vor.u32 %v9892_v56, %v9048_v50 }
 0x578   :  { %v5326_v57 = vpop.f32.mrf.mxu0  ;;  %5806 = vmatpush.bf16.msrb.mxu2 %v14720_v3  ;;  %v14725_v3 = vld [vmem:[#allocation245_spill] sm:$0xff] }
 0x579   :  { %v5276_v14 = vadd.f32 %v5275_v7, %v5227_v35  ;;  %5855 = vmatpush.bf16.msrb.mxu3 %v14721_v26  ;;  %v9884_v7 = vld [vmem:[#allocation7 + $0xb4] sm:$0xf] }
 0x57a   :  { %v5375_v28 = vpop.f32.mrf.mxu1  ;;  %5904 = vmatpush.bf16.msrb.mxu0 %v14722_v17  ;;  %5953 = vmatpush.bf16.msrb.mxu1 %v14723_v19  ;;  %v9050_v26 = vld [vmem:[#allocation7 + $0xf0] sm:$0xf0]  ;;  %v12407_v19 = vor.u32 %v9891_v1, %v9040_v5  ;;  %v14734_v5 = vld [vmem:[#allocation249_spill] sm:$0xff] }
 0x57b   :  { %v5325_v32 = vadd.f32 %v5324_v63, %v5276_v14  ;;  %v14727_v17 = vld [vmem:[#allocation266_spill] sm:$0xff]  ;;  %v12414_v11 = vor.u32 %v9884_v7, %v9050_v26  ;;  %v14735_v1 = vld [vmem:[#allocation261_spill] sm:$0xff]  ;;  %v14737_v7 = vld [vmem:[#allocation251_spill] sm:$0xff] }
 0x57c   :  { %5807 = vmatpush.bf16.msrb.mxu2 %v14724_v49  ;;  %v14728_v49 = vld [vmem:[#allocation246_spill] sm:$0xff]  ;;  %v14738_v26 = vld [vmem:[#allocation265_spill] sm:$0xff] }
 0x57d   :  { %v12401_v12 = vadd.f32 %v5373_v30, %v5325_v32  ;;  %5856 = vmatpush.bf16.msrb.mxu3 %v14725_v3  ;;  %v12411_v32 = vor.u32 %v9883_v46, %v9042_v24  ;;  %14729 = vst [vmem:[#allocation82_spill] sm:$0xff] %v12414_v11  ;;  %v14733_v24 = vld [vmem:[#allocation248_spill] sm:$0xff] }
 0x57e   :  { %v5228_v35 = vpop.f32.mrf.mxu2  ;;  %5905 = vmatpush.bf16.msrb.mxu0 %v14726_v54  ;;  %5954 = vmatpush.bf16.msrb.mxu1 %v14727_v17  ;;  %v14732_v17 = vld [vmem:[#allocation268_spill] sm:$0xff] }
 0x57f   :  { %v5229_v63 = vadd.f32 %v5228_v35, %v12247_v36  ;;  %v5277_v14 = vpop.f32.mrf.mxu3 }
 0x580   :  { %v5329_v30 = vpop.f32.mrf.mxu0  ;;  %5808 = vmatpush.bf16.msrb.mxu2 %v14728_v49  ;;  %v9907_v49 = vld [vmem:[#allocation7 + $0x164] sm:$0xf0] }
 0x581   :  { %v5278_v3 = vadd.f32 %v5277_v14, %v5229_v63  ;;  %5857 = vmatpush.bf16.msrb.mxu3 %v14730_v29  ;;  %v9104_v14 = vld [vmem:[#allocation7 + $0x128] sm:$0xf] }
 0x582   :  { %v5378_v54 = vpop.f32.mrf.mxu1  ;;  %5906 = vmatpush.bf16.msrb.mxu0 %v14731_v6  ;;  %5955 = vmatpush.bf16.msrb.mxu1 %v14732_v17  ;;  %v9908_v17 = vld [vmem:[#allocation7 + $0x16c] sm:$0xf0] }
 0x583   :  { %5426 = vmatmul.bf16.gmra.mxu2 %v12407_v19  ;;  %5524 = vmatmul.bf16.gmra.mxu0 %v12409_v41  ;;  %v5327_v36 = vadd.f32 %v5326_v57, %v5278_v3  ;;  %v14736_v57 = vld [vmem:[#allocation250_spill] sm:$0xff] }
 0x584   :  { %5475 = vmatmul.bf16.gmra.mxu3 %v12411_v32  ;;  %5809 = vmatpush.bf16.msrb.mxu2 %v14733_v24  ;;  %v9112_v3 = vld [vmem:[#allocation7 + $0x130] sm:$0xf]  ;;  %v9106_v24 = vld [vmem:[#allocation7 + $0x168] sm:$0xf0] }
 0x585   :  { %v12423_v56 = vadd.f32 %v5375_v28, %v5327_v36  ;;  %5573 = vmatmul.bf16.gmra.mxu1 %v12414_v11  ;;  %5858 = vmatpush.bf16.msrb.mxu3 %v14734_v5  ;;  %v9899_v36 = vld [vmem:[#allocation7 + $0x12c] sm:$0xf]  ;;  %v14740_v5 = vld [vmem:[#allocation256_spill] sm:$0xff] }
 0x586   :  { %v5231_v29 = vpop.f32.mrf.mxu2  ;;  %5907 = vmatpush.bf16.msrb.mxu0 %v14735_v1  ;;  %5956 = vmatpush.bf16.msrb.mxu1 %v11252_v39  ;;  %v14739_v39 = vld [vmem:[#allocation255_spill] sm:$0xff]  ;;  %v9900_v1 = vld [vmem:[#allocation7 + $0x134] sm:$0xf]  ;;  %v14745_v11 = vld [vmem:[#allocation269_spill] sm:$0xff] }
 0x587   :  { %v5232_v6 = vadd.f32 %v5231_v29, %v12259_v16  ;;  %v5280_v50 = vpop.f32.mrf.mxu3 }
 0x588   :  { %v5331_v46 = vpop.f32.mrf.mxu0  ;;  %5810 = vmatpush.bf16.msrb.mxu2 %v14736_v57  ;;  %v12441_v57 = vor.u32 %v9907_v49, %v9104_v14 }
 0x589   :  { %v5281_v35 = vadd.f32 %v5280_v50, %v5232_v6  ;;  %5859 = vmatpush.bf16.msrb.mxu3 %v14737_v7  ;;  %v9114_v6 = vld [vmem:[#allocation7 + $0x170] sm:$0xf0]  ;;  %v14741_v50 = vld [vmem:[#allocation267_spill] sm:$0xff]  ;;  %v12445_v7 = vor.u32 %v9899_v36, %v9106_v24 }
 0x58a   :  { %v5380_v28 = vpop.f32.mrf.mxu1  ;;  %5908 = vmatpush.bf16.msrb.mxu0 %v14738_v26  ;;  %5957 = vmatpush.bf16.msrb.mxu1 %v11258_v53  ;;  %v14742_v26 = vld [vmem:[#allocation263_spill] sm:$0xff] }
 0x58b   :  { %v5330_v63 = vadd.f32 %v5329_v30, %v5281_v35  ;;  %v12443_v35 = vor.u32 %v9908_v17, %v9112_v3 }
 0x58c   :  { %5811 = vmatpush.bf16.msrb.mxu2 %v14739_v39  ;;  %v12448_v39 = vor.u32 %v9900_v1, %v9114_v6  ;;  %v9168_v1 = vld [vmem:[#allocation7 + $0x1a8] sm:$0xf] }
 0x58d   :  { %v12435_v16 = vadd.f32 %v5378_v54, %v5330_v63  ;;  %5860 = vmatpush.bf16.msrb.mxu3 %v14740_v5  ;;  %v14744_v5 = vld [vmem:[#allocation264_spill] sm:$0xff]  ;;  %v9923_v6 = vld [vmem:[#allocation7 + $0x1e4] sm:$0xf0] }
 0x58e   :  { %v5233_v29 = vpop.f32.mrf.mxu2  ;;  %5909 = vmatpush.bf16.msrb.mxu0 %v14741_v50  ;;  %5958 = vmatpush.bf16.msrb.mxu1 %v11271_v60  ;;  %14743 = vst [vmem:[#allocation102_spill] sm:$0xff] %v12448_v39  ;;  %v14746_v60 = vld [vmem:[#allocation272_spill] sm:$0xff] }
 0x58f   :  { %v5234_v53 = vadd.f32 %v5233_v29, %v12280_v10  ;;  %v5282_v30 = vpop.f32.mrf.mxu3 }
 0x590   :  { %v5334_v54 = vpop.f32.mrf.mxu0  ;;  %5812 = vmatpush.bf16.msrb.mxu2 %v14742_v26 }
 0x591   :  { %v5283_v63 = vadd.f32 %v5282_v30, %v5234_v53  ;;  %5861 = vmatpush.bf16.msrb.mxu3 %v14744_v5  ;;  %v9176_v53 = vld [vmem:[#allocation7 + $0x1b0] sm:$0xf]  ;;  %v9916_v5 = vld [vmem:[#allocation7 + $0x1b4] sm:$0xf] }
 0x592   :  { %v5383_v50 = vpop.f32.mrf.mxu1  ;;  %5910 = vmatpush.bf16.msrb.mxu0 %v14745_v11  ;;  %5959 = vmatpush.bf16.msrb.mxu1 %v14746_v60  ;;  %v9924_v30 = vld [vmem:[#allocation7 + $0x1ec] sm:$0xf0]  ;;  %v9178_v60 = vld [vmem:[#allocation7 + $0x1f0] sm:$0xf0] }
 0x593   :  { %5431 = vmatmul.bf16.gmra.mxu2 %v12441_v57  ;;  %5529 = vmatmul.bf16.gmra.mxu0 %v12443_v35  ;;  %v5332_v10 = vadd.f32 %v5331_v46, %v5283_v63  ;;  %v9915_v46 = vld [vmem:[#allocation7 + $0x1ac] sm:$0xf] }
 0x594   :  { %5480 = vmatmul.bf16.gmra.mxu3 %v12445_v7  ;;  %v9170_v63 = vld [vmem:[#allocation7 + $0x1e8] sm:$0xf0] }
 0x595   :  { %v12456_v14 = vadd.f32 %v5380_v28, %v5332_v10  ;;  %5578 = vmatmul.bf16.gmra.mxu1 %v12448_v39 }
 0x596   :  { %v5236_v49 = vpop.f32.mrf.mxu2 }
 0x597   :  { %v5237_v3 = vadd.f32 %v5236_v49, %v12284_v40  ;;  %v5285_v17 = vpop.f32.mrf.mxu3  ;;  %v12463_v40 = vor.u32 %v9923_v6, %v9168_v1  ;;  %v12465_v49 = vor.u32 %v9924_v30, %v9176_v53 }
 0x598   :  { %v5336_v36 = vpop.f32.mrf.mxu0 }
 0x599   :  { %v5286_v24 = vadd.f32 %v5285_v17, %v5237_v3  ;;  %14747 = vst [vmem:[#allocation112_spill] sm:$0xff] %v12463_v40 }
 0x59a   :  { %v5385_v11 = vpop.f32.mrf.mxu1  ;;  %14748 = vst [vmem:[#allocation88_spill] sm:$0xff] %v12465_v49 }
 0x59b   :  { %v5335_v29 = vadd.f32 %v5334_v54, %v5286_v24  ;;  %v12467_v54 = vor.u32 %v9915_v46, %v9170_v63  ;;  %v12469_v24 = vor.u32 %v9916_v5, %v9178_v60  ;;  %v9939_v5 = vld [vmem:[#allocation7 + $0x264] sm:$0xf0]  ;;  %v9240_v60 = vld [vmem:[#allocation7 + $0x230] sm:$0xf] }
 0x59d   :  { %v12460_v26 = vadd.f32 %v5383_v50, %v5335_v29  ;;  %14749 = vst [vmem:[#allocation89_spill] sm:$0xff] %v12467_v54 }
 0x59e   :  { %v5238_v28 = vpop.f32.mrf.mxu2  ;;  %14750 = vst [vmem:[#allocation104_spill] sm:$0xff] %v12469_v24 }
 0x59f   :  { %v5239_v10 = vadd.f32 %v5238_v28, %v12298_v4  ;;  %v5287_v39 = vpop.f32.mrf.mxu3  ;;  %v9232_v28 = vld [vmem:[#allocation7 + $0x228] sm:$0xf] }
 0x5a0   :  { %v5339_v3 = vpop.f32.mrf.mxu0 }
 0x5a1   :  { %v5288_v17 = vadd.f32 %v5287_v39, %v5239_v10  ;;  %v9940_v10 = vld [vmem:[#allocation7 + $0x26c] sm:$0xf0] }
 0x5a2   :  { %v5388_v50 = vpop.f32.mrf.mxu1 }
 0x5a3   :  { %5436 = vmatmul.bf16.gmra.mxu2 %v12463_v40  ;;  %5534 = vmatmul.bf16.gmra.mxu0 %v12465_v49  ;;  %v5337_v29 = vadd.f32 %v5336_v36, %v5288_v17  ;;  %v9931_v36 = vld [vmem:[#allocation7 + $0x22c] sm:$0xf] }
 0x5a4   :  { %5485 = vmatmul.bf16.gmra.mxu3 %v12467_v54  ;;  %v9234_v17 = vld [vmem:[#allocation7 + $0x268] sm:$0xf0]  ;;  %v9242_v54 = vld [vmem:[#allocation7 + $0x270] sm:$0xf0] }
 0x5a5   :  { %v12474_v4 = vadd.f32 %v5385_v11, %v5337_v29  ;;  %5583 = vmatmul.bf16.gmra.mxu1 %v12469_v24  ;;  %v9932_v29 = vld [vmem:[#allocation7 + $0x234] sm:$0xf] }
 0x5a6   :  { %v5241_v1 = vpop.f32.mrf.mxu2 }
 0x5a7   :  { %v5242_v6 = vadd.f32 %v5241_v1, %v12302_v44  ;;  %v5290_v53 = vpop.f32.mrf.mxu3  ;;  %v12481_v44 = vor.u32 %v9939_v5, %v9232_v28  ;;  %v12483_v1 = vor.u32 %v9940_v10, %v9240_v60 }
 0x5a8   :  { %v5341_v30 = vpop.f32.mrf.mxu0 }
 0x5a9   :  { %v5291_v39 = vadd.f32 %v5290_v53, %v5242_v6  ;;  %14751 = vst [vmem:[#allocation115_spill] sm:$0xff] %v12481_v44 }
 0x5aa   :  { %v5390_v46 = vpop.f32.mrf.mxu1  ;;  %14752 = vst [vmem:[#allocation100_spill] sm:$0xff] %v12483_v1 }
 0x5ab   :  { %v5340_v63 = vadd.f32 %v5339_v3, %v5291_v39  ;;  %v12485_v3 = vor.u32 %v9931_v36, %v9234_v17  ;;  %v12487_v39 = vor.u32 %v9932_v29, %v9242_v54  ;;  %v9296_v36 = vld [vmem:[#allocation7 + $0x2a8] sm:$0xf]  ;;  %v9956_v29 = vld [vmem:[#allocation7 + $0x2ec] sm:$0xf0] }
 0x5ac   :  { %v9955_v17 = vld [vmem:[#allocation7 + $0x2e4] sm:$0xf0] }
 0x5ad   :  { %v12478_v49 = vadd.f32 %v5388_v50, %v5340_v63  ;;  %14753 = vst [vmem:[#allocation101_spill] sm:$0xff] %v12485_v3 }
 0x5ae   :  { %v5243_v11 = vpop.f32.mrf.mxu2  ;;  %14754 = vst [vmem:[#allocation108_spill] sm:$0xff] %v12487_v39 }
 0x5af   :  { %v5244_v24 = vadd.f32 %v5243_v11, %v12316_v34  ;;  %v5292_v40 = vpop.f32.mrf.mxu3  ;;  %v9304_v11 = vld [vmem:[#allocation7 + $0x2b0] sm:$0xf] }
 0x5b0   :  { %v5344_v6 = vpop.f32.mrf.mxu0 }
 0x5b1   :  { %v5293_v53 = vadd.f32 %v5292_v40, %v5244_v24 }
 0x5b2   :  { %v5393_v50 = vpop.f32.mrf.mxu1 }
 0x5b3   :  { %5441 = vmatmul.bf16.gmra.mxu2 %v12481_v44  ;;  %5539 = vmatmul.bf16.gmra.mxu0 %v12483_v1  ;;  %v5342_v63 = vadd.f32 %v5341_v30, %v5293_v53  ;;  %v9947_v30 = vld [vmem:[#allocation7 + $0x2ac] sm:$0xf] }
 0x5b4   :  { %5490 = vmatmul.bf16.gmra.mxu3 %v12485_v3  ;;  %v9298_v53 = vld [vmem:[#allocation7 + $0x2e8] sm:$0xf0]  ;;  %v9306_v3 = vld [vmem:[#allocation7 + $0x2f0] sm:$0xf0] }
 0x5b5   :  { %v12492_v34 = vadd.f32 %v5390_v46, %v5342_v63  ;;  %5588 = vmatmul.bf16.gmra.mxu1 %v12487_v39  ;;  %v9948_v63 = vld [vmem:[#allocation7 + $0x2b4] sm:$0xf] }
 0x5b6   :  { %v5246_v28 = vpop.f32.mrf.mxu2 }
 0x5b7   :  { %v5247_v5 = vadd.f32 %v5246_v28, %v12320_v62  ;;  %v5295_v60 = vpop.f32.mrf.mxu3  ;;  %v12499_v62 = vor.u32 %v9955_v17, %v9296_v36  ;;  %v12501_v28 = vor.u32 %v9956_v29, %v9304_v11 }
 0x5b8   :  { %v5346_v10 = vpop.f32.mrf.mxu0 }
 0x5b9   :  { %v5296_v40 = vadd.f32 %v5295_v60, %v5247_v5  ;;  %14755 = vst [vmem:[#allocation116_spill] sm:$0xff] %v12499_v62 }
 0x5ba   :  { %v5395_v54 = vpop.f32.mrf.mxu1  ;;  %14756 = vst [vmem:[#allocation252_spill] sm:$0xff] %v12501_v28 }
 0x5bb   :  { %v5345_v24 = vadd.f32 %v5344_v6, %v5296_v40  ;;  %v12503_v6 = vor.u32 %v9947_v30, %v9298_v53  ;;  %v12505_v40 = vor.u32 %v9948_v63, %v9306_v3  ;;  %v9360_v30 = vld [vmem:[#allocation7 + $0x328] sm:$0xf]  ;;  %v9972_v63 = vld [vmem:[#allocation7 + $0x36c] sm:$0xf0] }
 0x5bc   :  { %v9971_v53 = vld [vmem:[#allocation7 + $0x364] sm:$0xf0] }
 0x5bd   :  { %v12496_v1 = vadd.f32 %v5393_v50, %v5345_v24  ;;  %14757 = vst [vmem:[#allocation253_spill] sm:$0xff] %v12503_v6 }
 0x5be   :  { %v5248_v46 = vpop.f32.mrf.mxu2  ;;  %14758 = vst [vmem:[#allocation113_spill] sm:$0xff] %v12505_v40 }
 0x5bf   :  { %v5249_v39 = vadd.f32 %v5248_v46, %v12334_v13  ;;  %v5297_v44 = vpop.f32.mrf.mxu3  ;;  %v9368_v46 = vld [vmem:[#allocation7 + $0x330] sm:$0xf] }
 0x5c0   :  { %v5349_v5 = vpop.f32.mrf.mxu0 }
 0x5c1   :  { %v5298_v60 = vadd.f32 %v5297_v44, %v5249_v39 }
 0x5c2   :  { %v5398_v50 = vpop.f32.mrf.mxu1 }
 0x5c3   :  { %5446 = vmatmul.bf16.gmra.mxu2 %v12499_v62  ;;  %5544 = vmatmul.bf16.gmra.mxu0 %v12501_v28  ;;  %v5347_v24 = vadd.f32 %v5346_v10, %v5298_v60  ;;  %v9963_v10 = vld [vmem:[#allocation7 + $0x32c] sm:$0xf] }
 0x5c4   :  { %5495 = vmatmul.bf16.gmra.mxu3 %v12503_v6  ;;  %v9362_v60 = vld [vmem:[#allocation7 + $0x368] sm:$0xf0]  ;;  %v9370_v6 = vld [vmem:[#allocation7 + $0x370] sm:$0xf0] }
 0x5c5   :  { %v12510_v13 = vadd.f32 %v5395_v54, %v5347_v24  ;;  %5593 = vmatmul.bf16.gmra.mxu1 %v12505_v40  ;;  %v9964_v24 = vld [vmem:[#allocation7 + $0x334] sm:$0xf] }
 0x5c6   :  { %v5251_v36 = vpop.f32.mrf.mxu2 }
 0x5c7   :  { %v5252_v17 = vadd.f32 %v5251_v36, %v12338_v9  ;;  %v5300_v11 = vpop.f32.mrf.mxu3  ;;  %v12517_v9 = vor.u32 %v9971_v53, %v9360_v30  ;;  %v12519_v36 = vor.u32 %v9972_v63, %v9368_v46 }
 0x5c8   :  { %v5351_v29 = vpop.f32.mrf.mxu0 }
 0x5c9   :  { %v5301_v44 = vadd.f32 %v5300_v11, %v5252_v17  ;;  %14759 = vst [vmem:[#allocation114_spill] sm:$0xff] %v12517_v9 }
 0x5ca   :  { %v5400_v3 = vpop.f32.mrf.mxu1  ;;  %14760 = vst [vmem:[#allocation151_spill] sm:$0xff] %v12519_v36 }
 0x5cb   :  { %v5350_v39 = vadd.f32 %v5349_v5, %v5301_v44  ;;  %v12521_v5 = vor.u32 %v9963_v10, %v9362_v60  ;;  %v12523_v44 = vor.u32 %v9964_v24, %v9370_v6  ;;  %v9424_v10 = vld [vmem:[#allocation7 + $0x3a8] sm:$0xf]  ;;  %v9988_v24 = vld [vmem:[#allocation7 + $0x3ec] sm:$0xf0] }
 0x5cc   :  { %v9987_v60 = vld [vmem:[#allocation7 + $0x3e4] sm:$0xf0] }
 0x5cd   :  { %v12514_v28 = vadd.f32 %v5398_v50, %v5350_v39  ;;  %14761 = vst [vmem:[#allocation160_spill] sm:$0xff] %v12521_v5 }
 0x5ce   :  { %v5253_v54 = vpop.f32.mrf.mxu2  ;;  %14762 = vst [vmem:[#allocation121_spill] sm:$0xff] %v12523_v44 }
 0x5cf   :  { %v5254_v40 = vadd.f32 %v5253_v54, %v12352_v47  ;;  %v5302_v62 = vpop.f32.mrf.mxu3  ;;  %v9432_v54 = vld [vmem:[#allocation7 + $0x3b0] sm:$0xf] }
 0x5d0   :  { %v5354_v17 = vpop.f32.mrf.mxu0 }
 0x5d1   :  { %v5303_v11 = vadd.f32 %v5302_v62, %v5254_v40 }
 0x5d2   :  { %v5403_v50 = vpop.f32.mrf.mxu1 }
 0x5d3   :  { %5451 = vmatmul.bf16.gmra.mxu2 %v12517_v9  ;;  %5549 = vmatmul.bf16.gmra.mxu0 %v12519_v36  ;;  %v5352_v39 = vadd.f32 %v5351_v29, %v5303_v11  ;;  %v9979_v29 = vld [vmem:[#allocation7 + $0x3ac] sm:$0xf] }
 0x5d4   :  { %5500 = vmatmul.bf16.gmra.mxu3 %v12521_v5  ;;  %v9426_v11 = vld [vmem:[#allocation7 + $0x3e8] sm:$0xf0]  ;;  %v9434_v5 = vld [vmem:[#allocation7 + $0x3f0] sm:$0xf0] }
 0x5d5   :  { %v12528_v47 = vadd.f32 %v5400_v3, %v5352_v39  ;;  %5598 = vmatmul.bf16.gmra.mxu1 %v12523_v44  ;;  %v9980_v39 = vld [vmem:[#allocation7 + $0x3b4] sm:$0xf] }
 0x5d6   :  { %v5256_v30 = vpop.f32.mrf.mxu2 }
 0x5d7   :  { %v5257_v53 = vadd.f32 %v5256_v30, %v12356_v25  ;;  %v5305_v46 = vpop.f32.mrf.mxu3  ;;  %v12535_v25 = vor.u32 %v9987_v60, %v9424_v10  ;;  %v12537_v30 = vor.u32 %v9988_v24, %v9432_v54 }
 0x5d8   :  { %v5356_v63 = vpop.f32.mrf.mxu0 }
 0x5d9   :  { %v5306_v62 = vadd.f32 %v5305_v46, %v5257_v53  ;;  %14763 = vst [vmem:[#allocation122_spill] sm:$0xff] %v12537_v30 }
 0x5da   :  { %v5405_v6 = vpop.f32.mrf.mxu1 }
 0x5db   :  { %v5355_v40 = vadd.f32 %v5354_v17, %v5306_v62  ;;  %v12539_v17 = vor.u32 %v9979_v29, %v9426_v11  ;;  %v12541_v62 = vor.u32 %v9980_v39, %v9434_v5  ;;  %v8992_v29 = vld [vmem:[#allocation7 + $0x38] sm:$0xf]  ;;  %v9869_v39 = vld [vmem:[#allocation7 + $0x3c] sm:$0xf] }
 0x5dc   :  { %v9877_v11 = vld [vmem:[#allocation7 + $0x74] sm:$0xf0] }
 0x5dd   :  { %v12532_v36 = vadd.f32 %v5403_v50, %v5355_v40  ;;  %14764 = vst [vmem:[#allocation154_spill] sm:$0xff] %v12539_v17 }
 0x5de   :  { %v5258_v3 = vpop.f32.mrf.mxu2  ;;  %14765 = vst [vmem:[#allocation164_spill] sm:$0xff] %v12541_v62 }
 0x5df   :  { %v5259_v44 = vadd.f32 %v5258_v3, %v12370_v20  ;;  %v5307_v9 = vpop.f32.mrf.mxu3 }
 0x5e0   :  { %v5359_v53 = vpop.f32.mrf.mxu0 }
 0x5e1   :  { %v5308_v46 = vadd.f32 %v5307_v9, %v5259_v44 }
 0x5e2   :  { %v5408_v50 = vpop.f32.mrf.mxu1 }
 0x5e3   :  { %5456 = vmatmul.bf16.gmra.mxu2 %v12535_v25  ;;  %5554 = vmatmul.bf16.gmra.mxu0 %v12537_v30  ;;  %v5357_v40 = vadd.f32 %v5356_v63, %v5308_v46  ;;  %v8994_v63 = vld [vmem:[#allocation7 + $0x78] sm:$0xf0] }
 0x5e4   :  { %5505 = vmatmul.bf16.gmra.mxu3 %v12539_v17  ;;  %v12553_v17 = vor.u32 %v9877_v11, %v8992_v29  ;;  %v12555_v30 = vor.u32 %v9869_v39, %v8994_v63  ;;  %v14768_v29 = vld [vmem:[#allocation85_spill] sm:$0xff]  ;;  %v9056_v39 = vld [vmem:[#allocation7 + $0xb8] sm:$0xf] }
 0x5e5   :  { %v12546_v20 = vadd.f32 %v5405_v6, %v5357_v40  ;;  %5603 = vmatmul.bf16.gmra.mxu1 %v12541_v62  ;;  %v9893_v63 = vld [vmem:[#allocation7 + $0xf4] sm:$0xf0] }
 0x5e6   :  { %v5261_v10 = vpop.f32.mrf.mxu2 }
 0x5e7   :  { %v5262_v60 = vadd.f32 %v5261_v10, %v12374_v8  ;;  %v5310_v54 = vpop.f32.mrf.mxu3 }
 0x5e8   :  { %v5361_v24 = vpop.f32.mrf.mxu0 }
 0x5e9   :  { %v5311_v9 = vadd.f32 %v5310_v54, %v5262_v60 }
 0x5ea   :  { %v5410_v5 = vpop.f32.mrf.mxu1 }
 0x5eb   :  { %v5360_v44 = vadd.f32 %v5359_v53, %v5311_v9 }
 0x5ed   :  { %v12550_v3 = vadd.f32 %v5408_v50, %v5360_v44  ;;  %v14766_v50 = vld [vmem:[#allocation270_spill] sm:$0xff] }
 0x5ee   :  { %v5263_v46 = vpop.f32.mrf.mxu2 }
 0x5ef   :  { %v5264_v6 = vadd.f32 %v5263_v46, %v12389_v15  ;;  %v5312_v40 = vpop.f32.mrf.mxu3  ;;  %v14767_v15 = vld [vmem:[#allocation271_spill] sm:$0xff] }
 0x5f0   :  { %v5520_v62 = vpop.f32.mrf.mxu0  ;;  %v9058_v46 = vld [vmem:[#allocation7 + $0xf8] sm:$0xf0] }
 0x5f1   :  { %v5313_v8 = vadd.f32 %v5312_v40, %v5264_v6  ;;  %v14771_v6 = vld [vmem:[#allocation274_spill] sm:$0xff] }
 0x5f2   :  { %v5569_v10 = vpop.f32.mrf.mxu1  ;;  %v14772_v40 = vld [vmem:[#allocation278_spill] sm:$0xff] }
 0x5f3   :  { %5617 = vmatmul.bf16.vlgmr.msra.gmra.mxu2 %v12553_v17  ;;  %5715 = vmatmul.bf16.vlgmr.msra.gmra.mxu0 %v11849_v18  ;;  %v5362_v53 = vadd.f32 %v5361_v24, %v5313_v8 }
 0x5f4   :  { %5666 = vmatmul.bf16.vlgmr.msra.gmra.mxu3 %v12555_v30  ;;  %6001 = vmatpush.bf16.msra.mxu2 %v14766_v50  ;;  %v12579_v50 = vor.u32 %v9893_v63, %v9056_v39  ;;  %v14779_v39 = vld [vmem:[#allocation72_spill] sm:$0xff] }
 0x5f5   :  { %v12561_v60 = vadd.f32 %v5410_v5, %v5362_v53  ;;  %5764 = vmatmul.bf16.vlgmr.msra.gmra.mxu1 %v11851_v22  ;;  %6050 = vmatpush.bf16.msra.mxu3 %v14767_v15  ;;  %v14769_v22 = vld [vmem:[#allocation93_spill] sm:$0xff] }
 0x5f6   :  { %v5422_v54 = vpop.f32.mrf.mxu2  ;;  %6099 = vmatpush.bf16.msra.mxu0 %v11387_v51  ;;  %6148 = vmatpush.bf16.msra.mxu1 %v11412_v45  ;;  %v14770_v51 = vld [vmem:[#allocation273_spill] sm:$0xff] }
 0x5f7   :  { %v5423_v9 = vadd.f32 %v5422_v54, %v12401_v12  ;;  %v5471_v44 = vpop.f32.mrf.mxu3  ;;  %v9885_v12 = vld [vmem:[#allocation7 + $0xbc] sm:$0xf]  ;;  %v14774_v54 = vld [vmem:[#allocation66_spill] sm:$0xff] }
 0x5f8   :  { %v5522_v18 = vpop.f32.mrf.mxu0  ;;  %6002 = vmatpush.bf16.msra.mxu2 %v11291_v31  ;;  %v12581_v15 = vor.u32 %v9885_v12, %v9058_v46  ;;  %v14781_v12 = vld [vmem:[#allocation287_spill] sm:$0xff] }
 0x5f9   :  { %v5472_v24 = vadd.f32 %v5471_v44, %v5423_v9  ;;  %6051 = vmatpush.bf16.msra.mxu3 %v11293_v58  ;;  %v14773_v58 = vld [vmem:[#allocation282_spill] sm:$0xff]  ;;  %v14775_v9 = vld [vmem:[#allocation67_spill] sm:$0xff] }
 0x5fa   :  { %v5571_v5 = vpop.f32.mrf.mxu1  ;;  %6100 = vmatpush.bf16.msra.mxu0 %v14768_v29  ;;  %6149 = vmatpush.bf16.msra.mxu1 %v14769_v22  ;;  %v14777_v29 = vld [vmem:[#allocation285_spill] sm:$0xff]  ;;  %v14778_v22 = vld [vmem:[#allocation71_spill] sm:$0xff] }
 0x5fb   :  { %v5521_v11 = vadd.f32 %v5520_v62, %v5472_v24  ;;  %v14776_v24 = vld [vmem:[#allocation279_spill] sm:$0xff] }
 0x5fc   :  { %6003 = vmatpush.bf16.msra.mxu2 %v14770_v51  ;;  %v14780_v51 = vld [vmem:[#allocation92_spill] sm:$0xff] }
 0x5fd   :  { %v12573_v45 = vadd.f32 %v5569_v10, %v5521_v11  ;;  %6052 = vmatpush.bf16.msra.mxu3 %v14771_v6 }
 0x5fe   :  { %v5424_v31 = vpop.f32.mrf.mxu2  ;;  %6101 = vmatpush.bf16.msra.mxu0 %v14772_v40  ;;  %6150 = vmatpush.bf16.msra.mxu1 %v14773_v58  ;;  %v14783_v40 = vld [vmem:[#allocation78_spill] sm:$0xff]  ;;  %v14784_v58 = vld [vmem:[#allocation281_spill] sm:$0xff] }
 0x5ff   :  { %v5425_v8 = vadd.f32 %v5424_v31, %v12423_v56  ;;  %v5473_v53 = vpop.f32.mrf.mxu3 }
 0x600   :  { %v5525_v62 = vpop.f32.mrf.mxu0  ;;  %6004 = vmatpush.bf16.msra.mxu2 %v14774_v54  ;;  %v9909_v54 = vld [vmem:[#allocation7 + $0x174] sm:$0xf0] }
 0x601   :  { %v5474_v10 = vadd.f32 %v5473_v53, %v5425_v8  ;;  %6053 = vmatpush.bf16.msra.mxu3 %v14775_v9  ;;  %v9120_v53 = vld [vmem:[#allocation7 + $0x138] sm:$0xf] }
 0x602   :  { %v5574_v44 = vpop.f32.mrf.mxu1  ;;  %6102 = vmatpush.bf16.msra.mxu0 %v14776_v24  ;;  %6151 = vmatpush.bf16.msra.mxu1 %v14777_v29  ;;  %v9122_v24 = vld [vmem:[#allocation7 + $0x178] sm:$0xf0]  ;;  %v14787_v29 = vld [vmem:[#allocation84_spill] sm:$0xff] }
 0x603   :  { %5622 = vmatmul.bf16.gmra.mxu2 %v12579_v50  ;;  %5720 = vmatmul.bf16.gmra.mxu0 %v11875_v37  ;;  %v5523_v56 = vadd.f32 %v5522_v18, %v5474_v10  ;;  %v14782_v18 = vld [vmem:[#allocation77_spill] sm:$0xff]  ;;  %v14786_v10 = vld [vmem:[#allocation83_spill] sm:$0xff] }
 0x604   :  { %5671 = vmatmul.bf16.gmra.mxu3 %v12581_v15  ;;  %6005 = vmatpush.bf16.msra.mxu2 %v14778_v22  ;;  %v14788_v22 = vld [vmem:[#allocation284_spill] sm:$0xff] }
 0x605   :  { %v12591_v11 = vadd.f32 %v5571_v5, %v5523_v56  ;;  %5769 = vmatmul.bf16.gmra.mxu1 %v11878_v38  ;;  %6054 = vmatpush.bf16.msra.mxu3 %v14779_v39  ;;  %v14785_v38 = vld [vmem:[#allocation106_spill] sm:$0xff]  ;;  %v14789_v39 = vld [vmem:[#allocation111_spill] sm:$0xff] }
 0x606   :  { %v5427_v63 = vpop.f32.mrf.mxu2  ;;  %6103 = vmatpush.bf16.msra.mxu0 %v14780_v51  ;;  %6152 = vmatpush.bf16.msra.mxu1 %v14781_v12  ;;  %v12609_v12 = vor.u32 %v9909_v54, %v9120_v53 }
 0x607   :  { %v5428_v46 = vadd.f32 %v5427_v63, %v12435_v16  ;;  %v5476_v6 = vpop.f32.mrf.mxu3  ;;  %v9901_v16 = vld [vmem:[#allocation7 + $0x13c] sm:$0xf] }
 0x608   :  { %v5527_v37 = vpop.f32.mrf.mxu0  ;;  %6006 = vmatpush.bf16.msra.mxu2 %v14782_v18  ;;  %v14791_v18 = vld [vmem:[#allocation97_spill] sm:$0xff] }
 0x609   :  { %v5477_v31 = vadd.f32 %v5476_v6, %v5428_v46  ;;  %6055 = vmatpush.bf16.msra.mxu3 %v14783_v40  ;;  %v12611_v46 = vor.u32 %v9901_v16, %v9122_v24  ;;  %v14790_v6 = vld [vmem:[#allocation95_spill] sm:$0xff]  ;;  %v14792_v40 = vld [vmem:[#allocation286_spill] sm:$0xff] }
 0x60a   :  { %v5576_v5 = vpop.f32.mrf.mxu1  ;;  %6104 = vmatpush.bf16.msra.mxu0 %v14784_v58  ;;  %6153 = vmatpush.bf16.msra.mxu1 %v14785_v38  ;;  %v14793_v58 = vld [vmem:[#allocation290_spill] sm:$0xff] }
 0x60b   :  { %v5526_v8 = vadd.f32 %v5525_v62, %v5477_v31 }
 0x60c   :  { %6007 = vmatpush.bf16.msra.mxu2 %v14786_v10 }
 0x60d   :  { %v12603_v9 = vadd.f32 %v5574_v44, %v5526_v8  ;;  %6056 = vmatpush.bf16.msra.mxu3 %v14787_v29 }
 0x60e   :  { %v5429_v56 = vpop.f32.mrf.mxu2  ;;  %6105 = vmatpush.bf16.msra.mxu0 %v14788_v22  ;;  %6154 = vmatpush.bf16.msra.mxu1 %v14789_v39  ;;  %v9925_v22 = vld [vmem:[#allocation7 + $0x1f4] sm:$0xf0] }
 0x60f   :  { %v5430_v63 = vadd.f32 %v5429_v56, %v12456_v14  ;;  %v5478_v51 = vpop.f32.mrf.mxu3  ;;  %v9184_v56 = vld [vmem:[#allocation7 + $0x1b8] sm:$0xf] }
 0x610   :  { %v5530_v62 = vpop.f32.mrf.mxu0  ;;  %6008 = vmatpush.bf16.msra.mxu2 %v14790_v6  ;;  %v12627_v6 = vor.u32 %v9925_v22, %v9184_v56 }
 0x611   :  { %v5479_v44 = vadd.f32 %v5478_v51, %v5430_v63  ;;  %6057 = vmatpush.bf16.msra.mxu3 %v14791_v18 }
 0x612   :  { %v5579_v31 = vpop.f32.mrf.mxu1  ;;  %6106 = vmatpush.bf16.msra.mxu0 %v14792_v40  ;;  %6155 = vmatpush.bf16.msra.mxu1 %v14793_v58 }
 0x613   :  { %5627 = vmatmul.bf16.gmra.mxu2 %v12609_v12  ;;  %5725 = vmatmul.bf16.gmra.mxu0 %v11905_v43  ;;  %v5528_v14 = vadd.f32 %v5527_v37, %v5479_v44  ;;  %v9917_v43 = vld [vmem:[#allocation7 + $0x1bc] sm:$0xf] }
 0x614   :  { %5676 = vmatmul.bf16.gmra.mxu3 %v12611_v46  ;;  %v9186_v37 = vld [vmem:[#allocation7 + $0x1f8] sm:$0xf0] }
 0x615   :  { %v12620_v38 = vadd.f32 %v5576_v5, %v5528_v14  ;;  %5774 = vmatmul.bf16.gmra.mxu1 %v11908_v27  ;;  %v12629_v44 = vor.u32 %v9917_v43, %v9186_v37 }
 0x616   :  { %v5432_v8 = vpop.f32.mrf.mxu2 }
 0x617   :  { %v5433_v53 = vadd.f32 %v5432_v8, %v12460_v26  ;;  %v5481_v54 = vpop.f32.mrf.mxu3 }
 0x618   :  { %v5532_v10 = vpop.f32.mrf.mxu0 }
 0x619   :  { %v5482_v16 = vadd.f32 %v5481_v54, %v5433_v53 }
 0x61a   :  { %v5581_v24 = vpop.f32.mrf.mxu1 }
 0x61b   :  { %v5531_v29 = vadd.f32 %v5530_v62, %v5482_v16  ;;  %v9248_v16 = vld [vmem:[#allocation7 + $0x238] sm:$0xf] }
 0x61d   :  { %v12624_v39 = vadd.f32 %v5579_v31, %v5531_v29  ;;  %v9941_v29 = vld [vmem:[#allocation7 + $0x274] sm:$0xf0] }
 0x61e   :  { %v5434_v63 = vpop.f32.mrf.mxu2  ;;  %v12641_v37 = vor.u32 %v9941_v29, %v9248_v16 }
 0x61f   :  { %v5435_v5 = vadd.f32 %v5434_v63, %v12474_v4  ;;  %v5483_v51 = vpop.f32.mrf.mxu3 }
 0x620   :  { %v5535_v27 = vpop.f32.mrf.mxu0 }
 0x621   :  { %v5484_v26 = vadd.f32 %v5483_v51, %v5435_v5 }
 0x622   :  { %v5584_v18 = vpop.f32.mrf.mxu1 }
 0x623   :  { %5632 = vmatmul.bf16.gmra.mxu2 %v12627_v6  ;;  %5730 = vmatmul.bf16.gmra.mxu0 %v11923_v48  ;;  %v5533_v62 = vadd.f32 %v5532_v10, %v5484_v26  ;;  %v9933_v48 = vld [vmem:[#allocation7 + $0x23c] sm:$0xf] }
 0x624   :  { %5681 = vmatmul.bf16.gmra.mxu3 %v12629_v44  ;;  %v9250_v10 = vld [vmem:[#allocation7 + $0x278] sm:$0xf0] }
 0x625   :  { %v12634_v31 = vadd.f32 %v5581_v24, %v5533_v62  ;;  %5779 = vmatmul.bf16.gmra.mxu1 %v11925_v2  ;;  %v12643_v63 = vor.u32 %v9933_v48, %v9250_v10 }
 0x626   :  { %v5437_v4 = vpop.f32.mrf.mxu2 }
 0x627   :  { %v5438_v40 = vadd.f32 %v5437_v4, %v12478_v49  ;;  %v5486_v58 = vpop.f32.mrf.mxu3 }
 0x628   :  { %v5537_v14 = vpop.f32.mrf.mxu0 }
 0x629   :  { %v5487_v8 = vadd.f32 %v5486_v58, %v5438_v40 }
 0x62a   :  { %v5586_v53 = vpop.f32.mrf.mxu1 }
 0x62b   :  { %v5536_v54 = vadd.f32 %v5535_v27, %v5487_v8  ;;  %v9312_v8 = vld [vmem:[#allocation7 + $0x2b8] sm:$0xf] }
 0x62d   :  { %v12638_v56 = vadd.f32 %v5584_v18, %v5536_v54  ;;  %v9957_v54 = vld [vmem:[#allocation7 + $0x2f4] sm:$0xf0] }
 0x62e   :  { %v5439_v22 = vpop.f32.mrf.mxu2  ;;  %v12655_v10 = vor.u32 %v9957_v54, %v9312_v8 }
 0x62f   :  { %v5440_v24 = vadd.f32 %v5439_v22, %v12492_v34  ;;  %v5488_v43 = vpop.f32.mrf.mxu3 }
 0x630   :  { %v5540_v2 = vpop.f32.mrf.mxu0 }
 0x631   :  { %v5489_v49 = vadd.f32 %v5488_v43, %v5440_v24 }
 0x632   :  { %v5589_v5 = vpop.f32.mrf.mxu1 }
 0x633   :  { %5637 = vmatmul.bf16.gmra.mxu2 %v12641_v37  ;;  %5735 = vmatmul.bf16.gmra.mxu0 %v11937_v23  ;;  %v5538_v51 = vadd.f32 %v5537_v14, %v5489_v49  ;;  %v9949_v23 = vld [vmem:[#allocation7 + $0x2bc] sm:$0xf] }
 0x634   :  { %5686 = vmatmul.bf16.gmra.mxu3 %v12643_v63  ;;  %v9314_v14 = vld [vmem:[#allocation7 + $0x2f8] sm:$0xf0] }
 0x635   :  { %v12648_v27 = vadd.f32 %v5586_v53, %v5538_v51  ;;  %5784 = vmatmul.bf16.gmra.mxu1 %v11939_v55  ;;  %v12657_v22 = vor.u32 %v9949_v23, %v9314_v14 }
 0x636   :  { %v5442_v34 = vpop.f32.mrf.mxu2 }
 0x637   :  { %v5443_v26 = vadd.f32 %v5442_v34, %v12496_v1  ;;  %v5491_v18 = vpop.f32.mrf.mxu3  ;;  %14794 = vst [vmem:[#allocation127_spill] sm:$0xff] %v12657_v22 }
 0x638   :  { %v5542_v62 = vpop.f32.mrf.mxu0 }
 0x639   :  { %v5492_v4 = vadd.f32 %v5491_v18, %v5443_v26 }
 0x63a   :  { %v5591_v40 = vpop.f32.mrf.mxu1 }
 0x63b   :  { %v5541_v58 = vadd.f32 %v5540_v2, %v5492_v4  ;;  %v9376_v4 = vld [vmem:[#allocation7 + $0x338] sm:$0xf] }
 0x63d   :  { %v12652_v16 = vadd.f32 %v5589_v5, %v5541_v58  ;;  %v9973_v58 = vld [vmem:[#allocation7 + $0x374] sm:$0xf0] }
 0x63e   :  { %v5444_v29 = vpop.f32.mrf.mxu2  ;;  %v12669_v14 = vor.u32 %v9973_v58, %v9376_v4 }
 0x63f   :  { %v5445_v53 = vadd.f32 %v5444_v29, %v12510_v13  ;;  %v5493_v48 = vpop.f32.mrf.mxu3 }
 0x640   :  { %v5545_v55 = vpop.f32.mrf.mxu0  ;;  %14795 = vst [vmem:[#allocation128_spill] sm:$0xff] %v12669_v14 }
 0x641   :  { %v5494_v1 = vadd.f32 %v5493_v48, %v5445_v53 }
 0x642   :  { %v5594_v24 = vpop.f32.mrf.mxu1 }
 0x643   :  { %5642 = vmatmul.bf16.gmra.mxu2 %v12655_v10  ;;  %5740 = vmatmul.bf16.gmra.mxu0 %v11951_v52  ;;  %v5543_v43 = vadd.f32 %v5542_v62, %v5494_v1  ;;  %v9965_v52 = vld [vmem:[#allocation7 + $0x33c] sm:$0xf] }
 0x644   :  { %5691 = vmatmul.bf16.gmra.mxu3 %v12657_v22  ;;  %v9378_v62 = vld [vmem:[#allocation7 + $0x378] sm:$0xf0] }
 0x645   :  { %v12662_v2 = vadd.f32 %v5591_v40, %v5543_v43  ;;  %5789 = vmatmul.bf16.gmra.mxu1 %v11953_v61  ;;  %v12671_v29 = vor.u32 %v9965_v52, %v9378_v62 }
 0x646   :  { %v5447_v13 = vpop.f32.mrf.mxu2 }
 0x647   :  { %v5448_v49 = vadd.f32 %v5447_v13, %v12514_v28  ;;  %v5496_v5 = vpop.f32.mrf.mxu3  ;;  %14796 = vst [vmem:[#allocation155_spill] sm:$0xff] %v12671_v29 }
 0x648   :  { %v5547_v51 = vpop.f32.mrf.mxu0 }
 0x649   :  { %v5497_v34 = vadd.f32 %v5496_v5, %v5448_v49 }
 0x64a   :  { %v5596_v26 = vpop.f32.mrf.mxu1 }
 0x64b   :  { %v5546_v18 = vadd.f32 %v5545_v55, %v5497_v34  ;;  %v9440_v34 = vld [vmem:[#allocation7 + $0x3b8] sm:$0xf] }
 0x64d   :  { %v12666_v8 = vadd.f32 %v5594_v24, %v5546_v18  ;;  %v9989_v18 = vld [vmem:[#allocation7 + $0x3f4] sm:$0xf0] }
 0x64e   :  { %v5449_v54 = vpop.f32.mrf.mxu2  ;;  %v12683_v62 = vor.u32 %v9989_v18, %v9440_v34 }
 0x64f   :  { %v5450_v40 = vadd.f32 %v5449_v54, %v12528_v47  ;;  %v5498_v23 = vpop.f32.mrf.mxu3 }
 0x650   :  { %v5550_v61 = vpop.f32.mrf.mxu0  ;;  %14797 = vst [vmem:[#allocation167_spill] sm:$0xff] %v12683_v62 }
 0x651   :  { %v5499_v28 = vadd.f32 %v5498_v23, %v5450_v40 }
 0x652   :  { %v5599_v53 = vpop.f32.mrf.mxu1 }
 0x653   :  { %5647 = vmatmul.bf16.gmra.mxu2 %v12669_v14  ;;  %5745 = vmatmul.bf16.gmra.mxu0 %v11965_v59  ;;  %v5548_v48 = vadd.f32 %v5547_v51, %v5499_v28  ;;  %v9981_v59 = vld [vmem:[#allocation7 + $0x3bc] sm:$0xf]  ;;  %v14867_v14 = vld [vmem:[#allocation29_spill] sm:$0xff] }
 0x654   :  { %5696 = vmatmul.bf16.gmra.mxu3 %v12671_v29  ;;  %v9442_v51 = vld [vmem:[#allocation7 + $0x3f8] sm:$0xf0]  ;;  %v14861_v29 = vld [vmem:[#allocation214_spill] sm:$0xff] }
 0x655   :  { %v12676_v55 = vadd.f32 %v5596_v26, %v5548_v48  ;;  %5794 = vmatmul.bf16.gmra.mxu1 %v11967_v42  ;;  %v12685_v54 = vor.u32 %v9981_v59, %v9442_v51  ;;  %v14800_v51 = vld [vmem:[#allocation21_spill] sm:$0xff] }
 0x656   :  { %v5452_v47 = vpop.f32.mrf.mxu2 }
 0x657   :  { %v5453_v1 = vadd.f32 %v5452_v47, %v12532_v36  ;;  %v5501_v24 = vpop.f32.mrf.mxu3  ;;  %14798 = vst [vmem:[#allocation133_spill] sm:$0xff] %v12685_v54 }
 0x658   :  { %v5552_v43 = vpop.f32.mrf.mxu0 }
 0x659   :  { %v5502_v13 = vadd.f32 %v5501_v24, %v5453_v1 }
 0x65a   :  { %v5601_v49 = vpop.f32.mrf.mxu1 }
 0x65b   :  { %v5551_v5 = vadd.f32 %v5550_v61, %v5502_v13 }
 0x65d   :  { %v12680_v4 = vadd.f32 %v5599_v53, %v5551_v5 }
 0x65e   :  { %v5454_v58 = vpop.f32.mrf.mxu2 }
 0x65f   :  { %v5455_v26 = vadd.f32 %v5454_v58, %v12546_v20  ;;  %v5503_v52 = vpop.f32.mrf.mxu3  ;;  %v14801_v58 = vld [vmem:[#allocation107_spill] sm:$0xff] }
 0x660   :  { %v5555_v42 = vpop.f32.mrf.mxu0 }
 0x661   :  { %v5504_v36 = vadd.f32 %v5503_v52, %v5455_v26  ;;  %v14802_v52 = vld [vmem:[#allocation187_spill] sm:$0xff] }
 0x662   :  { %v5604_v40 = vpop.f32.mrf.mxu1 }
 0x663   :  { %5652 = vmatmul.bf16.gmra.mxu2 %v12683_v62  ;;  %5750 = vmatmul.bf16.gmra.mxu0 %v11979_v33  ;;  %v5553_v23 = vadd.f32 %v5552_v43, %v5504_v36  ;;  %v14804_v36 = vld [vmem:[#allocation135_spill] sm:$0xff] }
 0x664   :  { %5701 = vmatmul.bf16.gmra.mxu3 %v12685_v54  ;;  %v14855_v54 = vld [vmem:[#allocation206_spill] sm:$0xff] }
 0x665   :  { %v12690_v61 = vadd.f32 %v5601_v49, %v5553_v23  ;;  %5799 = vmatmul.bf16.gmra.mxu1 %v11981_v21  ;;  %v14799_v21 = vld [vmem:[#allocation26_spill] sm:$0xff] }
 0x666   :  { %v5457_v20 = vpop.f32.mrf.mxu2 }
 0x667   :  { %v5458_v28 = vadd.f32 %v5457_v20, %v12550_v3  ;;  %v5506_v53 = vpop.f32.mrf.mxu3 }
 0x668   :  { %v5557_v48 = vpop.f32.mrf.mxu0 }
 0x669   :  { %v5507_v47 = vadd.f32 %v5506_v53, %v5458_v28  ;;  %v14806_v28 = vld [vmem:[#allocation117_spill] sm:$0xff] }
 0x66a   :  { %v5606_v1 = vpop.f32.mrf.mxu1 }
 0x66b   :  { %v5556_v24 = vadd.f32 %v5555_v42, %v5507_v47 }
 0x66d   :  { %v12694_v13 = vadd.f32 %v5604_v40, %v5556_v24  ;;  %v14805_v40 = vld [vmem:[#allocation143_spill] sm:$0xff] }
 0x66e   :  { %v5459_v5 = vpop.f32.mrf.mxu2  ;;  %v14809_v24 = vld [vmem:[#allocation147_spill] sm:$0xff] }
 0x66f   :  { %v5460_v33 = vadd.f32 %v5459_v5, %v12561_v60  ;;  %v5508_v43 = vpop.f32.mrf.mxu3  ;;  %v14803_v60 = vld [vmem:[#allocation109_spill] sm:$0xff] }
 0x670   :  { %v5716_v34 = vpop.f32.mrf.mxu0 }
 0x671   :  { %v5509_v18 = vadd.f32 %v5508_v43, %v5460_v33  ;;  %v14810_v33 = vld [vmem:[#allocation123_spill] sm:$0xff]  ;;  %v14811_v43 = vld [vmem:[#allocation124_spill] sm:$0xff] }
 0x672   :  { %v5765_v49 = vpop.f32.mrf.mxu1 }
 0x673   :  { %5813 = vmatmul.bf16.vlgmr.msrb.gmra.mxu2 %v11993_v0  ;;  %5911 = vmatmul.bf16.vlgmr.msrb.gmra.mxu0 %v14799_v21  ;;  %v5558_v59 = vadd.f32 %v5557_v48, %v5509_v18  ;;  %v12699_v3 = vadd.f32 %v5765_v49, %v5716_v34  ;;  %v14807_v48 = vld [vmem:[#allocation118_spill] sm:$0xff]  ;;  %v14812_v34 = vld [vmem:[#allocation141_spill] sm:$0xff]  ;;  %v14813_v18 = vld [vmem:[#allocation156_spill] sm:$0xff] }
 0x674   :  { %5862 = vmatmul.bf16.vlgmr.msrb.gmra.mxu3 %v14800_v51  ;;  %6197 = vmatpush.bf16.msrb.mxu2 %v14801_v58  ;;  %v14814_v51 = vld [vmem:[#allocation125_spill] sm:$0xff] }
 0x675   :  { %v12703_v26 = vadd.f32 %v5606_v1, %v5558_v59  ;;  %5960 = vmatmul.bf16.vlgmr.msrb.gmra.mxu1 %v14802_v52  ;;  %6246 = vmatpush.bf16.msrb.mxu3 %v14803_v60  ;;  %v14808_v1 = vld [vmem:[#allocation138_spill] sm:$0xff] }
 0x676   :  { %v5618_v42 = vpop.f32.mrf.mxu2  ;;  %6295 = vmatpush.bf16.msrb.mxu0 %v14804_v36  ;;  %6344 = vmatpush.bf16.msrb.mxu1 %v14805_v40  ;;  %v14815_v52 = vld [vmem:[#allocation126_spill] sm:$0xff]  ;;  %v14817_v36 = vld [vmem:[#allocation159_spill] sm:$0xff]  ;;  %v14818_v40 = vld [vmem:[#allocation189_spill] sm:$0xff] }
 0x677   :  { %v5619_v0 = vadd.f32 %v5618_v42, %v12573_v45  ;;  %v5667_v23 = vpop.f32.mrf.mxu3  ;;  %v14816_v42 = vld [vmem:[#allocation142_spill] sm:$0xff] }
 0x678   :  { %v5718_v20 = vpop.f32.mrf.mxu0  ;;  %6198 = vmatpush.bf16.msrb.mxu2 %v14806_v28  ;;  %v14822_v28 = vld [vmem:[#allocation25_spill] sm:$0xff] }
 0x679   :  { %v12711_v53 = vadd.f32 %v5667_v23, %v5619_v0  ;;  %6247 = vmatpush.bf16.msrb.mxu3 %v14807_v48  ;;  %v14819_v0 = vld [vmem:[#allocation23_spill] sm:$0xff]  ;;  %v14823_v48 = vld [vmem:[#allocation130_spill] sm:$0xff] }
 0x67a   :  { %v5767_v47 = vpop.f32.mrf.mxu1  ;;  %6296 = vmatpush.bf16.msrb.mxu0 %v14808_v1  ;;  %6345 = vmatpush.bf16.msrb.mxu1 %v14809_v24  ;;  %v14824_v1 = vld [vmem:[#allocation144_spill] sm:$0xff] }
 0x67b   :  { %v12716_v5 = vadd.f32 %v5767_v47, %v5718_v20  ;;  %v14821_v20 = vld [vmem:[#allocation129_spill] sm:$0xff]  ;;  %v14825_v24 = vld [vmem:[#allocation292_spill] sm:$0xff] }
 0x67c   :  { %6199 = vmatpush.bf16.msrb.mxu2 %v14810_v33 }
 0x67d   :  { %6248 = vmatpush.bf16.msrb.mxu3 %v14811_v43 }
 0x67e   :  { %v5620_v45 = vpop.f32.mrf.mxu2  ;;  %6297 = vmatpush.bf16.msrb.mxu0 %v14812_v34  ;;  %6346 = vmatpush.bf16.msrb.mxu1 %v14813_v18  ;;  %v14826_v34 = vld [vmem:[#allocation131_spill] sm:$0xff] }
 0x67f   :  { %v5621_v49 = vadd.f32 %v5620_v45, %v12591_v11  ;;  %v5669_v21 = vpop.f32.mrf.mxu3  ;;  %v14820_v11 = vld [vmem:[#allocation190_spill] sm:$0xff] }
 0x680   :  { %v5721_v59 = vpop.f32.mrf.mxu0  ;;  %6200 = vmatpush.bf16.msrb.mxu2 %v14814_v51  ;;  %v14829_v51 = vld [vmem:[#allocation12_spill] sm:$0xff] }
 0x681   :  { %v12724_v58 = vadd.f32 %v5669_v21, %v5621_v49  ;;  %6249 = vmatpush.bf16.msrb.mxu3 %v14815_v52  ;;  %v14827_v49 = vld [vmem:[#allocation132_spill] sm:$0xff] }
 0x682   :  { %v5770_v60 = vpop.f32.mrf.mxu1  ;;  %6298 = vmatpush.bf16.msrb.mxu0 %v14816_v42  ;;  %6347 = vmatpush.bf16.msrb.mxu1 %v14817_v36  ;;  %v14831_v42 = vld [vmem:[#allocation137_spill] sm:$0xff] }
 0x683   :  { %5818 = vmatmul.bf16.gmra.mxu2 %v14818_v40  ;;  %5916 = vmatmul.bf16.gmra.mxu0 %v14819_v0  ;;  %v12731_v23 = vadd.f32 %v5770_v60, %v5721_v59  ;;  %v14828_v59 = vld [vmem:[#allocation150_spill] sm:$0xff]  ;;  %v14830_v60 = vld [vmem:[#allocation136_spill] sm:$0xff]  ;;  %v14832_v36 = vld [vmem:[#allocation157_spill] sm:$0xff] }
 0x684   :  { %5867 = vmatmul.bf16.gmra.mxu3 %v14820_v11  ;;  %6201 = vmatpush.bf16.msrb.mxu2 %v14821_v20  ;;  %v14833_v40 = vld [vmem:[#allocation173_spill] sm:$0xff] }
 0x685   :  { %5965 = vmatmul.bf16.gmra.mxu1 %v14822_v28  ;;  %6250 = vmatpush.bf16.msrb.mxu3 %v14823_v48  ;;  %v14834_v28 = vld [vmem:[#allocation148_spill] sm:$0xff] }
 0x686   :  { %v5623_v47 = vpop.f32.mrf.mxu2  ;;  %6299 = vmatpush.bf16.msrb.mxu0 %v14824_v1  ;;  %6348 = vmatpush.bf16.msrb.mxu1 %v14825_v24  ;;  %v14836_v24 = vld [vmem:[#allocation161_spill] sm:$0xff] }
 0x687   :  { %v5624_v33 = vadd.f32 %v5623_v47, %v12603_v9  ;;  %v5672_v43 = vpop.f32.mrf.mxu3  ;;  %v14835_v47 = vld [vmem:[#allocation149_spill] sm:$0xff] }
 0x688   :  { %v5723_v45 = vpop.f32.mrf.mxu0  ;;  %6202 = vmatpush.bf16.msrb.mxu2 %v14826_v34 }
 0x689   :  { %v12741_v18 = vadd.f32 %v5672_v43, %v5624_v33  ;;  %6251 = vmatpush.bf16.msrb.mxu3 %v14827_v49  ;;  %v14837_v33 = vld [vmem:[#allocation175_spill] sm:$0xff]  ;;  %v14841_v49 = vld [vmem:[#allocation46_spill] sm:$0xff] }
 0x68a   :  { %v5772_v21 = vpop.f32.mrf.mxu1  ;;  %6300 = vmatpush.bf16.msrb.mxu0 %v14828_v59  ;;  %6349 = vmatpush.bf16.msrb.mxu1 %v14829_v51  ;;  %v14838_v43 = vld [vmem:[#allocation27_spill] sm:$0xff] }
 0x68b   :  { %v12746_v52 = vadd.f32 %v5772_v21, %v5723_v45  ;;  %v14839_v45 = vld [vmem:[#allocation38_spill] sm:$0xff] }
 0x68c   :  { %6203 = vmatpush.bf16.msrb.mxu2 %v14830_v60 }
 0x68d   :  { %6252 = vmatpush.bf16.msrb.mxu3 %v14831_v42 }
 0x68e   :  { %v5625_v9 = vpop.f32.mrf.mxu2  ;;  %6301 = vmatpush.bf16.msrb.mxu0 %v14832_v36  ;;  %6350 = vmatpush.bf16.msrb.mxu1 %v14833_v40 }
 0x68f   :  { %v5626_v0 = vadd.f32 %v5625_v9, %v12620_v38  ;;  %v5674_v11 = vpop.f32.mrf.mxu3  ;;  %v14840_v38 = vld [vmem:[#allocation39_spill] sm:$0xff] }
 0x690   :  { %v5726_v20 = vpop.f32.mrf.mxu0  ;;  %6204 = vmatpush.bf16.msrb.mxu2 %v14834_v28 }
 0x691   :  { %v12754_v48 = vadd.f32 %v5674_v11, %v5626_v0  ;;  %6253 = vmatpush.bf16.msrb.mxu3 %v14835_v47 }
 0x692   :  { %v5775_v1 = vpop.f32.mrf.mxu1  ;;  %6302 = vmatpush.bf16.msrb.mxu0 %v14836_v24  ;;  %6351 = vmatpush.bf16.msrb.mxu1 %v14837_v33  ;;  %v14843_v24 = vld [vmem:[#allocation195_spill] sm:$0xff]  ;;  %v14844_v33 = vld [vmem:[#allocation196_spill] sm:$0xff] }
 0x693   :  { %5823 = vmatmul.bf16.gmra.mxu2 %v14838_v43  ;;  %5921 = vmatmul.bf16.gmra.mxu0 %v14839_v45  ;;  %v12761_v34 = vadd.f32 %v5775_v1, %v5726_v20  ;;  %v14842_v1 = vld [vmem:[#allocation194_spill] sm:$0xff] }
 0x694   :  { %5872 = vmatmul.bf16.gmra.mxu3 %v14840_v38  ;;  %v14845_v43 = vld [vmem:[#allocation50_spill] sm:$0xff] }
 0x695   :  { %5970 = vmatmul.bf16.gmra.mxu1 %v14841_v49 }
 0x696   :  { %v5628_v21 = vpop.f32.mrf.mxu2 }
 0x697   :  { %v5629_v59 = vadd.f32 %v5628_v21, %v12624_v39  ;;  %v5677_v51 = vpop.f32.mrf.mxu3 }
 0x698   :  { %v5728_v60 = vpop.f32.mrf.mxu0 }
 0x699   :  { %v12766_v42 = vadd.f32 %v5677_v51, %v5629_v59 }
 0x69a   :  { %v5777_v9 = vpop.f32.mrf.mxu1 }
 0x69b   :  { %v12768_v36 = vadd.f32 %v5777_v9, %v5728_v60 }
 0x69e   :  { %v5630_v40 = vpop.f32.mrf.mxu2 }
 0x69f   :  { %v5631_v0 = vadd.f32 %v5630_v40, %v12634_v31  ;;  %v5679_v11 = vpop.f32.mrf.mxu3 }
 0x6a0   :  { %v5731_v20 = vpop.f32.mrf.mxu0 }
 0x6a1   :  { %v12771_v28 = vadd.f32 %v5679_v11, %v5631_v0 }
 0x6a2   :  { %v5780_v47 = vpop.f32.mrf.mxu1 }
 0x6a3   :  { %5828 = vmatmul.bf16.gmra.mxu2 %v14842_v1  ;;  %5926 = vmatmul.bf16.gmra.mxu0 %v14843_v24  ;;  %v12775_v39 = vadd.f32 %v5780_v47, %v5731_v20  ;;  %v14846_v47 = vld [vmem:[#allocation54_spill] sm:$0xff]  ;;  %v14847_v1 = vld [vmem:[#allocation52_spill] sm:$0xff] }
 0x6a4   :  { %5877 = vmatmul.bf16.gmra.mxu3 %v14844_v33  ;;  %v14848_v24 = vld [vmem:[#allocation56_spill] sm:$0xff]  ;;  %v14849_v33 = vld [vmem:[#allocation57_spill] sm:$0xff] }
 0x6a5   :  { %5975 = vmatmul.bf16.gmra.mxu1 %v14845_v43 }
 0x6a6   :  { %v5633_v45 = vpop.f32.mrf.mxu2 }
 0x6a7   :  { %v5634_v38 = vadd.f32 %v5633_v45, %v12638_v56  ;;  %v5682_v49 = vpop.f32.mrf.mxu3 }
 0x6a8   :  { %v5733_v31 = vpop.f32.mrf.mxu0 }
 0x6a9   :  { %v12780_v21 = vadd.f32 %v5682_v49, %v5634_v38 }
 0x6aa   :  { %v5782_v59 = vpop.f32.mrf.mxu1 }
 0x6ab   :  { %v12782_v51 = vadd.f32 %v5782_v59, %v5733_v31 }
 0x6ae   :  { %v5635_v60 = vpop.f32.mrf.mxu2 }
 0x6af   :  { %v5636_v9 = vadd.f32 %v5635_v60, %v12648_v27  ;;  %v5684_v40 = vpop.f32.mrf.mxu3 }
 0x6b0   :  { %v5736_v0 = vpop.f32.mrf.mxu0 }
 0x6b1   :  { %v12785_v11 = vadd.f32 %v5684_v40, %v5636_v9 }
 0x6b2   :  { %v5785_v20 = vpop.f32.mrf.mxu1 }
 0x6b3   :  { %5833 = vmatmul.bf16.gmra.mxu2 %v14846_v47  ;;  %5931 = vmatmul.bf16.gmra.mxu0 %v14847_v1  ;;  %v12789_v56 = vadd.f32 %v5785_v20, %v5736_v0  ;;  %v14850_v1 = vld [vmem:[#allocation200_spill] sm:$0xff] }
 0x6b4   :  { %5882 = vmatmul.bf16.gmra.mxu3 %v14848_v24  ;;  %v14851_v24 = vld [vmem:[#allocation201_spill] sm:$0xff] }
 0x6b5   :  { %5980 = vmatmul.bf16.gmra.mxu1 %v14849_v33  ;;  %v14852_v33 = vld [vmem:[#allocation202_spill] sm:$0xff] }
 0x6b6   :  { %v5638_v43 = vpop.f32.mrf.mxu2 }
 0x6b7   :  { %v5639_v45 = vadd.f32 %v5638_v43, %v12652_v16  ;;  %v5687_v38 = vpop.f32.mrf.mxu3  ;;  %v14853_v43 = vld [vmem:[#allocation61_spill] sm:$0xff] }
 0x6b8   :  { %v5738_v27 = vpop.f32.mrf.mxu0 }
 0x6b9   :  { %v12794_v49 = vadd.f32 %v5687_v38, %v5639_v45 }
 0x6ba   :  { %v5787_v31 = vpop.f32.mrf.mxu1 }
 0x6bb   :  { %v12796_v59 = vadd.f32 %v5787_v31, %v5738_v27 }
 0x6be   :  { %v5640_v60 = vpop.f32.mrf.mxu2 }
 0x6bf   :  { %v5641_v9 = vadd.f32 %v5640_v60, %v12662_v2  ;;  %v5689_v40 = vpop.f32.mrf.mxu3 }
 0x6c0   :  { %v5741_v0 = vpop.f32.mrf.mxu0 }
 0x6c1   :  { %v12799_v20 = vadd.f32 %v5689_v40, %v5641_v9 }
 0x6c2   :  { %v5790_v47 = vpop.f32.mrf.mxu1 }
 0x6c3   :  { %5838 = vmatmul.bf16.gmra.mxu2 %v14850_v1  ;;  %5936 = vmatmul.bf16.gmra.mxu0 %v14851_v24  ;;  %v12803_v16 = vadd.f32 %v5790_v47, %v5741_v0 }
 0x6c4   :  { %5887 = vmatmul.bf16.gmra.mxu3 %v14852_v33 }
 0x6c5   :  { %5985 = vmatmul.bf16.gmra.mxu1 %v14853_v43  ;;  %v14856_v43 = vld [vmem:[#allocation207_spill] sm:$0xff] }
 0x6c6   :  { %v5643_v45 = vpop.f32.mrf.mxu2 }
 0x6c7   :  { %v5644_v38 = vadd.f32 %v5643_v45, %v12666_v8  ;;  %v5692_v27 = vpop.f32.mrf.mxu3  ;;  %v14857_v45 = vld [vmem:[#allocation208_spill] sm:$0xff] }
 0x6c8   :  { %v5743_v2 = vpop.f32.mrf.mxu0 }
 0x6c9   :  { %v12808_v31 = vadd.f32 %v5692_v27, %v5644_v38  ;;  %v14858_v38 = vld [vmem:[#allocation212_spill] sm:$0xff] }
 0x6ca   :  { %v5792_v60 = vpop.f32.mrf.mxu1 }
 0x6cb   :  { %v12810_v9 = vadd.f32 %v5792_v60, %v5743_v2 }
 0x6ce   :  { %v5645_v40 = vpop.f32.mrf.mxu2 }
 0x6cf   :  { %v5646_v1 = vadd.f32 %v5645_v40, %v12676_v55  ;;  %v5694_v24 = vpop.f32.mrf.mxu3 }
 0x6d0   :  { %v5746_v0 = vpop.f32.mrf.mxu0 }
 0x6d1   :  { %v12813_v47 = vadd.f32 %v5694_v24, %v5646_v1 }
 0x6d2   :  { %v5795_v33 = vpop.f32.mrf.mxu1 }
 0x6d3   :  { %14854 = vst [vmem:[#allocation134_spill] sm:$0xff] %v12813_v47  ;;  %5843 = vmatmul.bf16.gmra.mxu2 %v14855_v54  ;;  %5941 = vmatmul.bf16.gmra.mxu0 %v14856_v43  ;;  %v12817_v8 = vadd.f32 %v5795_v33, %v5746_v0 }
 0x6d4   :  { %5892 = vmatmul.bf16.gmra.mxu3 %v14857_v45 }
 0x6d5   :  { %5990 = vmatmul.bf16.gmra.mxu1 %v14858_v38  ;;  %v14862_v38 = vld [vmem:[#allocation220_spill] sm:$0xff] }
 0x6d6   :  { %v5648_v27 = vpop.f32.mrf.mxu2 }
 0x6d7   :  { %v5649_v2 = vadd.f32 %v5648_v27, %v12680_v4  ;;  %v5697_v60 = vpop.f32.mrf.mxu3  ;;  %v14863_v27 = vld [vmem:[#allocation221_spill] sm:$0xff] }
 0x6d8   :  { %v5748_v55 = vpop.f32.mrf.mxu0 }
 0x6d9   :  { %v12822_v40 = vadd.f32 %v5697_v60, %v5649_v2  ;;  %v14864_v2 = vld [vmem:[#allocation225_spill] sm:$0xff] }
 0x6da   :  { %v5797_v1 = vpop.f32.mrf.mxu1 }
 0x6db   :  { %14859 = vst [vmem:[#allocation158_spill] sm:$0xff] %v12822_v40  ;;  %v12824_v24 = vadd.f32 %v5797_v1, %v5748_v55 }
 0x6de   :  { %v5650_v62 = vpop.f32.mrf.mxu2 }
 0x6df   :  { %v5651_v54 = vadd.f32 %v5650_v62, %v12690_v61  ;;  %v5699_v43 = vpop.f32.mrf.mxu3 }
 0x6e0   :  { %v5751_v0 = vpop.f32.mrf.mxu0 }
 0x6e1   :  { %v12827_v33 = vadd.f32 %v5699_v43, %v5651_v54 }
 0x6e2   :  { %v5800_v45 = vpop.f32.mrf.mxu1 }
 0x6e3   :  { %14860 = vst [vmem:[#allocation169_spill] sm:$0xff] %v12827_v33  ;;  %5848 = vmatmul.bf16.gmra.mxu2 %v14861_v29  ;;  %5946 = vmatmul.bf16.gmra.mxu0 %v14862_v38  ;;  %v12831_v4 = vadd.f32 %v5800_v45, %v5751_v0 }
 0x6e4   :  { %5897 = vmatmul.bf16.gmra.mxu3 %v14863_v27 }
 0x6e5   :  { %5995 = vmatmul.bf16.gmra.mxu1 %v14864_v2  ;;  %v14868_v2 = vld [vmem:[#allocation30_spill] sm:$0xff] }
 0x6e6   :  { %v5653_v60 = vpop.f32.mrf.mxu2 }
 0x6e7   :  { %v5654_v55 = vadd.f32 %v5653_v60, %v12694_v13  ;;  %v5702_v1 = vpop.f32.mrf.mxu3  ;;  %v14869_v13 = vld [vmem:[#allocation31_spill] sm:$0xff]  ;;  %v14870_v60 = vld [vmem:[#allocation170_spill] sm:$0xff] }
 0x6e8   :  { %v5753_v62 = vpop.f32.mrf.mxu0 }
 0x6e9   :  { %v12836_v61 = vadd.f32 %v5702_v1, %v5654_v55  ;;  %v14871_v55 = vld [vmem:[#allocation34_spill] sm:$0xff]  ;;  %v14872_v1 = vld [vmem:[#allocation171_spill] sm:$0xff] }
 0x6ea   :  { %v5802_v54 = vpop.f32.mrf.mxu1 }
 0x6eb   :  { %14865 = vst [vmem:[#allocation139_spill] sm:$0xff] %v12836_v61  ;;  %v12838_v43 = vadd.f32 %v5802_v54, %v5753_v62  ;;  %v14875_v61 = vld [vmem:[#allocation18_spill] sm:$0xff] }
 0x6ee   :  { %v5655_v33 = vpop.f32.mrf.mxu2 }
 0x6ef   :  { %v5656_v29 = vadd.f32 %v5655_v33, %v12703_v26  ;;  %v5704_v38 = vpop.f32.mrf.mxu3 }
 0x6f0   :  { %v5912_v0 = vpop.f32.mrf.mxu0 }
 0x6f1   :  { %v12841_v45 = vadd.f32 %v5704_v38, %v5656_v29  ;;  %v14873_v29 = vld [vmem:[#allocation14_spill] sm:$0xff] }
 0x6f2   :  { %v5961_v27 = vpop.f32.mrf.mxu1 }
 0x6f3   :  { %14866 = vst [vmem:[#allocation140_spill] sm:$0xff] %v12841_v45  ;;  %6009 = vmatmul.bf16.vlgmr.msra.gmra.mxu2 %v14867_v14  ;;  %6107 = vmatmul.bf16.vlgmr.msra.gmra.mxu0 %v14868_v2  ;;  %v14874_v45 = vld [vmem:[#allocation16_spill] sm:$0xff] }
 0x6f4   :  { %6058 = vmatmul.bf16.vlgmr.msra.gmra.mxu3 %v14869_v13  ;;  %6393 = vmatpush.bf16.msra.mxu2 %v14870_v60  ;;  %v14876_v60 = vld [vmem:[#allocation13_spill] sm:$0xff] }
 0x6f5   :  { %6156 = vmatmul.bf16.vlgmr.msra.gmra.mxu1 %v14871_v55  ;;  %6442 = vmatpush.bf16.msra.mxu3 %v14872_v1 }
 0x6f6   :  { %v5814_v62 = vpop.f32.mrf.mxu2 }
 0x6f7   :  { %v5815_v26 = vadd.f32 %v5814_v62, %v12699_v3  ;;  %v5863_v33 = vpop.f32.mrf.mxu3  ;;  %v14877_v62 = vld [vmem:[#allocation20_spill] sm:$0xff] }
 0x6f8   :  { %v5914_v54 = vpop.f32.mrf.mxu0  ;;  %6394 = vmatpush.bf16.msra.mxu2 %v14873_v29  ;;  %v14878_v29 = vld [vmem:[#allocation181_spill] sm:$0xff] }
 0x6f9   :  { %v5864_v38 = vadd.f32 %v5863_v33, %v5815_v26  ;;  %6443 = vmatpush.bf16.msra.mxu3 %v14874_v45  ;;  %v14879_v45 = vld [vmem:[#allocation36_spill] sm:$0xff]  ;;  %v14882_v33 = vld [vmem:[#allocation182_spill] sm:$0xff] }
 0x6fa   :  { %v5963_v14 = vpop.f32.mrf.mxu1 }
 0x6fb   :  { %v5913_v2 = vadd.f32 %v5912_v0, %v5864_v38  ;;  %v14880_v0 = vld [vmem:[#allocation37_spill] sm:$0xff] }
 0x6fc   :  { %6395 = vmatpush.bf16.msra.mxu2 %v14875_v61 }
 0x6fd   :  { %v12853_v13 = vadd.f32 %v5961_v27, %v5913_v2  ;;  %6444 = vmatpush.bf16.msra.mxu3 %v14876_v60  ;;  %v14881_v27 = vld [vmem:[#allocation40_spill] sm:$0xff]  ;;  %v14884_v2 = vld [vmem:[#allocation183_spill] sm:$0xff] }
 0x6fe   :  { %v5816_v55 = vpop.f32.mrf.mxu2 }
 0x6ff   :  { %v5817_v1 = vadd.f32 %v5816_v55, %v12716_v5  ;;  %v5865_v40 = vpop.f32.mrf.mxu3  ;;  %v14883_v5 = vld [vmem:[#allocation41_spill] sm:$0xff] }
 0x700   :  { %v5917_v3 = vpop.f32.mrf.mxu0  ;;  %6396 = vmatpush.bf16.msra.mxu2 %v14877_v62  ;;  %v14885_v62 = vld [vmem:[#allocation15_spill] sm:$0xff] }
 0x701   :  { %v5866_v47 = vadd.f32 %v5865_v40, %v5817_v1  ;;  %6445 = vmatpush.bf16.msra.mxu3 %v14878_v29 }
 0x702   :  { %v5966_v26 = vpop.f32.mrf.mxu1 }
 0x703   :  { %6014 = vmatmul.bf16.gmra.mxu2 %v14879_v45  ;;  %6112 = vmatmul.bf16.gmra.mxu0 %v14880_v0  ;;  %v5915_v61 = vadd.f32 %v5914_v54, %v5866_v47  ;;  %v14886_v45 = vld [vmem:[#allocation184_spill] sm:$0xff]  ;;  %v14887_v0 = vld [vmem:[#allocation22_spill] sm:$0xff] }
 0x704   :  { %6063 = vmatmul.bf16.gmra.mxu3 %v14881_v27  ;;  %6397 = vmatpush.bf16.msra.mxu2 %v14882_v33 }
 0x705   :  { %v12863_v38 = vadd.f32 %v5963_v14, %v5915_v61  ;;  %6161 = vmatmul.bf16.gmra.mxu1 %v14883_v5  ;;  %6446 = vmatpush.bf16.msra.mxu3 %v14884_v2  ;;  %v14888_v61 = vld [vmem:[#allocation17_spill] sm:$0xff]  ;;  %v14889_v2 = vld [vmem:[#allocation24_spill] sm:$0xff] }
 0x706   :  { %v5819_v60 = vpop.f32.mrf.mxu2 }
 0x707   :  { %v5820_v40 = vadd.f32 %v5819_v60, %v12731_v23  ;;  %v5868_v55 = vpop.f32.mrf.mxu3 }
 0x708   :  { %v5919_v1 = vpop.f32.mrf.mxu0  ;;  %6398 = vmatpush.bf16.msra.mxu2 %v14885_v62  ;;  %v14890_v62 = vld [vmem:[#allocation19_spill] sm:$0xff] }
 0x709   :  { %v5869_v29 = vadd.f32 %v5868_v55, %v5820_v40  ;;  %6447 = vmatpush.bf16.msra.mxu3 %v14886_v45  ;;  %v14891_v55 = vld [vmem:[#allocation43_spill] sm:$0xff] }
 0x70a   :  { %v5968_v47 = vpop.f32.mrf.mxu1 }
 0x70b   :  { %v5918_v54 = vadd.f32 %v5917_v3, %v5869_v29  ;;  %v14892_v3 = vld [vmem:[#allocation44_spill] sm:$0xff] }
 0x70c   :  { %6399 = vmatpush.bf16.msra.mxu2 %v14887_v0 }
 0x70d   :  { %v12871_v14 = vadd.f32 %v5966_v26, %v5918_v54  ;;  %6448 = vmatpush.bf16.msra.mxu3 %v14888_v61  ;;  %v14893_v26 = vld [vmem:[#allocation47_spill] sm:$0xff]  ;;  %v14894_v54 = vld [vmem:[#allocation48_spill] sm:$0xff] }
 0x70e   :  { %v5821_v27 = vpop.f32.mrf.mxu2 }
 0x70f   :  { %v5822_v33 = vadd.f32 %v5821_v27, %v12746_v52  ;;  %v5870_v5 = vpop.f32.mrf.mxu3 }
 0x710   :  { %v5922_v23 = vpop.f32.mrf.mxu0  ;;  %6400 = vmatpush.bf16.msra.mxu2 %v14889_v2 }
 0x711   :  { %v5871_v60 = vadd.f32 %v5870_v5, %v5822_v33  ;;  %6449 = vmatpush.bf16.msra.mxu3 %v14890_v62 }
 0x712   :  { %v5971_v40 = vpop.f32.mrf.mxu1 }
 0x713   :  { %6019 = vmatmul.bf16.gmra.mxu2 %v14891_v55  ;;  %6117 = vmatmul.bf16.gmra.mxu0 %v14892_v3  ;;  %v5920_v29 = vadd.f32 %v5919_v1, %v5871_v60 }
 0x714   :  { %6068 = vmatmul.bf16.gmra.mxu3 %v14893_v26 }
 0x715   :  { %v12880_v45 = vadd.f32 %v5968_v47, %v5920_v29  ;;  %6166 = vmatmul.bf16.gmra.mxu1 %v14894_v54  ;;  %v14895_v29 = vld [vmem:[#allocation51_spill] sm:$0xff]  ;;  %v14896_v54 = vld [vmem:[#allocation241_spill] sm:$0xff] }
 0x716   :  { %v5824_v52 = vpop.f32.mrf.mxu2 }
 0x717   :  { %v5825_v0 = vadd.f32 %v5824_v52, %v12761_v34  ;;  %v5873_v61 = vpop.f32.mrf.mxu3  ;;  %v14897_v34 = vld [vmem:[#allocation53_spill] sm:$0xff] }
 0x718   :  { %v5924_v27 = vpop.f32.mrf.mxu0 }
 0x719   :  { %v5874_v33 = vadd.f32 %v5873_v61, %v5825_v0  ;;  %v14898_v0 = vld [vmem:[#allocation58_spill] sm:$0xff] }
 0x71a   :  { %v5973_v5 = vpop.f32.mrf.mxu1 }
 0x71b   :  { %v5923_v2 = vadd.f32 %v5922_v23, %v5874_v33 }
 0x71d   :  { %v12884_v62 = vadd.f32 %v5971_v40, %v5923_v2 }
 0x71e   :  { %v5826_v55 = vpop.f32.mrf.mxu2 }
 0x71f   :  { %v5827_v3 = vadd.f32 %v5826_v55, %v12768_v36  ;;  %v5875_v1 = vpop.f32.mrf.mxu3 }
 0x720   :  { %v5927_v60 = vpop.f32.mrf.mxu0 }
 0x721   :  { %v5876_v26 = vadd.f32 %v5875_v1, %v5827_v3 }
 0x722   :  { %v5976_v47 = vpop.f32.mrf.mxu1 }
 0x723   :  { %6024 = vmatmul.bf16.gmra.mxu2 %v14895_v29  ;;  %6122 = vmatmul.bf16.gmra.mxu0 %v14896_v54  ;;  %v5925_v22 = vadd.f32 %v5924_v27, %v5876_v26 }
 0x724   :  { %6073 = vmatmul.bf16.gmra.mxu3 %v14897_v34  ;;  %v14900_v34 = vld [vmem:[#allocation87_spill] sm:$0xff] }
 0x725   :  { %v12890_v52 = vadd.f32 %v5973_v5, %v5925_v22  ;;  %6171 = vmatmul.bf16.gmra.mxu1 %v14898_v0  ;;  %v14899_v5 = vld [vmem:[#allocation59_spill] sm:$0xff] }
 0x726   :  { %v5829_v23 = vpop.f32.mrf.mxu2 }
 0x727   :  { %v5830_v40 = vadd.f32 %v5829_v23, %v12775_v39  ;;  %v5878_v61 = vpop.f32.mrf.mxu3  ;;  %v14901_v39 = vld [vmem:[#allocation96_spill] sm:$0xff] }
 0x728   :  { %v5929_v36 = vpop.f32.mrf.mxu0 }
 0x729   :  { %v5879_v33 = vadd.f32 %v5878_v61, %v5830_v40  ;;  %v14902_v40 = vld [vmem:[#allocation62_spill] sm:$0xff] }
 0x72a   :  { %v5978_v2 = vpop.f32.mrf.mxu1 }
 0x72b   :  { %v5928_v55 = vadd.f32 %v5927_v60, %v5879_v33 }
 0x72d   :  { %v12894_v3 = vadd.f32 %v5976_v47, %v5928_v55 }
 0x72e   :  { %v5831_v1 = vpop.f32.mrf.mxu2 }
 0x72f   :  { %v5832_v29 = vadd.f32 %v5831_v1, %v12782_v51  ;;  %v5880_v27 = vpop.f32.mrf.mxu3 }
 0x730   :  { %v5932_v26 = vpop.f32.mrf.mxu0 }
 0x731   :  { %v5881_v54 = vadd.f32 %v5880_v27, %v5832_v29 }
 0x732   :  { %v5981_v22 = vpop.f32.mrf.mxu1 }
 0x733   :  { %6029 = vmatmul.bf16.gmra.mxu2 %v14899_v5  ;;  %6127 = vmatmul.bf16.gmra.mxu0 %v14900_v34  ;;  %v5930_v0 = vadd.f32 %v5929_v36, %v5881_v54 }
 0x734   :  { %6078 = vmatmul.bf16.gmra.mxu3 %v14901_v39  ;;  %v14904_v39 = vld [vmem:[#allocation90_spill] sm:$0xff] }
 0x735   :  { %v12900_v23 = vadd.f32 %v5978_v2, %v5930_v0  ;;  %6176 = vmatmul.bf16.gmra.mxu1 %v14902_v40  ;;  %v14903_v0 = vld [vmem:[#allocation63_spill] sm:$0xff] }
 0x736   :  { %v5834_v60 = vpop.f32.mrf.mxu2 }
 0x737   :  { %v5835_v47 = vadd.f32 %v5834_v60, %v12789_v56  ;;  %v5883_v61 = vpop.f32.mrf.mxu3  ;;  %v14905_v56 = vld [vmem:[#allocation99_spill] sm:$0xff] }
 0x738   :  { %v5934_v51 = vpop.f32.mrf.mxu0 }
 0x739   :  { %v5884_v33 = vadd.f32 %v5883_v61, %v5835_v47  ;;  %v14906_v47 = vld [vmem:[#allocation64_spill] sm:$0xff] }
 0x73a   :  { %v5983_v55 = vpop.f32.mrf.mxu1 }
 0x73b   :  { %v5933_v1 = vadd.f32 %v5932_v26, %v5884_v33 }
 0x73d   :  { %v12904_v29 = vadd.f32 %v5981_v22, %v5933_v1 }
 0x73e   :  { %v5836_v27 = vpop.f32.mrf.mxu2 }
 0x73f   :  { %v5837_v5 = vadd.f32 %v5836_v27, %v12796_v59  ;;  %v5885_v36 = vpop.f32.mrf.mxu3 }
 0x740   :  { %v5937_v54 = vpop.f32.mrf.mxu0 }
 0x741   :  { %v5886_v34 = vadd.f32 %v5885_v36, %v5837_v5 }
 0x742   :  { %v5986_v2 = vpop.f32.mrf.mxu1 }
 0x743   :  { %6034 = vmatmul.bf16.gmra.mxu2 %v14903_v0  ;;  %6132 = vmatmul.bf16.gmra.mxu0 %v14904_v39  ;;  %v5935_v40 = vadd.f32 %v5934_v51, %v5886_v34 }
 0x744   :  { %6083 = vmatmul.bf16.gmra.mxu3 %v14905_v56  ;;  %v14908_v56 = vld [vmem:[#allocation91_spill] sm:$0xff] }
 0x745   :  { %v12910_v60 = vadd.f32 %v5983_v55, %v5935_v40  ;;  %6181 = vmatmul.bf16.gmra.mxu1 %v14906_v47  ;;  %v14907_v40 = vld [vmem:[#allocation65_spill] sm:$0xff] }
 0x746   :  { %v5839_v26 = vpop.f32.mrf.mxu2 }
 0x747   :  { %v5840_v22 = vadd.f32 %v5839_v26, %v12803_v16  ;;  %v5888_v61 = vpop.f32.mrf.mxu3  ;;  %v14909_v16 = vld [vmem:[#allocation103_spill] sm:$0xff] }
 0x748   :  { %v5939_v59 = vpop.f32.mrf.mxu0 }
 0x749   :  { %v5889_v33 = vadd.f32 %v5888_v61, %v5840_v22  ;;  %v14910_v22 = vld [vmem:[#allocation69_spill] sm:$0xff] }
 0x74a   :  { %v5988_v1 = vpop.f32.mrf.mxu1 }
 0x74b   :  { %v5938_v27 = vadd.f32 %v5937_v54, %v5889_v33 }
 0x74d   :  { %v12914_v5 = vadd.f32 %v5986_v2, %v5938_v27 }
 0x74e   :  { %v5841_v36 = vpop.f32.mrf.mxu2 }
 0x74f   :  { %v5842_v0 = vadd.f32 %v5841_v36, %v12810_v9  ;;  %v5890_v51 = vpop.f32.mrf.mxu3 }
 0x750   :  { %v5942_v34 = vpop.f32.mrf.mxu0 }
 0x751   :  { %v5891_v39 = vadd.f32 %v5890_v51, %v5842_v0 }
 0x752   :  { %v5991_v55 = vpop.f32.mrf.mxu1 }
 0x753   :  { %6039 = vmatmul.bf16.gmra.mxu2 %v14907_v40  ;;  %6137 = vmatmul.bf16.gmra.mxu0 %v14908_v56  ;;  %v5940_v47 = vadd.f32 %v5939_v59, %v5891_v39 }
 0x754   :  { %6088 = vmatmul.bf16.gmra.mxu3 %v14909_v16  ;;  %v14912_v16 = vld [vmem:[#allocation94_spill] sm:$0xff] }
 0x755   :  { %v12920_v26 = vadd.f32 %v5988_v1, %v5940_v47  ;;  %6186 = vmatmul.bf16.gmra.mxu1 %v14910_v22  ;;  %v14911_v47 = vld [vmem:[#allocation70_spill] sm:$0xff] }
 0x756   :  { %v5844_v54 = vpop.f32.mrf.mxu2 }
 0x757   :  { %v5845_v2 = vadd.f32 %v5844_v54, %v12817_v8  ;;  %v5893_v61 = vpop.f32.mrf.mxu3  ;;  %v14913_v8 = vld [vmem:[#allocation105_spill] sm:$0xff] }
 0x758   :  { %v5944_v9 = vpop.f32.mrf.mxu0 }
 0x759   :  { %v5894_v33 = vadd.f32 %v5893_v61, %v5845_v2  ;;  %v14914_v2 = vld [vmem:[#allocation75_spill] sm:$0xff] }
 0x75a   :  { %v5993_v27 = vpop.f32.mrf.mxu1 }
 0x75b   :  { %v5943_v36 = vadd.f32 %v5942_v34, %v5894_v33 }
 0x75d   :  { %v12924_v0 = vadd.f32 %v5991_v55, %v5943_v36 }
 0x75e   :  { %v5846_v51 = vpop.f32.mrf.mxu2 }
 0x75f   :  { %v5847_v40 = vadd.f32 %v5846_v51, %v12824_v24  ;;  %v5895_v59 = vpop.f32.mrf.mxu3 }
 0x760   :  { %v5947_v39 = vpop.f32.mrf.mxu0 }
 0x761   :  { %v5896_v56 = vadd.f32 %v5895_v59, %v5847_v40 }
 0x762   :  { %v5996_v1 = vpop.f32.mrf.mxu1 }
 0x763   :  { %6044 = vmatmul.bf16.gmra.mxu2 %v14911_v47  ;;  %6142 = vmatmul.bf16.gmra.mxu0 %v14912_v16  ;;  %v5945_v22 = vadd.f32 %v5944_v9, %v5896_v56 }
 0x764   :  { %6093 = vmatmul.bf16.gmra.mxu3 %v14913_v8  ;;  %v14916_v8 = vld [vmem:[#allocation98_spill] sm:$0xff] }
 0x765   :  { %v12930_v54 = vadd.f32 %v5993_v27, %v5945_v22  ;;  %6191 = vmatmul.bf16.gmra.mxu1 %v14914_v2  ;;  %v14915_v22 = vld [vmem:[#allocation76_spill] sm:$0xff] }
 0x766   :  { %v5849_v34 = vpop.f32.mrf.mxu2 }
 0x767   :  { %v5850_v55 = vadd.f32 %v5849_v34, %v12831_v4  ;;  %v5898_v61 = vpop.f32.mrf.mxu3  ;;  %v14917_v4 = vld [vmem:[#allocation110_spill] sm:$0xff] }
 0x768   :  { %v5949_v24 = vpop.f32.mrf.mxu0 }
 0x769   :  { %v5899_v33 = vadd.f32 %v5898_v61, %v5850_v55  ;;  %v14918_v55 = vld [vmem:[#allocation81_spill] sm:$0xff] }
 0x76a   :  { %v5998_v36 = vpop.f32.mrf.mxu1 }
 0x76b   :  { %v5948_v51 = vadd.f32 %v5947_v39, %v5899_v33 }
 0x76d   :  { %v12934_v40 = vadd.f32 %v5996_v1, %v5948_v51 }
 0x76e   :  { %v5851_v59 = vpop.f32.mrf.mxu2 }
 0x76f   :  { %v5852_v47 = vadd.f32 %v5851_v59, %v12838_v43  ;;  %v5900_v9 = vpop.f32.mrf.mxu3 }
 0x770   :  { %v6108_v56 = vpop.f32.mrf.mxu0 }
 0x771   :  { %v5901_v16 = vadd.f32 %v5900_v9, %v5852_v47 }
 0x772   :  { %v6157_v27 = vpop.f32.mrf.mxu1 }
 0x773   :  { %6205 = vmatmul.bf16.vlgmr.msrb.gmra.mxu2 %v14915_v22  ;;  %6303 = vmatmul.bf16.vlgmr.msrb.gmra.mxu0 %v14916_v8  ;;  %v5950_v2 = vadd.f32 %v5949_v24, %v5901_v16 }
 0x774   :  { %6254 = vmatmul.bf16.vlgmr.msrb.gmra.mxu3 %v14917_v4  ;;  %v14919_v4 = vld [vmem:[#allocation82_spill] sm:$0xff] }
 0x775   :  { %v12940_v34 = vadd.f32 %v5998_v36, %v5950_v2  ;;  %6352 = vmatmul.bf16.vlgmr.msrb.gmra.mxu1 %v14918_v55 }
 0x776   :  { %v6010_v39 = vpop.f32.mrf.mxu2 }
 0x777   :  { %v6011_v1 = vadd.f32 %v6010_v39, %v12853_v13  ;;  %v6059_v61 = vpop.f32.mrf.mxu3 }
 0x778   :  { %v6110_v43 = vpop.f32.mrf.mxu0 }
 0x779   :  { %v6060_v33 = vadd.f32 %v6059_v61, %v6011_v1 }
 0x77a   :  { %v6159_v51 = vpop.f32.mrf.mxu1 }
 0x77b   :  { %v6109_v59 = vadd.f32 %v6108_v56, %v6060_v33 }
 0x77d   :  { %v12944_v47 = vadd.f32 %v6157_v27, %v6109_v59 }
 0x77e   :  { %v6012_v9 = vpop.f32.mrf.mxu2 }
 0x77f   :  { %v6013_v22 = vadd.f32 %v6012_v9, %v12863_v38  ;;  %v6061_v24 = vpop.f32.mrf.mxu3 }
 0x780   :  { %v6113_v16 = vpop.f32.mrf.mxu0 }
 0x781   :  { %v6062_v8 = vadd.f32 %v6061_v24, %v6013_v22  ;;  %v14920_v22 = vld [vmem:[#allocation102_spill] sm:$0xff] }
 0x782   :  { %v6162_v36 = vpop.f32.mrf.mxu1 }
 0x783   :  { %6210 = vmatmul.bf16.gmra.mxu2 %v12407_v19  ;;  %6308 = vmatmul.bf16.gmra.mxu0 %v12409_v41  ;;  %v6111_v2 = vadd.f32 %v6110_v43, %v6062_v8 }
 0x784   :  { %6259 = vmatmul.bf16.gmra.mxu3 %v12411_v32 }
 0x785   :  { %v12950_v13 = vadd.f32 %v6159_v51, %v6111_v2  ;;  %6357 = vmatmul.bf16.gmra.mxu1 %v14919_v4 }
 0x786   :  { %v6015_v56 = vpop.f32.mrf.mxu2 }
 0x787   :  { %v6016_v27 = vadd.f32 %v6015_v56, %v12871_v14  ;;  %v6064_v55 = vpop.f32.mrf.mxu3 }
 0x788   :  { %v6115_v38 = vpop.f32.mrf.mxu0 }
 0x789   :  { %v6065_v39 = vadd.f32 %v6064_v55, %v6016_v27 }
 0x78a   :  { %v6164_v1 = vpop.f32.mrf.mxu1 }
 0x78b   :  { %v6114_v61 = vadd.f32 %v6113_v16, %v6065_v39  ;;  %v14922_v39 = vld [vmem:[#allocation88_spill] sm:$0xff] }
 0x78d   :  { %v12954_v33 = vadd.f32 %v6162_v36, %v6114_v61  ;;  %v14923_v61 = vld [vmem:[#allocation89_spill] sm:$0xff] }
 0x78e   :  { %v6017_v19 = vpop.f32.mrf.mxu2 }
 0x78f   :  { %v6018_v41 = vadd.f32 %v6017_v19, %v12880_v45  ;;  %v6066_v43 = vpop.f32.mrf.mxu3  ;;  %v14924_v19 = vld [vmem:[#allocation104_spill] sm:$0xff] }
 0x790   :  { %v6118_v59 = vpop.f32.mrf.mxu0 }
 0x791   :  { %v6067_v32 = vadd.f32 %v6066_v43, %v6018_v41 }
 0x792   :  { %v6167_v14 = vpop.f32.mrf.mxu1 }
 0x793   :  { %6215 = vmatmul.bf16.gmra.mxu2 %v12441_v57  ;;  %6313 = vmatmul.bf16.gmra.mxu0 %v12443_v35  ;;  %v6116_v51 = vadd.f32 %v6115_v38, %v6067_v32  ;;  %v14921_v38 = vld [vmem:[#allocation112_spill] sm:$0xff] }
 0x794   :  { %6264 = vmatmul.bf16.gmra.mxu3 %v12445_v7 }
 0x795   :  { %v12960_v9 = vadd.f32 %v6164_v1, %v6116_v51  ;;  %6362 = vmatmul.bf16.gmra.mxu1 %v14920_v22 }
 0x796   :  { %v6020_v24 = vpop.f32.mrf.mxu2 }
 0x797   :  { %v6021_v16 = vadd.f32 %v6020_v24, %v12884_v62  ;;  %v6069_v8 = vpop.f32.mrf.mxu3 }
 0x798   :  { %v6120_v45 = vpop.f32.mrf.mxu0 }
 0x799   :  { %v6070_v36 = vadd.f32 %v6069_v8, %v6021_v16 }
 0x79a   :  { %v6169_v56 = vpop.f32.mrf.mxu1 }
 0x79b   :  { %v6119_v2 = vadd.f32 %v6118_v59, %v6070_v36 }
 0x79d   :  { %v12964_v4 = vadd.f32 %v6167_v14, %v6119_v2 }
 0x79e   :  { %v6022_v57 = vpop.f32.mrf.mxu2 }
 0x79f   :  { %v6023_v35 = vadd.f32 %v6022_v57, %v12890_v52  ;;  %v6071_v27 = vpop.f32.mrf.mxu3  ;;  %v14925_v57 = vld [vmem:[#allocation115_spill] sm:$0xff] }
 0x7a0   :  { %v6123_v7 = vpop.f32.mrf.mxu0 }
 0x7a1   :  { %v6072_v55 = vadd.f32 %v6071_v27, %v6023_v35  ;;  %v6803_v27 = vld [vmem:[%s13617_s5 + $0x78] sm:$0xff] }
 0x7a2   :  { %v6172_v52 = vpop.f32.mrf.mxu1  ;;  %6820 = vmatpush.msra.mxu0 %v6803_v27  ;;  %v6794_v27 = vld [vmem:[%s13617_s5 + $0x30] sm:$0xff] }
 0x7a3   :  { %6220 = vmatmul.bf16.gmra.mxu2 %v14921_v38  ;;  %6318 = vmatmul.bf16.gmra.mxu0 %v14922_v39  ;;  %v6121_v1 = vadd.f32 %v6120_v45, %v6072_v55  ;;  %v14928_v55 = vld [vmem:[#allocation108_spill] sm:$0xff]  ;;  %v6802_v38 = vld [vmem:[%s13617_s5 + $0x70] sm:$0xff] }
 0x7a4   :  { %6269 = vmatmul.bf16.gmra.mxu3 %v14923_v61  ;;  %6821 = vmatpush.msra.mxu0 %v6802_v38  ;;  %v6793_v38 = vld [vmem:[%s13617_s5 + $0x28] sm:$0xff] }
 0x7a5   :  { %v12970_v62 = vadd.f32 %v6169_v56, %v6121_v1  ;;  %6367 = vmatmul.bf16.gmra.mxu1 %v14924_v19  ;;  %v14926_v56 = vld [vmem:[#allocation100_spill] sm:$0xff] }
 0x7a6   :  { %v6025_v41 = vpop.f32.mrf.mxu2  ;;  %v6801_v19 = vld [vmem:[%s13617_s5 + $0x68] sm:$0xff] }
 0x7a7   :  { %v6026_v43 = vadd.f32 %v6025_v41, %v12894_v3  ;;  %v6074_v59 = vpop.f32.mrf.mxu3  ;;  %v14927_v3 = vld [vmem:[#allocation101_spill] sm:$0xff]  ;;  %6822 = vmatpush.msra.mxu0 %v6801_v19 }
 0x7a8   :  { %v6125_v32 = vpop.f32.mrf.mxu0 }
 0x7a9   :  { %v6075_v51 = vadd.f32 %v6074_v59, %v6026_v43  ;;  %v6800_v43 = vld [vmem:[%s13617_s5 + $0x60] sm:$0xff] }
 0x7aa   :  { %v6174_v2 = vpop.f32.mrf.mxu1  ;;  %6823 = vmatpush.msra.mxu0 %v6800_v43  ;;  %v6790_v43 = vld [vmem:[%s13617_s5 + $0x10] sm:$0xff] }
 0x7ab   :  { %v6124_v14 = vadd.f32 %v6123_v7, %v6075_v51 }
 0x7ad   :  { %v12974_v22 = vadd.f32 %v6172_v52, %v6124_v14  ;;  %v6798_v52 = vld [vmem:[%s13617_s5 + $0x50] sm:$0xff] }
 0x7ae   :  { %v6027_v24 = vpop.f32.mrf.mxu2 }
 0x7af   :  { %v6028_v16 = vadd.f32 %v6027_v24, %v12900_v23  ;;  %v6076_v8 = vpop.f32.mrf.mxu3 }
 0x7b0   :  { %v6128_v45 = vpop.f32.mrf.mxu0 }
 0x7b1   :  { %v6077_v36 = vadd.f32 %v6076_v8, %v6028_v16  ;;  %v6797_v16 = vld [vmem:[%s13617_s5 + $0x48] sm:$0xff] }
 0x7b3   :  { %6225 = vmatmul.bf16.gmra.mxu2 %v14925_v57  ;;  %6323 = vmatmul.bf16.gmra.mxu0 %v14926_v56  ;;  %v6126_v35 = vadd.f32 %v6125_v32, %v6077_v36  ;;  %v14929_v36 = vld [vmem:[#allocation116_spill] sm:$0xff]  ;;  %v6795_v56 = vld [vmem:[%s13617_s5 + $0x38] sm:$0xff] }
 0x7b4   :  { %6274 = vmatmul.bf16.gmra.mxu3 %v14927_v3 }
 0x7b5   :  { %v12983_v7 = vadd.f32 %v6174_v2, %v6126_v35  ;;  %6372 = vmatmul.bf16.gmra.mxu1 %v14928_v55  ;;  %v14930_v2 = vld [vmem:[#allocation252_spill] sm:$0xff]  ;;  %v14932_v35 = vld [vmem:[#allocation113_spill] sm:$0xff] }
 0x7b6   :  { %v6030_v23 = vpop.f32.mrf.mxu2 }
 0x7b7   :  { %v6031_v39 = vadd.f32 %v6030_v23, %v12904_v29  ;;  %v6079_v1 = vpop.f32.mrf.mxu3  ;;  %v6799_v29 = vld [vmem:[%s13617_s5 + $0x58] sm:$0xff] }
 0x7b8   :  { %v6130_v61 = vpop.f32.mrf.mxu0  ;;  %6824 = vmatpush.msra.mxu0 %v6799_v29 }
 0x7b9   :  { %v6080_v41 = vadd.f32 %v6079_v1, %v6031_v39 }
 0x7ba   :  { %6825 = vmatpush.msra.mxu0 %v6798_v52  ;;  %v6789_v52 = vld [vmem:[%s13617_s5 + $0x8] sm:$0xff] }
 0x7bb   :  { %v12996_v59 = vadd.f32 %v6128_v45, %v6080_v41  ;;  %v6796_v45 = vld [vmem:[%s13617_s5 + $0x40] sm:$0xff] }
 0x7bc   :  { %6826 = vmatpush.msra.mxu0 %v6797_v16  ;;  %v14934_v16 = vld [vmem:[#allocation151_spill] sm:$0xff] }
 0x7be   :  { %v6032_v32 = vpop.f32.mrf.mxu2  ;;  %6827 = vmatpush.msra.mxu0 %v6796_v45 }
 0x7bf   :  { %v6033_v51 = vadd.f32 %v6032_v32, %v12910_v60  ;;  %v6081_v14 = vpop.f32.mrf.mxu3  ;;  %v14931_v60 = vld [vmem:[#allocation253_spill] sm:$0xff] }
 0x7c0   :  { %v6133_v24 = vpop.f32.mrf.mxu0  ;;  %6828 = vmatpush.msra.mxu0 %v6795_v56 }
 0x7c1   :  { %v6082_v8 = vadd.f32 %v6081_v14, %v6033_v51  ;;  %v6788_v14 = vld [vmem:[%s13617_s5] sm:$0xff] }
 0x7c2   :  { %6829 = vmatpush.msra.mxu0 %v6794_v27  ;;  %v6771_v27 = vld [vmem:[%s13616_s4 + $0x78] sm:$0xff] }
 0x7c3   :  { %6230 = vmatmul.bf16.gmra.mxu2 %v14929_v36  ;;  %6328 = vmatmul.bf16.gmra.mxu0 %v14930_v2  ;;  %v13013_v57 = vadd.f32 %v6130_v61, %v6082_v8  ;;  %v6792_v61 = vld [vmem:[%s13617_s5 + $0x20] sm:$0xff]  ;;  %v14936_v36 = vld [vmem:[#allocation121_spill] sm:$0xff] }
 0x7c4   :  { %6279 = vmatmul.bf16.gmra.mxu3 %v14931_v60  ;;  %6830 = vmatpush.msra.mxu0 %v6793_v38 }
 0x7c5   :  { %6377 = vmatmul.bf16.gmra.mxu1 %v14932_v35  ;;  %6950 = vmatpush.msrb.mxu2 %v6771_v27 }
 0x7c6   :  { %v6035_v3 = vpop.f32.mrf.mxu2  ;;  %6831 = vmatpush.msra.mxu0 %v6792_v61  ;;  %v6819_v61 = vld [vmem:[%s13617_s5 + $0xf8] sm:$0xff] }
 0x7c7   :  { %v6036_v55 = vadd.f32 %v6035_v3, %v12914_v5  ;;  %v6084_v23 = vpop.f32.mrf.mxu3  ;;  %v6791_v5 = vld [vmem:[%s13617_s5 + $0x18] sm:$0xff]  ;;  %6885 = vmatpush.msra.mxu1 %v6819_v61 }
 0x7c8   :  { %v6135_v1 = vpop.f32.mrf.mxu0  ;;  %6832 = vmatpush.msra.mxu0 %v6791_v5  ;;  %v14937_v5 = vld [vmem:[#allocation122_spill] sm:$0xff] }
 0x7c9   :  { %v6085_v39 = vadd.f32 %v6084_v23, %v6036_v55  ;;  %v6787_v55 = vld [vmem:[%s13616_s4 + $0xf8] sm:$0xff] }
 0x7ca   :  { %6833 = vmatpush.msra.mxu0 %v6790_v43  ;;  %7015 = vmatpush.msrb.mxu3 %v6787_v55  ;;  %v14938_v43 = vld [vmem:[#allocation154_spill] sm:$0xff] }
 0x7cb   :  { %v13030_v19 = vadd.f32 %v6133_v24, %v6085_v39  ;;  %v14933_v24 = vld [vmem:[#allocation114_spill] sm:$0xff] }
 0x7cc   :  { %6834 = vmatpush.msra.mxu0 %v6789_v52 }
 0x7ce   :  { %v6037_v41 = vpop.f32.mrf.mxu2  ;;  %6835 = vmatpush.msra.mxu0 %v6788_v14  ;;  %v13080_v14 = vld [vmem:[%s13615_s3] sm:$0x3] }
 0x7cf   :  { %v6038_v29 = vadd.f32 %v6037_v41, %v12920_v26  ;;  %v6086_v32 = vpop.f32.mrf.mxu3  ;;  %v14935_v26 = vld [vmem:[#allocation160_spill] sm:$0xff] }
 0x7d0   :  { %v6138_v45 = vpop.f32.mrf.mxu0 }
 0x7d1   :  { %v6087_v51 = vadd.f32 %v6086_v32, %v6038_v29  ;;  %v6770_v29 = vld [vmem:[%s13616_s4 + $0x70] sm:$0xff] }
 0x7d2   :  { %6951 = vmatpush.msrb.mxu2 %v6770_v29  ;;  %v6786_v32 = vld [vmem:[%s13616_s4 + $0xf0] sm:$0xff]  ;;  %v6816_v29 = vld [vmem:[%s13617_s5 + $0xe0] sm:$0xff] }
 0x7d3   :  { %6235 = vmatmul.bf16.gmra.mxu2 %v14933_v24  ;;  %6333 = vmatmul.bf16.gmra.mxu0 %v14934_v16  ;;  %v13047_v8 = vadd.f32 %v6135_v1, %v6087_v51 }
 0x7d4   :  { %6284 = vmatmul.bf16.gmra.mxu3 %v14935_v26 }
 0x7d5   :  { %6382 = vmatmul.bf16.gmra.mxu1 %v14936_v36  ;;  %7016 = vmatpush.msrb.mxu3 %v6786_v32  ;;  %v6818_v36 = vld [vmem:[%s13617_s5 + $0xf0] sm:$0xff] }
 0x7d6   :  { %v6040_v2 = vpop.f32.mrf.mxu2  ;;  %6886 = vmatpush.msra.mxu1 %v6818_v36 }
 0x7d7   :  { %v6041_v60 = vadd.f32 %v6040_v2, %v12924_v0  ;;  %v6089_v56 = vpop.f32.mrf.mxu3 }
 0x7d8   :  { %v6140_v23 = vpop.f32.mrf.mxu0 }
 0x7d9   :  { %v6090_v35 = vadd.f32 %v6089_v56, %v6041_v60  ;;  %v6785_v60 = vld [vmem:[%s13616_s4 + $0xe8] sm:$0xff] }
 0x7da   :  { %7017 = vmatpush.msrb.mxu3 %v6785_v60 }
 0x7db   :  { %v13052_v3 = vadd.f32 %v6138_v45, %v6090_v35  ;;  %v13083_v45 = vperm.slane %v13080_v14, 0 }
 0x7dd   :  { %v6692_v2 = vadd.f32 %v13083_v45, %v12711_v53  ;;  %v6698_v36 = vadd.f32 %v13083_v45, %v12754_v48  ;;  %v6765_v48 = vld [vmem:[%s13616_s4 + $0x48] sm:$0xff] }
 0x7de   :  { %v6042_v38 = vpop.f32.mrf.mxu2 }
 0x7df   :  { %v6043_v39 = vadd.f32 %v6042_v38, %v12930_v54  ;;  %v6091_v1 = vpop.f32.mrf.mxu3  ;;  %v14939_v54 = vld [vmem:[#allocation164_spill] sm:$0xff]  ;;  %v6724_v55 = vmax.f32 %v6692_v2, 0.0 }
 0x7e0   :  { %v6143_v24 = vpop.f32.mrf.mxu0  ;;  %v6817_v38 = vld [vmem:[%s13617_s5 + $0xe8] sm:$0xff] }
 0x7e1   :  { %v6092_v0 = vadd.f32 %v6091_v1, %v6043_v39  ;;  %6887 = vmatpush.msra.mxu1 %v6817_v38  ;;  %v6694_v1 = vadd.f32 %v13083_v45, %v12724_v58  ;;  %v6767_v58 = vld [vmem:[%s13616_s4 + $0x58] sm:$0xff] }
 0x7e3   :  { %6240 = vmatmul.bf16.gmra.mxu2 %v12535_v25  ;;  %6338 = vmatmul.bf16.gmra.mxu0 %v14937_v5  ;;  %v13066_v41 = vadd.f32 %v6140_v23, %v6092_v0  ;;  %v6784_v0 = vld [vmem:[%s13616_s4 + $0xe0] sm:$0xff] }
 0x7e4   :  { %6289 = vmatmul.bf16.gmra.mxu3 %v14938_v43  ;;  %6888 = vmatpush.msra.mxu1 %v6816_v29 }
 0x7e5   :  { %6387 = vmatmul.bf16.gmra.mxu1 %v14939_v54  ;;  %7018 = vmatpush.msrb.mxu3 %v6784_v0  ;;  %v6696_v54 = vadd.f32 %v13083_v45, %v12741_v18  ;;  %v13135_v18 = vpop.f32.mrf.mxu1  ;;  %v6813_v0 = vld [vmem:[%s13617_s5 + $0xc8] sm:$0xff] }
 0x7e6   :  { %v6045_v52 = vpop.f32.mrf.mxu2 }
 0x7e7   :  { %v6046_v25 = vadd.f32 %v6045_v52, %v12934_v40  ;;  %v6094_v51 = vpop.f32.mrf.mxu3  ;;  %v6769_v40 = vld [vmem:[%s13616_s4 + $0x68] sm:$0xff] }
 0x7e8   :  { %6952 = vmatpush.msrb.mxu2 %v6769_v40  ;;  %v6145_v39 = vpop.f32.mrf.mxu0  ;;  %v6782_v40 = vld [vmem:[%s13616_s4 + $0xd0] sm:$0xff] }
 0x7e9   :  { %v6095_v16 = vadd.f32 %v6094_v51, %v6046_v25  ;;  %v6728_v51 = vmax.f32 %v6696_v54, 0.0  ;;  %v6779_v54 = vld [vmem:[%s13616_s4 + $0xb8] sm:$0xff] }
 0x7eb   :  { %v13085_v26 = vadd.f32 %v6143_v24, %v6095_v16  ;;  %v6815_v16 = vld [vmem:[%s13617_s5 + $0xd8] sm:$0xff] }
 0x7ec   :  { %6889 = vmatpush.msra.mxu1 %v6815_v16  ;;  %v6811_v16 = vld [vmem:[%s13617_s5 + $0xb8] sm:$0xff] }
 0x7ee   :  { %v6047_v56 = vpop.f32.mrf.mxu2 }
 0x7ef   :  { %v6048_v35 = vadd.f32 %v6047_v56, %v12940_v34  ;;  %v6096_v27 = vpop.f32.mrf.mxu3  ;;  %v6768_v34 = vld [vmem:[%s13616_s4 + $0x60] sm:$0xff] }
 0x7f0   :  { %6953 = vmatpush.msrb.mxu2 %v6768_v34 }
 0x7f1   :  { %v6097_v23 = vadd.f32 %v6096_v27, %v6048_v35  ;;  %v6814_v35 = vld [vmem:[%s13617_s5 + $0xd0] sm:$0xff]  ;;  %v6700_v27 = vadd.f32 %v13083_v45, %v12766_v42  ;;  %v6764_v42 = vld [vmem:[%s13616_s4 + $0x40] sm:$0xff] }
 0x7f2   :  { %6954 = vmatpush.msrb.mxu2 %v6767_v58  ;;  %6890 = vmatpush.msra.mxu1 %v6814_v35  ;;  %v6812_v58 = vld [vmem:[%s13617_s5 + $0xc0] sm:$0xff] }
 0x7f3   :  { %6401 = vmatmul.bf16.vlgmr.msra.gmra.mxu2 %v12553_v17  ;;  %6836 = vmatmul.f32.vlgmr.msra.gmra.mxu0 %v6724_v55  ;;  %v13103_v53 = vadd.f32 %v6145_v39, %v6097_v23  ;;  %v13160_v55 = vpop.f32.mrf.mxu1  ;;  %v6732_v34 = vmax.f32 %v6700_v27, 0.0 }
 0x7f4   :  { %6450 = vmatmul.bf16.vlgmr.msra.gmra.mxu3 %v12555_v30  ;;  %v6726_v30 = vmax.f32 %v6694_v1, 0.0  ;;  %6891 = vmatpush.msra.mxu1 %v6813_v0  ;;  %v6809_v0 = vld [vmem:[%s13617_s5 + $0xa8] sm:$0xff] }
 0x7f6   :  { %v6206_v61 = vpop.f32.mrf.mxu2  ;;  %6892 = vmatpush.msra.mxu1 %v6812_v58  ;;  %v6180_v58 = vadd.f32 %v13160_v55, %v13013_v57  ;;  %v14940_v57 = vld [vmem:[#allocation127_spill] sm:$0xff]  ;;  %v6758_v55 = vld [vmem:[%s13616_s4 + $0x10] sm:$0xff] }
 0x7f7   :  { %v6207_v17 = vadd.f32 %v6206_v61, %v12944_v47  ;;  %v6255_v5 = vpop.f32.mrf.mxu3  ;;  %v6783_v47 = vld [vmem:[%s13616_s4 + $0xd8] sm:$0xff]  ;;  %v6780_v61 = vld [vmem:[%s13616_s4 + $0xc0] sm:$0xff] }
 0x7f8   :  { %7019 = vmatpush.msrb.mxu3 %v6783_v47  ;;  %6893 = vmatpush.msra.mxu1 %v6811_v16 }
 0x7f9   :  { %v13115_v43 = vadd.f32 %v6255_v5, %v6207_v17 }
 0x7fa   :  { %7020 = vmatpush.msrb.mxu3 %v6782_v40  ;;  %v6778_v40 = vld [vmem:[%s13616_s4 + $0xb0] sm:$0xff] }
 0x7fb   :  { %6839 = vmatmul.f32.gmra.mxu0 %v6726_v30  ;;  %v13179_v30 = vpop.f32.mrf.mxu1 }
 0x7fe   :  { %v6208_v32 = vpop.f32.mrf.mxu2 }
 0x7ff   :  { %v6209_v52 = vadd.f32 %v6208_v32, %v12950_v13  ;;  %v6257_v25 = vpop.f32.mrf.mxu3  ;;  %v6766_v13 = vld [vmem:[%s13616_s4 + $0x50] sm:$0xff] }
 0x800   :  { %6955 = vmatpush.msrb.mxu2 %v6766_v13 }
 0x801   :  { %v13129_v24 = vadd.f32 %v6257_v25, %v6209_v52 }
 0x802   :  { %6956 = vmatpush.msrb.mxu2 %v6765_v48  ;;  %v6777_v48 = vld [vmem:[%s13616_s4 + $0xa8] sm:$0xff] }
 0x803   :  { %6406 = vmatmul.bf16.gmra.mxu2 %v12579_v50  ;;  %6842 = vmatmul.f32.gmra.mxu0 %v6728_v51  ;;  %v13200_v13 = vpop.f32.mrf.mxu1 }
 0x804   :  { %6455 = vmatmul.bf16.gmra.mxu3 %v12581_v15  ;;  %v6730_v15 = vmax.f32 %v6698_v36, 0.0  ;;  %6957 = vmatpush.msrb.mxu2 %v6764_v42  ;;  %v13209_v36 = vpop.f32.mrf.mxu0  ;;  %v6178_v42 = vadd.f32 %v13135_v18, %v12996_v59  ;;  %v6759_v59 = vld [vmem:[%s13616_s4 + $0x18] sm:$0xff]  ;;  %v6712_v18 = vadd.f32 %v13083_v45, %v12808_v31 }
 0x805   :  { %v6807_v31 = vld [vmem:[%s13617_s5 + $0x98] sm:$0xff] }
 0x806   :  { %v6211_v2 = vpop.f32.mrf.mxu2 }
 0x807   :  { %v6212_v50 = vadd.f32 %v6211_v2, %v12954_v33  ;;  %v6260_v60 = vpop.f32.mrf.mxu3  ;;  %v6781_v33 = vld [vmem:[%s13616_s4 + $0xc8] sm:$0xff] }
 0x808   :  { %7021 = vmatpush.msrb.mxu3 %v6781_v33 }
 0x809   :  { %v13147_v56 = vadd.f32 %v6260_v60, %v6212_v50 }
 0x80a   :  { %7022 = vmatpush.msrb.mxu3 %v6780_v61 }
 0x80b   :  { %6845 = vmatmul.f32.gmra.mxu0 %v6730_v15  ;;  %v6810_v15 = vld [vmem:[%s13617_s5 + $0xb0] sm:$0xff]  ;;  %v13223_v35 = vpop.f32.mrf.mxu1 }
 0x80c   :  { %7023 = vmatpush.msrb.mxu3 %v6779_v54  ;;  %6894 = vmatpush.msra.mxu1 %v6810_v15  ;;  %v13230_v33 = vpop.f32.mrf.mxu0 }
 0x80e   :  { %v6213_v23 = vpop.f32.mrf.mxu2  ;;  %7024 = vmatpush.msrb.mxu3 %v6778_v40  ;;  %6895 = vmatpush.msra.mxu1 %v6809_v0  ;;  %v6183_v40 = vadd.f32 %v13179_v30, %v13030_v19  ;;  %v6757_v19 = vld [vmem:[%s13616_s4 + $0x8] sm:$0xff]  ;;  %v14942_v30 = vld [vmem:[#allocation158_spill] sm:$0xff] }
 0x80f   :  { %v6214_v38 = vadd.f32 %v6213_v23, %v12960_v9  ;;  %v6262_v39 = vpop.f32.mrf.mxu3  ;;  %v6702_v9 = vadd.f32 %v13083_v45, %v12771_v28  ;;  %v6763_v28 = vld [vmem:[%s13616_s4 + $0x38] sm:$0xff] }
 0x810   :  { %6958 = vmatpush.msrb.mxu2 %v6763_v28  ;;  %7025 = vmatpush.msrb.mxu3 %v6777_v48  ;;  %v6775_v28 = vld [vmem:[%s13616_s4 + $0x98] sm:$0xff]  ;;  %v6716_v48 = vadd.f32 %v13083_v45, %v14942_v30 }
 0x811   :  { %v13163_v1 = vadd.f32 %v6262_v39, %v6214_v38  ;;  %v6734_v29 = vmax.f32 %v6702_v9, 0.0  ;;  %v6776_v9 = vld [vmem:[%s13616_s4 + $0xa0] sm:$0xff] }
 0x812   :  { %7026 = vmatpush.msrb.mxu3 %v6776_v9  ;;  %v6805_v9 = vld [vmem:[%s13617_s5 + $0x88] sm:$0xff] }
 0x813   :  { %6411 = vmatmul.bf16.gmra.mxu2 %v12609_v12  ;;  %6848 = vmatmul.f32.gmra.mxu0 %v6732_v34  ;;  %v13250_v61 = vpop.f32.mrf.mxu1 }
 0x814   :  { %6460 = vmatmul.bf16.gmra.mxu3 %v12611_v46 }
 0x815   :  { %7027 = vmatpush.msrb.mxu3 %v6775_v28 }
 0x816   :  { %v6216_v17 = vpop.f32.mrf.mxu2 }
 0x817   :  { %v6217_v5 = vadd.f32 %v6216_v17, %v12964_v4  ;;  %v6265_v12 = vpop.f32.mrf.mxu3  ;;  %v6704_v4 = vadd.f32 %v13083_v45, %v12780_v21  ;;  %v6762_v21 = vld [vmem:[%s13616_s4 + $0x30] sm:$0xff] }
 0x818   :  { %6959 = vmatpush.msrb.mxu2 %v6762_v21  ;;  %v14941_v21 = vld [vmem:[#allocation134_spill] sm:$0xff] }
 0x819   :  { %v13181_v46 = vadd.f32 %v6265_v12, %v6217_v5  ;;  %v6736_v25 = vmax.f32 %v6704_v4, 0.0  ;;  %v13252_v5 = vpop.f32.mrf.mxu0 }
 0x81b   :  { %6851 = vmatmul.f32.gmra.mxu0 %v6734_v29 }
 0x81e   :  { %v6218_v47 = vpop.f32.mrf.mxu2 }
 0x81f   :  { %v6219_v32 = vadd.f32 %v6218_v47, %v12970_v62  ;;  %v6267_v52 = vpop.f32.mrf.mxu3  ;;  %v6706_v62 = vadd.f32 %v13083_v45, %v12785_v11  ;;  %v6761_v11 = vld [vmem:[%s13616_s4 + $0x28] sm:$0xff] }
 0x820   :  { %6960 = vmatpush.msrb.mxu2 %v6761_v11  ;;  %v6806_v11 = vld [vmem:[%s13617_s5 + $0x90] sm:$0xff] }
 0x821   :  { %v13195_v51 = vadd.f32 %v6267_v52, %v6219_v32  ;;  %v6738_v60 = vmax.f32 %v6706_v62, 0.0  ;;  %v13269_v32 = vpop.f32.mrf.mxu1  ;;  %v6744_v52 = vmax.f32 %v6712_v18, 0.0  ;;  %v13276_v16 = vpop.f32.mrf.mxu0  ;;  %v6714_v62 = vadd.f32 %v13083_v45, %v14941_v21 }
 0x823   :  { %6416 = vmatmul.bf16.gmra.mxu2 %v12627_v6  ;;  %6854 = vmatmul.f32.gmra.mxu0 %v6736_v25  ;;  %v6746_v15 = vmax.f32 %v6714_v62, 0.0 }
 0x824   :  { %6465 = vmatmul.bf16.gmra.mxu3 %v12629_v44 }
 0x826   :  { %v6221_v2 = vpop.f32.mrf.mxu2 }
 0x827   :  { %v6222_v6 = vadd.f32 %v6221_v2, %v12974_v22  ;;  %v6270_v50 = vpop.f32.mrf.mxu3  ;;  %v6708_v22 = vadd.f32 %v13083_v45, %v12794_v49  ;;  %v6760_v49 = vld [vmem:[%s13616_s4 + $0x20] sm:$0xff]  ;;  %v6774_v2 = vld [vmem:[%s13616_s4 + $0x90] sm:$0xff] }
 0x828   :  { %6961 = vmatpush.msrb.mxu2 %v6760_v49  ;;  %7028 = vmatpush.msrb.mxu3 %v6774_v2 }
 0x829   :  { %v13215_v44 = vadd.f32 %v6270_v50, %v6222_v6  ;;  %v6740_v39 = vmax.f32 %v6708_v22, 0.0  ;;  %v6194_v22 = vpop.f32.mrf.mxu1 }
 0x82a   :  { %6962 = vmatpush.msrb.mxu2 %v6759_v59  ;;  %v6188_v59 = vadd.f32 %v13223_v35, %v13052_v3  ;;  %v6804_v3 = vld [vmem:[%s13617_s5 + $0x80] sm:$0xff] }
 0x82b   :  { %6857 = vmatmul.f32.gmra.mxu0 %v6738_v60 }
 0x82c   :  { %6963 = vmatpush.msrb.mxu2 %v6758_v55 }
 0x82e   :  { %v6223_v27 = vpop.f32.mrf.mxu2  ;;  %6964 = vmatpush.msrb.mxu2 %v6757_v19 }
 0x82f   :  { %v6224_v23 = vadd.f32 %v6223_v27, %v12983_v7  ;;  %v6272_v38 = vpop.f32.mrf.mxu3  ;;  %v6710_v7 = vadd.f32 %v13083_v45, %v12799_v20  ;;  %v6808_v20 = vld [vmem:[%s13617_s5 + $0xa0] sm:$0xff]  ;;  %v6185_v27 = vadd.f32 %v13200_v13, %v13047_v8 }
 0x830   :  { %6896 = vmatpush.msra.mxu1 %v6808_v20  ;;  %v6756_v8 = vld [vmem:[%s13616_s4] sm:$0xff] }
 0x831   :  { %v13233_v34 = vadd.f32 %v6272_v38, %v6224_v23  ;;  %v6742_v29 = vmax.f32 %v6710_v7, 0.0  ;;  %v13302_v23 = vpop.f32.mrf.mxu0  ;;  %v6773_v38 = vld [vmem:[%s13616_s4 + $0x88] sm:$0xff]  ;;  %v6748_v7 = vmax.f32 %v6716_v48, 0.0  ;;  %6965 = vmatpush.msrb.mxu2 %v6756_v8  ;;  %v6772_v13 = vld [vmem:[%s13616_s4 + $0x80] sm:$0xff] }
 0x832   :  { %6897 = vmatpush.msra.mxu1 %v6807_v31  ;;  %7029 = vmatpush.msrb.mxu3 %v6773_v38 }
 0x833   :  { %6421 = vmatmul.bf16.gmra.mxu2 %v12641_v37  ;;  %6860 = vmatmul.f32.gmra.mxu0 %v6740_v39 }
 0x834   :  { %6470 = vmatmul.bf16.gmra.mxu3 %v12643_v63  ;;  %6898 = vmatpush.msra.mxu1 %v6806_v11 }
 0x835   :  { %7030 = vmatpush.msrb.mxu3 %v6772_v13 }
 0x836   :  { %v6226_v37 = vpop.f32.mrf.mxu2  ;;  %6899 = vmatpush.msra.mxu1 %v6805_v9  ;;  %v14951_v9 = vld [vmem:[#allocation188_spill] sm:$0xff] }
 0x837   :  { %v6227_v63 = vadd.f32 %v6226_v37, %v6178_v42  ;;  %v6275_v17 = vpop.f32.mrf.mxu3  ;;  %v14943_v37 = vld [vmem:[#allocation128_spill] sm:$0xff] }
 0x838   :  { %6900 = vmatpush.msra.mxu1 %v6804_v3  ;;  %v6307_v3 = vadd.f32 %v13230_v33, %v13129_v24  ;;  %v6310_v33 = vadd.f32 %v13252_v5, %v13147_v56  ;;  %v6312_v56 = vadd.f32 %v13276_v16, %v13163_v1 }
 0x839   :  { %v13254_v12 = vadd.f32 %v6275_v17, %v6227_v63  ;;  %v6353_v63 = vpop.f32.mrf.mxu1  ;;  %v14944_v17 = vld [vmem:[#allocation155_spill] sm:$0xff] }
 0x83b   :  { %6863 = vmatmul.f32.gmra.mxu0 %v6742_v29  ;;  %v14945_v29 = vld [vmem:[#allocation169_spill] sm:$0xff] }
 0x83c   :  { %v6718_v20 = vadd.f32 %v13083_v45, %v14945_v29  ;;  %v6305_v29 = vadd.f32 %v13209_v36, %v13115_v43 }
 0x83e   :  { %v6228_v4 = vpop.f32.mrf.mxu2 }
 0x83f   :  { %v6229_v54 = vadd.f32 %v6228_v4, %v6180_v58  ;;  %v6277_v47 = vpop.f32.mrf.mxu3  ;;  %v13324_v58 = vpop.f32.mrf.mxu0 }
 0x841   :  { %v13271_v25 = vadd.f32 %v6277_v47, %v6229_v54  ;;  %v6750_v47 = vmax.f32 %v6718_v20, 0.0  ;;  %v6355_v35 = vpop.f32.mrf.mxu1 }
 0x843   :  { %6426 = vmatmul.bf16.gmra.mxu2 %v12655_v10  ;;  %6866 = vmatmul.f32.gmra.mxu0 %v6744_v52  ;;  %v14946_v52 = vld [vmem:[#allocation139_spill] sm:$0xff] }
 0x844   :  { %6475 = vmatmul.bf16.gmra.mxu3 %v14940_v57  ;;  %v6720_v31 = vadd.f32 %v13083_v45, %v14946_v52  ;;  %v6190_v57 = vadd.f32 %v13250_v61, %v13066_v41  ;;  %v14949_v41 = vld [vmem:[#allocation140_spill] sm:$0xff] }
 0x845   :  { %v6722_v61 = vadd.f32 %v13083_v45, %v14949_v41  ;;  %v14955_v41 = vld [vmem:[#allocation35_spill] sm:$0xff] }
 0x846   :  { %v6231_v6 = vpop.f32.mrf.mxu2 }
 0x847   :  { %v6232_v10 = vadd.f32 %v6231_v6, %v6183_v40  ;;  %v6280_v50 = vpop.f32.mrf.mxu3  ;;  %v6752_v40 = vmax.f32 %v6720_v31, 0.0  ;;  %v13335_v2 = vpop.f32.mrf.mxu0  ;;  %v6754_v38 = vmax.f32 %v6722_v61, 0.0 }
 0x849   :  { %v13290_v60 = vadd.f32 %v6280_v50, %v6232_v10  ;;  %v14947_v10 = vld [vmem:[#allocation167_spill] sm:$0xff]  ;;  %v14948_v50 = vld [vmem:[#allocation133_spill] sm:$0xff]  ;;  %v6358_v48 = vpop.f32.mrf.mxu1 }
 0x84b   :  { %6869 = vmatmul.f32.gmra.mxu0 %v6746_v15  ;;  %v6193_v15 = vadd.f32 %v13269_v32, %v13085_v26  ;;  %v6195_v32 = vadd.f32 %v6194_v22, %v13103_v53  ;;  %v6354_v53 = vadd.f32 %v6353_v63, %v6305_v29  ;;  %v14953_v22 = vld [vmem:[#allocation32_spill] sm:$0xff] }
 0x84e   :  { %v6233_v39 = vpop.f32.mrf.mxu2 }
 0x84f   :  { %v6234_v0 = vadd.f32 %v6233_v39, %v6185_v27  ;;  %v6282_v49 = vpop.f32.mrf.mxu3  ;;  %v13348_v39 = vperm.slane %v13080_v14, 1 }
 0x851   :  { %v13307_v42 = vadd.f32 %v6282_v49, %v6234_v0  ;;  %v13350_v0 = vpop.f32.mrf.mxu0  ;;  %v7119_v49 = vld [vmem:[%s13619_s7 + $0x18] sm:$0xff]  ;;  %v6597_v8 = vadd.f32 %v13348_v39, %v14951_v9  ;;  %v6601_v61 = vadd.f32 %v13348_v39, %v14955_v41 }
 0x852   :  { %7185 = vmatpush.msrb.mxu0 %v7119_v49  ;;  %v14957_v9 = vld [vmem:[#allocation42_spill] sm:$0xff] }
 0x853   :  { %6431 = vmatmul.bf16.gmra.mxu2 %v14943_v37  ;;  %6872 = vmatmul.f32.gmra.mxu0 %v6748_v7  ;;  %v14950_v7 = vld [vmem:[#allocation275_spill] sm:$0xff] }
 0x854   :  { %6480 = vmatmul.bf16.gmra.mxu3 %v14944_v17  ;;  %v6596_v26 = vadd.f32 %v13083_v45, %v14950_v7  ;;  %v14956_v7 = vld [vmem:[#allocation277_spill] sm:$0xff] }
 0x856   :  { %v6236_v18 = vpop.f32.mrf.mxu2  ;;  %v6628_v17 = vmax.f32 %v6596_v26, 0.0  ;;  %v6359_v26 = vadd.f32 %v6358_v48, %v6310_v33  ;;  %v7118_v48 = vld [vmem:[%s13619_s7 + $0x10] sm:$0xff] }
 0x857   :  { %v6237_v28 = vadd.f32 %v6236_v18, %v6188_v59  ;;  %v6285_v4 = vpop.f32.mrf.mxu3  ;;  %v6629_v59 = vmax.f32 %v6597_v8, 0.0  ;;  %v6360_v18 = vpop.f32.mrf.mxu1  ;;  %v6603_v8 = vadd.f32 %v13348_v39, %v14957_v9  ;;  %7186 = vmatpush.msrb.mxu0 %v7118_v48  ;;  %v14963_v9 = vld [vmem:[#allocation49_spill] sm:$0xff] }
 0x859   :  { %v13326_v54 = vadd.f32 %v6285_v4, %v6237_v28  ;;  %v14952_v28 = vld [vmem:[#allocation276_spill] sm:$0xff]  ;;  %v13392_v16 = vpop.f32.mrf.mxu0 }
 0x85a   :  { %v6598_v4 = vadd.f32 %v13083_v45, %v14952_v28 }
 0x85b   :  { %6875 = vmatmul.f32.gmra.mxu0 %v6750_v47  ;;  %v6599_v47 = vadd.f32 %v13348_v39, %v14953_v22  ;;  %v6361_v22 = vadd.f32 %v6360_v18, %v6312_v56  ;;  %v14960_v18 = vld [vmem:[#allocation74_spill] sm:$0xff] }
 0x85c   :  { %v6630_v36 = vmax.f32 %v6598_v4, 0.0  ;;  %v14958_v4 = vld [vmem:[#allocation73_spill] sm:$0xff] }
 0x85e   :  { %v6238_v55 = vpop.f32.mrf.mxu2 }
 0x85f   :  { %v6239_v21 = vadd.f32 %v6238_v55, %v6190_v57  ;;  %v6287_v62 = vpop.f32.mrf.mxu3  ;;  %v6631_v55 = vmax.f32 %v6599_v47, 0.0 }
 0x861   :  { %v13337_v6 = vadd.f32 %v6287_v62, %v6239_v21  ;;  %v6363_v62 = vpop.f32.mrf.mxu1  ;;  %v13401_v33 = vpop.f32.mrf.mxu0 }
 0x863   :  { %6436 = vmatmul.bf16.gmra.mxu2 %v14947_v10  ;;  %6878 = vmatmul.f32.gmra.mxu0 %v6752_v40  ;;  %v14954_v40 = vld [vmem:[#allocation68_spill] sm:$0xff]  ;;  %v6356_v10 = vadd.f32 %v6355_v35, %v6307_v3  ;;  %v6602_v35 = vadd.f32 %v13083_v45, %v14956_v7 }
 0x864   :  { %6485 = vmatmul.bf16.gmra.mxu3 %v14948_v50  ;;  %v6600_v63 = vadd.f32 %v13083_v45, %v14954_v40 }
 0x865   :  { %v6634_v29 = vmax.f32 %v6602_v35, 0.0 }
 0x866   :  { %v6241_v11 = vpop.f32.mrf.mxu2  ;;  %v6632_v24 = vmax.f32 %v6600_v63, 0.0 }
 0x867   :  { %v6242_v19 = vadd.f32 %v6241_v11, %v6193_v15  ;;  %v6290_v30 = vpop.f32.mrf.mxu3 }
 0x869   :  { %v13345_v27 = vadd.f32 %v6290_v30, %v6242_v19 }
 0x86b   :  { %6881 = vmatmul.f32.gmra.mxu0 %v6754_v38  ;;  %v6633_v38 = vmax.f32 %v6601_v61, 0.0  ;;  %v14961_v61 = vld [vmem:[#allocation45_spill] sm:$0xff] }
 0x86e   :  { %v6243_v13 = vpop.f32.mrf.mxu2 }
 0x86f   :  { %v6244_v37 = vadd.f32 %v6243_v13, %v6195_v32  ;;  %v6292_v14 = vpop.f32.mrf.mxu3  ;;  %v6365_v13 = vpop.f32.mrf.mxu1 }
 0x871   :  { %v13362_v20 = vadd.f32 %v6292_v14, %v6244_v37 }
 0x873   :  { %6966 = vmatmul.f32.vlgmr.msrb.gmra.mxu2 %v6628_v17 }
 0x874   :  { %7031 = vmatmul.f32.vlgmr.msrb.gmra.mxu3 %v6629_v59  ;;  %v6635_v59 = vmax.f32 %v6603_v8, 0.0  ;;  %v6609_v8 = vadd.f32 %v13348_v39, %v14963_v9 }
 0x876   :  { %v6402_v52 = vpop.f32.mrf.mxu2 }
 0x877   :  { %v6403_v31 = vadd.f32 %v6402_v52, %v6354_v53  ;;  %v6451_v57 = vpop.f32.mrf.mxu3  ;;  %v6604_v53 = vadd.f32 %v13083_v45, %v14958_v4  ;;  %v14959_v52 = vld [vmem:[#allocation193_spill] sm:$0xff] }
 0x878   :  { %v6605_v1 = vadd.f32 %v13348_v39, %v14959_v52 }
 0x879   :  { %v6452_v43 = vadd.f32 %v6451_v57, %v6403_v31 }
 0x87a   :  { %v6637_v40 = vmax.f32 %v6605_v1, 0.0 }
 0x87b   :  { %v6693_v21 = vadd.f32 %v13348_v39, %v6452_v43  ;;  %6969 = vmatmul.f32.gmra.mxu2 %v6630_v36  ;;  %v6368_v43 = vpop.f32.mrf.mxu1  ;;  %v6636_v36 = vmax.f32 %v6604_v53, 0.0 }
 0x87c   :  { %7034 = vmatmul.f32.gmra.mxu3 %v6631_v55  ;;  %v6315_v55 = vadd.f32 %v13302_v23, %v13181_v46  ;;  %v6317_v46 = vadd.f32 %v13324_v58, %v13195_v51  ;;  %v6320_v58 = vadd.f32 %v13335_v2, %v13215_v44  ;;  %v6322_v2 = vadd.f32 %v13350_v0, %v13233_v34 }
 0x87d   :  { %v6725_v50 = vmax.f32 %v6693_v21, 0.0 }
 0x87e   :  { %v6404_v15 = vpop.f32.mrf.mxu2  ;;  %v6369_v4 = vadd.f32 %v6368_v43, %v6320_v58  ;;  %v14966_v43 = vld [vmem:[#allocation86_spill] sm:$0xff] }
 0x87f   :  { %v6405_v11 = vadd.f32 %v6404_v15, %v6356_v10  ;;  %v6453_v19 = vpop.f32.mrf.mxu3  ;;  %6901 = vmatmul.f32.vlgmr.msra.gmra.mxu1 %v6725_v50  ;;  %v6606_v10 = vadd.f32 %v13083_v45, %v14960_v18  ;;  %v6364_v50 = vadd.f32 %v6363_v62, %v6315_v55  ;;  %v6607_v15 = vadd.f32 %v13348_v39, %v14961_v61  ;;  %v14962_v62 = vld [vmem:[#allocation79_spill] sm:$0xff]  ;;  %v7117_v18 = vld [vmem:[%s13619_s7 + $0x8] sm:$0xff] }
 0x880   :  { %v6608_v35 = vadd.f32 %v13083_v45, %v14962_v62  ;;  %7187 = vmatpush.msrb.mxu0 %v7117_v18 }
 0x881   :  { %v6454_v30 = vadd.f32 %v6453_v19, %v6405_v11 }
 0x882   :  { %v6640_v51 = vmax.f32 %v6608_v35, 0.0 }
 0x883   :  { %v6695_v49 = vadd.f32 %v13348_v39, %v6454_v30  ;;  %6972 = vmatmul.f32.gmra.mxu2 %v6632_v24  ;;  %v6638_v30 = vmax.f32 %v6606_v10, 0.0  ;;  %v14967_v10 = vld [vmem:[#allocation199_spill] sm:$0xff] }
 0x884   :  { %7037 = vmatmul.f32.gmra.mxu3 %v6633_v38  ;;  %v6370_v38 = vpop.f32.mrf.mxu1  ;;  %v6613_v34 = vadd.f32 %v13348_v39, %v14967_v10 }
 0x885   :  { %v6727_v32 = vmax.f32 %v6695_v49, 0.0  ;;  %v6639_v49 = vmax.f32 %v6607_v15, 0.0 }
 0x886   :  { %v6407_v37 = vpop.f32.mrf.mxu2 }
 0x887   :  { %v6408_v14 = vadd.f32 %v6407_v37, %v6359_v26  ;;  %v6456_v17 = vpop.f32.mrf.mxu3  ;;  %6904 = vmatmul.f32.gmra.mxu1 %v6727_v32  ;;  %v6366_v26 = vadd.f32 %v6365_v13, %v6317_v46 }
 0x889   :  { %v6457_v5 = vadd.f32 %v6456_v17, %v6408_v14 }
 0x88b   :  { %v6697_v28 = vadd.f32 %v13348_v39, %v6457_v5  ;;  %6975 = vmatmul.f32.gmra.mxu2 %v6634_v29  ;;  %v6641_v5 = vmax.f32 %v6609_v8, 0.0  ;;  %v13412_v29 = vpop.f32.mrf.mxu0 }
 0x88c   :  { %7040 = vmatmul.f32.gmra.mxu3 %v6635_v59  ;;  %v6373_v13 = vpop.f32.mrf.mxu1 }
 0x88d   :  { %v6729_v47 = vmax.f32 %v6697_v28, 0.0  ;;  %v14964_v28 = vld [vmem:[#allocation80_spill] sm:$0xff] }
 0x88e   :  { %v6409_v31 = vpop.f32.mrf.mxu2  ;;  %v6610_v48 = vadd.f32 %v13083_v45, %v14964_v28 }
 0x88f   :  { %v6410_v57 = vadd.f32 %v6409_v31, %v6361_v22  ;;  %v6458_v3 = vpop.f32.mrf.mxu3  ;;  %6907 = vmatmul.f32.gmra.mxu1 %v6729_v47  ;;  %v14965_v22 = vld [vmem:[#allocation55_spill] sm:$0xff] }
 0x890   :  { %v6611_v47 = vadd.f32 %v13348_v39, %v14965_v22 }
 0x891   :  { %v6459_v21 = vadd.f32 %v6458_v3, %v6410_v57  ;;  %v6642_v57 = vmax.f32 %v6610_v48, 0.0 }
 0x892   :  { %v6643_v3 = vmax.f32 %v6611_v47, 0.0 }
 0x893   :  { %v6699_v63 = vadd.f32 %v13348_v39, %v6459_v21  ;;  %6978 = vmatmul.f32.gmra.mxu2 %v6636_v36  ;;  %v6331_v55 = vpop.f32.mrf.mxu0  ;;  %v6612_v21 = vadd.f32 %v13083_v45, %v14966_v43 }
 0x894   :  { %7043 = vmatmul.f32.gmra.mxu3 %v6637_v40  ;;  %v6371_v40 = vadd.f32 %v6370_v38, %v6322_v2  ;;  %v6375_v0 = vpop.f32.mrf.mxu1 }
 0x895   :  { %v6731_v41 = vmax.f32 %v6699_v63, 0.0  ;;  %v6644_v15 = vmax.f32 %v6612_v21, 0.0 }
 0x896   :  { %v6412_v11 = vpop.f32.mrf.mxu2 }
 0x897   :  { %v6413_v19 = vadd.f32 %v6412_v11, %v6364_v50  ;;  %v6461_v24 = vpop.f32.mrf.mxu3  ;;  %6910 = vmatmul.f32.gmra.mxu1 %v6731_v41  ;;  %v6325_v11 = vadd.f32 %v13392_v16, %v13254_v12  ;;  %v6327_v16 = vadd.f32 %v13401_v33, %v13271_v25 }
 0x899   :  { %v6462_v23 = vadd.f32 %v6461_v24, %v6413_v19  ;;  %v6645_v24 = vmax.f32 %v6613_v34, 0.0  ;;  %v6374_v38 = vadd.f32 %v6373_v13, %v6325_v11  ;;  %v7116_v11 = vld [vmem:[%s13619_s7] sm:$0xff] }
 0x89a   :  { %7188 = vmatpush.msrb.mxu0 %v7116_v11 }
 0x89b   :  { %v6701_v7 = vadd.f32 %v13348_v39, %v6462_v23  ;;  %6981 = vmatmul.f32.gmra.mxu2 %v6638_v30  ;;  %v14968_v23 = vld [vmem:[#allocation280_spill] sm:$0xff]  ;;  %v6334_v35 = vpop.f32.mrf.mxu0 }
 0x89c   :  { %7046 = vmatmul.f32.gmra.mxu3 %v6639_v49  ;;  %v6614_v30 = vadd.f32 %v13083_v45, %v14968_v23  ;;  %v6378_v12 = vpop.f32.mrf.mxu1 }
 0x89d   :  { %v6733_v32 = vmax.f32 %v6701_v7, 0.0  ;;  %v14969_v7 = vld [vmem:[#allocation60_spill] sm:$0xff] }
 0x89e   :  { %v6414_v37 = vpop.f32.mrf.mxu2  ;;  %v6615_v62 = vadd.f32 %v13348_v39, %v14969_v7 }
 0x89f   :  { %v6415_v14 = vadd.f32 %v6414_v37, %v6366_v26  ;;  %v6463_v17 = vpop.f32.mrf.mxu3  ;;  %6913 = vmatmul.f32.gmra.mxu1 %v6733_v32  ;;  %v6646_v37 = vmax.f32 %v6614_v30, 0.0  ;;  %v6335_v30 = vadd.f32 %v6334_v35, %v13326_v54 }
 0x8a1   :  { %v6464_v56 = vadd.f32 %v6463_v17, %v6415_v14  ;;  %v6647_v14 = vmax.f32 %v6615_v62, 0.0 }
 0x8a3   :  { %v6703_v59 = vadd.f32 %v13348_v39, %v6464_v56  ;;  %6984 = vmatmul.f32.gmra.mxu2 %v6640_v51  ;;  %v14970_v51 = vld [vmem:[#allocation283_spill] sm:$0xff]  ;;  %v6376_v56 = vadd.f32 %v6375_v0, %v6327_v16  ;;  %v6336_v25 = vpop.f32.mrf.mxu0 }
 0x8a4   :  { %7049 = vmatmul.f32.gmra.mxu3 %v6641_v5  ;;  %v6616_v58 = vadd.f32 %v13083_v45, %v14970_v51  ;;  %v14977_v16 = vld [vmem:[#allocation223_spill] sm:$0xff]  ;;  %v6337_v54 = vadd.f32 %v6336_v25, %v13337_v6 }
 0x8a5   :  { %v6735_v53 = vmax.f32 %v6703_v59, 0.0  ;;  %v14971_v59 = vld [vmem:[#allocation205_spill] sm:$0xff] }
 0x8a6   :  { %v6417_v52 = vpop.f32.mrf.mxu2  ;;  %v6617_v13 = vadd.f32 %v13348_v39, %v14971_v59  ;;  %v6648_v33 = vmax.f32 %v6616_v58, 0.0  ;;  %v14978_v59 = vld [vmem:[#allocation119_spill] sm:$0xff] }
 0x8a7   :  { %v6418_v1 = vadd.f32 %v6417_v52, %v6369_v4  ;;  %v6466_v44 = vpop.f32.mrf.mxu3  ;;  %6916 = vmatmul.f32.gmra.mxu1 %v6735_v53  ;;  %v6330_v53 = vadd.f32 %v13412_v29, %v13290_v60  ;;  %v6380_v52 = vpop.f32.mrf.mxu1  ;;  %v6332_v60 = vadd.f32 %v6331_v55, %v13307_v42 }
 0x8a8   :  { %v6649_v47 = vmax.f32 %v6617_v13, 0.0  ;;  %v6624_v13 = vadd.f32 %v13083_v45, %v14978_v59 }
 0x8a9   :  { %v6467_v31 = vadd.f32 %v6466_v44, %v6418_v1  ;;  %v14972_v44 = vld [vmem:[#allocation288_spill] sm:$0xff] }
 0x8aa   :  { %v6618_v2 = vadd.f32 %v13083_v45, %v14972_v44  ;;  %v6656_v25 = vmax.f32 %v6624_v13, 0.0 }
 0x8ab   :  { %v6705_v36 = vadd.f32 %v13348_v39, %v6467_v31  ;;  %6987 = vmatmul.f32.gmra.mxu2 %v6642_v57  ;;  %v6379_v31 = vadd.f32 %v6378_v12, %v6330_v53  ;;  %v6339_v18 = vpop.f32.mrf.mxu0 }
 0x8ac   :  { %7052 = vmatmul.f32.gmra.mxu3 %v6643_v3  ;;  %v14973_v3 = vld [vmem:[#allocation211_spill] sm:$0xff] }
 0x8ad   :  { %v6737_v63 = vmax.f32 %v6705_v36, 0.0  ;;  %v6619_v36 = vadd.f32 %v13348_v39, %v14973_v3 }
 0x8ae   :  { %v6419_v50 = vpop.f32.mrf.mxu2 }
 0x8af   :  { %v6420_v41 = vadd.f32 %v6419_v50, %v6371_v40  ;;  %v6468_v61 = vpop.f32.mrf.mxu3  ;;  %6919 = vmatmul.f32.gmra.mxu1 %v6737_v63  ;;  %v6650_v63 = vmax.f32 %v6618_v2, 0.0  ;;  %v6651_v10 = vmax.f32 %v6619_v36, 0.0  ;;  %v6383_v0 = vpop.f32.mrf.mxu1  ;;  %v14974_v50 = vld [vmem:[#allocation289_spill] sm:$0xff] }
 0x8b1   :  { %v6469_v19 = vadd.f32 %v6468_v61, %v6420_v41  ;;  %v6620_v41 = vadd.f32 %v13083_v45, %v14974_v50  ;;  %v6381_v61 = vadd.f32 %v6380_v52, %v6332_v60 }
 0x8b3   :  { %v6707_v46 = vadd.f32 %v13348_v39, %v6469_v19  ;;  %6990 = vmatmul.f32.gmra.mxu2 %v6644_v15  ;;  %v14975_v19 = vld [vmem:[#allocation213_spill] sm:$0xff]  ;;  %v6652_v23 = vmax.f32 %v6620_v41, 0.0  ;;  %v6341_v62 = vpop.f32.mrf.mxu0 }
 0x8b4   :  { %7055 = vmatmul.f32.gmra.mxu3 %v6645_v24  ;;  %v6621_v42 = vadd.f32 %v13348_v39, %v14975_v19 }
 0x8b5   :  { %v6739_v49 = vmax.f32 %v6707_v46, 0.0 }
 0x8b6   :  { %v6422_v26 = vpop.f32.mrf.mxu2 }
 0x8b7   :  { %v6423_v32 = vadd.f32 %v6422_v26, %v6374_v38  ;;  %v6471_v9 = vpop.f32.mrf.mxu3  ;;  %6922 = vmatmul.f32.gmra.mxu1 %v6739_v49  ;;  %v6653_v49 = vmax.f32 %v6621_v42, 0.0  ;;  %v14976_v26 = vld [vmem:[#allocation291_spill] sm:$0xff] }
 0x8b9   :  { %v6472_v8 = vadd.f32 %v6471_v9, %v6423_v32  ;;  %v6622_v32 = vadd.f32 %v13083_v45, %v14976_v26  ;;  %v6384_v9 = vadd.f32 %v6383_v0, %v6335_v30 }
 0x8bb   :  { %v6709_v17 = vadd.f32 %v13348_v39, %v6472_v8  ;;  %6993 = vmatmul.f32.gmra.mxu2 %v6646_v37  ;;  %v6623_v8 = vadd.f32 %v13348_v39, %v14977_v16  ;;  %v6385_v37 = vpop.f32.mrf.mxu1  ;;  %v6654_v58 = vmax.f32 %v6622_v32, 0.0  ;;  %v6837_v53 = vpop.f32.mrf.mxu0  ;;  %v13486_v32 = vld [vmem:[%s13618_s6] ss:$0 sm:$0xff] }
 0x8bc   :  { %7058 = vmatmul.f32.gmra.mxu3 %v6647_v14 }
 0x8bd   :  { %v6741_v5 = vmax.f32 %v6709_v17, 0.0 }
 0x8be   :  { %v6424_v28 = vpop.f32.mrf.mxu2 }
 0x8bf   :  { %v6425_v48 = vadd.f32 %v6424_v28, %v6376_v56  ;;  %v6473_v4 = vpop.f32.mrf.mxu3  ;;  %6925 = vmatmul.f32.gmra.mxu1 %v6741_v5  ;;  %v6655_v56 = vmax.f32 %v6623_v8, 0.0  ;;  %v6386_v28 = vadd.f32 %v6385_v37, %v6337_v54 }
 0x8c1   :  { %v6474_v22 = vadd.f32 %v6473_v4, %v6425_v48  ;;  %v14979_v4 = vld [vmem:[#allocation28_spill] sm:$0xff] }
 0x8c3   :  { %v6711_v1 = vadd.f32 %v13348_v39, %v6474_v22  ;;  %6996 = vmatmul.f32.gmra.mxu2 %v6648_v33  ;;  %v6625_v33 = vadd.f32 %v13348_v39, %v14979_v4  ;;  %v6388_v6 = vpop.f32.mrf.mxu1 }
 0x8c4   :  { %7061 = vmatmul.f32.gmra.mxu3 %v6649_v47 }
 0x8c5   :  { %v6743_v57 = vmax.f32 %v6711_v1, 0.0  ;;  %v6340_v1 = vadd.f32 %v6339_v18, %v13345_v27  ;;  %v6657_v2 = vmax.f32 %v6625_v33, 0.0  ;;  %v6342_v27 = vadd.f32 %v6341_v62, %v13362_v20 }
 0x8c6   :  { %v6427_v43 = vpop.f32.mrf.mxu2 }
 0x8c7   :  { %v6428_v21 = vadd.f32 %v6427_v43, %v6379_v31  ;;  %v6476_v40 = vpop.f32.mrf.mxu3  ;;  %6928 = vmatmul.f32.gmra.mxu1 %v6743_v57  ;;  %v14980_v57 = vld [vmem:[#allocation120_spill] sm:$0xff]  ;;  %v6389_v36 = vadd.f32 %v6388_v6, %v6340_v1 }
 0x8c8   :  { %v6626_v3 = vadd.f32 %v13083_v45, %v14980_v57  ;;  %v7257_v45 = vld [vmem:[%s13621_s9 + $0x18] sm:$0xff] }
 0x8c9   :  { %v6477_v29 = vadd.f32 %v6476_v40, %v6428_v21  ;;  %v14981_v21 = vld [vmem:[#allocation33_spill] sm:$0xff]  ;;  %7322 = vmatpush.msrb.mxu1 %v7257_v45 }
 0x8ca   :  { %v6627_v40 = vadd.f32 %v13348_v39, %v14981_v21 }
 0x8cb   :  { %v6713_v34 = vadd.f32 %v13348_v39, %v6477_v29  ;;  %6999 = vmatmul.f32.gmra.mxu2 %v6650_v63  ;;  %v6390_v0 = vpop.f32.mrf.mxu1 }
 0x8cc   :  { %7064 = vmatmul.f32.gmra.mxu3 %v6651_v10  ;;  %v6840_v10 = vpop.f32.mrf.mxu0  ;;  %v6659_v50 = vmax.f32 %v6627_v40, 0.0 }
 0x8cd   :  { %v6745_v15 = vmax.f32 %v6713_v34, 0.0  ;;  %v6658_v34 = vmax.f32 %v6626_v3, 0.0 }
 0x8ce   :  { %v6429_v55 = vpop.f32.mrf.mxu2 }
 0x8cf   :  { %v6430_v24 = vadd.f32 %v6429_v55, %v6381_v61  ;;  %v6478_v46 = vpop.f32.mrf.mxu3  ;;  %6931 = vmatmul.f32.gmra.mxu1 %v6745_v15  ;;  %v6391_v61 = vadd.f32 %v6390_v0, %v6342_v27 }
 0x8d1   :  { %v6479_v38 = vadd.f32 %v6478_v46, %v6430_v24 }
 0x8d3   :  { %v6715_v7 = vadd.f32 %v13348_v39, %v6479_v38  ;;  %7002 = vmatmul.f32.gmra.mxu2 %v6652_v23 }
 0x8d4   :  { %7067 = vmatmul.f32.gmra.mxu3 %v6653_v49  ;;  %v6843_v55 = vpop.f32.mrf.mxu0 }
 0x8d5   :  { %v6747_v12 = vmax.f32 %v6715_v7, 0.0 }
 0x8d6   :  { %v6432_v14 = vpop.f32.mrf.mxu2 }
 0x8d7   :  { %v6433_v17 = vadd.f32 %v6432_v14, %v6384_v9  ;;  %v6481_v51 = vpop.f32.mrf.mxu3  ;;  %6934 = vmatmul.f32.gmra.mxu1 %v6747_v12 }
 0x8d9   :  { %v6482_v35 = vadd.f32 %v6481_v51, %v6433_v17 }
 0x8db   :  { %v6717_v5 = vadd.f32 %v13348_v39, %v6482_v35  ;;  %7005 = vmatmul.f32.gmra.mxu2 %v6654_v58 }
 0x8dc   :  { %7070 = vmatmul.f32.gmra.mxu3 %v6655_v56  ;;  %v6846_v38 = vpop.f32.mrf.mxu0  ;;  %v7256_v56 = vld [vmem:[%s13621_s9 + $0x10] sm:$0xff] }
 0x8dd   :  { %v6749_v48 = vmax.f32 %v6717_v5, 0.0  ;;  %7323 = vmatpush.msrb.mxu1 %v7256_v56 }
 0x8de   :  { %v6434_v22 = vpop.f32.mrf.mxu2 }
 0x8df   :  { %v6435_v47 = vadd.f32 %v6434_v22, %v6386_v28  ;;  %v6483_v52 = vpop.f32.mrf.mxu3  ;;  %6937 = vmatmul.f32.gmra.mxu1 %v6749_v48 }
 0x8e1   :  { %v6484_v44 = vadd.f32 %v6483_v52, %v6435_v47 }
 0x8e3   :  { %v6719_v31 = vadd.f32 %v13348_v39, %v6484_v44  ;;  %7008 = vmatmul.f32.gmra.mxu2 %v6656_v25 }
 0x8e4   :  { %7073 = vmatmul.f32.gmra.mxu3 %v6657_v2  ;;  %v6849_v14 = vpop.f32.mrf.mxu0 }
 0x8e5   :  { %v6751_v43 = vmax.f32 %v6719_v31, 0.0 }
 0x8e6   :  { %v6437_v60 = vpop.f32.mrf.mxu2 }
 0x8e7   :  { %v6438_v29 = vadd.f32 %v6437_v60, %v6389_v36  ;;  %v6486_v63 = vpop.f32.mrf.mxu3  ;;  %6940 = vmatmul.f32.gmra.mxu1 %v6751_v43 }
 0x8e9   :  { %v6487_v18 = vadd.f32 %v6486_v63, %v6438_v29 }
 0x8eb   :  { %v6721_v41 = vadd.f32 %v13348_v39, %v6487_v18  ;;  %7011 = vmatmul.f32.gmra.mxu2 %v6658_v34 }
 0x8ec   :  { %7076 = vmatmul.f32.gmra.mxu3 %v6659_v50  ;;  %v6852_v33 = vpop.f32.mrf.mxu0 }
 0x8ed   :  { %v6753_v15 = vmax.f32 %v6721_v41, 0.0 }
 0x8ee   :  { %v6439_v11 = vpop.f32.mrf.mxu2 }
 0x8ef   :  { %v6440_v19 = vadd.f32 %v6439_v11, %v6391_v61  ;;  %v6488_v42 = vpop.f32.mrf.mxu3  ;;  %6943 = vmatmul.f32.gmra.mxu1 %v6753_v15 }
 0x8f1   :  { %v6489_v20 = vadd.f32 %v6488_v42, %v6440_v19  ;;  %v7255_v42 = vld [vmem:[%s13621_s9 + $0x8] sm:$0xff] }
 0x8f2   :  { %7324 = vmatpush.msrb.mxu1 %v7255_v42 }
 0x8f3   :  { %v6723_v24 = vadd.f32 %v13348_v39, %v6489_v20 }
 0x8f4   :  { %v6855_v31 = vpop.f32.mrf.mxu0 }
 0x8f5   :  { %v6755_v46 = vmax.f32 %v6723_v24, 0.0 }
 0x8f6   :  { %v6967_v23 = vpop.f32.mrf.mxu2 }
 0x8f7   :  { %v7032_v30 = vpop.f32.mrf.mxu3  ;;  %6946 = vmatmul.f32.gmra.mxu1 %v6755_v46 }
 0x8fc   :  { %v6902_v49 = vpop.f32.mrf.mxu1 }
 0x8fd   :  { %v6903_v7 = vadd.f32 %v6902_v49, %v6837_v53 }
 0x8fe   :  { %v6970_v62 = vpop.f32.mrf.mxu2 }
 0x8ff   :  { %v6968_v26 = vadd.f32 %v6967_v23, %v6903_v7  ;;  %v7035_v9 = vpop.f32.mrf.mxu3 }
 0x901   :  { %v7033_v12 = vadd.f32 %v7032_v30, %v6968_v26 }
 0x903   :  { %v7084_v16 = vadd.f32 %v13486_v32, %v7033_v12 }
 0x904   :  { %v6905_v8 = vpop.f32.mrf.mxu1 }
 0x905   :  { %v7100_v39 = vmax.f32 %v7084_v16, 0.0  ;;  %v6906_v37 = vadd.f32 %v6905_v8, %v6840_v10  ;;  %v6858_v10 = vpop.f32.mrf.mxu0 }
 0x906   :  { %v6973_v17 = vpop.f32.mrf.mxu2 }
 0x907   :  { %v6971_v51 = vadd.f32 %v6970_v62, %v6906_v37  ;;  %v7038_v54 = vpop.f32.mrf.mxu3  ;;  %9446 = vmatmul.msk.f32.vlgmr.msrb.gmra.mxu0 %vm7124_vm0, %v7100_v39 }
 0x909   :  { %v7036_v35 = vadd.f32 %v7035_v9, %v6971_v51 }
 0x90b   :  { %v7085_v58 = vadd.f32 %v13486_v32, %v7036_v35 }
 0x90c   :  { %v6908_v5 = vpop.f32.mrf.mxu1 }
 0x90d   :  { %v6909_v59 = vadd.f32 %v6908_v5, %v6843_v55  ;;  %v7101_v13 = vmax.f32 %v7085_v58, 0.0  ;;  %v6861_v20 = vpop.f32.mrf.mxu0 }
 0x90e   :  { %v6976_v28 = vpop.f32.mrf.mxu2 }
 0x90f   :  { %v6974_v48 = vadd.f32 %v6973_v17, %v6909_v59  ;;  %v7041_v4 = vpop.f32.mrf.mxu3  ;;  %9447 = vmatmul.msk.f32.gmra.mxu0 %vm7124_vm0, %v7101_v13 }
 0x911   :  { %v7039_v53 = vadd.f32 %v7038_v54, %v6974_v48 }
 0x913   :  { %v7086_v22 = vadd.f32 %v13486_v32, %v7039_v53 }
 0x914   :  { %v6911_v47 = vpop.f32.mrf.mxu1 }
 0x915   :  { %v6912_v52 = vadd.f32 %v6911_v47, %v6846_v38  ;;  %v7102_v6 = vmax.f32 %v7086_v22, 0.0  ;;  %v6864_v12 = vpop.f32.mrf.mxu0 }
 0x916   :  { %v6979_v25 = vpop.f32.mrf.mxu2 }
 0x917   :  { %v6977_v1 = vadd.f32 %v6976_v28, %v6912_v52  ;;  %v7044_v44 = vpop.f32.mrf.mxu3  ;;  %9448 = vmatmul.msk.f32.gmra.mxu0 %vm7124_vm0, %v7102_v6 }
 0x919   :  { %v7042_v2 = vadd.f32 %v7041_v4, %v6977_v1 }
 0x91b   :  { %v7087_v57 = vadd.f32 %v13486_v32, %v7042_v2 }
 0x91c   :  { %v6914_v3 = vpop.f32.mrf.mxu1 }
 0x91d   :  { %v6915_v36 = vadd.f32 %v6914_v3, %v6849_v14  ;;  %v7103_v43 = vmax.f32 %v7087_v57, 0.0  ;;  %v6867_v58 = vpop.f32.mrf.mxu0 }
 0x91e   :  { %v6982_v21 = vpop.f32.mrf.mxu2 }
 0x91f   :  { %v6980_v40 = vadd.f32 %v6979_v25, %v6915_v36  ;;  %v7047_v60 = vpop.f32.mrf.mxu3  ;;  %9449 = vmatmul.msk.f32.gmra.mxu0 %vm7124_vm0, %v7103_v43  ;;  %v7254_v25 = vld [vmem:[%s13621_s9] sm:$0xff] }
 0x920   :  { %7325 = vmatpush.msrb.mxu1 %v7254_v25 }
 0x921   :  { %v7045_v29 = vadd.f32 %v7044_v44, %v6980_v40 }
 0x923   :  { %v7088_v63 = vadd.f32 %v13486_v32, %v7045_v29 }
 0x924   :  { %v6917_v27 = vpop.f32.mrf.mxu1 }
 0x925   :  { %v6918_v18 = vadd.f32 %v6917_v27, %v6852_v33  ;;  %v7104_v34 = vmax.f32 %v7088_v63, 0.0  ;;  %v6870_v22 = vpop.f32.mrf.mxu0 }
 0x926   :  { %v6985_v0 = vpop.f32.mrf.mxu2 }
 0x927   :  { %v6983_v50 = vadd.f32 %v6982_v21, %v6918_v18  ;;  %v7050_v41 = vpop.f32.mrf.mxu3  ;;  %9450 = vmatmul.msk.f32.gmra.mxu0 %vm7124_vm0, %v7104_v34 }
 0x929   :  { %v7048_v45 = vadd.f32 %v7047_v60, %v6983_v50 }
 0x92b   :  { %v7089_v61 = vadd.f32 %v13486_v32, %v7048_v45 }
 0x92c   :  { %v6920_v15 = vpop.f32.mrf.mxu1 }
 0x92d   :  { %v6921_v11 = vadd.f32 %v6920_v15, %v6855_v31  ;;  %v7105_v19 = vmax.f32 %v7089_v61, 0.0  ;;  %v6873_v21 = vpop.f32.mrf.mxu0 }
 0x92e   :  { %v6988_v55 = vpop.f32.mrf.mxu2 }
 0x92f   :  { %v6986_v24 = vadd.f32 %v6985_v0, %v6921_v11  ;;  %v7053_v46 = vpop.f32.mrf.mxu3  ;;  %9451 = vmatmul.msk.f32.gmra.mxu0 %vm7124_vm0, %v7105_v19 }
 0x931   :  { %v7051_v23 = vadd.f32 %v7050_v41, %v6986_v24 }
 0x933   :  { %v7090_v30 = vadd.f32 %v13486_v32, %v7051_v23 }
 0x934   :  { %v6923_v38 = vpop.f32.mrf.mxu1 }
 0x935   :  { %v6924_v49 = vadd.f32 %v6923_v38, %v6858_v10  ;;  %v7106_v7 = vmax.f32 %v7090_v30, 0.0  ;;  %v6876_v50 = vpop.f32.mrf.mxu0 }
 0x936   :  { %v6991_v62 = vpop.f32.mrf.mxu2 }
 0x937   :  { %v6989_v26 = vadd.f32 %v6988_v55, %v6924_v49  ;;  %v7056_v9 = vpop.f32.mrf.mxu3  ;;  %9452 = vmatmul.msk.f32.gmra.mxu0 %vm7124_vm0, %v7106_v7 }
 0x939   :  { %v7054_v16 = vadd.f32 %v7053_v46, %v6989_v26 }
 0x93b   :  { %v7091_v8 = vadd.f32 %v13486_v32, %v7054_v16 }
 0x93c   :  { %v6926_v39 = vpop.f32.mrf.mxu1 }
 0x93d   :  { %v6927_v37 = vadd.f32 %v6926_v39, %v6861_v20  ;;  %v7107_v14 = vmax.f32 %v7091_v8, 0.0  ;;  %v6879_v24 = vpop.f32.mrf.mxu0 }
 0x93e   :  { %v6994_v17 = vpop.f32.mrf.mxu2 }
 0x93f   :  { %v6992_v51 = vadd.f32 %v6991_v62, %v6927_v37  ;;  %v7059_v54 = vpop.f32.mrf.mxu3  ;;  %9453 = vmatmul.msk.f32.gmra.mxu0 %vm7124_vm0, %v7107_v14 }
 0x941   :  { %v7057_v35 = vadd.f32 %v7056_v9, %v6992_v51 }
 0x943   :  { %v7092_v56 = vadd.f32 %v13486_v32, %v7057_v35 }
 0x944   :  { %v6929_v5 = vpop.f32.mrf.mxu1 }
 0x945   :  { %v7108_v59 = vmax.f32 %v7092_v56, 0.0  ;;  %v6930_v13 = vadd.f32 %v6929_v5, %v6864_v12  ;;  %v6882_v12 = vpop.f32.mrf.mxu0 }
 0x946   :  { %v6997_v28 = vpop.f32.mrf.mxu2 }
 0x947   :  { %v6995_v48 = vadd.f32 %v6994_v17, %v6930_v13  ;;  %v7062_v4 = vpop.f32.mrf.mxu3  ;;  %9454 = vmatmul.msk.f32.gmra.mxu0 %vm7124_vm0, %v7108_v59 }
 0x949   :  { %v7060_v33 = vadd.f32 %v7059_v54, %v6995_v48 }
 0x94b   :  { %v7093_v53 = vadd.f32 %v13486_v32, %v7060_v33 }
 0x94c   :  { %v6932_v47 = vpop.f32.mrf.mxu1 }
 0x94d   :  { %v7109_v52 = vmax.f32 %v7093_v53, 0.0  ;;  %v6933_v6 = vadd.f32 %v6932_v47, %v6867_v58  ;;  %v10014_v58 = vld [vmem:[%s13620_s8] ss:$0 sm:$0xff] }
 0x94e   :  { %v7000_v1 = vpop.f32.mrf.mxu2 }
 0x94f   :  { %v6998_v44 = vadd.f32 %v6997_v28, %v6933_v6  ;;  %9455 = vmatmul.msk.f32.gmra.mxu0 %vm7124_vm0, %v7109_v52  ;;  %v7065_v2 = vpop.f32.mrf.mxu3 }
 0x951   :  { %v7063_v31 = vadd.f32 %v7062_v4, %v6998_v44 }
 0x953   :  { %v7094_v57 = vadd.f32 %v13486_v32, %v7063_v31 }
 0x954   :  { %v6935_v3 = vpop.f32.mrf.mxu1 }
 0x955   :  { %v7110_v36 = vmax.f32 %v7094_v57, 0.0  ;;  %v6936_v43 = vadd.f32 %v6935_v3, %v6870_v22 }
 0x956   :  { %v7003_v60 = vpop.f32.mrf.mxu2 }
 0x957   :  { %v7001_v40 = vadd.f32 %v7000_v1, %v6936_v43  ;;  %9456 = vmatmul.msk.f32.gmra.mxu0 %vm7124_vm0, %v7110_v36  ;;  %v7068_v63 = vpop.f32.mrf.mxu3 }
 0x959   :  { %v7066_v29 = vadd.f32 %v7065_v2, %v7001_v40 }
 0x95b   :  { %v7095_v10 = vadd.f32 %v13486_v32, %v7066_v29 }
 0x95c   :  { %v6938_v27 = vpop.f32.mrf.mxu1 }
 0x95d   :  { %v7111_v18 = vmax.f32 %v7095_v10, 0.0  ;;  %v6939_v34 = vadd.f32 %v6938_v27, %v6873_v21 }
 0x95e   :  { %v7006_v45 = vpop.f32.mrf.mxu2 }
 0x95f   :  { %v7004_v0 = vadd.f32 %v7003_v60, %v6939_v34  ;;  %9457 = vmatmul.msk.f32.gmra.mxu0 %vm7124_vm0, %v7111_v18  ;;  %v7071_v15 = vpop.f32.mrf.mxu3 }
 0x961   :  { %v7069_v41 = vadd.f32 %v7068_v63, %v7004_v0 }
 0x963   :  { %v7096_v61 = vadd.f32 %v13486_v32, %v7069_v41 }
 0x964   :  { %v6941_v11 = vpop.f32.mrf.mxu1 }
 0x965   :  { %v7112_v19 = vmax.f32 %v7096_v61, 0.0  ;;  %v6942_v42 = vadd.f32 %v6941_v11, %v6876_v50 }
 0x966   :  { %v7009_v23 = vpop.f32.mrf.mxu2 }
 0x967   :  { %v7007_v20 = vadd.f32 %v7006_v45, %v6942_v42  ;;  %9458 = vmatmul.msk.f32.gmra.mxu0 %vm7124_vm0, %v7112_v19  ;;  %v7074_v7 = vpop.f32.mrf.mxu3 }
 0x969   :  { %v7072_v55 = vadd.f32 %v7071_v15, %v7007_v20 }
 0x96b   :  { %v7097_v46 = vadd.f32 %v13486_v32, %v7072_v55 }
 0x96c   :  { %v6944_v30 = vpop.f32.mrf.mxu1 }
 0x96d   :  { %v7113_v38 = vmax.f32 %v7097_v46, 0.0  ;;  %v6945_v49 = vadd.f32 %v6944_v30, %v6879_v24 }
 0x96e   :  { %v7012_v37 = vpop.f32.mrf.mxu2 }
 0x96f   :  { %v7010_v62 = vadd.f32 %v7009_v23, %v6945_v49  ;;  %9459 = vmatmul.msk.f32.gmra.mxu0 %vm7124_vm0, %v7113_v38  ;;  %v7077_v17 = vpop.f32.mrf.mxu3  ;;  %v10015_v49 = vld [vmem:[#allocation4] ss:$0 sm:$0xff] }
 0x971   :  { %v7075_v26 = vadd.f32 %v7074_v7, %v7010_v62 }
 0x973   :  { %v7098_v9 = vadd.f32 %v13486_v32, %v7075_v26 }
 0x974   :  { %v6947_v16 = vpop.f32.mrf.mxu1 }
 0x975   :  { %v7114_v8 = vmax.f32 %v7098_v9, 0.0  ;;  %v6948_v39 = vadd.f32 %v6947_v16, %v6882_v12 }
 0x977   :  { %v7013_v14 = vadd.f32 %v7012_v37, %v6948_v39  ;;  %9460 = vmatmul.msk.f32.gmra.mxu0 %vm7124_vm0, %v7114_v8 }
 0x979   :  { %v7078_v51 = vadd.f32 %v7077_v17, %v7013_v14 }
 0x97b   :  { %v7099_v54 = vadd.f32 %v13486_v32, %v7078_v51 }
 0x97d   :  { %v7115_v35 = vmax.f32 %v7099_v54, 0.0 }
 0x97f   :  { %9461 = vmatmul.msk.f32.gmra.mxu0 %vm7124_vm0, %v7115_v35 }
 0x984   :  { %v7190_v56 = vpop.f32.mrf.mxu0 }
 0x985   :  { %v7191_v5 = vadd.f32 %v10014_v58, %v7190_v56 }
 0x987   :  { %v7238_v59 = vmax.f32 %v7191_v5, 0.0 }
 0x989   :  { %9462 = vmatmul.msk.f32.vlgmr.msrb.gmra.mxu1 %vm7124_vm0, %v7238_v59 }
 0x98c   :  { %v7193_v13 = vpop.f32.mrf.mxu0 }
 0x98d   :  { %v7194_v28 = vadd.f32 %v10014_v58, %v7193_v13 }
 0x98f   :  { %v7239_v48 = vmax.f32 %v7194_v28, 0.0 }
 0x991   :  { %9463 = vmatmul.msk.f32.gmra.mxu1 %vm7124_vm0, %v7239_v48 }
 0x994   :  { %v7196_v4 = vpop.f32.mrf.mxu0 }
 0x995   :  { %v7197_v33 = vadd.f32 %v10014_v58, %v7196_v4 }
 0x997   :  { %v7240_v32 = vmax.f32 %v7197_v33, 0.0 }
 0x999   :  { %9464 = vmatmul.msk.f32.gmra.mxu1 %vm7124_vm0, %v7240_v32 }
 0x99c   :  { %v7199_v53 = vpop.f32.mrf.mxu0 }
 0x99d   :  { %v7200_v22 = vadd.f32 %v10014_v58, %v7199_v53 }
 0x99f   :  { %v7241_v47 = vmax.f32 %v7200_v22, 0.0 }
 0x9a1   :  { %9465 = vmatmul.msk.f32.gmra.mxu1 %vm7124_vm0, %v7241_v47 }
 0x9a4   :  { %v7202_v52 = vpop.f32.mrf.mxu0 }
 0x9a5   :  { %v7203_v6 = vadd.f32 %v10014_v58, %v7202_v52 }
 0x9a7   :  { %v7242_v25 = vmax.f32 %v7203_v6, 0.0 }
 0x9a9   :  { %9466 = vmatmul.msk.f32.gmra.mxu1 %vm7124_vm0, %v7242_v25 }
 0x9ac   :  { %v7205_v1 = vpop.f32.mrf.mxu0 }
 0x9ad   :  { %v7206_v44 = vadd.f32 %v10014_v58, %v7205_v1 }
 0x9af   :  { %v7243_v2 = vmax.f32 %v7206_v44, 0.0 }
 0x9b1   :  { %9467 = vmatmul.msk.f32.gmra.mxu1 %vm7124_vm0, %v7243_v2 }
 0x9b4   :  { %v7208_v31 = vpop.f32.mrf.mxu0 }
 0x9b5   :  { %v7209_v57 = vadd.f32 %v10014_v58, %v7208_v31 }
 0x9b7   :  { %v7244_v3 = vmax.f32 %v7209_v57, 0.0 }
 0x9b9   :  { %9468 = vmatmul.msk.f32.gmra.mxu1 %vm7124_vm0, %v7244_v3 }
 0x9bc   :  { %v7211_v36 = vpop.f32.mrf.mxu0 }
 0x9bd   :  { %v7212_v43 = vadd.f32 %v10014_v58, %v7211_v36 }
 0x9bf   :  { %v7245_v21 = vmax.f32 %v7212_v43, 0.0 }
 0x9c1   :  { %9469 = vmatmul.msk.f32.gmra.mxu1 %vm7124_vm0, %v7245_v21 }
 0x9c4   :  { %v7214_v40 = vpop.f32.mrf.mxu0 }
 0x9c5   :  { %v7215_v60 = vadd.f32 %v10014_v58, %v7214_v40 }
 0x9c7   :  { %v7246_v29 = vmax.f32 %v7215_v60, 0.0 }
 0x9c9   :  { %9470 = vmatmul.msk.f32.gmra.mxu1 %vm7124_vm0, %v7246_v29 }
 0x9cc   :  { %v7217_v63 = vpop.f32.mrf.mxu0 }
 0x9cd   :  { %v7218_v10 = vadd.f32 %v10014_v58, %v7217_v63 }
 0x9cf   :  { %v7247_v27 = vmax.f32 %v7218_v10, 0.0 }
 0x9d1   :  { %9471 = vmatmul.msk.f32.gmra.mxu1 %vm7124_vm0, %v7247_v27 }
 0x9d4   :  { %v7220_v18 = vpop.f32.mrf.mxu0 }
 0x9d5   :  { %v7221_v34 = vadd.f32 %v10014_v58, %v7220_v18 }
 0x9d7   :  { %v7248_v0 = vmax.f32 %v7221_v34, 0.0 }
 0x9d9   :  { %9472 = vmatmul.msk.f32.gmra.mxu1 %vm7124_vm0, %v7248_v0 }
 0x9dc   :  { %v7223_v50 = vpop.f32.mrf.mxu0 }
 0x9dd   :  { %v7224_v41 = vadd.f32 %v10014_v58, %v7223_v50 }
 0x9df   :  { %v7249_v45 = vmax.f32 %v7224_v41, 0.0 }
 0x9e1   :  { %9473 = vmatmul.msk.f32.gmra.mxu1 %vm7124_vm0, %v7249_v45 }
 0x9e4   :  { %v7226_v61 = vpop.f32.mrf.mxu0 }
 0x9e5   :  { %v7227_v15 = vadd.f32 %v10014_v58, %v7226_v61 }
 0x9e7   :  { %v7250_v11 = vmax.f32 %v7227_v15, 0.0 }
 0x9e9   :  { %9474 = vmatmul.msk.f32.gmra.mxu1 %vm7124_vm0, %v7250_v11 }
 0x9ec   :  { %v7229_v19 = vpop.f32.mrf.mxu0 }
 0x9ed   :  { %v7230_v42 = vadd.f32 %v10014_v58, %v7229_v19 }
 0x9ef   :  { %v7251_v20 = vmax.f32 %v7230_v42, 0.0 }
 0x9f1   :  { %9475 = vmatmul.msk.f32.gmra.mxu1 %vm7124_vm0, %v7251_v20 }
 0x9f4   :  { %v7232_v55 = vpop.f32.mrf.mxu0 }
 0x9f5   :  { %v7233_v24 = vadd.f32 %v10014_v58, %v7232_v55 }
 0x9f7   :  { %v7252_v46 = vmax.f32 %v7233_v24, 0.0 }
 0x9f9   :  { %9476 = vmatmul.msk.f32.gmra.mxu1 %vm7124_vm0, %v7252_v46 }
 0x9fc   :  { %v7235_v23 = vpop.f32.mrf.mxu0 }
 0x9fd   :  { %v7236_v30 = vadd.f32 %v10014_v58, %v7235_v23 }
 0x9ff   :  { %v7253_v38 = vmax.f32 %v7236_v30, 0.0 }
 0xa01   :  { %9477 = vmatmul.msk.f32.gmra.mxu1 %vm7124_vm0, %v7253_v38 }
 0xa06   :  { %v7327_v7 = vpop.f32.mrf.mxu1 }
 0xa07   :  { %v7328_v62 = vadd.f32 %v10015_v49, %v7327_v7 }
 0xa09   :  { %7376 = vst.msk [vmem:[%s13623_s11] sm:$0xff] %vm7375_vm1, %v7328_v62 }
 0xa0e   :  { %v7330_v26 = vpop.f32.mrf.mxu1 }
 0xa0f   :  { %v7331_v9 = vadd.f32 %v10015_v49, %v7330_v26 }
 0xa11   :  { %7377 = vst.msk [vmem:[%s13623_s11 + $0x8] sm:$0xff] %vm7375_vm1, %v7331_v9 }
 0xa16   :  { %v7333_v12 = vpop.f32.mrf.mxu1 }
 0xa17   :  { %v7334_v16 = vadd.f32 %v10015_v49, %v7333_v12 }
 0xa19   :  { %7378 = vst.msk [vmem:[%s13623_s11 + $0x10] sm:$0xff] %vm7375_vm1, %v7334_v16 }
 0xa1e   :  { %v7336_v8 = vpop.f32.mrf.mxu1 }
 0xa1f   :  { %v7337_v39 = vadd.f32 %v10015_v49, %v7336_v8 }
 0xa21   :  { %7379 = vst.msk [vmem:[%s13623_s11 + $0x18] sm:$0xff] %vm7375_vm1, %v7337_v39 }
 0xa26   :  { %v7339_v37 = vpop.f32.mrf.mxu1 }
 0xa27   :  { %v7340_v14 = vadd.f32 %v10015_v49, %v7339_v37 }
 0xa29   :  { %7380 = vst.msk [vmem:[%s13623_s11 + $0x20] sm:$0xff] %vm7375_vm1, %v7340_v14 }
 0xa2e   :  { %v7342_v17 = vpop.f32.mrf.mxu1 }
 0xa2f   :  { %v7343_v51 = vadd.f32 %v10015_v49, %v7342_v17 }
 0xa31   :  { %7381 = vst.msk [vmem:[%s13623_s11 + $0x28] sm:$0xff] %vm7375_vm1, %v7343_v51 }
 0xa36   :  { %v7345_v54 = vpop.f32.mrf.mxu1 }
 0xa37   :  { %v7346_v35 = vadd.f32 %v10015_v49, %v7345_v54 }
 0xa39   :  { %7382 = vst.msk [vmem:[%s13623_s11 + $0x30] sm:$0xff] %vm7375_vm1, %v7346_v35 }
 0xa3e   :  { %v7348_v58 = vpop.f32.mrf.mxu1 }
 0xa3f   :  { %v7349_v56 = vadd.f32 %v10015_v49, %v7348_v58 }
 0xa41   :  { %7383 = vst.msk [vmem:[%s13623_s11 + $0x38] sm:$0xff] %vm7375_vm1, %v7349_v56 }
 0xa46   :  { %v7351_v5 = vpop.f32.mrf.mxu1 }
 0xa47   :  { %v7352_v59 = vadd.f32 %v10015_v49, %v7351_v5 }
 0xa49   :  { %7384 = vst.msk [vmem:[%s13623_s11 + $0x40] sm:$0xff] %vm7375_vm1, %v7352_v59 }
 0xa4e   :  { %v7354_v13 = vpop.f32.mrf.mxu1 }
 0xa4f   :  { %v7355_v28 = vadd.f32 %v10015_v49, %v7354_v13 }
 0xa51   :  { %7385 = vst.msk [vmem:[%s13623_s11 + $0x48] sm:$0xff] %vm7375_vm1, %v7355_v28 }
 0xa56   :  { %v7357_v48 = vpop.f32.mrf.mxu1 }
 0xa57   :  { %v7358_v4 = vadd.f32 %v10015_v49, %v7357_v48 }
 0xa59   :  { %7386 = vst.msk [vmem:[%s13623_s11 + $0x50] sm:$0xff] %vm7375_vm1, %v7358_v4 }
 0xa5e   :  { %v7360_v33 = vpop.f32.mrf.mxu1 }
 0xa5f   :  { %v7361_v32 = vadd.f32 %v10015_v49, %v7360_v33 }
 0xa61   :  { %7387 = vst.msk [vmem:[%s13623_s11 + $0x58] sm:$0xff] %vm7375_vm1, %v7361_v32 }
 0xa66   :  { %v7363_v53 = vpop.f32.mrf.mxu1 }
 0xa67   :  { %v7364_v22 = vadd.f32 %v10015_v49, %v7363_v53 }
 0xa69   :  { %7388 = vst.msk [vmem:[%s13623_s11 + $0x60] sm:$0xff] %vm7375_vm1, %v7364_v22 }
 0xa6e   :  { %v7366_v47 = vpop.f32.mrf.mxu1 }
 0xa6f   :  { %v7367_v52 = vadd.f32 %v10015_v49, %v7366_v47 }
 0xa71   :  { %7389 = vst.msk [vmem:[%s13623_s11 + $0x68] sm:$0xff] %vm7375_vm1, %v7367_v52 }
 0xa76   :  { %v7369_v6 = vpop.f32.mrf.mxu1 }
 0xa77   :  { %v7370_v25 = vadd.f32 %v10015_v49, %v7369_v6 }
 0xa79   :  { %7390 = vst.msk [vmem:[%s13623_s11 + $0x70] sm:$0xff] %vm7375_vm1, %v7370_v25 }
 0xa7e   :  { %v7372_v1 = vpop.f32.mrf.mxu1 }
 0xa7f   :  { %v7373_v44 = vadd.f32 %v10015_v49, %v7372_v1 }
 0xa81   :  { %7391 = vst.msk [vmem:[%s13623_s11 + $0x78] sm:$0xff] %vm7375_vm1, %v7373_v44 }
 0xa82   :  { %7396 = vsyncpa [#allocation6], 1 }
 0xa83   :  { %7397 = vsyncpa [#allocation8], 1 }

</bundles_post_ra>
